<compile_context>
chip_gen: v7x
topology: tpu7x:2x2x1
jax: 0.10.0
libtpu: 0.0.40
codegen_flags: <defaults>
</compile_context>

<pallas_src>
import jax
import jax.numpy as jnp
from jax.experimental import pallas as pl
from jax.experimental.pallas import tpu as pltpu


LANES = 128        # fixed working lane width: whole sequence lives in 1 vreg row
N_BLOCKS = 6

# ----------------------------------------------------------------------------
# Packed parameter layout (flat f32 vector living in SMEM)
# ----------------------------------------------------------------------------
UP_N, DR_N, CZ_N, RC_N = 27, 18, 18, 16
UP_OFF = 0
DR_OFF = UP_OFF + UP_N * N_BLOCKS                 # 162
CZ_OFF = DR_OFF + DR_N * N_BLOCKS                 # 270
RC_OFF = CZ_OFF + CZ_N * (N_BLOCKS - 1)           # 360
P_TOTAL = RC_OFF + RC_N                           # 376

# BN gamma/beta positions inside each per-block vector (PyTorch init: 1 / 0)
UP_G, UP_B = (18, 19, 25), (20, 21, 26)
DR_G, DR_B = (0, 4, 12, 16), (1, 5, 13, 17)
CZ_G, CZ_B = (8,), (9,)
RC_G, RC_B = (8,), (9,)


# ----------------------------------------------------------------------------
# In-kernel math helpers (all operate on (B, LANES) register tiles whose
# invalid tail lanes are exactly zero; every helper re-establishes that
# invariant on its output)
# ----------------------------------------------------------------------------
def _sigmoid(x):
    # exact sigmoid via tanh: one EUP transcendental + two VPU ops
    return 0.5 + 0.5 * jnp.tanh(0.5 * x)


def _swish(x):
    # swish(0) == 0, so a zero tail stays zero
    return x * _sigmoid(x)


def _roll(x, shift):
    # circular lane rotation on the XLU; shift normalized to [0, LANES)
    return pltpu.roll(x, shift % LANES, axis=1)


def _bn(x, n_valid, mask, gamma, beta, eps=1e-5):
    """BatchNorm1d (training mode, single channel) over the valid lanes.

    `x` has an exactly-zero tail, so full-tile reductions equal reductions
    over the `n_valid` valid elements.  The two reductions are issued
    back-to-back so their trees can interleave on the XLU units.
    """
    s = jnp.sum(x)
    ss = jnp.sum(x * x)
    inv_n = 1.0 / float(n_valid)
    mean = s * inv_n
    var = jnp.maximum(ss * inv_n - mean * mean, 0.0)   # single-pass, clamped
    y = gamma * (x - mean) * jax.lax.rsqrt(var + eps) + beta
    return jnp.where(mask, y, 0.0)


def _conv_same(x, ws, bias, pad, mask):
    """Single-channel 'same' Conv1d (kernel 2*pad+1, zero padding), in-register.

    Shifted taps come from circular lane rolls; the zero tail of `x` supplies
    the zero padding, and the output is re-masked to keep the tail zero.
    """
    acc = ws[pad] * x
    for j in range(2 * pad + 1):
        if j != pad:
            acc = acc + ws[j] * _roll(x, pad - j)
    return jnp.where(mask, acc + bias, 0.0)


def _residual_block_1ch(x, p, n_valid, mask):
    """ResidualBlock(dim=1): conv(k5,p2) -> conv(k1) -> BN -> Swish -> conv(k3,p1);
    out = x + 0.1 * seq(x).  `p(k)` reads the k-th packed scalar."""
    a = _conv_same(x, [p(t) for t in range(5)], p(5), 2, mask)
    a = jnp.where(mask, p(6) * a + p(7), 0.0)
    a = _swish(_bn(a, n_valid, mask, p(8), p(9)))
    c = _conv_same(a, [p(10 + t) for t in range(3)], p(13), 1, mask)
    return x + 0.1 * c


# ----------------------------------------------------------------------------
# Fused decoder kernel (statically unrolled over the 6 blocks)
# ----------------------------------------------------------------------------
def _make_decoder_kernel(B, L0):
    def kernel(z_ref, eps_ref, p_ref, xhat_ref, xsig_ref):
        def p(i):
            return p_ref[i]                 # scalar SMEM read (static index)

        lane = jax.lax.broadcasted_iota(jnp.int32, (B, LANES), 1)

        z = z_ref[...]                                   # (B, LANES), zero tail
        dec = jnp.zeros((B, LANES), jnp.float32)         # decoder_out init

        for i in range(N_BLOCKS):
            Lin = L0 + 8 * i
            up = UP_OFF + UP_N * i

            # ---- UpsamplingConvBlock(2->2->2->2->1); each k=1/pad=1 conv grows L by 2
            m = lane < (Lin + 2)
            d_s, z_s = _roll(dec, 1), _roll(z, 1)
            h0 = jnp.where(m, p(up + 0) * d_s + p(up + 1) * z_s + p(up + 4), 0.0)
            h1 = jnp.where(m, p(up + 2) * d_s + p(up + 3) * z_s + p(up + 5), 0.0)

            m = lane < (Lin + 4)
            h0s, h1s = _roll(h0, 1), _roll(h1, 1)
            g0 = jnp.where(m, p(up + 6) * h0s + p(up + 7) * h1s + p(up + 10), 0.0)
            g1 = jnp.where(m, p(up + 8) * h0s + p(up + 9) * h1s + p(up + 11), 0.0)

            m = lane < (Lin + 6)
            g0s, g1s = _roll(g0, 1), _roll(g1, 1)
            t0 = jnp.where(m, p(up + 12) * g0s + p(up + 13) * g1s + p(up + 16), 0.0)
            t1 = jnp.where(m, p(up + 14) * g0s + p(up + 15) * g1s + p(up + 17), 0.0)

            n6 = B * (Lin + 6)
            y0 = _swish(_bn(t0, n6, m, p(up + 18), p(up + 20)))   # BN(2ch) + Swish
            y1 = _swish(_bn(t1, n6, m, p(up + 19), p(up + 21)))

            L = Lin + 8
            m = lane < L
            y0s, y1s = _roll(y0, 1), _roll(y1, 1)
            o = jnp.where(m, p(up + 22) * y0s + p(up + 23) * y1s + p(up + 24), 0.0)
            nL = B * L
            h = _swish(_bn(o, nL, m, p(up + 25), p(up + 26)))     # (B, LANES), valid [0, L)

            # ---- DecoderResidualBlock(1) ------------------------------------
            dr = DR_OFF + DR_N * i
            a = _bn(h, nL, m, p(dr + 0), p(dr + 1))
            a = jnp.where(m, p(dr + 2) * a + p(dr + 3), 0.0)
            a = _swish(_bn(a, nL, m, p(dr + 4), p(dr + 5)))
            c = _conv_same(a, [p(dr + 6 + t) for t in range(5)], p(dr + 11), 2, m)
            c = _swish(_bn(c, nL, m, p(dr + 12), p(dr + 13)))
            c = jnp.where(m, p(dr + 14) * c + p(dr + 15), 0.0)
            c = _bn(c, nL, m, p(dr + 16), p(dr + 17))
            dec = h + 0.1 * c

            if i == N_BLOCKS - 1:
                break

            # ---- condition_z[i] + reparameterize (mode='random') ------------
            cz = CZ_OFF + CZ_N * i
            r = _swish(_residual_block_1ch(dec, lambda k, cz=cz: p(cz + k), nL, m))
            mu = p(cz + 14) * r + p(cz + 16)
            log_var = p(cz + 15) * r + p(cz + 17)
            z = jnp.where(m, mu + jnp.exp(0.5 * log_var) * eps_ref[i], 0.0)

        # ---- recon: ResidualBlock(1) -> Conv1d(1,1,k=1); plus sigmoid(recon) --
        Lf = L0 + 8 * N_BLOCKS
        mf = lane < Lf
        r = _residual_block_1ch(dec, lambda k: p(RC_OFF + k), B * Lf, mf)
        xh = jnp.where(mf, p(RC_OFF + 14) * r + p(RC_OFF + 15), 0.0)
        xhat_ref[...] = xh                 # lane-dense (B, 128) stores
        xsig_ref[...] = _sigmoid(xh)

    return kernel


# ----------------------------------------------------------------------------
# Wrapper: one grid-less pallas_call for the whole forward
# ----------------------------------------------------------------------------
def decoder_forward(z, eps, params_vec):
    B, D, L0 = z.shape                  # D == z_dim == 1
    assert D == 1, "the reference module is only shape-consistent for z_dim == 1"
    Lmax = L0 + 8 * N_BLOCKS
    assert Lmax + 2 <= LANES, "whole sequence must fit inside one 128-lane tile"
    assert eps.shape == (N_BLOCKS - 1, B, LANES)
    assert params_vec.shape == (P_TOTAL,)

    # lane-dense (B, 128) tile for z; zero tail beyond L0
    z_tile = jnp.zeros((B, LANES), jnp.float32).at[:, :L0].set(
        z[:, 0, :].astype(jnp.float32))

    xh, xsig = pl.pallas_call(
        _make_decoder_kernel(B, L0),
        out_shape=(jax.ShapeDtypeStruct((B, LANES), jnp.float32),
                   jax.ShapeDtypeStruct((B, LANES), jnp.float32)),
        in_specs=[pl.BlockSpec(memory_space=pltpu.MemorySpace.VMEM),   # z tile
                  pl.BlockSpec(memory_space=pltpu.MemorySpace.VMEM),   # eps stack
                  pl.BlockSpec(memory_space=pltpu.MemorySpace.SMEM)],  # packed params
        out_specs=(pl.BlockSpec(memory_space=pltpu.MemorySpace.VMEM),
                   pl.BlockSpec(memory_space=pltpu.MemorySpace.VMEM)),
    )(z_tile, eps, params_vec)

    x_hat = xh[:, :Lmax].reshape(B, 1, Lmax)
    x_hat_sigmoid = xsig[:, :Lmax].reshape(B, 1, Lmax)
    return x_hat, x_hat_sigmoid, []     # xs=None, mode='random' -> no KL terms


decoder_forward_jit = jax.jit(decoder_forward)


# ----------------------------------------------------------------------------
# Deterministic synthetic parameter initialization
# ----------------------------------------------------------------------------
def _param_vec(key, n, gamma_idx, beta_idx, scale=0.3):
    v = scale * jax.random.normal(key, (n,), dtype=jnp.float32)
    if gamma_idx:
        v = v.at[jnp.asarray(gamma_idx)].set(1.0)   # BN weight init (PyTorch)
    if beta_idx:
        v = v.at[jnp.asarray(beta_idx)].set(0.0)    # BN bias init (PyTorch)
    return v


def init_decoder_params(key):
    ks = jax.random.split(key, 18)
    ups = [_param_vec(ks[i], UP_N, UP_G, UP_B) for i in range(N_BLOCKS)]
    drs = [_param_vec(ks[6 + i], DR_N, DR_G, DR_B) for i in range(N_BLOCKS)]
    czs = [_param_vec(ks[12 + i], CZ_N, CZ_G, CZ_B) for i in range(N_BLOCKS - 1)]
    rc = _param_vec(ks[17], RC_N, RC_G, RC_B)
    # TODO(synk): condition_xz params (posterior path, xs is not None) and the
    # mode='fix' / freeze_level cached-z branch are not part of the default
    # forward and are not implemented here.
    flat = jnp.concatenate(ups + drs + czs + [rc])
    assert flat.shape == (P_TOTAL,)
    return flat


# ----------------------------------------------------------------------------
# Main
# ----------------------------------------------------------------------------
if __name__ == "__main__":
    key = jax.random.PRNGKey(0)
    B, z_dim, L0 = 8, 1, 16          # B=8 fills the f32 sublanes of a vreg
    Lmax = L0 + 8 * N_BLOCKS         # 64

    z = jax.random.normal(jax.random.fold_in(key, 999), (B, z_dim, L0),
                          dtype=jnp.float32)
    params_vec = init_decoder_params(jax.random.fold_in(key, 1))
    # all 5 reparameterization noises generated once, lane-dense, sliced by mask
    eps = jax.random.normal(jax.random.fold_in(key, 2),
                            (N_BLOCKS - 1, B, LANES), dtype=jnp.float32)

    x_hat, x_hat_sigmoid, kls = decoder_forward_jit(z, eps, params_vec)
    jax.block_until_ready((x_hat, x_hat_sigmoid))

    assert x_hat.shape == (B, 1, Lmax)
    assert x_hat_sigmoid.shape == (B, 1, Lmax)
    assert kls == []
    assert bool(jnp.all(jnp.isfinite(x_hat)))
    assert bool(jnp.all(jnp.isfinite(x_hat_sigmoid)))
    print("KERNEL_OK")
</pallas_src>

<mosaic_0001>
module attributes {stable_mosaic.version = 11 : i64} {
  func.func @kernel(%arg0: memref<8x128xf32, #tpu.memory_space<vmem>>, %arg1: memref<5x8x128xf32, #tpu.memory_space<vmem>>, %arg2: memref<376xf32, #tpu.memory_space<smem>>, %arg3: memref<8x128xf32, #tpu.memory_space<vmem>>, %arg4: memref<8x128xf32, #tpu.memory_space<vmem>>) attributes {dimension_semantics = [], scalar_prefetch = 0 : i64, scratch_operands = 0 : i64, tpu.core_type = #tpu.core_type<tc>} {
    %0 = tpu.iota {dimensions = array<i32: 1>} : vector<8x128xi32>
    %c0 = arith.constant 0 : index
    %c0_0 = arith.constant 0 : index
    %1 = vector.load %arg0[%c0, %c0_0] : memref<8x128xf32, #tpu.memory_space<vmem>>, vector<8x128xf32>
    %cst = arith.constant 0.000000e+00 : f32
    %2 = vector.broadcast %cst : f32 to vector<8x128xf32>
    %c18_i32 = arith.constant 18 : i32
    %3 = vector.broadcast %c18_i32 : i32 to vector<8x128xi32>
    %4 = arith.cmpi slt, %0, %3 : vector<8x128xi32>
    %c1_i32 = arith.constant 1 : i32
    %5 = tpu.dynamic_rotate %2 by %c1_i32 dim 1 : vector<8x128xf32>, i32 -> vector<8x128xf32>
    %c1_i32_1 = arith.constant 1 : i32
    %6 = tpu.dynamic_rotate %1 by %c1_i32_1 dim 1 : vector<8x128xf32>, i32 -> vector<8x128xf32>
    %c0_2 = arith.constant 0 : index
    %7 = memref.load %arg2[%c0_2] : memref<376xf32, #tpu.memory_space<smem>>
    %8 = vector.broadcast %7 : f32 to vector<8x128xf32>
    %9 = arith.mulf %8, %5 : vector<8x128xf32>
    %c1 = arith.constant 1 : index
    %10 = memref.load %arg2[%c1] : memref<376xf32, #tpu.memory_space<smem>>
    %11 = vector.broadcast %10 : f32 to vector<8x128xf32>
    %12 = arith.mulf %11, %6 : vector<8x128xf32>
    %13 = arith.addf %9, %12 : vector<8x128xf32>
    %c4 = arith.constant 4 : index
    %14 = memref.load %arg2[%c4] : memref<376xf32, #tpu.memory_space<smem>>
    %15 = vector.broadcast %14 : f32 to vector<8x128xf32>
    %16 = arith.addf %13, %15 : vector<8x128xf32>
    %cst_3 = arith.constant 0.000000e+00 : f32
    %17 = vector.broadcast %cst_3 : f32 to vector<8x128xf32>
    %18 = arith.select %4, %16, %17 : vector<8x128xi1>, vector<8x128xf32>
    %c2 = arith.constant 2 : index
    %19 = memref.load %arg2[%c2] : memref<376xf32, #tpu.memory_space<smem>>
    %20 = vector.broadcast %19 : f32 to vector<8x128xf32>
    %21 = arith.mulf %20, %5 : vector<8x128xf32>
    %c3 = arith.constant 3 : index
    %22 = memref.load %arg2[%c3] : memref<376xf32, #tpu.memory_space<smem>>
    %23 = vector.broadcast %22 : f32 to vector<8x128xf32>
    %24 = arith.mulf %23, %6 : vector<8x128xf32>
    %25 = arith.addf %21, %24 : vector<8x128xf32>
    %c5 = arith.constant 5 : index
    %26 = memref.load %arg2[%c5] : memref<376xf32, #tpu.memory_space<smem>>
    %27 = vector.broadcast %26 : f32 to vector<8x128xf32>
    %28 = arith.addf %25, %27 : vector<8x128xf32>
    %cst_4 = arith.constant 0.000000e+00 : f32
    %29 = vector.broadcast %cst_4 : f32 to vector<8x128xf32>
    %30 = arith.select %4, %28, %29 : vector<8x128xi1>, vector<8x128xf32>
    %c20_i32 = arith.constant 20 : i32
    %31 = vector.broadcast %c20_i32 : i32 to vector<8x128xi32>
    %32 = arith.cmpi slt, %0, %31 : vector<8x128xi32>
    %c1_i32_5 = arith.constant 1 : i32
    %33 = tpu.dynamic_rotate %18 by %c1_i32_5 dim 1 : vector<8x128xf32>, i32 -> vector<8x128xf32>
    %c1_i32_6 = arith.constant 1 : i32
    %34 = tpu.dynamic_rotate %30 by %c1_i32_6 dim 1 : vector<8x128xf32>, i32 -> vector<8x128xf32>
    %c6 = arith.constant 6 : index
    %35 = memref.load %arg2[%c6] : memref<376xf32, #tpu.memory_space<smem>>
    %36 = vector.broadcast %35 : f32 to vector<8x128xf32>
    %37 = arith.mulf %36, %33 : vector<8x128xf32>
    %c7 = arith.constant 7 : index
    %38 = memref.load %arg2[%c7] : memref<376xf32, #tpu.memory_space<smem>>
    %39 = vector.broadcast %38 : f32 to vector<8x128xf32>
    %40 = arith.mulf %39, %34 : vector<8x128xf32>
    %41 = arith.addf %37, %40 : vector<8x128xf32>
    %c10 = arith.constant 10 : index
    %42 = memref.load %arg2[%c10] : memref<376xf32, #tpu.memory_space<smem>>
    %43 = vector.broadcast %42 : f32 to vector<8x128xf32>
    %44 = arith.addf %41, %43 : vector<8x128xf32>
    %cst_7 = arith.constant 0.000000e+00 : f32
    %45 = vector.broadcast %cst_7 : f32 to vector<8x128xf32>
    %46 = arith.select %32, %44, %45 : vector<8x128xi1>, vector<8x128xf32>
    %c8 = arith.constant 8 : index
    %47 = memref.load %arg2[%c8] : memref<376xf32, #tpu.memory_space<smem>>
    %48 = vector.broadcast %47 : f32 to vector<8x128xf32>
    %49 = arith.mulf %48, %33 : vector<8x128xf32>
    %c9 = arith.constant 9 : index
    %50 = memref.load %arg2[%c9] : memref<376xf32, #tpu.memory_space<smem>>
    %51 = vector.broadcast %50 : f32 to vector<8x128xf32>
    %52 = arith.mulf %51, %34 : vector<8x128xf32>
    %53 = arith.addf %49, %52 : vector<8x128xf32>
    %c11 = arith.constant 11 : index
    %54 = memref.load %arg2[%c11] : memref<376xf32, #tpu.memory_space<smem>>
    %55 = vector.broadcast %54 : f32 to vector<8x128xf32>
    %56 = arith.addf %53, %55 : vector<8x128xf32>
    %cst_8 = arith.constant 0.000000e+00 : f32
    %57 = vector.broadcast %cst_8 : f32 to vector<8x128xf32>
    %58 = arith.select %32, %56, %57 : vector<8x128xi1>, vector<8x128xf32>
    %c22_i32 = arith.constant 22 : i32
    %59 = vector.broadcast %c22_i32 : i32 to vector<8x128xi32>
    %60 = arith.cmpi slt, %0, %59 : vector<8x128xi32>
    %c1_i32_9 = arith.constant 1 : i32
    %61 = tpu.dynamic_rotate %46 by %c1_i32_9 dim 1 : vector<8x128xf32>, i32 -> vector<8x128xf32>
    %c1_i32_10 = arith.constant 1 : i32
    %62 = tpu.dynamic_rotate %58 by %c1_i32_10 dim 1 : vector<8x128xf32>, i32 -> vector<8x128xf32>
    %c12 = arith.constant 12 : index
    %63 = memref.load %arg2[%c12] : memref<376xf32, #tpu.memory_space<smem>>
    %64 = vector.broadcast %63 : f32 to vector<8x128xf32>
    %65 = arith.mulf %64, %61 : vector<8x128xf32>
    %c13 = arith.constant 13 : index
    %66 = memref.load %arg2[%c13] : memref<376xf32, #tpu.memory_space<smem>>
    %67 = vector.broadcast %66 : f32 to vector<8x128xf32>
    %68 = arith.mulf %67, %62 : vector<8x128xf32>
    %69 = arith.addf %65, %68 : vector<8x128xf32>
    %c16 = arith.constant 16 : index
    %70 = memref.load %arg2[%c16] : memref<376xf32, #tpu.memory_space<smem>>
    %71 = vector.broadcast %70 : f32 to vector<8x128xf32>
    %72 = arith.addf %69, %71 : vector<8x128xf32>
    %cst_11 = arith.constant 0.000000e+00 : f32
    %73 = vector.broadcast %cst_11 : f32 to vector<8x128xf32>
    %74 = arith.select %60, %72, %73 : vector<8x128xi1>, vector<8x128xf32>
    %c14 = arith.constant 14 : index
    %75 = memref.load %arg2[%c14] : memref<376xf32, #tpu.memory_space<smem>>
    %76 = vector.broadcast %75 : f32 to vector<8x128xf32>
    %77 = arith.mulf %76, %61 : vector<8x128xf32>
    %c15 = arith.constant 15 : index
    %78 = memref.load %arg2[%c15] : memref<376xf32, #tpu.memory_space<smem>>
    %79 = vector.broadcast %78 : f32 to vector<8x128xf32>
    %80 = arith.mulf %79, %62 : vector<8x128xf32>
    %81 = arith.addf %77, %80 : vector<8x128xf32>
    %c17 = arith.constant 17 : index
    %82 = memref.load %arg2[%c17] : memref<376xf32, #tpu.memory_space<smem>>
    %83 = vector.broadcast %82 : f32 to vector<8x128xf32>
    %84 = arith.addf %81, %83 : vector<8x128xf32>
    %cst_12 = arith.constant 0.000000e+00 : f32
    %85 = vector.broadcast %cst_12 : f32 to vector<8x128xf32>
    %86 = arith.select %60, %84, %85 : vector<8x128xi1>, vector<8x128xf32>
    %c18 = arith.constant 18 : index
    %87 = memref.load %arg2[%c18] : memref<376xf32, #tpu.memory_space<smem>>
    %c20 = arith.constant 20 : index
    %88 = memref.load %arg2[%c20] : memref<376xf32, #tpu.memory_space<smem>>
    %89 = vector.shape_cast %74 : vector<8x128xf32> to vector<1x8x128xf32>
    %cst_13 = arith.constant dense<0.000000e+00> : vector<1xf32>
    %90 = vector.multi_reduction <add>, %89, %cst_13 [1, 2] : vector<1x8x128xf32> to vector<1xf32>
    %91 = vector.shape_cast %90 : vector<1xf32> to vector<1x1x1xf32>
    %92 = vector.extract %91[0, 0, 0] : f32 from vector<1x1x1xf32>
    %93 = arith.mulf %74, %74 : vector<8x128xf32>
    %94 = vector.shape_cast %93 : vector<8x128xf32> to vector<1x8x128xf32>
    %cst_14 = arith.constant dense<0.000000e+00> : vector<1xf32>
    %95 = vector.multi_reduction <add>, %94, %cst_14 [1, 2] : vector<1x8x128xf32> to vector<1xf32>
    %96 = vector.shape_cast %95 : vector<1xf32> to vector<1x1x1xf32>
    %97 = vector.extract %96[0, 0, 0] : f32 from vector<1x1x1xf32>
    %cst_15 = arith.constant 0.00568181835 : f32
    %98 = arith.mulf %92, %cst_15 : f32
    %cst_16 = arith.constant 0.00568181835 : f32
    %99 = arith.mulf %97, %cst_16 : f32
    %100 = arith.mulf %98, %98 : f32
    %101 = arith.subf %99, %100 : f32
    %cst_17 = arith.constant 0.000000e+00 : f32
    %102 = arith.maximumf %101, %cst_17 : f32
    %103 = vector.broadcast %98 : f32 to vector<8x128xf32>
    %104 = arith.subf %74, %103 : vector<8x128xf32>
    %105 = vector.broadcast %87 : f32 to vector<8x128xf32>
    %106 = arith.mulf %105, %104 : vector<8x128xf32>
    %cst_18 = arith.constant 9.99999974E-6 : f32
    %107 = arith.addf %102, %cst_18 : f32
    %108 = math.rsqrt %107 : f32
    %109 = vector.broadcast %108 : f32 to vector<8x128xf32>
    %110 = arith.mulf %106, %109 : vector<8x128xf32>
    %111 = vector.broadcast %88 : f32 to vector<8x128xf32>
    %112 = arith.addf %110, %111 : vector<8x128xf32>
    %cst_19 = arith.constant 0.000000e+00 : f32
    %113 = vector.broadcast %cst_19 : f32 to vector<8x128xf32>
    %114 = arith.select %60, %112, %113 : vector<8x128xi1>, vector<8x128xf32>
    %cst_20 = arith.constant 5.000000e-01 : f32
    %115 = vector.broadcast %cst_20 : f32 to vector<8x128xf32>
    %116 = arith.mulf %115, %114 : vector<8x128xf32>
    %117 = math.tanh %116 : vector<8x128xf32>
    %cst_21 = arith.constant 5.000000e-01 : f32
    %118 = vector.broadcast %cst_21 : f32 to vector<8x128xf32>
    %119 = arith.mulf %118, %117 : vector<8x128xf32>
    %cst_22 = arith.constant 5.000000e-01 : f32
    %120 = vector.broadcast %cst_22 : f32 to vector<8x128xf32>
    %121 = arith.addf %120, %119 : vector<8x128xf32>
    %122 = arith.mulf %114, %121 : vector<8x128xf32>
    %c19 = arith.constant 19 : index
    %123 = memref.load %arg2[%c19] : memref<376xf32, #tpu.memory_space<smem>>
    %c21 = arith.constant 21 : index
    %124 = memref.load %arg2[%c21] : memref<376xf32, #tpu.memory_space<smem>>
    %125 = vector.shape_cast %86 : vector<8x128xf32> to vector<1x8x128xf32>
    %cst_23 = arith.constant dense<0.000000e+00> : vector<1xf32>
    %126 = vector.multi_reduction <add>, %125, %cst_23 [1, 2] : vector<1x8x128xf32> to vector<1xf32>
    %127 = vector.shape_cast %126 : vector<1xf32> to vector<1x1x1xf32>
    %128 = vector.extract %127[0, 0, 0] : f32 from vector<1x1x1xf32>
    %129 = arith.mulf %86, %86 : vector<8x128xf32>
    %130 = vector.shape_cast %129 : vector<8x128xf32> to vector<1x8x128xf32>
    %cst_24 = arith.constant dense<0.000000e+00> : vector<1xf32>
    %131 = vector.multi_reduction <add>, %130, %cst_24 [1, 2] : vector<1x8x128xf32> to vector<1xf32>
    %132 = vector.shape_cast %131 : vector<1xf32> to vector<1x1x1xf32>
    %133 = vector.extract %132[0, 0, 0] : f32 from vector<1x1x1xf32>
    %cst_25 = arith.constant 0.00568181835 : f32
    %134 = arith.mulf %128, %cst_25 : f32
    %cst_26 = arith.constant 0.00568181835 : f32
    %135 = arith.mulf %133, %cst_26 : f32
    %136 = arith.mulf %134, %134 : f32
    %137 = arith.subf %135, %136 : f32
    %cst_27 = arith.constant 0.000000e+00 : f32
    %138 = arith.maximumf %137, %cst_27 : f32
    %139 = vector.broadcast %134 : f32 to vector<8x128xf32>
    %140 = arith.subf %86, %139 : vector<8x128xf32>
    %141 = vector.broadcast %123 : f32 to vector<8x128xf32>
    %142 = arith.mulf %141, %140 : vector<8x128xf32>
    %cst_28 = arith.constant 9.99999974E-6 : f32
    %143 = arith.addf %138, %cst_28 : f32
    %144 = math.rsqrt %143 : f32
    %145 = vector.broadcast %144 : f32 to vector<8x128xf32>
    %146 = arith.mulf %142, %145 : vector<8x128xf32>
    %147 = vector.broadcast %124 : f32 to vector<8x128xf32>
    %148 = arith.addf %146, %147 : vector<8x128xf32>
    %cst_29 = arith.constant 0.000000e+00 : f32
    %149 = vector.broadcast %cst_29 : f32 to vector<8x128xf32>
    %150 = arith.select %60, %148, %149 : vector<8x128xi1>, vector<8x128xf32>
    %cst_30 = arith.constant 5.000000e-01 : f32
    %151 = vector.broadcast %cst_30 : f32 to vector<8x128xf32>
    %152 = arith.mulf %151, %150 : vector<8x128xf32>
    %153 = math.tanh %152 : vector<8x128xf32>
    %cst_31 = arith.constant 5.000000e-01 : f32
    %154 = vector.broadcast %cst_31 : f32 to vector<8x128xf32>
    %155 = arith.mulf %154, %153 : vector<8x128xf32>
    %cst_32 = arith.constant 5.000000e-01 : f32
    %156 = vector.broadcast %cst_32 : f32 to vector<8x128xf32>
    %157 = arith.addf %156, %155 : vector<8x128xf32>
    %158 = arith.mulf %150, %157 : vector<8x128xf32>
    %c24_i32 = arith.constant 24 : i32
    %159 = vector.broadcast %c24_i32 : i32 to vector<8x128xi32>
    %160 = arith.cmpi slt, %0, %159 : vector<8x128xi32>
    %c1_i32_33 = arith.constant 1 : i32
    %161 = tpu.dynamic_rotate %122 by %c1_i32_33 dim 1 : vector<8x128xf32>, i32 -> vector<8x128xf32>
    %c1_i32_34 = arith.constant 1 : i32
    %162 = tpu.dynamic_rotate %158 by %c1_i32_34 dim 1 : vector<8x128xf32>, i32 -> vector<8x128xf32>
    %c22 = arith.constant 22 : index
    %163 = memref.load %arg2[%c22] : memref<376xf32, #tpu.memory_space<smem>>
    %164 = vector.broadcast %163 : f32 to vector<8x128xf32>
    %165 = arith.mulf %164, %161 : vector<8x128xf32>
    %c23 = arith.constant 23 : index
    %166 = memref.load %arg2[%c23] : memref<376xf32, #tpu.memory_space<smem>>
    %167 = vector.broadcast %166 : f32 to vector<8x128xf32>
    %168 = arith.mulf %167, %162 : vector<8x128xf32>
    %169 = arith.addf %165, %168 : vector<8x128xf32>
    %c24 = arith.constant 24 : index
    %170 = memref.load %arg2[%c24] : memref<376xf32, #tpu.memory_space<smem>>
    %171 = vector.broadcast %170 : f32 to vector<8x128xf32>
    %172 = arith.addf %169, %171 : vector<8x128xf32>
    %cst_35 = arith.constant 0.000000e+00 : f32
    %173 = vector.broadcast %cst_35 : f32 to vector<8x128xf32>
    %174 = arith.select %160, %172, %173 : vector<8x128xi1>, vector<8x128xf32>
    %c25 = arith.constant 25 : index
    %175 = memref.load %arg2[%c25] : memref<376xf32, #tpu.memory_space<smem>>
    %c26 = arith.constant 26 : index
    %176 = memref.load %arg2[%c26] : memref<376xf32, #tpu.memory_space<smem>>
    %177 = vector.shape_cast %174 : vector<8x128xf32> to vector<1x8x128xf32>
    %cst_36 = arith.constant dense<0.000000e+00> : vector<1xf32>
    %178 = vector.multi_reduction <add>, %177, %cst_36 [1, 2] : vector<1x8x128xf32> to vector<1xf32>
    %179 = vector.shape_cast %178 : vector<1xf32> to vector<1x1x1xf32>
    %180 = vector.extract %179[0, 0, 0] : f32 from vector<1x1x1xf32>
    %181 = arith.mulf %174, %174 : vector<8x128xf32>
    %182 = vector.shape_cast %181 : vector<8x128xf32> to vector<1x8x128xf32>
    %cst_37 = arith.constant dense<0.000000e+00> : vector<1xf32>
    %183 = vector.multi_reduction <add>, %182, %cst_37 [1, 2] : vector<1x8x128xf32> to vector<1xf32>
    %184 = vector.shape_cast %183 : vector<1xf32> to vector<1x1x1xf32>
    %185 = vector.extract %184[0, 0, 0] : f32 from vector<1x1x1xf32>
    %cst_38 = arith.constant 0.00520833349 : f32
    %186 = arith.mulf %180, %cst_38 : f32
    %cst_39 = arith.constant 0.00520833349 : f32
    %187 = arith.mulf %185, %cst_39 : f32
    %188 = arith.mulf %186, %186 : f32
    %189 = arith.subf %187, %188 : f32
    %cst_40 = arith.constant 0.000000e+00 : f32
    %190 = arith.maximumf %189, %cst_40 : f32
    %191 = vector.broadcast %186 : f32 to vector<8x128xf32>
    %192 = arith.subf %174, %191 : vector<8x128xf32>
    %193 = vector.broadcast %175 : f32 to vector<8x128xf32>
    %194 = arith.mulf %193, %192 : vector<8x128xf32>
    %cst_41 = arith.constant 9.99999974E-6 : f32
    %195 = arith.addf %190, %cst_41 : f32
    %196 = math.rsqrt %195 : f32
    %197 = vector.broadcast %196 : f32 to vector<8x128xf32>
    %198 = arith.mulf %194, %197 : vector<8x128xf32>
    %199 = vector.broadcast %176 : f32 to vector<8x128xf32>
    %200 = arith.addf %198, %199 : vector<8x128xf32>
    %cst_42 = arith.constant 0.000000e+00 : f32
    %201 = vector.broadcast %cst_42 : f32 to vector<8x128xf32>
    %202 = arith.select %160, %200, %201 : vector<8x128xi1>, vector<8x128xf32>
    %cst_43 = arith.constant 5.000000e-01 : f32
    %203 = vector.broadcast %cst_43 : f32 to vector<8x128xf32>
    %204 = arith.mulf %203, %202 : vector<8x128xf32>
    %205 = math.tanh %204 : vector<8x128xf32>
    %cst_44 = arith.constant 5.000000e-01 : f32
    %206 = vector.broadcast %cst_44 : f32 to vector<8x128xf32>
    %207 = arith.mulf %206, %205 : vector<8x128xf32>
    %cst_45 = arith.constant 5.000000e-01 : f32
    %208 = vector.broadcast %cst_45 : f32 to vector<8x128xf32>
    %209 = arith.addf %208, %207 : vector<8x128xf32>
    %210 = arith.mulf %202, %209 : vector<8x128xf32>
    %c162 = arith.constant 162 : index
    %211 = memref.load %arg2[%c162] : memref<376xf32, #tpu.memory_space<smem>>
    %c163 = arith.constant 163 : index
    %212 = memref.load %arg2[%c163] : memref<376xf32, #tpu.memory_space<smem>>
    %213 = vector.shape_cast %210 : vector<8x128xf32> to vector<1x8x128xf32>
    %cst_46 = arith.constant dense<0.000000e+00> : vector<1xf32>
    %214 = vector.multi_reduction <add>, %213, %cst_46 [1, 2] : vector<1x8x128xf32> to vector<1xf32>
    %215 = vector.shape_cast %214 : vector<1xf32> to vector<1x1x1xf32>
    %216 = vector.extract %215[0, 0, 0] : f32 from vector<1x1x1xf32>
    %217 = arith.mulf %210, %210 : vector<8x128xf32>
    %218 = vector.shape_cast %217 : vector<8x128xf32> to vector<1x8x128xf32>
    %cst_47 = arith.constant dense<0.000000e+00> : vector<1xf32>
    %219 = vector.multi_reduction <add>, %218, %cst_47 [1, 2] : vector<1x8x128xf32> to vector<1xf32>
    %220 = vector.shape_cast %219 : vector<1xf32> to vector<1x1x1xf32>
    %221 = vector.extract %220[0, 0, 0] : f32 from vector<1x1x1xf32>
    %cst_48 = arith.constant 0.00520833349 : f32
    %222 = arith.mulf %216, %cst_48 : f32
    %cst_49 = arith.constant 0.00520833349 : f32
    %223 = arith.mulf %221, %cst_49 : f32
    %224 = arith.mulf %222, %222 : f32
    %225 = arith.subf %223, %224 : f32
    %cst_50 = arith.constant 0.000000e+00 : f32
    %226 = arith.maximumf %225, %cst_50 : f32
    %227 = vector.broadcast %222 : f32 to vector<8x128xf32>
    %228 = arith.subf %210, %227 : vector<8x128xf32>
    %229 = vector.broadcast %211 : f32 to vector<8x128xf32>
    %230 = arith.mulf %229, %228 : vector<8x128xf32>
    %cst_51 = arith.constant 9.99999974E-6 : f32
    %231 = arith.addf %226, %cst_51 : f32
    %232 = math.rsqrt %231 : f32
    %233 = vector.broadcast %232 : f32 to vector<8x128xf32>
    %234 = arith.mulf %230, %233 : vector<8x128xf32>
    %235 = vector.broadcast %212 : f32 to vector<8x128xf32>
    %236 = arith.addf %234, %235 : vector<8x128xf32>
    %cst_52 = arith.constant 0.000000e+00 : f32
    %237 = vector.broadcast %cst_52 : f32 to vector<8x128xf32>
    %238 = arith.select %160, %236, %237 : vector<8x128xi1>, vector<8x128xf32>
    %c164 = arith.constant 164 : index
    %239 = memref.load %arg2[%c164] : memref<376xf32, #tpu.memory_space<smem>>
    %240 = vector.broadcast %239 : f32 to vector<8x128xf32>
    %241 = arith.mulf %240, %238 : vector<8x128xf32>
    %c165 = arith.constant 165 : index
    %242 = memref.load %arg2[%c165] : memref<376xf32, #tpu.memory_space<smem>>
    %243 = vector.broadcast %242 : f32 to vector<8x128xf32>
    %244 = arith.addf %241, %243 : vector<8x128xf32>
    %cst_53 = arith.constant 0.000000e+00 : f32
    %245 = vector.broadcast %cst_53 : f32 to vector<8x128xf32>
    %246 = arith.select %160, %244, %245 : vector<8x128xi1>, vector<8x128xf32>
    %c166 = arith.constant 166 : index
    %247 = memref.load %arg2[%c166] : memref<376xf32, #tpu.memory_space<smem>>
    %c167 = arith.constant 167 : index
    %248 = memref.load %arg2[%c167] : memref<376xf32, #tpu.memory_space<smem>>
    %249 = vector.shape_cast %246 : vector<8x128xf32> to vector<1x8x128xf32>
    %cst_54 = arith.constant dense<0.000000e+00> : vector<1xf32>
    %250 = vector.multi_reduction <add>, %249, %cst_54 [1, 2] : vector<1x8x128xf32> to vector<1xf32>
    %251 = vector.shape_cast %250 : vector<1xf32> to vector<1x1x1xf32>
    %252 = vector.extract %251[0, 0, 0] : f32 from vector<1x1x1xf32>
    %253 = arith.mulf %246, %246 : vector<8x128xf32>
    %254 = vector.shape_cast %253 : vector<8x128xf32> to vector<1x8x128xf32>
    %cst_55 = arith.constant dense<0.000000e+00> : vector<1xf32>
    %255 = vector.multi_reduction <add>, %254, %cst_55 [1, 2] : vector<1x8x128xf32> to vector<1xf32>
    %256 = vector.shape_cast %255 : vector<1xf32> to vector<1x1x1xf32>
    %257 = vector.extract %256[0, 0, 0] : f32 from vector<1x1x1xf32>
    %cst_56 = arith.constant 0.00520833349 : f32
    %258 = arith.mulf %252, %cst_56 : f32
    %cst_57 = arith.constant 0.00520833349 : f32
    %259 = arith.mulf %257, %cst_57 : f32
    %260 = arith.mulf %258, %258 : f32
    %261 = arith.subf %259, %260 : f32
    %cst_58 = arith.constant 0.000000e+00 : f32
    %262 = arith.maximumf %261, %cst_58 : f32
    %263 = vector.broadcast %258 : f32 to vector<8x128xf32>
    %264 = arith.subf %246, %263 : vector<8x128xf32>
    %265 = vector.broadcast %247 : f32 to vector<8x128xf32>
    %266 = arith.mulf %265, %264 : vector<8x128xf32>
    %cst_59 = arith.constant 9.99999974E-6 : f32
    %267 = arith.addf %262, %cst_59 : f32
    %268 = math.rsqrt %267 : f32
    %269 = vector.broadcast %268 : f32 to vector<8x128xf32>
    %270 = arith.mulf %266, %269 : vector<8x128xf32>
    %271 = vector.broadcast %248 : f32 to vector<8x128xf32>
    %272 = arith.addf %270, %271 : vector<8x128xf32>
    %cst_60 = arith.constant 0.000000e+00 : f32
    %273 = vector.broadcast %cst_60 : f32 to vector<8x128xf32>
    %274 = arith.select %160, %272, %273 : vector<8x128xi1>, vector<8x128xf32>
    %cst_61 = arith.constant 5.000000e-01 : f32
    %275 = vector.broadcast %cst_61 : f32 to vector<8x128xf32>
    %276 = arith.mulf %275, %274 : vector<8x128xf32>
    %277 = math.tanh %276 : vector<8x128xf32>
    %cst_62 = arith.constant 5.000000e-01 : f32
    %278 = vector.broadcast %cst_62 : f32 to vector<8x128xf32>
    %279 = arith.mulf %278, %277 : vector<8x128xf32>
    %cst_63 = arith.constant 5.000000e-01 : f32
    %280 = vector.broadcast %cst_63 : f32 to vector<8x128xf32>
    %281 = arith.addf %280, %279 : vector<8x128xf32>
    %282 = arith.mulf %274, %281 : vector<8x128xf32>
    %c168 = arith.constant 168 : index
    %283 = memref.load %arg2[%c168] : memref<376xf32, #tpu.memory_space<smem>>
    %c169 = arith.constant 169 : index
    %284 = memref.load %arg2[%c169] : memref<376xf32, #tpu.memory_space<smem>>
    %c170 = arith.constant 170 : index
    %285 = memref.load %arg2[%c170] : memref<376xf32, #tpu.memory_space<smem>>
    %c171 = arith.constant 171 : index
    %286 = memref.load %arg2[%c171] : memref<376xf32, #tpu.memory_space<smem>>
    %c172 = arith.constant 172 : index
    %287 = memref.load %arg2[%c172] : memref<376xf32, #tpu.memory_space<smem>>
    %c173 = arith.constant 173 : index
    %288 = memref.load %arg2[%c173] : memref<376xf32, #tpu.memory_space<smem>>
    %289 = vector.broadcast %285 : f32 to vector<8x128xf32>
    %290 = arith.mulf %289, %282 : vector<8x128xf32>
    %c2_i32 = arith.constant 2 : i32
    %291 = tpu.dynamic_rotate %282 by %c2_i32 dim 1 : vector<8x128xf32>, i32 -> vector<8x128xf32>
    %292 = vector.broadcast %283 : f32 to vector<8x128xf32>
    %293 = arith.mulf %292, %291 : vector<8x128xf32>
    %294 = arith.addf %290, %293 : vector<8x128xf32>
    %c1_i32_64 = arith.constant 1 : i32
    %295 = tpu.dynamic_rotate %282 by %c1_i32_64 dim 1 : vector<8x128xf32>, i32 -> vector<8x128xf32>
    %296 = vector.broadcast %284 : f32 to vector<8x128xf32>
    %297 = arith.mulf %296, %295 : vector<8x128xf32>
    %298 = arith.addf %294, %297 : vector<8x128xf32>
    %c127_i32 = arith.constant 127 : i32
    %299 = tpu.dynamic_rotate %282 by %c127_i32 dim 1 : vector<8x128xf32>, i32 -> vector<8x128xf32>
    %300 = vector.broadcast %286 : f32 to vector<8x128xf32>
    %301 = arith.mulf %300, %299 : vector<8x128xf32>
    %302 = arith.addf %298, %301 : vector<8x128xf32>
    %c126_i32 = arith.constant 126 : i32
    %303 = tpu.dynamic_rotate %282 by %c126_i32 dim 1 : vector<8x128xf32>, i32 -> vector<8x128xf32>
    %304 = vector.broadcast %287 : f32 to vector<8x128xf32>
    %305 = arith.mulf %304, %303 : vector<8x128xf32>
    %306 = arith.addf %302, %305 : vector<8x128xf32>
    %307 = vector.broadcast %288 : f32 to vector<8x128xf32>
    %308 = arith.addf %306, %307 : vector<8x128xf32>
    %cst_65 = arith.constant 0.000000e+00 : f32
    %309 = vector.broadcast %cst_65 : f32 to vector<8x128xf32>
    %310 = arith.select %160, %308, %309 : vector<8x128xi1>, vector<8x128xf32>
    %c174 = arith.constant 174 : index
    %311 = memref.load %arg2[%c174] : memref<376xf32, #tpu.memory_space<smem>>
    %c175 = arith.constant 175 : index
    %312 = memref.load %arg2[%c175] : memref<376xf32, #tpu.memory_space<smem>>
    %313 = vector.shape_cast %310 : vector<8x128xf32> to vector<1x8x128xf32>
    %cst_66 = arith.constant dense<0.000000e+00> : vector<1xf32>
    %314 = vector.multi_reduction <add>, %313, %cst_66 [1, 2] : vector<1x8x128xf32> to vector<1xf32>
    %315 = vector.shape_cast %314 : vector<1xf32> to vector<1x1x1xf32>
    %316 = vector.extract %315[0, 0, 0] : f32 from vector<1x1x1xf32>
    %317 = arith.mulf %310, %310 : vector<8x128xf32>
    %318 = vector.shape_cast %317 : vector<8x128xf32> to vector<1x8x128xf32>
    %cst_67 = arith.constant dense<0.000000e+00> : vector<1xf32>
    %319 = vector.multi_reduction <add>, %318, %cst_67 [1, 2] : vector<1x8x128xf32> to vector<1xf32>
    %320 = vector.shape_cast %319 : vector<1xf32> to vector<1x1x1xf32>
    %321 = vector.extract %320[0, 0, 0] : f32 from vector<1x1x1xf32>
    %cst_68 = arith.constant 0.00520833349 : f32
    %322 = arith.mulf %316, %cst_68 : f32
    %cst_69 = arith.constant 0.00520833349 : f32
    %323 = arith.mulf %321, %cst_69 : f32
    %324 = arith.mulf %322, %322 : f32
    %325 = arith.subf %323, %324 : f32
    %cst_70 = arith.constant 0.000000e+00 : f32
    %326 = arith.maximumf %325, %cst_70 : f32
    %327 = vector.broadcast %322 : f32 to vector<8x128xf32>
    %328 = arith.subf %310, %327 : vector<8x128xf32>
    %329 = vector.broadcast %311 : f32 to vector<8x128xf32>
    %330 = arith.mulf %329, %328 : vector<8x128xf32>
    %cst_71 = arith.constant 9.99999974E-6 : f32
    %331 = arith.addf %326, %cst_71 : f32
    %332 = math.rsqrt %331 : f32
    %333 = vector.broadcast %332 : f32 to vector<8x128xf32>
    %334 = arith.mulf %330, %333 : vector<8x128xf32>
    %335 = vector.broadcast %312 : f32 to vector<8x128xf32>
    %336 = arith.addf %334, %335 : vector<8x128xf32>
    %cst_72 = arith.constant 0.000000e+00 : f32
    %337 = vector.broadcast %cst_72 : f32 to vector<8x128xf32>
    %338 = arith.select %160, %336, %337 : vector<8x128xi1>, vector<8x128xf32>
    %cst_73 = arith.constant 5.000000e-01 : f32
    %339 = vector.broadcast %cst_73 : f32 to vector<8x128xf32>
    %340 = arith.mulf %339, %338 : vector<8x128xf32>
    %341 = math.tanh %340 : vector<8x128xf32>
    %cst_74 = arith.constant 5.000000e-01 : f32
    %342 = vector.broadcast %cst_74 : f32 to vector<8x128xf32>
    %343 = arith.mulf %342, %341 : vector<8x128xf32>
    %cst_75 = arith.constant 5.000000e-01 : f32
    %344 = vector.broadcast %cst_75 : f32 to vector<8x128xf32>
    %345 = arith.addf %344, %343 : vector<8x128xf32>
    %346 = arith.mulf %338, %345 : vector<8x128xf32>
    %c176 = arith.constant 176 : index
    %347 = memref.load %arg2[%c176] : memref<376xf32, #tpu.memory_space<smem>>
    %348 = vector.broadcast %347 : f32 to vector<8x128xf32>
    %349 = arith.mulf %348, %346 : vector<8x128xf32>
    %c177 = arith.constant 177 : index
    %350 = memref.load %arg2[%c177] : memref<376xf32, #tpu.memory_space<smem>>
    %351 = vector.broadcast %350 : f32 to vector<8x128xf32>
    %352 = arith.addf %349, %351 : vector<8x128xf32>
    %cst_76 = arith.constant 0.000000e+00 : f32
    %353 = vector.broadcast %cst_76 : f32 to vector<8x128xf32>
    %354 = arith.select %160, %352, %353 : vector<8x128xi1>, vector<8x128xf32>
    %c178 = arith.constant 178 : index
    %355 = memref.load %arg2[%c178] : memref<376xf32, #tpu.memory_space<smem>>
    %c179 = arith.constant 179 : index
    %356 = memref.load %arg2[%c179] : memref<376xf32, #tpu.memory_space<smem>>
    %357 = vector.shape_cast %354 : vector<8x128xf32> to vector<1x8x128xf32>
    %cst_77 = arith.constant dense<0.000000e+00> : vector<1xf32>
    %358 = vector.multi_reduction <add>, %357, %cst_77 [1, 2] : vector<1x8x128xf32> to vector<1xf32>
    %359 = vector.shape_cast %358 : vector<1xf32> to vector<1x1x1xf32>
    %360 = vector.extract %359[0, 0, 0] : f32 from vector<1x1x1xf32>
    %361 = arith.mulf %354, %354 : vector<8x128xf32>
    %362 = vector.shape_cast %361 : vector<8x128xf32> to vector<1x8x128xf32>
    %cst_78 = arith.constant dense<0.000000e+00> : vector<1xf32>
    %363 = vector.multi_reduction <add>, %362, %cst_78 [1, 2] : vector<1x8x128xf32> to vector<1xf32>
    %364 = vector.shape_cast %363 : vector<1xf32> to vector<1x1x1xf32>
    %365 = vector.extract %364[0, 0, 0] : f32 from vector<1x1x1xf32>
    %cst_79 = arith.constant 0.00520833349 : f32
    %366 = arith.mulf %360, %cst_79 : f32
    %cst_80 = arith.constant 0.00520833349 : f32
    %367 = arith.mulf %365, %cst_80 : f32
    %368 = arith.mulf %366, %366 : f32
    %369 = arith.subf %367, %368 : f32
    %cst_81 = arith.constant 0.000000e+00 : f32
    %370 = arith.maximumf %369, %cst_81 : f32
    %371 = vector.broadcast %366 : f32 to vector<8x128xf32>
    %372 = arith.subf %354, %371 : vector<8x128xf32>
    %373 = vector.broadcast %355 : f32 to vector<8x128xf32>
    %374 = arith.mulf %373, %372 : vector<8x128xf32>
    %cst_82 = arith.constant 9.99999974E-6 : f32
    %375 = arith.addf %370, %cst_82 : f32
    %376 = math.rsqrt %375 : f32
    %377 = vector.broadcast %376 : f32 to vector<8x128xf32>
    %378 = arith.mulf %374, %377 : vector<8x128xf32>
    %379 = vector.broadcast %356 : f32 to vector<8x128xf32>
    %380 = arith.addf %378, %379 : vector<8x128xf32>
    %cst_83 = arith.constant 0.000000e+00 : f32
    %381 = vector.broadcast %cst_83 : f32 to vector<8x128xf32>
    %382 = arith.select %160, %380, %381 : vector<8x128xi1>, vector<8x128xf32>
    %cst_84 = arith.constant 1.000000e-01 : f32
    %383 = vector.broadcast %cst_84 : f32 to vector<8x128xf32>
    %384 = arith.mulf %383, %382 : vector<8x128xf32>
    %385 = arith.addf %210, %384 : vector<8x128xf32>
    %c270 = arith.constant 270 : index
    %386 = memref.load %arg2[%c270] : memref<376xf32, #tpu.memory_space<smem>>
    %c271 = arith.constant 271 : index
    %387 = memref.load %arg2[%c271] : memref<376xf32, #tpu.memory_space<smem>>
    %c272 = arith.constant 272 : index
    %388 = memref.load %arg2[%c272] : memref<376xf32, #tpu.memory_space<smem>>
    %c273 = arith.constant 273 : index
    %389 = memref.load %arg2[%c273] : memref<376xf32, #tpu.memory_space<smem>>
    %c274 = arith.constant 274 : index
    %390 = memref.load %arg2[%c274] : memref<376xf32, #tpu.memory_space<smem>>
    %c275 = arith.constant 275 : index
    %391 = memref.load %arg2[%c275] : memref<376xf32, #tpu.memory_space<smem>>
    %392 = vector.broadcast %388 : f32 to vector<8x128xf32>
    %393 = arith.mulf %392, %385 : vector<8x128xf32>
    %c2_i32_85 = arith.constant 2 : i32
    %394 = tpu.dynamic_rotate %385 by %c2_i32_85 dim 1 : vector<8x128xf32>, i32 -> vector<8x128xf32>
    %395 = vector.broadcast %386 : f32 to vector<8x128xf32>
    %396 = arith.mulf %395, %394 : vector<8x128xf32>
    %397 = arith.addf %393, %396 : vector<8x128xf32>
    %c1_i32_86 = arith.constant 1 : i32
    %398 = tpu.dynamic_rotate %385 by %c1_i32_86 dim 1 : vector<8x128xf32>, i32 -> vector<8x128xf32>
    %399 = vector.broadcast %387 : f32 to vector<8x128xf32>
    %400 = arith.mulf %399, %398 : vector<8x128xf32>
    %401 = arith.addf %397, %400 : vector<8x128xf32>
    %c127_i32_87 = arith.constant 127 : i32
    %402 = tpu.dynamic_rotate %385 by %c127_i32_87 dim 1 : vector<8x128xf32>, i32 -> vector<8x128xf32>
    %403 = vector.broadcast %389 : f32 to vector<8x128xf32>
    %404 = arith.mulf %403, %402 : vector<8x128xf32>
    %405 = arith.addf %401, %404 : vector<8x128xf32>
    %c126_i32_88 = arith.constant 126 : i32
    %406 = tpu.dynamic_rotate %385 by %c126_i32_88 dim 1 : vector<8x128xf32>, i32 -> vector<8x128xf32>
    %407 = vector.broadcast %390 : f32 to vector<8x128xf32>
    %408 = arith.mulf %407, %406 : vector<8x128xf32>
    %409 = arith.addf %405, %408 : vector<8x128xf32>
    %410 = vector.broadcast %391 : f32 to vector<8x128xf32>
    %411 = arith.addf %409, %410 : vector<8x128xf32>
    %cst_89 = arith.constant 0.000000e+00 : f32
    %412 = vector.broadcast %cst_89 : f32 to vector<8x128xf32>
    %413 = arith.select %160, %411, %412 : vector<8x128xi1>, vector<8x128xf32>
    %c276 = arith.constant 276 : index
    %414 = memref.load %arg2[%c276] : memref<376xf32, #tpu.memory_space<smem>>
    %415 = vector.broadcast %414 : f32 to vector<8x128xf32>
    %416 = arith.mulf %415, %413 : vector<8x128xf32>
    %c277 = arith.constant 277 : index
    %417 = memref.load %arg2[%c277] : memref<376xf32, #tpu.memory_space<smem>>
    %418 = vector.broadcast %417 : f32 to vector<8x128xf32>
    %419 = arith.addf %416, %418 : vector<8x128xf32>
    %cst_90 = arith.constant 0.000000e+00 : f32
    %420 = vector.broadcast %cst_90 : f32 to vector<8x128xf32>
    %421 = arith.select %160, %419, %420 : vector<8x128xi1>, vector<8x128xf32>
    %c278 = arith.constant 278 : index
    %422 = memref.load %arg2[%c278] : memref<376xf32, #tpu.memory_space<smem>>
    %c279 = arith.constant 279 : index
    %423 = memref.load %arg2[%c279] : memref<376xf32, #tpu.memory_space<smem>>
    %424 = vector.shape_cast %421 : vector<8x128xf32> to vector<1x8x128xf32>
    %cst_91 = arith.constant dense<0.000000e+00> : vector<1xf32>
    %425 = vector.multi_reduction <add>, %424, %cst_91 [1, 2] : vector<1x8x128xf32> to vector<1xf32>
    %426 = vector.shape_cast %425 : vector<1xf32> to vector<1x1x1xf32>
    %427 = vector.extract %426[0, 0, 0] : f32 from vector<1x1x1xf32>
    %428 = arith.mulf %421, %421 : vector<8x128xf32>
    %429 = vector.shape_cast %428 : vector<8x128xf32> to vector<1x8x128xf32>
    %cst_92 = arith.constant dense<0.000000e+00> : vector<1xf32>
    %430 = vector.multi_reduction <add>, %429, %cst_92 [1, 2] : vector<1x8x128xf32> to vector<1xf32>
    %431 = vector.shape_cast %430 : vector<1xf32> to vector<1x1x1xf32>
    %432 = vector.extract %431[0, 0, 0] : f32 from vector<1x1x1xf32>
    %cst_93 = arith.constant 0.00520833349 : f32
    %433 = arith.mulf %427, %cst_93 : f32
    %cst_94 = arith.constant 0.00520833349 : f32
    %434 = arith.mulf %432, %cst_94 : f32
    %435 = arith.mulf %433, %433 : f32
    %436 = arith.subf %434, %435 : f32
    %cst_95 = arith.constant 0.000000e+00 : f32
    %437 = arith.maximumf %436, %cst_95 : f32
    %438 = vector.broadcast %433 : f32 to vector<8x128xf32>
    %439 = arith.subf %421, %438 : vector<8x128xf32>
    %440 = vector.broadcast %422 : f32 to vector<8x128xf32>
    %441 = arith.mulf %440, %439 : vector<8x128xf32>
    %cst_96 = arith.constant 9.99999974E-6 : f32
    %442 = arith.addf %437, %cst_96 : f32
    %443 = math.rsqrt %442 : f32
    %444 = vector.broadcast %443 : f32 to vector<8x128xf32>
    %445 = arith.mulf %441, %444 : vector<8x128xf32>
    %446 = vector.broadcast %423 : f32 to vector<8x128xf32>
    %447 = arith.addf %445, %446 : vector<8x128xf32>
    %cst_97 = arith.constant 0.000000e+00 : f32
    %448 = vector.broadcast %cst_97 : f32 to vector<8x128xf32>
    %449 = arith.select %160, %447, %448 : vector<8x128xi1>, vector<8x128xf32>
    %cst_98 = arith.constant 5.000000e-01 : f32
    %450 = vector.broadcast %cst_98 : f32 to vector<8x128xf32>
    %451 = arith.mulf %450, %449 : vector<8x128xf32>
    %452 = math.tanh %451 : vector<8x128xf32>
    %cst_99 = arith.constant 5.000000e-01 : f32
    %453 = vector.broadcast %cst_99 : f32 to vector<8x128xf32>
    %454 = arith.mulf %453, %452 : vector<8x128xf32>
    %cst_100 = arith.constant 5.000000e-01 : f32
    %455 = vector.broadcast %cst_100 : f32 to vector<8x128xf32>
    %456 = arith.addf %455, %454 : vector<8x128xf32>
    %457 = arith.mulf %449, %456 : vector<8x128xf32>
    %c280 = arith.constant 280 : index
    %458 = memref.load %arg2[%c280] : memref<376xf32, #tpu.memory_space<smem>>
    %c281 = arith.constant 281 : index
    %459 = memref.load %arg2[%c281] : memref<376xf32, #tpu.memory_space<smem>>
    %c282 = arith.constant 282 : index
    %460 = memref.load %arg2[%c282] : memref<376xf32, #tpu.memory_space<smem>>
    %c283 = arith.constant 283 : index
    %461 = memref.load %arg2[%c283] : memref<376xf32, #tpu.memory_space<smem>>
    %462 = vector.broadcast %459 : f32 to vector<8x128xf32>
    %463 = arith.mulf %462, %457 : vector<8x128xf32>
    %c1_i32_101 = arith.constant 1 : i32
    %464 = tpu.dynamic_rotate %457 by %c1_i32_101 dim 1 : vector<8x128xf32>, i32 -> vector<8x128xf32>
    %465 = vector.broadcast %458 : f32 to vector<8x128xf32>
    %466 = arith.mulf %465, %464 : vector<8x128xf32>
    %467 = arith.addf %463, %466 : vector<8x128xf32>
    %c127_i32_102 = arith.constant 127 : i32
    %468 = tpu.dynamic_rotate %457 by %c127_i32_102 dim 1 : vector<8x128xf32>, i32 -> vector<8x128xf32>
    %469 = vector.broadcast %460 : f32 to vector<8x128xf32>
    %470 = arith.mulf %469, %468 : vector<8x128xf32>
    %471 = arith.addf %467, %470 : vector<8x128xf32>
    %472 = vector.broadcast %461 : f32 to vector<8x128xf32>
    %473 = arith.addf %471, %472 : vector<8x128xf32>
    %cst_103 = arith.constant 0.000000e+00 : f32
    %474 = vector.broadcast %cst_103 : f32 to vector<8x128xf32>
    %475 = arith.select %160, %473, %474 : vector<8x128xi1>, vector<8x128xf32>
    %cst_104 = arith.constant 1.000000e-01 : f32
    %476 = vector.broadcast %cst_104 : f32 to vector<8x128xf32>
    %477 = arith.mulf %476, %475 : vector<8x128xf32>
    %478 = arith.addf %385, %477 : vector<8x128xf32>
    %cst_105 = arith.constant 5.000000e-01 : f32
    %479 = vector.broadcast %cst_105 : f32 to vector<8x128xf32>
    %480 = arith.mulf %479, %478 : vector<8x128xf32>
    %481 = math.tanh %480 : vector<8x128xf32>
    %cst_106 = arith.constant 5.000000e-01 : f32
    %482 = vector.broadcast %cst_106 : f32 to vector<8x128xf32>
    %483 = arith.mulf %482, %481 : vector<8x128xf32>
    %cst_107 = arith.constant 5.000000e-01 : f32
    %484 = vector.broadcast %cst_107 : f32 to vector<8x128xf32>
    %485 = arith.addf %484, %483 : vector<8x128xf32>
    %486 = arith.mulf %478, %485 : vector<8x128xf32>
    %c284 = arith.constant 284 : index
    %487 = memref.load %arg2[%c284] : memref<376xf32, #tpu.memory_space<smem>>
    %488 = vector.broadcast %487 : f32 to vector<8x128xf32>
    %489 = arith.mulf %488, %486 : vector<8x128xf32>
    %c286 = arith.constant 286 : index
    %490 = memref.load %arg2[%c286] : memref<376xf32, #tpu.memory_space<smem>>
    %491 = vector.broadcast %490 : f32 to vector<8x128xf32>
    %492 = arith.addf %489, %491 : vector<8x128xf32>
    %c285 = arith.constant 285 : index
    %493 = memref.load %arg2[%c285] : memref<376xf32, #tpu.memory_space<smem>>
    %494 = vector.broadcast %493 : f32 to vector<8x128xf32>
    %495 = arith.mulf %494, %486 : vector<8x128xf32>
    %c287 = arith.constant 287 : index
    %496 = memref.load %arg2[%c287] : memref<376xf32, #tpu.memory_space<smem>>
    %497 = vector.broadcast %496 : f32 to vector<8x128xf32>
    %498 = arith.addf %495, %497 : vector<8x128xf32>
    %cst_108 = arith.constant 5.000000e-01 : f32
    %499 = vector.broadcast %cst_108 : f32 to vector<8x128xf32>
    %500 = arith.mulf %499, %498 : vector<8x128xf32>
    %501 = math.exp %500 : vector<8x128xf32>
    %c0_109 = arith.constant 0 : index
    %c0_110 = arith.constant 0 : index
    %c0_111 = arith.constant 0 : index
    %502 = vector.load %arg1[%c0_109, %c0_110, %c0_111] : memref<5x8x128xf32, #tpu.memory_space<vmem>>, vector<1x8x128xf32>
    %503 = vector.shape_cast %502 : vector<1x8x128xf32> to vector<8x128xf32>
    %504 = arith.mulf %501, %503 : vector<8x128xf32>
    %505 = arith.addf %492, %504 : vector<8x128xf32>
    %cst_112 = arith.constant 0.000000e+00 : f32
    %506 = vector.broadcast %cst_112 : f32 to vector<8x128xf32>
    %507 = arith.select %160, %505, %506 : vector<8x128xi1>, vector<8x128xf32>
    %c26_i32 = arith.constant 26 : i32
    %508 = vector.broadcast %c26_i32 : i32 to vector<8x128xi32>
    %509 = arith.cmpi slt, %0, %508 : vector<8x128xi32>
    %c1_i32_113 = arith.constant 1 : i32
    %510 = tpu.dynamic_rotate %385 by %c1_i32_113 dim 1 : vector<8x128xf32>, i32 -> vector<8x128xf32>
    %c1_i32_114 = arith.constant 1 : i32
    %511 = tpu.dynamic_rotate %507 by %c1_i32_114 dim 1 : vector<8x128xf32>, i32 -> vector<8x128xf32>
    %c27 = arith.constant 27 : index
    %512 = memref.load %arg2[%c27] : memref<376xf32, #tpu.memory_space<smem>>
    %513 = vector.broadcast %512 : f32 to vector<8x128xf32>
    %514 = arith.mulf %513, %510 : vector<8x128xf32>
    %c28 = arith.constant 28 : index
    %515 = memref.load %arg2[%c28] : memref<376xf32, #tpu.memory_space<smem>>
    %516 = vector.broadcast %515 : f32 to vector<8x128xf32>
    %517 = arith.mulf %516, %511 : vector<8x128xf32>
    %518 = arith.addf %514, %517 : vector<8x128xf32>
    %c31 = arith.constant 31 : index
    %519 = memref.load %arg2[%c31] : memref<376xf32, #tpu.memory_space<smem>>
    %520 = vector.broadcast %519 : f32 to vector<8x128xf32>
    %521 = arith.addf %518, %520 : vector<8x128xf32>
    %cst_115 = arith.constant 0.000000e+00 : f32
    %522 = vector.broadcast %cst_115 : f32 to vector<8x128xf32>
    %523 = arith.select %509, %521, %522 : vector<8x128xi1>, vector<8x128xf32>
    %c29 = arith.constant 29 : index
    %524 = memref.load %arg2[%c29] : memref<376xf32, #tpu.memory_space<smem>>
    %525 = vector.broadcast %524 : f32 to vector<8x128xf32>
    %526 = arith.mulf %525, %510 : vector<8x128xf32>
    %c30 = arith.constant 30 : index
    %527 = memref.load %arg2[%c30] : memref<376xf32, #tpu.memory_space<smem>>
    %528 = vector.broadcast %527 : f32 to vector<8x128xf32>
    %529 = arith.mulf %528, %511 : vector<8x128xf32>
    %530 = arith.addf %526, %529 : vector<8x128xf32>
    %c32 = arith.constant 32 : index
    %531 = memref.load %arg2[%c32] : memref<376xf32, #tpu.memory_space<smem>>
    %532 = vector.broadcast %531 : f32 to vector<8x128xf32>
    %533 = arith.addf %530, %532 : vector<8x128xf32>
    %cst_116 = arith.constant 0.000000e+00 : f32
    %534 = vector.broadcast %cst_116 : f32 to vector<8x128xf32>
    %535 = arith.select %509, %533, %534 : vector<8x128xi1>, vector<8x128xf32>
    %c28_i32 = arith.constant 28 : i32
    %536 = vector.broadcast %c28_i32 : i32 to vector<8x128xi32>
    %537 = arith.cmpi slt, %0, %536 : vector<8x128xi32>
    %c1_i32_117 = arith.constant 1 : i32
    %538 = tpu.dynamic_rotate %523 by %c1_i32_117 dim 1 : vector<8x128xf32>, i32 -> vector<8x128xf32>
    %c1_i32_118 = arith.constant 1 : i32
    %539 = tpu.dynamic_rotate %535 by %c1_i32_118 dim 1 : vector<8x128xf32>, i32 -> vector<8x128xf32>
    %c33 = arith.constant 33 : index
    %540 = memref.load %arg2[%c33] : memref<376xf32, #tpu.memory_space<smem>>
    %541 = vector.broadcast %540 : f32 to vector<8x128xf32>
    %542 = arith.mulf %541, %538 : vector<8x128xf32>
    %c34 = arith.constant 34 : index
    %543 = memref.load %arg2[%c34] : memref<376xf32, #tpu.memory_space<smem>>
    %544 = vector.broadcast %543 : f32 to vector<8x128xf32>
    %545 = arith.mulf %544, %539 : vector<8x128xf32>
    %546 = arith.addf %542, %545 : vector<8x128xf32>
    %c37 = arith.constant 37 : index
    %547 = memref.load %arg2[%c37] : memref<376xf32, #tpu.memory_space<smem>>
    %548 = vector.broadcast %547 : f32 to vector<8x128xf32>
    %549 = arith.addf %546, %548 : vector<8x128xf32>
    %cst_119 = arith.constant 0.000000e+00 : f32
    %550 = vector.broadcast %cst_119 : f32 to vector<8x128xf32>
    %551 = arith.select %537, %549, %550 : vector<8x128xi1>, vector<8x128xf32>
    %c35 = arith.constant 35 : index
    %552 = memref.load %arg2[%c35] : memref<376xf32, #tpu.memory_space<smem>>
    %553 = vector.broadcast %552 : f32 to vector<8x128xf32>
    %554 = arith.mulf %553, %538 : vector<8x128xf32>
    %c36 = arith.constant 36 : index
    %555 = memref.load %arg2[%c36] : memref<376xf32, #tpu.memory_space<smem>>
    %556 = vector.broadcast %555 : f32 to vector<8x128xf32>
    %557 = arith.mulf %556, %539 : vector<8x128xf32>
    %558 = arith.addf %554, %557 : vector<8x128xf32>
    %c38 = arith.constant 38 : index
    %559 = memref.load %arg2[%c38] : memref<376xf32, #tpu.memory_space<smem>>
    %560 = vector.broadcast %559 : f32 to vector<8x128xf32>
    %561 = arith.addf %558, %560 : vector<8x128xf32>
    %cst_120 = arith.constant 0.000000e+00 : f32
    %562 = vector.broadcast %cst_120 : f32 to vector<8x128xf32>
    %563 = arith.select %537, %561, %562 : vector<8x128xi1>, vector<8x128xf32>
    %c30_i32 = arith.constant 30 : i32
    %564 = vector.broadcast %c30_i32 : i32 to vector<8x128xi32>
    %565 = arith.cmpi slt, %0, %564 : vector<8x128xi32>
    %c1_i32_121 = arith.constant 1 : i32
    %566 = tpu.dynamic_rotate %551 by %c1_i32_121 dim 1 : vector<8x128xf32>, i32 -> vector<8x128xf32>
    %c1_i32_122 = arith.constant 1 : i32
    %567 = tpu.dynamic_rotate %563 by %c1_i32_122 dim 1 : vector<8x128xf32>, i32 -> vector<8x128xf32>
    %c39 = arith.constant 39 : index
    %568 = memref.load %arg2[%c39] : memref<376xf32, #tpu.memory_space<smem>>
    %569 = vector.broadcast %568 : f32 to vector<8x128xf32>
    %570 = arith.mulf %569, %566 : vector<8x128xf32>
    %c40 = arith.constant 40 : index
    %571 = memref.load %arg2[%c40] : memref<376xf32, #tpu.memory_space<smem>>
    %572 = vector.broadcast %571 : f32 to vector<8x128xf32>
    %573 = arith.mulf %572, %567 : vector<8x128xf32>
    %574 = arith.addf %570, %573 : vector<8x128xf32>
    %c43 = arith.constant 43 : index
    %575 = memref.load %arg2[%c43] : memref<376xf32, #tpu.memory_space<smem>>
    %576 = vector.broadcast %575 : f32 to vector<8x128xf32>
    %577 = arith.addf %574, %576 : vector<8x128xf32>
    %cst_123 = arith.constant 0.000000e+00 : f32
    %578 = vector.broadcast %cst_123 : f32 to vector<8x128xf32>
    %579 = arith.select %565, %577, %578 : vector<8x128xi1>, vector<8x128xf32>
    %c41 = arith.constant 41 : index
    %580 = memref.load %arg2[%c41] : memref<376xf32, #tpu.memory_space<smem>>
    %581 = vector.broadcast %580 : f32 to vector<8x128xf32>
    %582 = arith.mulf %581, %566 : vector<8x128xf32>
    %c42 = arith.constant 42 : index
    %583 = memref.load %arg2[%c42] : memref<376xf32, #tpu.memory_space<smem>>
    %584 = vector.broadcast %583 : f32 to vector<8x128xf32>
    %585 = arith.mulf %584, %567 : vector<8x128xf32>
    %586 = arith.addf %582, %585 : vector<8x128xf32>
    %c44 = arith.constant 44 : index
    %587 = memref.load %arg2[%c44] : memref<376xf32, #tpu.memory_space<smem>>
    %588 = vector.broadcast %587 : f32 to vector<8x128xf32>
    %589 = arith.addf %586, %588 : vector<8x128xf32>
    %cst_124 = arith.constant 0.000000e+00 : f32
    %590 = vector.broadcast %cst_124 : f32 to vector<8x128xf32>
    %591 = arith.select %565, %589, %590 : vector<8x128xi1>, vector<8x128xf32>
    %c45 = arith.constant 45 : index
    %592 = memref.load %arg2[%c45] : memref<376xf32, #tpu.memory_space<smem>>
    %c47 = arith.constant 47 : index
    %593 = memref.load %arg2[%c47] : memref<376xf32, #tpu.memory_space<smem>>
    %594 = vector.shape_cast %579 : vector<8x128xf32> to vector<1x8x128xf32>
    %cst_125 = arith.constant dense<0.000000e+00> : vector<1xf32>
    %595 = vector.multi_reduction <add>, %594, %cst_125 [1, 2] : vector<1x8x128xf32> to vector<1xf32>
    %596 = vector.shape_cast %595 : vector<1xf32> to vector<1x1x1xf32>
    %597 = vector.extract %596[0, 0, 0] : f32 from vector<1x1x1xf32>
    %598 = arith.mulf %579, %579 : vector<8x128xf32>
    %599 = vector.shape_cast %598 : vector<8x128xf32> to vector<1x8x128xf32>
    %cst_126 = arith.constant dense<0.000000e+00> : vector<1xf32>
    %600 = vector.multi_reduction <add>, %599, %cst_126 [1, 2] : vector<1x8x128xf32> to vector<1xf32>
    %601 = vector.shape_cast %600 : vector<1xf32> to vector<1x1x1xf32>
    %602 = vector.extract %601[0, 0, 0] : f32 from vector<1x1x1xf32>
    %cst_127 = arith.constant 0.00416666688 : f32
    %603 = arith.mulf %597, %cst_127 : f32
    %cst_128 = arith.constant 0.00416666688 : f32
    %604 = arith.mulf %602, %cst_128 : f32
    %605 = arith.mulf %603, %603 : f32
    %606 = arith.subf %604, %605 : f32
    %cst_129 = arith.constant 0.000000e+00 : f32
    %607 = arith.maximumf %606, %cst_129 : f32
    %608 = vector.broadcast %603 : f32 to vector<8x128xf32>
    %609 = arith.subf %579, %608 : vector<8x128xf32>
    %610 = vector.broadcast %592 : f32 to vector<8x128xf32>
    %611 = arith.mulf %610, %609 : vector<8x128xf32>
    %cst_130 = arith.constant 9.99999974E-6 : f32
    %612 = arith.addf %607, %cst_130 : f32
    %613 = math.rsqrt %612 : f32
    %614 = vector.broadcast %613 : f32 to vector<8x128xf32>
    %615 = arith.mulf %611, %614 : vector<8x128xf32>
    %616 = vector.broadcast %593 : f32 to vector<8x128xf32>
    %617 = arith.addf %615, %616 : vector<8x128xf32>
    %cst_131 = arith.constant 0.000000e+00 : f32
    %618 = vector.broadcast %cst_131 : f32 to vector<8x128xf32>
    %619 = arith.select %565, %617, %618 : vector<8x128xi1>, vector<8x128xf32>
    %cst_132 = arith.constant 5.000000e-01 : f32
    %620 = vector.broadcast %cst_132 : f32 to vector<8x128xf32>
    %621 = arith.mulf %620, %619 : vector<8x128xf32>
    %622 = math.tanh %621 : vector<8x128xf32>
    %cst_133 = arith.constant 5.000000e-01 : f32
    %623 = vector.broadcast %cst_133 : f32 to vector<8x128xf32>
    %624 = arith.mulf %623, %622 : vector<8x128xf32>
    %cst_134 = arith.constant 5.000000e-01 : f32
    %625 = vector.broadcast %cst_134 : f32 to vector<8x128xf32>
    %626 = arith.addf %625, %624 : vector<8x128xf32>
    %627 = arith.mulf %619, %626 : vector<8x128xf32>
    %c46 = arith.constant 46 : index
    %628 = memref.load %arg2[%c46] : memref<376xf32, #tpu.memory_space<smem>>
    %c48 = arith.constant 48 : index
    %629 = memref.load %arg2[%c48] : memref<376xf32, #tpu.memory_space<smem>>
    %630 = vector.shape_cast %591 : vector<8x128xf32> to vector<1x8x128xf32>
    %cst_135 = arith.constant dense<0.000000e+00> : vector<1xf32>
    %631 = vector.multi_reduction <add>, %630, %cst_135 [1, 2] : vector<1x8x128xf32> to vector<1xf32>
    %632 = vector.shape_cast %631 : vector<1xf32> to vector<1x1x1xf32>
    %633 = vector.extract %632[0, 0, 0] : f32 from vector<1x1x1xf32>
    %634 = arith.mulf %591, %591 : vector<8x128xf32>
    %635 = vector.shape_cast %634 : vector<8x128xf32> to vector<1x8x128xf32>
    %cst_136 = arith.constant dense<0.000000e+00> : vector<1xf32>
    %636 = vector.multi_reduction <add>, %635, %cst_136 [1, 2] : vector<1x8x128xf32> to vector<1xf32>
    %637 = vector.shape_cast %636 : vector<1xf32> to vector<1x1x1xf32>
    %638 = vector.extract %637[0, 0, 0] : f32 from vector<1x1x1xf32>
    %cst_137 = arith.constant 0.00416666688 : f32
    %639 = arith.mulf %633, %cst_137 : f32
    %cst_138 = arith.constant 0.00416666688 : f32
    %640 = arith.mulf %638, %cst_138 : f32
    %641 = arith.mulf %639, %639 : f32
    %642 = arith.subf %640, %641 : f32
    %cst_139 = arith.constant 0.000000e+00 : f32
    %643 = arith.maximumf %642, %cst_139 : f32
    %644 = vector.broadcast %639 : f32 to vector<8x128xf32>
    %645 = arith.subf %591, %644 : vector<8x128xf32>
    %646 = vector.broadcast %628 : f32 to vector<8x128xf32>
    %647 = arith.mulf %646, %645 : vector<8x128xf32>
    %cst_140 = arith.constant 9.99999974E-6 : f32
    %648 = arith.addf %643, %cst_140 : f32
    %649 = math.rsqrt %648 : f32
    %650 = vector.broadcast %649 : f32 to vector<8x128xf32>
    %651 = arith.mulf %647, %650 : vector<8x128xf32>
    %652 = vector.broadcast %629 : f32 to vector<8x128xf32>
    %653 = arith.addf %651, %652 : vector<8x128xf32>
    %cst_141 = arith.constant 0.000000e+00 : f32
    %654 = vector.broadcast %cst_141 : f32 to vector<8x128xf32>
    %655 = arith.select %565, %653, %654 : vector<8x128xi1>, vector<8x128xf32>
    %cst_142 = arith.constant 5.000000e-01 : f32
    %656 = vector.broadcast %cst_142 : f32 to vector<8x128xf32>
    %657 = arith.mulf %656, %655 : vector<8x128xf32>
    %658 = math.tanh %657 : vector<8x128xf32>
    %cst_143 = arith.constant 5.000000e-01 : f32
    %659 = vector.broadcast %cst_143 : f32 to vector<8x128xf32>
    %660 = arith.mulf %659, %658 : vector<8x128xf32>
    %cst_144 = arith.constant 5.000000e-01 : f32
    %661 = vector.broadcast %cst_144 : f32 to vector<8x128xf32>
    %662 = arith.addf %661, %660 : vector<8x128xf32>
    %663 = arith.mulf %655, %662 : vector<8x128xf32>
    %c32_i32 = arith.constant 32 : i32
    %664 = vector.broadcast %c32_i32 : i32 to vector<8x128xi32>
    %665 = arith.cmpi slt, %0, %664 : vector<8x128xi32>
    %c1_i32_145 = arith.constant 1 : i32
    %666 = tpu.dynamic_rotate %627 by %c1_i32_145 dim 1 : vector<8x128xf32>, i32 -> vector<8x128xf32>
    %c1_i32_146 = arith.constant 1 : i32
    %667 = tpu.dynamic_rotate %663 by %c1_i32_146 dim 1 : vector<8x128xf32>, i32 -> vector<8x128xf32>
    %c49 = arith.constant 49 : index
    %668 = memref.load %arg2[%c49] : memref<376xf32, #tpu.memory_space<smem>>
    %669 = vector.broadcast %668 : f32 to vector<8x128xf32>
    %670 = arith.mulf %669, %666 : vector<8x128xf32>
    %c50 = arith.constant 50 : index
    %671 = memref.load %arg2[%c50] : memref<376xf32, #tpu.memory_space<smem>>
    %672 = vector.broadcast %671 : f32 to vector<8x128xf32>
    %673 = arith.mulf %672, %667 : vector<8x128xf32>
    %674 = arith.addf %670, %673 : vector<8x128xf32>
    %c51 = arith.constant 51 : index
    %675 = memref.load %arg2[%c51] : memref<376xf32, #tpu.memory_space<smem>>
    %676 = vector.broadcast %675 : f32 to vector<8x128xf32>
    %677 = arith.addf %674, %676 : vector<8x128xf32>
    %cst_147 = arith.constant 0.000000e+00 : f32
    %678 = vector.broadcast %cst_147 : f32 to vector<8x128xf32>
    %679 = arith.select %665, %677, %678 : vector<8x128xi1>, vector<8x128xf32>
    %c52 = arith.constant 52 : index
    %680 = memref.load %arg2[%c52] : memref<376xf32, #tpu.memory_space<smem>>
    %c53 = arith.constant 53 : index
    %681 = memref.load %arg2[%c53] : memref<376xf32, #tpu.memory_space<smem>>
    %682 = vector.shape_cast %679 : vector<8x128xf32> to vector<1x8x128xf32>
    %cst_148 = arith.constant dense<0.000000e+00> : vector<1xf32>
    %683 = vector.multi_reduction <add>, %682, %cst_148 [1, 2] : vector<1x8x128xf32> to vector<1xf32>
    %684 = vector.shape_cast %683 : vector<1xf32> to vector<1x1x1xf32>
    %685 = vector.extract %684[0, 0, 0] : f32 from vector<1x1x1xf32>
    %686 = arith.mulf %679, %679 : vector<8x128xf32>
    %687 = vector.shape_cast %686 : vector<8x128xf32> to vector<1x8x128xf32>
    %cst_149 = arith.constant dense<0.000000e+00> : vector<1xf32>
    %688 = vector.multi_reduction <add>, %687, %cst_149 [1, 2] : vector<1x8x128xf32> to vector<1xf32>
    %689 = vector.shape_cast %688 : vector<1xf32> to vector<1x1x1xf32>
    %690 = vector.extract %689[0, 0, 0] : f32 from vector<1x1x1xf32>
    %cst_150 = arith.constant 3.906250e-03 : f32
    %691 = arith.mulf %685, %cst_150 : f32
    %cst_151 = arith.constant 3.906250e-03 : f32
    %692 = arith.mulf %690, %cst_151 : f32
    %693 = arith.mulf %691, %691 : f32
    %694 = arith.subf %692, %693 : f32
    %cst_152 = arith.constant 0.000000e+00 : f32
    %695 = arith.maximumf %694, %cst_152 : f32
    %696 = vector.broadcast %691 : f32 to vector<8x128xf32>
    %697 = arith.subf %679, %696 : vector<8x128xf32>
    %698 = vector.broadcast %680 : f32 to vector<8x128xf32>
    %699 = arith.mulf %698, %697 : vector<8x128xf32>
    %cst_153 = arith.constant 9.99999974E-6 : f32
    %700 = arith.addf %695, %cst_153 : f32
    %701 = math.rsqrt %700 : f32
    %702 = vector.broadcast %701 : f32 to vector<8x128xf32>
    %703 = arith.mulf %699, %702 : vector<8x128xf32>
    %704 = vector.broadcast %681 : f32 to vector<8x128xf32>
    %705 = arith.addf %703, %704 : vector<8x128xf32>
    %cst_154 = arith.constant 0.000000e+00 : f32
    %706 = vector.broadcast %cst_154 : f32 to vector<8x128xf32>
    %707 = arith.select %665, %705, %706 : vector<8x128xi1>, vector<8x128xf32>
    %cst_155 = arith.constant 5.000000e-01 : f32
    %708 = vector.broadcast %cst_155 : f32 to vector<8x128xf32>
    %709 = arith.mulf %708, %707 : vector<8x128xf32>
    %710 = math.tanh %709 : vector<8x128xf32>
    %cst_156 = arith.constant 5.000000e-01 : f32
    %711 = vector.broadcast %cst_156 : f32 to vector<8x128xf32>
    %712 = arith.mulf %711, %710 : vector<8x128xf32>
    %cst_157 = arith.constant 5.000000e-01 : f32
    %713 = vector.broadcast %cst_157 : f32 to vector<8x128xf32>
    %714 = arith.addf %713, %712 : vector<8x128xf32>
    %715 = arith.mulf %707, %714 : vector<8x128xf32>
    %c180 = arith.constant 180 : index
    %716 = memref.load %arg2[%c180] : memref<376xf32, #tpu.memory_space<smem>>
    %c181 = arith.constant 181 : index
    %717 = memref.load %arg2[%c181] : memref<376xf32, #tpu.memory_space<smem>>
    %718 = vector.shape_cast %715 : vector<8x128xf32> to vector<1x8x128xf32>
    %cst_158 = arith.constant dense<0.000000e+00> : vector<1xf32>
    %719 = vector.multi_reduction <add>, %718, %cst_158 [1, 2] : vector<1x8x128xf32> to vector<1xf32>
    %720 = vector.shape_cast %719 : vector<1xf32> to vector<1x1x1xf32>
    %721 = vector.extract %720[0, 0, 0] : f32 from vector<1x1x1xf32>
    %722 = arith.mulf %715, %715 : vector<8x128xf32>
    %723 = vector.shape_cast %722 : vector<8x128xf32> to vector<1x8x128xf32>
    %cst_159 = arith.constant dense<0.000000e+00> : vector<1xf32>
    %724 = vector.multi_reduction <add>, %723, %cst_159 [1, 2] : vector<1x8x128xf32> to vector<1xf32>
    %725 = vector.shape_cast %724 : vector<1xf32> to vector<1x1x1xf32>
    %726 = vector.extract %725[0, 0, 0] : f32 from vector<1x1x1xf32>
    %cst_160 = arith.constant 3.906250e-03 : f32
    %727 = arith.mulf %721, %cst_160 : f32
    %cst_161 = arith.constant 3.906250e-03 : f32
    %728 = arith.mulf %726, %cst_161 : f32
    %729 = arith.mulf %727, %727 : f32
    %730 = arith.subf %728, %729 : f32
    %cst_162 = arith.constant 0.000000e+00 : f32
    %731 = arith.maximumf %730, %cst_162 : f32
    %732 = vector.broadcast %727 : f32 to vector<8x128xf32>
    %733 = arith.subf %715, %732 : vector<8x128xf32>
    %734 = vector.broadcast %716 : f32 to vector<8x128xf32>
    %735 = arith.mulf %734, %733 : vector<8x128xf32>
    %cst_163 = arith.constant 9.99999974E-6 : f32
    %736 = arith.addf %731, %cst_163 : f32
    %737 = math.rsqrt %736 : f32
    %738 = vector.broadcast %737 : f32 to vector<8x128xf32>
    %739 = arith.mulf %735, %738 : vector<8x128xf32>
    %740 = vector.broadcast %717 : f32 to vector<8x128xf32>
    %741 = arith.addf %739, %740 : vector<8x128xf32>
    %cst_164 = arith.constant 0.000000e+00 : f32
    %742 = vector.broadcast %cst_164 : f32 to vector<8x128xf32>
    %743 = arith.select %665, %741, %742 : vector<8x128xi1>, vector<8x128xf32>
    %c182 = arith.constant 182 : index
    %744 = memref.load %arg2[%c182] : memref<376xf32, #tpu.memory_space<smem>>
    %745 = vector.broadcast %744 : f32 to vector<8x128xf32>
    %746 = arith.mulf %745, %743 : vector<8x128xf32>
    %c183 = arith.constant 183 : index
    %747 = memref.load %arg2[%c183] : memref<376xf32, #tpu.memory_space<smem>>
    %748 = vector.broadcast %747 : f32 to vector<8x128xf32>
    %749 = arith.addf %746, %748 : vector<8x128xf32>
    %cst_165 = arith.constant 0.000000e+00 : f32
    %750 = vector.broadcast %cst_165 : f32 to vector<8x128xf32>
    %751 = arith.select %665, %749, %750 : vector<8x128xi1>, vector<8x128xf32>
    %c184 = arith.constant 184 : index
    %752 = memref.load %arg2[%c184] : memref<376xf32, #tpu.memory_space<smem>>
    %c185 = arith.constant 185 : index
    %753 = memref.load %arg2[%c185] : memref<376xf32, #tpu.memory_space<smem>>
    %754 = vector.shape_cast %751 : vector<8x128xf32> to vector<1x8x128xf32>
    %cst_166 = arith.constant dense<0.000000e+00> : vector<1xf32>
    %755 = vector.multi_reduction <add>, %754, %cst_166 [1, 2] : vector<1x8x128xf32> to vector<1xf32>
    %756 = vector.shape_cast %755 : vector<1xf32> to vector<1x1x1xf32>
    %757 = vector.extract %756[0, 0, 0] : f32 from vector<1x1x1xf32>
    %758 = arith.mulf %751, %751 : vector<8x128xf32>
    %759 = vector.shape_cast %758 : vector<8x128xf32> to vector<1x8x128xf32>
    %cst_167 = arith.constant dense<0.000000e+00> : vector<1xf32>
    %760 = vector.multi_reduction <add>, %759, %cst_167 [1, 2] : vector<1x8x128xf32> to vector<1xf32>
    %761 = vector.shape_cast %760 : vector<1xf32> to vector<1x1x1xf32>
    %762 = vector.extract %761[0, 0, 0] : f32 from vector<1x1x1xf32>
    %cst_168 = arith.constant 3.906250e-03 : f32
    %763 = arith.mulf %757, %cst_168 : f32
    %cst_169 = arith.constant 3.906250e-03 : f32
    %764 = arith.mulf %762, %cst_169 : f32
    %765 = arith.mulf %763, %763 : f32
    %766 = arith.subf %764, %765 : f32
    %cst_170 = arith.constant 0.000000e+00 : f32
    %767 = arith.maximumf %766, %cst_170 : f32
    %768 = vector.broadcast %763 : f32 to vector<8x128xf32>
    %769 = arith.subf %751, %768 : vector<8x128xf32>
    %770 = vector.broadcast %752 : f32 to vector<8x128xf32>
    %771 = arith.mulf %770, %769 : vector<8x128xf32>
    %cst_171 = arith.constant 9.99999974E-6 : f32
    %772 = arith.addf %767, %cst_171 : f32
    %773 = math.rsqrt %772 : f32
    %774 = vector.broadcast %773 : f32 to vector<8x128xf32>
    %775 = arith.mulf %771, %774 : vector<8x128xf32>
    %776 = vector.broadcast %753 : f32 to vector<8x128xf32>
    %777 = arith.addf %775, %776 : vector<8x128xf32>
    %cst_172 = arith.constant 0.000000e+00 : f32
    %778 = vector.broadcast %cst_172 : f32 to vector<8x128xf32>
    %779 = arith.select %665, %777, %778 : vector<8x128xi1>, vector<8x128xf32>
    %cst_173 = arith.constant 5.000000e-01 : f32
    %780 = vector.broadcast %cst_173 : f32 to vector<8x128xf32>
    %781 = arith.mulf %780, %779 : vector<8x128xf32>
    %782 = math.tanh %781 : vector<8x128xf32>
    %cst_174 = arith.constant 5.000000e-01 : f32
    %783 = vector.broadcast %cst_174 : f32 to vector<8x128xf32>
    %784 = arith.mulf %783, %782 : vector<8x128xf32>
    %cst_175 = arith.constant 5.000000e-01 : f32
    %785 = vector.broadcast %cst_175 : f32 to vector<8x128xf32>
    %786 = arith.addf %785, %784 : vector<8x128xf32>
    %787 = arith.mulf %779, %786 : vector<8x128xf32>
    %c186 = arith.constant 186 : index
    %788 = memref.load %arg2[%c186] : memref<376xf32, #tpu.memory_space<smem>>
    %c187 = arith.constant 187 : index
    %789 = memref.load %arg2[%c187] : memref<376xf32, #tpu.memory_space<smem>>
    %c188 = arith.constant 188 : index
    %790 = memref.load %arg2[%c188] : memref<376xf32, #tpu.memory_space<smem>>
    %c189 = arith.constant 189 : index
    %791 = memref.load %arg2[%c189] : memref<376xf32, #tpu.memory_space<smem>>
    %c190 = arith.constant 190 : index
    %792 = memref.load %arg2[%c190] : memref<376xf32, #tpu.memory_space<smem>>
    %c191 = arith.constant 191 : index
    %793 = memref.load %arg2[%c191] : memref<376xf32, #tpu.memory_space<smem>>
    %794 = vector.broadcast %790 : f32 to vector<8x128xf32>
    %795 = arith.mulf %794, %787 : vector<8x128xf32>
    %c2_i32_176 = arith.constant 2 : i32
    %796 = tpu.dynamic_rotate %787 by %c2_i32_176 dim 1 : vector<8x128xf32>, i32 -> vector<8x128xf32>
    %797 = vector.broadcast %788 : f32 to vector<8x128xf32>
    %798 = arith.mulf %797, %796 : vector<8x128xf32>
    %799 = arith.addf %795, %798 : vector<8x128xf32>
    %c1_i32_177 = arith.constant 1 : i32
    %800 = tpu.dynamic_rotate %787 by %c1_i32_177 dim 1 : vector<8x128xf32>, i32 -> vector<8x128xf32>
    %801 = vector.broadcast %789 : f32 to vector<8x128xf32>
    %802 = arith.mulf %801, %800 : vector<8x128xf32>
    %803 = arith.addf %799, %802 : vector<8x128xf32>
    %c127_i32_178 = arith.constant 127 : i32
    %804 = tpu.dynamic_rotate %787 by %c127_i32_178 dim 1 : vector<8x128xf32>, i32 -> vector<8x128xf32>
    %805 = vector.broadcast %791 : f32 to vector<8x128xf32>
    %806 = arith.mulf %805, %804 : vector<8x128xf32>
    %807 = arith.addf %803, %806 : vector<8x128xf32>
    %c126_i32_179 = arith.constant 126 : i32
    %808 = tpu.dynamic_rotate %787 by %c126_i32_179 dim 1 : vector<8x128xf32>, i32 -> vector<8x128xf32>
    %809 = vector.broadcast %792 : f32 to vector<8x128xf32>
    %810 = arith.mulf %809, %808 : vector<8x128xf32>
    %811 = arith.addf %807, %810 : vector<8x128xf32>
    %812 = vector.broadcast %793 : f32 to vector<8x128xf32>
    %813 = arith.addf %811, %812 : vector<8x128xf32>
    %cst_180 = arith.constant 0.000000e+00 : f32
    %814 = vector.broadcast %cst_180 : f32 to vector<8x128xf32>
    %815 = arith.select %665, %813, %814 : vector<8x128xi1>, vector<8x128xf32>
    %c192 = arith.constant 192 : index
    %816 = memref.load %arg2[%c192] : memref<376xf32, #tpu.memory_space<smem>>
    %c193 = arith.constant 193 : index
    %817 = memref.load %arg2[%c193] : memref<376xf32, #tpu.memory_space<smem>>
    %818 = vector.shape_cast %815 : vector<8x128xf32> to vector<1x8x128xf32>
    %cst_181 = arith.constant dense<0.000000e+00> : vector<1xf32>
    %819 = vector.multi_reduction <add>, %818, %cst_181 [1, 2] : vector<1x8x128xf32> to vector<1xf32>
    %820 = vector.shape_cast %819 : vector<1xf32> to vector<1x1x1xf32>
    %821 = vector.extract %820[0, 0, 0] : f32 from vector<1x1x1xf32>
    %822 = arith.mulf %815, %815 : vector<8x128xf32>
    %823 = vector.shape_cast %822 : vector<8x128xf32> to vector<1x8x128xf32>
    %cst_182 = arith.constant dense<0.000000e+00> : vector<1xf32>
    %824 = vector.multi_reduction <add>, %823, %cst_182 [1, 2] : vector<1x8x128xf32> to vector<1xf32>
    %825 = vector.shape_cast %824 : vector<1xf32> to vector<1x1x1xf32>
    %826 = vector.extract %825[0, 0, 0] : f32 from vector<1x1x1xf32>
    %cst_183 = arith.constant 3.906250e-03 : f32
    %827 = arith.mulf %821, %cst_183 : f32
    %cst_184 = arith.constant 3.906250e-03 : f32
    %828 = arith.mulf %826, %cst_184 : f32
    %829 = arith.mulf %827, %827 : f32
    %830 = arith.subf %828, %829 : f32
    %cst_185 = arith.constant 0.000000e+00 : f32
    %831 = arith.maximumf %830, %cst_185 : f32
    %832 = vector.broadcast %827 : f32 to vector<8x128xf32>
    %833 = arith.subf %815, %832 : vector<8x128xf32>
    %834 = vector.broadcast %816 : f32 to vector<8x128xf32>
    %835 = arith.mulf %834, %833 : vector<8x128xf32>
    %cst_186 = arith.constant 9.99999974E-6 : f32
    %836 = arith.addf %831, %cst_186 : f32
    %837 = math.rsqrt %836 : f32
    %838 = vector.broadcast %837 : f32 to vector<8x128xf32>
    %839 = arith.mulf %835, %838 : vector<8x128xf32>
    %840 = vector.broadcast %817 : f32 to vector<8x128xf32>
    %841 = arith.addf %839, %840 : vector<8x128xf32>
    %cst_187 = arith.constant 0.000000e+00 : f32
    %842 = vector.broadcast %cst_187 : f32 to vector<8x128xf32>
    %843 = arith.select %665, %841, %842 : vector<8x128xi1>, vector<8x128xf32>
    %cst_188 = arith.constant 5.000000e-01 : f32
    %844 = vector.broadcast %cst_188 : f32 to vector<8x128xf32>
    %845 = arith.mulf %844, %843 : vector<8x128xf32>
    %846 = math.tanh %845 : vector<8x128xf32>
    %cst_189 = arith.constant 5.000000e-01 : f32
    %847 = vector.broadcast %cst_189 : f32 to vector<8x128xf32>
    %848 = arith.mulf %847, %846 : vector<8x128xf32>
    %cst_190 = arith.constant 5.000000e-01 : f32
    %849 = vector.broadcast %cst_190 : f32 to vector<8x128xf32>
    %850 = arith.addf %849, %848 : vector<8x128xf32>
    %851 = arith.mulf %843, %850 : vector<8x128xf32>
    %c194 = arith.constant 194 : index
    %852 = memref.load %arg2[%c194] : memref<376xf32, #tpu.memory_space<smem>>
    %853 = vector.broadcast %852 : f32 to vector<8x128xf32>
    %854 = arith.mulf %853, %851 : vector<8x128xf32>
    %c195 = arith.constant 195 : index
    %855 = memref.load %arg2[%c195] : memref<376xf32, #tpu.memory_space<smem>>
    %856 = vector.broadcast %855 : f32 to vector<8x128xf32>
    %857 = arith.addf %854, %856 : vector<8x128xf32>
    %cst_191 = arith.constant 0.000000e+00 : f32
    %858 = vector.broadcast %cst_191 : f32 to vector<8x128xf32>
    %859 = arith.select %665, %857, %858 : vector<8x128xi1>, vector<8x128xf32>
    %c196 = arith.constant 196 : index
    %860 = memref.load %arg2[%c196] : memref<376xf32, #tpu.memory_space<smem>>
    %c197 = arith.constant 197 : index
    %861 = memref.load %arg2[%c197] : memref<376xf32, #tpu.memory_space<smem>>
    %862 = vector.shape_cast %859 : vector<8x128xf32> to vector<1x8x128xf32>
    %cst_192 = arith.constant dense<0.000000e+00> : vector<1xf32>
    %863 = vector.multi_reduction <add>, %862, %cst_192 [1, 2] : vector<1x8x128xf32> to vector<1xf32>
    %864 = vector.shape_cast %863 : vector<1xf32> to vector<1x1x1xf32>
    %865 = vector.extract %864[0, 0, 0] : f32 from vector<1x1x1xf32>
    %866 = arith.mulf %859, %859 : vector<8x128xf32>
    %867 = vector.shape_cast %866 : vector<8x128xf32> to vector<1x8x128xf32>
    %cst_193 = arith.constant dense<0.000000e+00> : vector<1xf32>
    %868 = vector.multi_reduction <add>, %867, %cst_193 [1, 2] : vector<1x8x128xf32> to vector<1xf32>
    %869 = vector.shape_cast %868 : vector<1xf32> to vector<1x1x1xf32>
    %870 = vector.extract %869[0, 0, 0] : f32 from vector<1x1x1xf32>
    %cst_194 = arith.constant 3.906250e-03 : f32
    %871 = arith.mulf %865, %cst_194 : f32
    %cst_195 = arith.constant 3.906250e-03 : f32
    %872 = arith.mulf %870, %cst_195 : f32
    %873 = arith.mulf %871, %871 : f32
    %874 = arith.subf %872, %873 : f32
    %cst_196 = arith.constant 0.000000e+00 : f32
    %875 = arith.maximumf %874, %cst_196 : f32
    %876 = vector.broadcast %871 : f32 to vector<8x128xf32>
    %877 = arith.subf %859, %876 : vector<8x128xf32>
    %878 = vector.broadcast %860 : f32 to vector<8x128xf32>
    %879 = arith.mulf %878, %877 : vector<8x128xf32>
    %cst_197 = arith.constant 9.99999974E-6 : f32
    %880 = arith.addf %875, %cst_197 : f32
    %881 = math.rsqrt %880 : f32
    %882 = vector.broadcast %881 : f32 to vector<8x128xf32>
    %883 = arith.mulf %879, %882 : vector<8x128xf32>
    %884 = vector.broadcast %861 : f32 to vector<8x128xf32>
    %885 = arith.addf %883, %884 : vector<8x128xf32>
    %cst_198 = arith.constant 0.000000e+00 : f32
    %886 = vector.broadcast %cst_198 : f32 to vector<8x128xf32>
    %887 = arith.select %665, %885, %886 : vector<8x128xi1>, vector<8x128xf32>
    %cst_199 = arith.constant 1.000000e-01 : f32
    %888 = vector.broadcast %cst_199 : f32 to vector<8x128xf32>
    %889 = arith.mulf %888, %887 : vector<8x128xf32>
    %890 = arith.addf %715, %889 : vector<8x128xf32>
    %c288 = arith.constant 288 : index
    %891 = memref.load %arg2[%c288] : memref<376xf32, #tpu.memory_space<smem>>
    %c289 = arith.constant 289 : index
    %892 = memref.load %arg2[%c289] : memref<376xf32, #tpu.memory_space<smem>>
    %c290 = arith.constant 290 : index
    %893 = memref.load %arg2[%c290] : memref<376xf32, #tpu.memory_space<smem>>
    %c291 = arith.constant 291 : index
    %894 = memref.load %arg2[%c291] : memref<376xf32, #tpu.memory_space<smem>>
    %c292 = arith.constant 292 : index
    %895 = memref.load %arg2[%c292] : memref<376xf32, #tpu.memory_space<smem>>
    %c293 = arith.constant 293 : index
    %896 = memref.load %arg2[%c293] : memref<376xf32, #tpu.memory_space<smem>>
    %897 = vector.broadcast %893 : f32 to vector<8x128xf32>
    %898 = arith.mulf %897, %890 : vector<8x128xf32>
    %c2_i32_200 = arith.constant 2 : i32
    %899 = tpu.dynamic_rotate %890 by %c2_i32_200 dim 1 : vector<8x128xf32>, i32 -> vector<8x128xf32>
    %900 = vector.broadcast %891 : f32 to vector<8x128xf32>
    %901 = arith.mulf %900, %899 : vector<8x128xf32>
    %902 = arith.addf %898, %901 : vector<8x128xf32>
    %c1_i32_201 = arith.constant 1 : i32
    %903 = tpu.dynamic_rotate %890 by %c1_i32_201 dim 1 : vector<8x128xf32>, i32 -> vector<8x128xf32>
    %904 = vector.broadcast %892 : f32 to vector<8x128xf32>
    %905 = arith.mulf %904, %903 : vector<8x128xf32>
    %906 = arith.addf %902, %905 : vector<8x128xf32>
    %c127_i32_202 = arith.constant 127 : i32
    %907 = tpu.dynamic_rotate %890 by %c127_i32_202 dim 1 : vector<8x128xf32>, i32 -> vector<8x128xf32>
    %908 = vector.broadcast %894 : f32 to vector<8x128xf32>
    %909 = arith.mulf %908, %907 : vector<8x128xf32>
    %910 = arith.addf %906, %909 : vector<8x128xf32>
    %c126_i32_203 = arith.constant 126 : i32
    %911 = tpu.dynamic_rotate %890 by %c126_i32_203 dim 1 : vector<8x128xf32>, i32 -> vector<8x128xf32>
    %912 = vector.broadcast %895 : f32 to vector<8x128xf32>
    %913 = arith.mulf %912, %911 : vector<8x128xf32>
    %914 = arith.addf %910, %913 : vector<8x128xf32>
    %915 = vector.broadcast %896 : f32 to vector<8x128xf32>
    %916 = arith.addf %914, %915 : vector<8x128xf32>
    %cst_204 = arith.constant 0.000000e+00 : f32
    %917 = vector.broadcast %cst_204 : f32 to vector<8x128xf32>
    %918 = arith.select %665, %916, %917 : vector<8x128xi1>, vector<8x128xf32>
    %c294 = arith.constant 294 : index
    %919 = memref.load %arg2[%c294] : memref<376xf32, #tpu.memory_space<smem>>
    %920 = vector.broadcast %919 : f32 to vector<8x128xf32>
    %921 = arith.mulf %920, %918 : vector<8x128xf32>
    %c295 = arith.constant 295 : index
    %922 = memref.load %arg2[%c295] : memref<376xf32, #tpu.memory_space<smem>>
    %923 = vector.broadcast %922 : f32 to vector<8x128xf32>
    %924 = arith.addf %921, %923 : vector<8x128xf32>
    %cst_205 = arith.constant 0.000000e+00 : f32
    %925 = vector.broadcast %cst_205 : f32 to vector<8x128xf32>
    %926 = arith.select %665, %924, %925 : vector<8x128xi1>, vector<8x128xf32>
    %c296 = arith.constant 296 : index
    %927 = memref.load %arg2[%c296] : memref<376xf32, #tpu.memory_space<smem>>
    %c297 = arith.constant 297 : index
    %928 = memref.load %arg2[%c297] : memref<376xf32, #tpu.memory_space<smem>>
    %929 = vector.shape_cast %926 : vector<8x128xf32> to vector<1x8x128xf32>
    %cst_206 = arith.constant dense<0.000000e+00> : vector<1xf32>
    %930 = vector.multi_reduction <add>, %929, %cst_206 [1, 2] : vector<1x8x128xf32> to vector<1xf32>
    %931 = vector.shape_cast %930 : vector<1xf32> to vector<1x1x1xf32>
    %932 = vector.extract %931[0, 0, 0] : f32 from vector<1x1x1xf32>
    %933 = arith.mulf %926, %926 : vector<8x128xf32>
    %934 = vector.shape_cast %933 : vector<8x128xf32> to vector<1x8x128xf32>
    %cst_207 = arith.constant dense<0.000000e+00> : vector<1xf32>
    %935 = vector.multi_reduction <add>, %934, %cst_207 [1, 2] : vector<1x8x128xf32> to vector<1xf32>
    %936 = vector.shape_cast %935 : vector<1xf32> to vector<1x1x1xf32>
    %937 = vector.extract %936[0, 0, 0] : f32 from vector<1x1x1xf32>
    %cst_208 = arith.constant 3.906250e-03 : f32
    %938 = arith.mulf %932, %cst_208 : f32
    %cst_209 = arith.constant 3.906250e-03 : f32
    %939 = arith.mulf %937, %cst_209 : f32
    %940 = arith.mulf %938, %938 : f32
    %941 = arith.subf %939, %940 : f32
    %cst_210 = arith.constant 0.000000e+00 : f32
    %942 = arith.maximumf %941, %cst_210 : f32
    %943 = vector.broadcast %938 : f32 to vector<8x128xf32>
    %944 = arith.subf %926, %943 : vector<8x128xf32>
    %945 = vector.broadcast %927 : f32 to vector<8x128xf32>
    %946 = arith.mulf %945, %944 : vector<8x128xf32>
    %cst_211 = arith.constant 9.99999974E-6 : f32
    %947 = arith.addf %942, %cst_211 : f32
    %948 = math.rsqrt %947 : f32
    %949 = vector.broadcast %948 : f32 to vector<8x128xf32>
    %950 = arith.mulf %946, %949 : vector<8x128xf32>
    %951 = vector.broadcast %928 : f32 to vector<8x128xf32>
    %952 = arith.addf %950, %951 : vector<8x128xf32>
    %cst_212 = arith.constant 0.000000e+00 : f32
    %953 = vector.broadcast %cst_212 : f32 to vector<8x128xf32>
    %954 = arith.select %665, %952, %953 : vector<8x128xi1>, vector<8x128xf32>
    %cst_213 = arith.constant 5.000000e-01 : f32
    %955 = vector.broadcast %cst_213 : f32 to vector<8x128xf32>
    %956 = arith.mulf %955, %954 : vector<8x128xf32>
    %957 = math.tanh %956 : vector<8x128xf32>
    %cst_214 = arith.constant 5.000000e-01 : f32
    %958 = vector.broadcast %cst_214 : f32 to vector<8x128xf32>
    %959 = arith.mulf %958, %957 : vector<8x128xf32>
    %cst_215 = arith.constant 5.000000e-01 : f32
    %960 = vector.broadcast %cst_215 : f32 to vector<8x128xf32>
    %961 = arith.addf %960, %959 : vector<8x128xf32>
    %962 = arith.mulf %954, %961 : vector<8x128xf32>
    %c298 = arith.constant 298 : index
    %963 = memref.load %arg2[%c298] : memref<376xf32, #tpu.memory_space<smem>>
    %c299 = arith.constant 299 : index
    %964 = memref.load %arg2[%c299] : memref<376xf32, #tpu.memory_space<smem>>
    %c300 = arith.constant 300 : index
    %965 = memref.load %arg2[%c300] : memref<376xf32, #tpu.memory_space<smem>>
    %c301 = arith.constant 301 : index
    %966 = memref.load %arg2[%c301] : memref<376xf32, #tpu.memory_space<smem>>
    %967 = vector.broadcast %964 : f32 to vector<8x128xf32>
    %968 = arith.mulf %967, %962 : vector<8x128xf32>
    %c1_i32_216 = arith.constant 1 : i32
    %969 = tpu.dynamic_rotate %962 by %c1_i32_216 dim 1 : vector<8x128xf32>, i32 -> vector<8x128xf32>
    %970 = vector.broadcast %963 : f32 to vector<8x128xf32>
    %971 = arith.mulf %970, %969 : vector<8x128xf32>
    %972 = arith.addf %968, %971 : vector<8x128xf32>
    %c127_i32_217 = arith.constant 127 : i32
    %973 = tpu.dynamic_rotate %962 by %c127_i32_217 dim 1 : vector<8x128xf32>, i32 -> vector<8x128xf32>
    %974 = vector.broadcast %965 : f32 to vector<8x128xf32>
    %975 = arith.mulf %974, %973 : vector<8x128xf32>
    %976 = arith.addf %972, %975 : vector<8x128xf32>
    %977 = vector.broadcast %966 : f32 to vector<8x128xf32>
    %978 = arith.addf %976, %977 : vector<8x128xf32>
    %cst_218 = arith.constant 0.000000e+00 : f32
    %979 = vector.broadcast %cst_218 : f32 to vector<8x128xf32>
    %980 = arith.select %665, %978, %979 : vector<8x128xi1>, vector<8x128xf32>
    %cst_219 = arith.constant 1.000000e-01 : f32
    %981 = vector.broadcast %cst_219 : f32 to vector<8x128xf32>
    %982 = arith.mulf %981, %980 : vector<8x128xf32>
    %983 = arith.addf %890, %982 : vector<8x128xf32>
    %cst_220 = arith.constant 5.000000e-01 : f32
    %984 = vector.broadcast %cst_220 : f32 to vector<8x128xf32>
    %985 = arith.mulf %984, %983 : vector<8x128xf32>
    %986 = math.tanh %985 : vector<8x128xf32>
    %cst_221 = arith.constant 5.000000e-01 : f32
    %987 = vector.broadcast %cst_221 : f32 to vector<8x128xf32>
    %988 = arith.mulf %987, %986 : vector<8x128xf32>
    %cst_222 = arith.constant 5.000000e-01 : f32
    %989 = vector.broadcast %cst_222 : f32 to vector<8x128xf32>
    %990 = arith.addf %989, %988 : vector<8x128xf32>
    %991 = arith.mulf %983, %990 : vector<8x128xf32>
    %c302 = arith.constant 302 : index
    %992 = memref.load %arg2[%c302] : memref<376xf32, #tpu.memory_space<smem>>
    %993 = vector.broadcast %992 : f32 to vector<8x128xf32>
    %994 = arith.mulf %993, %991 : vector<8x128xf32>
    %c304 = arith.constant 304 : index
    %995 = memref.load %arg2[%c304] : memref<376xf32, #tpu.memory_space<smem>>
    %996 = vector.broadcast %995 : f32 to vector<8x128xf32>
    %997 = arith.addf %994, %996 : vector<8x128xf32>
    %c303 = arith.constant 303 : index
    %998 = memref.load %arg2[%c303] : memref<376xf32, #tpu.memory_space<smem>>
    %999 = vector.broadcast %998 : f32 to vector<8x128xf32>
    %1000 = arith.mulf %999, %991 : vector<8x128xf32>
    %c305 = arith.constant 305 : index
    %1001 = memref.load %arg2[%c305] : memref<376xf32, #tpu.memory_space<smem>>
    %1002 = vector.broadcast %1001 : f32 to vector<8x128xf32>
    %1003 = arith.addf %1000, %1002 : vector<8x128xf32>
    %cst_223 = arith.constant 5.000000e-01 : f32
    %1004 = vector.broadcast %cst_223 : f32 to vector<8x128xf32>
    %1005 = arith.mulf %1004, %1003 : vector<8x128xf32>
    %1006 = math.exp %1005 : vector<8x128xf32>
    %c1_224 = arith.constant 1 : index
    %c0_225 = arith.constant 0 : index
    %c0_226 = arith.constant 0 : index
    %1007 = vector.load %arg1[%c1_224, %c0_225, %c0_226] : memref<5x8x128xf32, #tpu.memory_space<vmem>>, vector<1x8x128xf32>
    %1008 = vector.shape_cast %1007 : vector<1x8x128xf32> to vector<8x128xf32>
    %1009 = arith.mulf %1006, %1008 : vector<8x128xf32>
    %1010 = arith.addf %997, %1009 : vector<8x128xf32>
    %cst_227 = arith.constant 0.000000e+00 : f32
    %1011 = vector.broadcast %cst_227 : f32 to vector<8x128xf32>
    %1012 = arith.select %665, %1010, %1011 : vector<8x128xi1>, vector<8x128xf32>
    %c34_i32 = arith.constant 34 : i32
    %1013 = vector.broadcast %c34_i32 : i32 to vector<8x128xi32>
    %1014 = arith.cmpi slt, %0, %1013 : vector<8x128xi32>
    %c1_i32_228 = arith.constant 1 : i32
    %1015 = tpu.dynamic_rotate %890 by %c1_i32_228 dim 1 : vector<8x128xf32>, i32 -> vector<8x128xf32>
    %c1_i32_229 = arith.constant 1 : i32
    %1016 = tpu.dynamic_rotate %1012 by %c1_i32_229 dim 1 : vector<8x128xf32>, i32 -> vector<8x128xf32>
    %c54 = arith.constant 54 : index
    %1017 = memref.load %arg2[%c54] : memref<376xf32, #tpu.memory_space<smem>>
    %1018 = vector.broadcast %1017 : f32 to vector<8x128xf32>
    %1019 = arith.mulf %1018, %1015 : vector<8x128xf32>
    %c55 = arith.constant 55 : index
    %1020 = memref.load %arg2[%c55] : memref<376xf32, #tpu.memory_space<smem>>
    %1021 = vector.broadcast %1020 : f32 to vector<8x128xf32>
    %1022 = arith.mulf %1021, %1016 : vector<8x128xf32>
    %1023 = arith.addf %1019, %1022 : vector<8x128xf32>
    %c58 = arith.constant 58 : index
    %1024 = memref.load %arg2[%c58] : memref<376xf32, #tpu.memory_space<smem>>
    %1025 = vector.broadcast %1024 : f32 to vector<8x128xf32>
    %1026 = arith.addf %1023, %1025 : vector<8x128xf32>
    %cst_230 = arith.constant 0.000000e+00 : f32
    %1027 = vector.broadcast %cst_230 : f32 to vector<8x128xf32>
    %1028 = arith.select %1014, %1026, %1027 : vector<8x128xi1>, vector<8x128xf32>
    %c56 = arith.constant 56 : index
    %1029 = memref.load %arg2[%c56] : memref<376xf32, #tpu.memory_space<smem>>
    %1030 = vector.broadcast %1029 : f32 to vector<8x128xf32>
    %1031 = arith.mulf %1030, %1015 : vector<8x128xf32>
    %c57 = arith.constant 57 : index
    %1032 = memref.load %arg2[%c57] : memref<376xf32, #tpu.memory_space<smem>>
    %1033 = vector.broadcast %1032 : f32 to vector<8x128xf32>
    %1034 = arith.mulf %1033, %1016 : vector<8x128xf32>
    %1035 = arith.addf %1031, %1034 : vector<8x128xf32>
    %c59 = arith.constant 59 : index
    %1036 = memref.load %arg2[%c59] : memref<376xf32, #tpu.memory_space<smem>>
    %1037 = vector.broadcast %1036 : f32 to vector<8x128xf32>
    %1038 = arith.addf %1035, %1037 : vector<8x128xf32>
    %cst_231 = arith.constant 0.000000e+00 : f32
    %1039 = vector.broadcast %cst_231 : f32 to vector<8x128xf32>
    %1040 = arith.select %1014, %1038, %1039 : vector<8x128xi1>, vector<8x128xf32>
    %c36_i32 = arith.constant 36 : i32
    %1041 = vector.broadcast %c36_i32 : i32 to vector<8x128xi32>
    %1042 = arith.cmpi slt, %0, %1041 : vector<8x128xi32>
    %c1_i32_232 = arith.constant 1 : i32
    %1043 = tpu.dynamic_rotate %1028 by %c1_i32_232 dim 1 : vector<8x128xf32>, i32 -> vector<8x128xf32>
    %c1_i32_233 = arith.constant 1 : i32
    %1044 = tpu.dynamic_rotate %1040 by %c1_i32_233 dim 1 : vector<8x128xf32>, i32 -> vector<8x128xf32>
    %c60 = arith.constant 60 : index
    %1045 = memref.load %arg2[%c60] : memref<376xf32, #tpu.memory_space<smem>>
    %1046 = vector.broadcast %1045 : f32 to vector<8x128xf32>
    %1047 = arith.mulf %1046, %1043 : vector<8x128xf32>
    %c61 = arith.constant 61 : index
    %1048 = memref.load %arg2[%c61] : memref<376xf32, #tpu.memory_space<smem>>
    %1049 = vector.broadcast %1048 : f32 to vector<8x128xf32>
    %1050 = arith.mulf %1049, %1044 : vector<8x128xf32>
    %1051 = arith.addf %1047, %1050 : vector<8x128xf32>
    %c64 = arith.constant 64 : index
    %1052 = memref.load %arg2[%c64] : memref<376xf32, #tpu.memory_space<smem>>
    %1053 = vector.broadcast %1052 : f32 to vector<8x128xf32>
    %1054 = arith.addf %1051, %1053 : vector<8x128xf32>
    %cst_234 = arith.constant 0.000000e+00 : f32
    %1055 = vector.broadcast %cst_234 : f32 to vector<8x128xf32>
    %1056 = arith.select %1042, %1054, %1055 : vector<8x128xi1>, vector<8x128xf32>
    %c62 = arith.constant 62 : index
    %1057 = memref.load %arg2[%c62] : memref<376xf32, #tpu.memory_space<smem>>
    %1058 = vector.broadcast %1057 : f32 to vector<8x128xf32>
    %1059 = arith.mulf %1058, %1043 : vector<8x128xf32>
    %c63 = arith.constant 63 : index
    %1060 = memref.load %arg2[%c63] : memref<376xf32, #tpu.memory_space<smem>>
    %1061 = vector.broadcast %1060 : f32 to vector<8x128xf32>
    %1062 = arith.mulf %1061, %1044 : vector<8x128xf32>
    %1063 = arith.addf %1059, %1062 : vector<8x128xf32>
    %c65 = arith.constant 65 : index
    %1064 = memref.load %arg2[%c65] : memref<376xf32, #tpu.memory_space<smem>>
    %1065 = vector.broadcast %1064 : f32 to vector<8x128xf32>
    %1066 = arith.addf %1063, %1065 : vector<8x128xf32>
    %cst_235 = arith.constant 0.000000e+00 : f32
    %1067 = vector.broadcast %cst_235 : f32 to vector<8x128xf32>
    %1068 = arith.select %1042, %1066, %1067 : vector<8x128xi1>, vector<8x128xf32>
    %c38_i32 = arith.constant 38 : i32
    %1069 = vector.broadcast %c38_i32 : i32 to vector<8x128xi32>
    %1070 = arith.cmpi slt, %0, %1069 : vector<8x128xi32>
    %c1_i32_236 = arith.constant 1 : i32
    %1071 = tpu.dynamic_rotate %1056 by %c1_i32_236 dim 1 : vector<8x128xf32>, i32 -> vector<8x128xf32>
    %c1_i32_237 = arith.constant 1 : i32
    %1072 = tpu.dynamic_rotate %1068 by %c1_i32_237 dim 1 : vector<8x128xf32>, i32 -> vector<8x128xf32>
    %c66 = arith.constant 66 : index
    %1073 = memref.load %arg2[%c66] : memref<376xf32, #tpu.memory_space<smem>>
    %1074 = vector.broadcast %1073 : f32 to vector<8x128xf32>
    %1075 = arith.mulf %1074, %1071 : vector<8x128xf32>
    %c67 = arith.constant 67 : index
    %1076 = memref.load %arg2[%c67] : memref<376xf32, #tpu.memory_space<smem>>
    %1077 = vector.broadcast %1076 : f32 to vector<8x128xf32>
    %1078 = arith.mulf %1077, %1072 : vector<8x128xf32>
    %1079 = arith.addf %1075, %1078 : vector<8x128xf32>
    %c70 = arith.constant 70 : index
    %1080 = memref.load %arg2[%c70] : memref<376xf32, #tpu.memory_space<smem>>
    %1081 = vector.broadcast %1080 : f32 to vector<8x128xf32>
    %1082 = arith.addf %1079, %1081 : vector<8x128xf32>
    %cst_238 = arith.constant 0.000000e+00 : f32
    %1083 = vector.broadcast %cst_238 : f32 to vector<8x128xf32>
    %1084 = arith.select %1070, %1082, %1083 : vector<8x128xi1>, vector<8x128xf32>
    %c68 = arith.constant 68 : index
    %1085 = memref.load %arg2[%c68] : memref<376xf32, #tpu.memory_space<smem>>
    %1086 = vector.broadcast %1085 : f32 to vector<8x128xf32>
    %1087 = arith.mulf %1086, %1071 : vector<8x128xf32>
    %c69 = arith.constant 69 : index
    %1088 = memref.load %arg2[%c69] : memref<376xf32, #tpu.memory_space<smem>>
    %1089 = vector.broadcast %1088 : f32 to vector<8x128xf32>
    %1090 = arith.mulf %1089, %1072 : vector<8x128xf32>
    %1091 = arith.addf %1087, %1090 : vector<8x128xf32>
    %c71 = arith.constant 71 : index
    %1092 = memref.load %arg2[%c71] : memref<376xf32, #tpu.memory_space<smem>>
    %1093 = vector.broadcast %1092 : f32 to vector<8x128xf32>
    %1094 = arith.addf %1091, %1093 : vector<8x128xf32>
    %cst_239 = arith.constant 0.000000e+00 : f32
    %1095 = vector.broadcast %cst_239 : f32 to vector<8x128xf32>
    %1096 = arith.select %1070, %1094, %1095 : vector<8x128xi1>, vector<8x128xf32>
    %c72 = arith.constant 72 : index
    %1097 = memref.load %arg2[%c72] : memref<376xf32, #tpu.memory_space<smem>>
    %c74 = arith.constant 74 : index
    %1098 = memref.load %arg2[%c74] : memref<376xf32, #tpu.memory_space<smem>>
    %1099 = vector.shape_cast %1084 : vector<8x128xf32> to vector<1x8x128xf32>
    %cst_240 = arith.constant dense<0.000000e+00> : vector<1xf32>
    %1100 = vector.multi_reduction <add>, %1099, %cst_240 [1, 2] : vector<1x8x128xf32> to vector<1xf32>
    %1101 = vector.shape_cast %1100 : vector<1xf32> to vector<1x1x1xf32>
    %1102 = vector.extract %1101[0, 0, 0] : f32 from vector<1x1x1xf32>
    %1103 = arith.mulf %1084, %1084 : vector<8x128xf32>
    %1104 = vector.shape_cast %1103 : vector<8x128xf32> to vector<1x8x128xf32>
    %cst_241 = arith.constant dense<0.000000e+00> : vector<1xf32>
    %1105 = vector.multi_reduction <add>, %1104, %cst_241 [1, 2] : vector<1x8x128xf32> to vector<1xf32>
    %1106 = vector.shape_cast %1105 : vector<1xf32> to vector<1x1x1xf32>
    %1107 = vector.extract %1106[0, 0, 0] : f32 from vector<1x1x1xf32>
    %cst_242 = arith.constant 0.00328947371 : f32
    %1108 = arith.mulf %1102, %cst_242 : f32
    %cst_243 = arith.constant 0.00328947371 : f32
    %1109 = arith.mulf %1107, %cst_243 : f32
    %1110 = arith.mulf %1108, %1108 : f32
    %1111 = arith.subf %1109, %1110 : f32
    %cst_244 = arith.constant 0.000000e+00 : f32
    %1112 = arith.maximumf %1111, %cst_244 : f32
    %1113 = vector.broadcast %1108 : f32 to vector<8x128xf32>
    %1114 = arith.subf %1084, %1113 : vector<8x128xf32>
    %1115 = vector.broadcast %1097 : f32 to vector<8x128xf32>
    %1116 = arith.mulf %1115, %1114 : vector<8x128xf32>
    %cst_245 = arith.constant 9.99999974E-6 : f32
    %1117 = arith.addf %1112, %cst_245 : f32
    %1118 = math.rsqrt %1117 : f32
    %1119 = vector.broadcast %1118 : f32 to vector<8x128xf32>
    %1120 = arith.mulf %1116, %1119 : vector<8x128xf32>
    %1121 = vector.broadcast %1098 : f32 to vector<8x128xf32>
    %1122 = arith.addf %1120, %1121 : vector<8x128xf32>
    %cst_246 = arith.constant 0.000000e+00 : f32
    %1123 = vector.broadcast %cst_246 : f32 to vector<8x128xf32>
    %1124 = arith.select %1070, %1122, %1123 : vector<8x128xi1>, vector<8x128xf32>
    %cst_247 = arith.constant 5.000000e-01 : f32
    %1125 = vector.broadcast %cst_247 : f32 to vector<8x128xf32>
    %1126 = arith.mulf %1125, %1124 : vector<8x128xf32>
    %1127 = math.tanh %1126 : vector<8x128xf32>
    %cst_248 = arith.constant 5.000000e-01 : f32
    %1128 = vector.broadcast %cst_248 : f32 to vector<8x128xf32>
    %1129 = arith.mulf %1128, %1127 : vector<8x128xf32>
    %cst_249 = arith.constant 5.000000e-01 : f32
    %1130 = vector.broadcast %cst_249 : f32 to vector<8x128xf32>
    %1131 = arith.addf %1130, %1129 : vector<8x128xf32>
    %1132 = arith.mulf %1124, %1131 : vector<8x128xf32>
    %c73 = arith.constant 73 : index
    %1133 = memref.load %arg2[%c73] : memref<376xf32, #tpu.memory_space<smem>>
    %c75 = arith.constant 75 : index
    %1134 = memref.load %arg2[%c75] : memref<376xf32, #tpu.memory_space<smem>>
    %1135 = vector.shape_cast %1096 : vector<8x128xf32> to vector<1x8x128xf32>
    %cst_250 = arith.constant dense<0.000000e+00> : vector<1xf32>
    %1136 = vector.multi_reduction <add>, %1135, %cst_250 [1, 2] : vector<1x8x128xf32> to vector<1xf32>
    %1137 = vector.shape_cast %1136 : vector<1xf32> to vector<1x1x1xf32>
    %1138 = vector.extract %1137[0, 0, 0] : f32 from vector<1x1x1xf32>
    %1139 = arith.mulf %1096, %1096 : vector<8x128xf32>
    %1140 = vector.shape_cast %1139 : vector<8x128xf32> to vector<1x8x128xf32>
    %cst_251 = arith.constant dense<0.000000e+00> : vector<1xf32>
    %1141 = vector.multi_reduction <add>, %1140, %cst_251 [1, 2] : vector<1x8x128xf32> to vector<1xf32>
    %1142 = vector.shape_cast %1141 : vector<1xf32> to vector<1x1x1xf32>
    %1143 = vector.extract %1142[0, 0, 0] : f32 from vector<1x1x1xf32>
    %cst_252 = arith.constant 0.00328947371 : f32
    %1144 = arith.mulf %1138, %cst_252 : f32
    %cst_253 = arith.constant 0.00328947371 : f32
    %1145 = arith.mulf %1143, %cst_253 : f32
    %1146 = arith.mulf %1144, %1144 : f32
    %1147 = arith.subf %1145, %1146 : f32
    %cst_254 = arith.constant 0.000000e+00 : f32
    %1148 = arith.maximumf %1147, %cst_254 : f32
    %1149 = vector.broadcast %1144 : f32 to vector<8x128xf32>
    %1150 = arith.subf %1096, %1149 : vector<8x128xf32>
    %1151 = vector.broadcast %1133 : f32 to vector<8x128xf32>
    %1152 = arith.mulf %1151, %1150 : vector<8x128xf32>
    %cst_255 = arith.constant 9.99999974E-6 : f32
    %1153 = arith.addf %1148, %cst_255 : f32
    %1154 = math.rsqrt %1153 : f32
    %1155 = vector.broadcast %1154 : f32 to vector<8x128xf32>
    %1156 = arith.mulf %1152, %1155 : vector<8x128xf32>
    %1157 = vector.broadcast %1134 : f32 to vector<8x128xf32>
    %1158 = arith.addf %1156, %1157 : vector<8x128xf32>
    %cst_256 = arith.constant 0.000000e+00 : f32
    %1159 = vector.broadcast %cst_256 : f32 to vector<8x128xf32>
    %1160 = arith.select %1070, %1158, %1159 : vector<8x128xi1>, vector<8x128xf32>
    %cst_257 = arith.constant 5.000000e-01 : f32
    %1161 = vector.broadcast %cst_257 : f32 to vector<8x128xf32>
    %1162 = arith.mulf %1161, %1160 : vector<8x128xf32>
    %1163 = math.tanh %1162 : vector<8x128xf32>
    %cst_258 = arith.constant 5.000000e-01 : f32
    %1164 = vector.broadcast %cst_258 : f32 to vector<8x128xf32>
    %1165 = arith.mulf %1164, %1163 : vector<8x128xf32>
    %cst_259 = arith.constant 5.000000e-01 : f32
    %1166 = vector.broadcast %cst_259 : f32 to vector<8x128xf32>
    %1167 = arith.addf %1166, %1165 : vector<8x128xf32>
    %1168 = arith.mulf %1160, %1167 : vector<8x128xf32>
    %c40_i32 = arith.constant 40 : i32
    %1169 = vector.broadcast %c40_i32 : i32 to vector<8x128xi32>
    %1170 = arith.cmpi slt, %0, %1169 : vector<8x128xi32>
    %c1_i32_260 = arith.constant 1 : i32
    %1171 = tpu.dynamic_rotate %1132 by %c1_i32_260 dim 1 : vector<8x128xf32>, i32 -> vector<8x128xf32>
    %c1_i32_261 = arith.constant 1 : i32
    %1172 = tpu.dynamic_rotate %1168 by %c1_i32_261 dim 1 : vector<8x128xf32>, i32 -> vector<8x128xf32>
    %c76 = arith.constant 76 : index
    %1173 = memref.load %arg2[%c76] : memref<376xf32, #tpu.memory_space<smem>>
    %1174 = vector.broadcast %1173 : f32 to vector<8x128xf32>
    %1175 = arith.mulf %1174, %1171 : vector<8x128xf32>
    %c77 = arith.constant 77 : index
    %1176 = memref.load %arg2[%c77] : memref<376xf32, #tpu.memory_space<smem>>
    %1177 = vector.broadcast %1176 : f32 to vector<8x128xf32>
    %1178 = arith.mulf %1177, %1172 : vector<8x128xf32>
    %1179 = arith.addf %1175, %1178 : vector<8x128xf32>
    %c78 = arith.constant 78 : index
    %1180 = memref.load %arg2[%c78] : memref<376xf32, #tpu.memory_space<smem>>
    %1181 = vector.broadcast %1180 : f32 to vector<8x128xf32>
    %1182 = arith.addf %1179, %1181 : vector<8x128xf32>
    %cst_262 = arith.constant 0.000000e+00 : f32
    %1183 = vector.broadcast %cst_262 : f32 to vector<8x128xf32>
    %1184 = arith.select %1170, %1182, %1183 : vector<8x128xi1>, vector<8x128xf32>
    %c79 = arith.constant 79 : index
    %1185 = memref.load %arg2[%c79] : memref<376xf32, #tpu.memory_space<smem>>
    %c80 = arith.constant 80 : index
    %1186 = memref.load %arg2[%c80] : memref<376xf32, #tpu.memory_space<smem>>
    %1187 = vector.shape_cast %1184 : vector<8x128xf32> to vector<1x8x128xf32>
    %cst_263 = arith.constant dense<0.000000e+00> : vector<1xf32>
    %1188 = vector.multi_reduction <add>, %1187, %cst_263 [1, 2] : vector<1x8x128xf32> to vector<1xf32>
    %1189 = vector.shape_cast %1188 : vector<1xf32> to vector<1x1x1xf32>
    %1190 = vector.extract %1189[0, 0, 0] : f32 from vector<1x1x1xf32>
    %1191 = arith.mulf %1184, %1184 : vector<8x128xf32>
    %1192 = vector.shape_cast %1191 : vector<8x128xf32> to vector<1x8x128xf32>
    %cst_264 = arith.constant dense<0.000000e+00> : vector<1xf32>
    %1193 = vector.multi_reduction <add>, %1192, %cst_264 [1, 2] : vector<1x8x128xf32> to vector<1xf32>
    %1194 = vector.shape_cast %1193 : vector<1xf32> to vector<1x1x1xf32>
    %1195 = vector.extract %1194[0, 0, 0] : f32 from vector<1x1x1xf32>
    %cst_265 = arith.constant 3.125000e-03 : f32
    %1196 = arith.mulf %1190, %cst_265 : f32
    %cst_266 = arith.constant 3.125000e-03 : f32
    %1197 = arith.mulf %1195, %cst_266 : f32
    %1198 = arith.mulf %1196, %1196 : f32
    %1199 = arith.subf %1197, %1198 : f32
    %cst_267 = arith.constant 0.000000e+00 : f32
    %1200 = arith.maximumf %1199, %cst_267 : f32
    %1201 = vector.broadcast %1196 : f32 to vector<8x128xf32>
    %1202 = arith.subf %1184, %1201 : vector<8x128xf32>
    %1203 = vector.broadcast %1185 : f32 to vector<8x128xf32>
    %1204 = arith.mulf %1203, %1202 : vector<8x128xf32>
    %cst_268 = arith.constant 9.99999974E-6 : f32
    %1205 = arith.addf %1200, %cst_268 : f32
    %1206 = math.rsqrt %1205 : f32
    %1207 = vector.broadcast %1206 : f32 to vector<8x128xf32>
    %1208 = arith.mulf %1204, %1207 : vector<8x128xf32>
    %1209 = vector.broadcast %1186 : f32 to vector<8x128xf32>
    %1210 = arith.addf %1208, %1209 : vector<8x128xf32>
    %cst_269 = arith.constant 0.000000e+00 : f32
    %1211 = vector.broadcast %cst_269 : f32 to vector<8x128xf32>
    %1212 = arith.select %1170, %1210, %1211 : vector<8x128xi1>, vector<8x128xf32>
    %cst_270 = arith.constant 5.000000e-01 : f32
    %1213 = vector.broadcast %cst_270 : f32 to vector<8x128xf32>
    %1214 = arith.mulf %1213, %1212 : vector<8x128xf32>
    %1215 = math.tanh %1214 : vector<8x128xf32>
    %cst_271 = arith.constant 5.000000e-01 : f32
    %1216 = vector.broadcast %cst_271 : f32 to vector<8x128xf32>
    %1217 = arith.mulf %1216, %1215 : vector<8x128xf32>
    %cst_272 = arith.constant 5.000000e-01 : f32
    %1218 = vector.broadcast %cst_272 : f32 to vector<8x128xf32>
    %1219 = arith.addf %1218, %1217 : vector<8x128xf32>
    %1220 = arith.mulf %1212, %1219 : vector<8x128xf32>
    %c198 = arith.constant 198 : index
    %1221 = memref.load %arg2[%c198] : memref<376xf32, #tpu.memory_space<smem>>
    %c199 = arith.constant 199 : index
    %1222 = memref.load %arg2[%c199] : memref<376xf32, #tpu.memory_space<smem>>
    %1223 = vector.shape_cast %1220 : vector<8x128xf32> to vector<1x8x128xf32>
    %cst_273 = arith.constant dense<0.000000e+00> : vector<1xf32>
    %1224 = vector.multi_reduction <add>, %1223, %cst_273 [1, 2] : vector<1x8x128xf32> to vector<1xf32>
    %1225 = vector.shape_cast %1224 : vector<1xf32> to vector<1x1x1xf32>
    %1226 = vector.extract %1225[0, 0, 0] : f32 from vector<1x1x1xf32>
    %1227 = arith.mulf %1220, %1220 : vector<8x128xf32>
    %1228 = vector.shape_cast %1227 : vector<8x128xf32> to vector<1x8x128xf32>
    %cst_274 = arith.constant dense<0.000000e+00> : vector<1xf32>
    %1229 = vector.multi_reduction <add>, %1228, %cst_274 [1, 2] : vector<1x8x128xf32> to vector<1xf32>
    %1230 = vector.shape_cast %1229 : vector<1xf32> to vector<1x1x1xf32>
    %1231 = vector.extract %1230[0, 0, 0] : f32 from vector<1x1x1xf32>
    %cst_275 = arith.constant 3.125000e-03 : f32
    %1232 = arith.mulf %1226, %cst_275 : f32
    %cst_276 = arith.constant 3.125000e-03 : f32
    %1233 = arith.mulf %1231, %cst_276 : f32
    %1234 = arith.mulf %1232, %1232 : f32
    %1235 = arith.subf %1233, %1234 : f32
    %cst_277 = arith.constant 0.000000e+00 : f32
    %1236 = arith.maximumf %1235, %cst_277 : f32
    %1237 = vector.broadcast %1232 : f32 to vector<8x128xf32>
    %1238 = arith.subf %1220, %1237 : vector<8x128xf32>
    %1239 = vector.broadcast %1221 : f32 to vector<8x128xf32>
    %1240 = arith.mulf %1239, %1238 : vector<8x128xf32>
    %cst_278 = arith.constant 9.99999974E-6 : f32
    %1241 = arith.addf %1236, %cst_278 : f32
    %1242 = math.rsqrt %1241 : f32
    %1243 = vector.broadcast %1242 : f32 to vector<8x128xf32>
    %1244 = arith.mulf %1240, %1243 : vector<8x128xf32>
    %1245 = vector.broadcast %1222 : f32 to vector<8x128xf32>
    %1246 = arith.addf %1244, %1245 : vector<8x128xf32>
    %cst_279 = arith.constant 0.000000e+00 : f32
    %1247 = vector.broadcast %cst_279 : f32 to vector<8x128xf32>
    %1248 = arith.select %1170, %1246, %1247 : vector<8x128xi1>, vector<8x128xf32>
    %c200 = arith.constant 200 : index
    %1249 = memref.load %arg2[%c200] : memref<376xf32, #tpu.memory_space<smem>>
    %1250 = vector.broadcast %1249 : f32 to vector<8x128xf32>
    %1251 = arith.mulf %1250, %1248 : vector<8x128xf32>
    %c201 = arith.constant 201 : index
    %1252 = memref.load %arg2[%c201] : memref<376xf32, #tpu.memory_space<smem>>
    %1253 = vector.broadcast %1252 : f32 to vector<8x128xf32>
    %1254 = arith.addf %1251, %1253 : vector<8x128xf32>
    %cst_280 = arith.constant 0.000000e+00 : f32
    %1255 = vector.broadcast %cst_280 : f32 to vector<8x128xf32>
    %1256 = arith.select %1170, %1254, %1255 : vector<8x128xi1>, vector<8x128xf32>
    %c202 = arith.constant 202 : index
    %1257 = memref.load %arg2[%c202] : memref<376xf32, #tpu.memory_space<smem>>
    %c203 = arith.constant 203 : index
    %1258 = memref.load %arg2[%c203] : memref<376xf32, #tpu.memory_space<smem>>
    %1259 = vector.shape_cast %1256 : vector<8x128xf32> to vector<1x8x128xf32>
    %cst_281 = arith.constant dense<0.000000e+00> : vector<1xf32>
    %1260 = vector.multi_reduction <add>, %1259, %cst_281 [1, 2] : vector<1x8x128xf32> to vector<1xf32>
    %1261 = vector.shape_cast %1260 : vector<1xf32> to vector<1x1x1xf32>
    %1262 = vector.extract %1261[0, 0, 0] : f32 from vector<1x1x1xf32>
    %1263 = arith.mulf %1256, %1256 : vector<8x128xf32>
    %1264 = vector.shape_cast %1263 : vector<8x128xf32> to vector<1x8x128xf32>
    %cst_282 = arith.constant dense<0.000000e+00> : vector<1xf32>
    %1265 = vector.multi_reduction <add>, %1264, %cst_282 [1, 2] : vector<1x8x128xf32> to vector<1xf32>
    %1266 = vector.shape_cast %1265 : vector<1xf32> to vector<1x1x1xf32>
    %1267 = vector.extract %1266[0, 0, 0] : f32 from vector<1x1x1xf32>
    %cst_283 = arith.constant 3.125000e-03 : f32
    %1268 = arith.mulf %1262, %cst_283 : f32
    %cst_284 = arith.constant 3.125000e-03 : f32
    %1269 = arith.mulf %1267, %cst_284 : f32
    %1270 = arith.mulf %1268, %1268 : f32
    %1271 = arith.subf %1269, %1270 : f32
    %cst_285 = arith.constant 0.000000e+00 : f32
    %1272 = arith.maximumf %1271, %cst_285 : f32
    %1273 = vector.broadcast %1268 : f32 to vector<8x128xf32>
    %1274 = arith.subf %1256, %1273 : vector<8x128xf32>
    %1275 = vector.broadcast %1257 : f32 to vector<8x128xf32>
    %1276 = arith.mulf %1275, %1274 : vector<8x128xf32>
    %cst_286 = arith.constant 9.99999974E-6 : f32
    %1277 = arith.addf %1272, %cst_286 : f32
    %1278 = math.rsqrt %1277 : f32
    %1279 = vector.broadcast %1278 : f32 to vector<8x128xf32>
    %1280 = arith.mulf %1276, %1279 : vector<8x128xf32>
    %1281 = vector.broadcast %1258 : f32 to vector<8x128xf32>
    %1282 = arith.addf %1280, %1281 : vector<8x128xf32>
    %cst_287 = arith.constant 0.000000e+00 : f32
    %1283 = vector.broadcast %cst_287 : f32 to vector<8x128xf32>
    %1284 = arith.select %1170, %1282, %1283 : vector<8x128xi1>, vector<8x128xf32>
    %cst_288 = arith.constant 5.000000e-01 : f32
    %1285 = vector.broadcast %cst_288 : f32 to vector<8x128xf32>
    %1286 = arith.mulf %1285, %1284 : vector<8x128xf32>
    %1287 = math.tanh %1286 : vector<8x128xf32>
    %cst_289 = arith.constant 5.000000e-01 : f32
    %1288 = vector.broadcast %cst_289 : f32 to vector<8x128xf32>
    %1289 = arith.mulf %1288, %1287 : vector<8x128xf32>
    %cst_290 = arith.constant 5.000000e-01 : f32
    %1290 = vector.broadcast %cst_290 : f32 to vector<8x128xf32>
    %1291 = arith.addf %1290, %1289 : vector<8x128xf32>
    %1292 = arith.mulf %1284, %1291 : vector<8x128xf32>
    %c204 = arith.constant 204 : index
    %1293 = memref.load %arg2[%c204] : memref<376xf32, #tpu.memory_space<smem>>
    %c205 = arith.constant 205 : index
    %1294 = memref.load %arg2[%c205] : memref<376xf32, #tpu.memory_space<smem>>
    %c206 = arith.constant 206 : index
    %1295 = memref.load %arg2[%c206] : memref<376xf32, #tpu.memory_space<smem>>
    %c207 = arith.constant 207 : index
    %1296 = memref.load %arg2[%c207] : memref<376xf32, #tpu.memory_space<smem>>
    %c208 = arith.constant 208 : index
    %1297 = memref.load %arg2[%c208] : memref<376xf32, #tpu.memory_space<smem>>
    %c209 = arith.constant 209 : index
    %1298 = memref.load %arg2[%c209] : memref<376xf32, #tpu.memory_space<smem>>
    %1299 = vector.broadcast %1295 : f32 to vector<8x128xf32>
    %1300 = arith.mulf %1299, %1292 : vector<8x128xf32>
    %c2_i32_291 = arith.constant 2 : i32
    %1301 = tpu.dynamic_rotate %1292 by %c2_i32_291 dim 1 : vector<8x128xf32>, i32 -> vector<8x128xf32>
    %1302 = vector.broadcast %1293 : f32 to vector<8x128xf32>
    %1303 = arith.mulf %1302, %1301 : vector<8x128xf32>
    %1304 = arith.addf %1300, %1303 : vector<8x128xf32>
    %c1_i32_292 = arith.constant 1 : i32
    %1305 = tpu.dynamic_rotate %1292 by %c1_i32_292 dim 1 : vector<8x128xf32>, i32 -> vector<8x128xf32>
    %1306 = vector.broadcast %1294 : f32 to vector<8x128xf32>
    %1307 = arith.mulf %1306, %1305 : vector<8x128xf32>
    %1308 = arith.addf %1304, %1307 : vector<8x128xf32>
    %c127_i32_293 = arith.constant 127 : i32
    %1309 = tpu.dynamic_rotate %1292 by %c127_i32_293 dim 1 : vector<8x128xf32>, i32 -> vector<8x128xf32>
    %1310 = vector.broadcast %1296 : f32 to vector<8x128xf32>
    %1311 = arith.mulf %1310, %1309 : vector<8x128xf32>
    %1312 = arith.addf %1308, %1311 : vector<8x128xf32>
    %c126_i32_294 = arith.constant 126 : i32
    %1313 = tpu.dynamic_rotate %1292 by %c126_i32_294 dim 1 : vector<8x128xf32>, i32 -> vector<8x128xf32>
    %1314 = vector.broadcast %1297 : f32 to vector<8x128xf32>
    %1315 = arith.mulf %1314, %1313 : vector<8x128xf32>
    %1316 = arith.addf %1312, %1315 : vector<8x128xf32>
    %1317 = vector.broadcast %1298 : f32 to vector<8x128xf32>
    %1318 = arith.addf %1316, %1317 : vector<8x128xf32>
    %cst_295 = arith.constant 0.000000e+00 : f32
    %1319 = vector.broadcast %cst_295 : f32 to vector<8x128xf32>
    %1320 = arith.select %1170, %1318, %1319 : vector<8x128xi1>, vector<8x128xf32>
    %c210 = arith.constant 210 : index
    %1321 = memref.load %arg2[%c210] : memref<376xf32, #tpu.memory_space<smem>>
    %c211 = arith.constant 211 : index
    %1322 = memref.load %arg2[%c211] : memref<376xf32, #tpu.memory_space<smem>>
    %1323 = vector.shape_cast %1320 : vector<8x128xf32> to vector<1x8x128xf32>
    %cst_296 = arith.constant dense<0.000000e+00> : vector<1xf32>
    %1324 = vector.multi_reduction <add>, %1323, %cst_296 [1, 2] : vector<1x8x128xf32> to vector<1xf32>
    %1325 = vector.shape_cast %1324 : vector<1xf32> to vector<1x1x1xf32>
    %1326 = vector.extract %1325[0, 0, 0] : f32 from vector<1x1x1xf32>
    %1327 = arith.mulf %1320, %1320 : vector<8x128xf32>
    %1328 = vector.shape_cast %1327 : vector<8x128xf32> to vector<1x8x128xf32>
    %cst_297 = arith.constant dense<0.000000e+00> : vector<1xf32>
    %1329 = vector.multi_reduction <add>, %1328, %cst_297 [1, 2] : vector<1x8x128xf32> to vector<1xf32>
    %1330 = vector.shape_cast %1329 : vector<1xf32> to vector<1x1x1xf32>
    %1331 = vector.extract %1330[0, 0, 0] : f32 from vector<1x1x1xf32>
    %cst_298 = arith.constant 3.125000e-03 : f32
    %1332 = arith.mulf %1326, %cst_298 : f32
    %cst_299 = arith.constant 3.125000e-03 : f32
    %1333 = arith.mulf %1331, %cst_299 : f32
    %1334 = arith.mulf %1332, %1332 : f32
    %1335 = arith.subf %1333, %1334 : f32
    %cst_300 = arith.constant 0.000000e+00 : f32
    %1336 = arith.maximumf %1335, %cst_300 : f32
    %1337 = vector.broadcast %1332 : f32 to vector<8x128xf32>
    %1338 = arith.subf %1320, %1337 : vector<8x128xf32>
    %1339 = vector.broadcast %1321 : f32 to vector<8x128xf32>
    %1340 = arith.mulf %1339, %1338 : vector<8x128xf32>
    %cst_301 = arith.constant 9.99999974E-6 : f32
    %1341 = arith.addf %1336, %cst_301 : f32
    %1342 = math.rsqrt %1341 : f32
    %1343 = vector.broadcast %1342 : f32 to vector<8x128xf32>
    %1344 = arith.mulf %1340, %1343 : vector<8x128xf32>
    %1345 = vector.broadcast %1322 : f32 to vector<8x128xf32>
    %1346 = arith.addf %1344, %1345 : vector<8x128xf32>
    %cst_302 = arith.constant 0.000000e+00 : f32
    %1347 = vector.broadcast %cst_302 : f32 to vector<8x128xf32>
    %1348 = arith.select %1170, %1346, %1347 : vector<8x128xi1>, vector<8x128xf32>
    %cst_303 = arith.constant 5.000000e-01 : f32
    %1349 = vector.broadcast %cst_303 : f32 to vector<8x128xf32>
    %1350 = arith.mulf %1349, %1348 : vector<8x128xf32>
    %1351 = math.tanh %1350 : vector<8x128xf32>
    %cst_304 = arith.constant 5.000000e-01 : f32
    %1352 = vector.broadcast %cst_304 : f32 to vector<8x128xf32>
    %1353 = arith.mulf %1352, %1351 : vector<8x128xf32>
    %cst_305 = arith.constant 5.000000e-01 : f32
    %1354 = vector.broadcast %cst_305 : f32 to vector<8x128xf32>
    %1355 = arith.addf %1354, %1353 : vector<8x128xf32>
    %1356 = arith.mulf %1348, %1355 : vector<8x128xf32>
    %c212 = arith.constant 212 : index
    %1357 = memref.load %arg2[%c212] : memref<376xf32, #tpu.memory_space<smem>>
    %1358 = vector.broadcast %1357 : f32 to vector<8x128xf32>
    %1359 = arith.mulf %1358, %1356 : vector<8x128xf32>
    %c213 = arith.constant 213 : index
    %1360 = memref.load %arg2[%c213] : memref<376xf32, #tpu.memory_space<smem>>
    %1361 = vector.broadcast %1360 : f32 to vector<8x128xf32>
    %1362 = arith.addf %1359, %1361 : vector<8x128xf32>
    %cst_306 = arith.constant 0.000000e+00 : f32
    %1363 = vector.broadcast %cst_306 : f32 to vector<8x128xf32>
    %1364 = arith.select %1170, %1362, %1363 : vector<8x128xi1>, vector<8x128xf32>
    %c214 = arith.constant 214 : index
    %1365 = memref.load %arg2[%c214] : memref<376xf32, #tpu.memory_space<smem>>
    %c215 = arith.constant 215 : index
    %1366 = memref.load %arg2[%c215] : memref<376xf32, #tpu.memory_space<smem>>
    %1367 = vector.shape_cast %1364 : vector<8x128xf32> to vector<1x8x128xf32>
    %cst_307 = arith.constant dense<0.000000e+00> : vector<1xf32>
    %1368 = vector.multi_reduction <add>, %1367, %cst_307 [1, 2] : vector<1x8x128xf32> to vector<1xf32>
    %1369 = vector.shape_cast %1368 : vector<1xf32> to vector<1x1x1xf32>
    %1370 = vector.extract %1369[0, 0, 0] : f32 from vector<1x1x1xf32>
    %1371 = arith.mulf %1364, %1364 : vector<8x128xf32>
    %1372 = vector.shape_cast %1371 : vector<8x128xf32> to vector<1x8x128xf32>
    %cst_308 = arith.constant dense<0.000000e+00> : vector<1xf32>
    %1373 = vector.multi_reduction <add>, %1372, %cst_308 [1, 2] : vector<1x8x128xf32> to vector<1xf32>
    %1374 = vector.shape_cast %1373 : vector<1xf32> to vector<1x1x1xf32>
    %1375 = vector.extract %1374[0, 0, 0] : f32 from vector<1x1x1xf32>
    %cst_309 = arith.constant 3.125000e-03 : f32
    %1376 = arith.mulf %1370, %cst_309 : f32
    %cst_310 = arith.constant 3.125000e-03 : f32
    %1377 = arith.mulf %1375, %cst_310 : f32
    %1378 = arith.mulf %1376, %1376 : f32
    %1379 = arith.subf %1377, %1378 : f32
    %cst_311 = arith.constant 0.000000e+00 : f32
    %1380 = arith.maximumf %1379, %cst_311 : f32
    %1381 = vector.broadcast %1376 : f32 to vector<8x128xf32>
    %1382 = arith.subf %1364, %1381 : vector<8x128xf32>
    %1383 = vector.broadcast %1365 : f32 to vector<8x128xf32>
    %1384 = arith.mulf %1383, %1382 : vector<8x128xf32>
    %cst_312 = arith.constant 9.99999974E-6 : f32
    %1385 = arith.addf %1380, %cst_312 : f32
    %1386 = math.rsqrt %1385 : f32
    %1387 = vector.broadcast %1386 : f32 to vector<8x128xf32>
    %1388 = arith.mulf %1384, %1387 : vector<8x128xf32>
    %1389 = vector.broadcast %1366 : f32 to vector<8x128xf32>
    %1390 = arith.addf %1388, %1389 : vector<8x128xf32>
    %cst_313 = arith.constant 0.000000e+00 : f32
    %1391 = vector.broadcast %cst_313 : f32 to vector<8x128xf32>
    %1392 = arith.select %1170, %1390, %1391 : vector<8x128xi1>, vector<8x128xf32>
    %cst_314 = arith.constant 1.000000e-01 : f32
    %1393 = vector.broadcast %cst_314 : f32 to vector<8x128xf32>
    %1394 = arith.mulf %1393, %1392 : vector<8x128xf32>
    %1395 = arith.addf %1220, %1394 : vector<8x128xf32>
    %c306 = arith.constant 306 : index
    %1396 = memref.load %arg2[%c306] : memref<376xf32, #tpu.memory_space<smem>>
    %c307 = arith.constant 307 : index
    %1397 = memref.load %arg2[%c307] : memref<376xf32, #tpu.memory_space<smem>>
    %c308 = arith.constant 308 : index
    %1398 = memref.load %arg2[%c308] : memref<376xf32, #tpu.memory_space<smem>>
    %c309 = arith.constant 309 : index
    %1399 = memref.load %arg2[%c309] : memref<376xf32, #tpu.memory_space<smem>>
    %c310 = arith.constant 310 : index
    %1400 = memref.load %arg2[%c310] : memref<376xf32, #tpu.memory_space<smem>>
    %c311 = arith.constant 311 : index
    %1401 = memref.load %arg2[%c311] : memref<376xf32, #tpu.memory_space<smem>>
    %1402 = vector.broadcast %1398 : f32 to vector<8x128xf32>
    %1403 = arith.mulf %1402, %1395 : vector<8x128xf32>
    %c2_i32_315 = arith.constant 2 : i32
    %1404 = tpu.dynamic_rotate %1395 by %c2_i32_315 dim 1 : vector<8x128xf32>, i32 -> vector<8x128xf32>
    %1405 = vector.broadcast %1396 : f32 to vector<8x128xf32>
    %1406 = arith.mulf %1405, %1404 : vector<8x128xf32>
    %1407 = arith.addf %1403, %1406 : vector<8x128xf32>
    %c1_i32_316 = arith.constant 1 : i32
    %1408 = tpu.dynamic_rotate %1395 by %c1_i32_316 dim 1 : vector<8x128xf32>, i32 -> vector<8x128xf32>
    %1409 = vector.broadcast %1397 : f32 to vector<8x128xf32>
    %1410 = arith.mulf %1409, %1408 : vector<8x128xf32>
    %1411 = arith.addf %1407, %1410 : vector<8x128xf32>
    %c127_i32_317 = arith.constant 127 : i32
    %1412 = tpu.dynamic_rotate %1395 by %c127_i32_317 dim 1 : vector<8x128xf32>, i32 -> vector<8x128xf32>
    %1413 = vector.broadcast %1399 : f32 to vector<8x128xf32>
    %1414 = arith.mulf %1413, %1412 : vector<8x128xf32>
    %1415 = arith.addf %1411, %1414 : vector<8x128xf32>
    %c126_i32_318 = arith.constant 126 : i32
    %1416 = tpu.dynamic_rotate %1395 by %c126_i32_318 dim 1 : vector<8x128xf32>, i32 -> vector<8x128xf32>
    %1417 = vector.broadcast %1400 : f32 to vector<8x128xf32>
    %1418 = arith.mulf %1417, %1416 : vector<8x128xf32>
    %1419 = arith.addf %1415, %1418 : vector<8x128xf32>
    %1420 = vector.broadcast %1401 : f32 to vector<8x128xf32>
    %1421 = arith.addf %1419, %1420 : vector<8x128xf32>
    %cst_319 = arith.constant 0.000000e+00 : f32
    %1422 = vector.broadcast %cst_319 : f32 to vector<8x128xf32>
    %1423 = arith.select %1170, %1421, %1422 : vector<8x128xi1>, vector<8x128xf32>
    %c312 = arith.constant 312 : index
    %1424 = memref.load %arg2[%c312] : memref<376xf32, #tpu.memory_space<smem>>
    %1425 = vector.broadcast %1424 : f32 to vector<8x128xf32>
    %1426 = arith.mulf %1425, %1423 : vector<8x128xf32>
    %c313 = arith.constant 313 : index
    %1427 = memref.load %arg2[%c313] : memref<376xf32, #tpu.memory_space<smem>>
    %1428 = vector.broadcast %1427 : f32 to vector<8x128xf32>
    %1429 = arith.addf %1426, %1428 : vector<8x128xf32>
    %cst_320 = arith.constant 0.000000e+00 : f32
    %1430 = vector.broadcast %cst_320 : f32 to vector<8x128xf32>
    %1431 = arith.select %1170, %1429, %1430 : vector<8x128xi1>, vector<8x128xf32>
    %c314 = arith.constant 314 : index
    %1432 = memref.load %arg2[%c314] : memref<376xf32, #tpu.memory_space<smem>>
    %c315 = arith.constant 315 : index
    %1433 = memref.load %arg2[%c315] : memref<376xf32, #tpu.memory_space<smem>>
    %1434 = vector.shape_cast %1431 : vector<8x128xf32> to vector<1x8x128xf32>
    %cst_321 = arith.constant dense<0.000000e+00> : vector<1xf32>
    %1435 = vector.multi_reduction <add>, %1434, %cst_321 [1, 2] : vector<1x8x128xf32> to vector<1xf32>
    %1436 = vector.shape_cast %1435 : vector<1xf32> to vector<1x1x1xf32>
    %1437 = vector.extract %1436[0, 0, 0] : f32 from vector<1x1x1xf32>
    %1438 = arith.mulf %1431, %1431 : vector<8x128xf32>
    %1439 = vector.shape_cast %1438 : vector<8x128xf32> to vector<1x8x128xf32>
    %cst_322 = arith.constant dense<0.000000e+00> : vector<1xf32>
    %1440 = vector.multi_reduction <add>, %1439, %cst_322 [1, 2] : vector<1x8x128xf32> to vector<1xf32>
    %1441 = vector.shape_cast %1440 : vector<1xf32> to vector<1x1x1xf32>
    %1442 = vector.extract %1441[0, 0, 0] : f32 from vector<1x1x1xf32>
    %cst_323 = arith.constant 3.125000e-03 : f32
    %1443 = arith.mulf %1437, %cst_323 : f32
    %cst_324 = arith.constant 3.125000e-03 : f32
    %1444 = arith.mulf %1442, %cst_324 : f32
    %1445 = arith.mulf %1443, %1443 : f32
    %1446 = arith.subf %1444, %1445 : f32
    %cst_325 = arith.constant 0.000000e+00 : f32
    %1447 = arith.maximumf %1446, %cst_325 : f32
    %1448 = vector.broadcast %1443 : f32 to vector<8x128xf32>
    %1449 = arith.subf %1431, %1448 : vector<8x128xf32>
    %1450 = vector.broadcast %1432 : f32 to vector<8x128xf32>
    %1451 = arith.mulf %1450, %1449 : vector<8x128xf32>
    %cst_326 = arith.constant 9.99999974E-6 : f32
    %1452 = arith.addf %1447, %cst_326 : f32
    %1453 = math.rsqrt %1452 : f32
    %1454 = vector.broadcast %1453 : f32 to vector<8x128xf32>
    %1455 = arith.mulf %1451, %1454 : vector<8x128xf32>
    %1456 = vector.broadcast %1433 : f32 to vector<8x128xf32>
    %1457 = arith.addf %1455, %1456 : vector<8x128xf32>
    %cst_327 = arith.constant 0.000000e+00 : f32
    %1458 = vector.broadcast %cst_327 : f32 to vector<8x128xf32>
    %1459 = arith.select %1170, %1457, %1458 : vector<8x128xi1>, vector<8x128xf32>
    %cst_328 = arith.constant 5.000000e-01 : f32
    %1460 = vector.broadcast %cst_328 : f32 to vector<8x128xf32>
    %1461 = arith.mulf %1460, %1459 : vector<8x128xf32>
    %1462 = math.tanh %1461 : vector<8x128xf32>
    %cst_329 = arith.constant 5.000000e-01 : f32
    %1463 = vector.broadcast %cst_329 : f32 to vector<8x128xf32>
    %1464 = arith.mulf %1463, %1462 : vector<8x128xf32>
    %cst_330 = arith.constant 5.000000e-01 : f32
    %1465 = vector.broadcast %cst_330 : f32 to vector<8x128xf32>
    %1466 = arith.addf %1465, %1464 : vector<8x128xf32>
    %1467 = arith.mulf %1459, %1466 : vector<8x128xf32>
    %c316 = arith.constant 316 : index
    %1468 = memref.load %arg2[%c316] : memref<376xf32, #tpu.memory_space<smem>>
    %c317 = arith.constant 317 : index
    %1469 = memref.load %arg2[%c317] : memref<376xf32, #tpu.memory_space<smem>>
    %c318 = arith.constant 318 : index
    %1470 = memref.load %arg2[%c318] : memref<376xf32, #tpu.memory_space<smem>>
    %c319 = arith.constant 319 : index
    %1471 = memref.load %arg2[%c319] : memref<376xf32, #tpu.memory_space<smem>>
    %1472 = vector.broadcast %1469 : f32 to vector<8x128xf32>
    %1473 = arith.mulf %1472, %1467 : vector<8x128xf32>
    %c1_i32_331 = arith.constant 1 : i32
    %1474 = tpu.dynamic_rotate %1467 by %c1_i32_331 dim 1 : vector<8x128xf32>, i32 -> vector<8x128xf32>
    %1475 = vector.broadcast %1468 : f32 to vector<8x128xf32>
    %1476 = arith.mulf %1475, %1474 : vector<8x128xf32>
    %1477 = arith.addf %1473, %1476 : vector<8x128xf32>
    %c127_i32_332 = arith.constant 127 : i32
    %1478 = tpu.dynamic_rotate %1467 by %c127_i32_332 dim 1 : vector<8x128xf32>, i32 -> vector<8x128xf32>
    %1479 = vector.broadcast %1470 : f32 to vector<8x128xf32>
    %1480 = arith.mulf %1479, %1478 : vector<8x128xf32>
    %1481 = arith.addf %1477, %1480 : vector<8x128xf32>
    %1482 = vector.broadcast %1471 : f32 to vector<8x128xf32>
    %1483 = arith.addf %1481, %1482 : vector<8x128xf32>
    %cst_333 = arith.constant 0.000000e+00 : f32
    %1484 = vector.broadcast %cst_333 : f32 to vector<8x128xf32>
    %1485 = arith.select %1170, %1483, %1484 : vector<8x128xi1>, vector<8x128xf32>
    %cst_334 = arith.constant 1.000000e-01 : f32
    %1486 = vector.broadcast %cst_334 : f32 to vector<8x128xf32>
    %1487 = arith.mulf %1486, %1485 : vector<8x128xf32>
    %1488 = arith.addf %1395, %1487 : vector<8x128xf32>
    %cst_335 = arith.constant 5.000000e-01 : f32
    %1489 = vector.broadcast %cst_335 : f32 to vector<8x128xf32>
    %1490 = arith.mulf %1489, %1488 : vector<8x128xf32>
    %1491 = math.tanh %1490 : vector<8x128xf32>
    %cst_336 = arith.constant 5.000000e-01 : f32
    %1492 = vector.broadcast %cst_336 : f32 to vector<8x128xf32>
    %1493 = arith.mulf %1492, %1491 : vector<8x128xf32>
    %cst_337 = arith.constant 5.000000e-01 : f32
    %1494 = vector.broadcast %cst_337 : f32 to vector<8x128xf32>
    %1495 = arith.addf %1494, %1493 : vector<8x128xf32>
    %1496 = arith.mulf %1488, %1495 : vector<8x128xf32>
    %c320 = arith.constant 320 : index
    %1497 = memref.load %arg2[%c320] : memref<376xf32, #tpu.memory_space<smem>>
    %1498 = vector.broadcast %1497 : f32 to vector<8x128xf32>
    %1499 = arith.mulf %1498, %1496 : vector<8x128xf32>
    %c322 = arith.constant 322 : index
    %1500 = memref.load %arg2[%c322] : memref<376xf32, #tpu.memory_space<smem>>
    %1501 = vector.broadcast %1500 : f32 to vector<8x128xf32>
    %1502 = arith.addf %1499, %1501 : vector<8x128xf32>
    %c321 = arith.constant 321 : index
    %1503 = memref.load %arg2[%c321] : memref<376xf32, #tpu.memory_space<smem>>
    %1504 = vector.broadcast %1503 : f32 to vector<8x128xf32>
    %1505 = arith.mulf %1504, %1496 : vector<8x128xf32>
    %c323 = arith.constant 323 : index
    %1506 = memref.load %arg2[%c323] : memref<376xf32, #tpu.memory_space<smem>>
    %1507 = vector.broadcast %1506 : f32 to vector<8x128xf32>
    %1508 = arith.addf %1505, %1507 : vector<8x128xf32>
    %cst_338 = arith.constant 5.000000e-01 : f32
    %1509 = vector.broadcast %cst_338 : f32 to vector<8x128xf32>
    %1510 = arith.mulf %1509, %1508 : vector<8x128xf32>
    %1511 = math.exp %1510 : vector<8x128xf32>
    %c2_339 = arith.constant 2 : index
    %c0_340 = arith.constant 0 : index
    %c0_341 = arith.constant 0 : index
    %1512 = vector.load %arg1[%c2_339, %c0_340, %c0_341] : memref<5x8x128xf32, #tpu.memory_space<vmem>>, vector<1x8x128xf32>
    %1513 = vector.shape_cast %1512 : vector<1x8x128xf32> to vector<8x128xf32>
    %1514 = arith.mulf %1511, %1513 : vector<8x128xf32>
    %1515 = arith.addf %1502, %1514 : vector<8x128xf32>
    %cst_342 = arith.constant 0.000000e+00 : f32
    %1516 = vector.broadcast %cst_342 : f32 to vector<8x128xf32>
    %1517 = arith.select %1170, %1515, %1516 : vector<8x128xi1>, vector<8x128xf32>
    %c42_i32 = arith.constant 42 : i32
    %1518 = vector.broadcast %c42_i32 : i32 to vector<8x128xi32>
    %1519 = arith.cmpi slt, %0, %1518 : vector<8x128xi32>
    %c1_i32_343 = arith.constant 1 : i32
    %1520 = tpu.dynamic_rotate %1395 by %c1_i32_343 dim 1 : vector<8x128xf32>, i32 -> vector<8x128xf32>
    %c1_i32_344 = arith.constant 1 : i32
    %1521 = tpu.dynamic_rotate %1517 by %c1_i32_344 dim 1 : vector<8x128xf32>, i32 -> vector<8x128xf32>
    %c81 = arith.constant 81 : index
    %1522 = memref.load %arg2[%c81] : memref<376xf32, #tpu.memory_space<smem>>
    %1523 = vector.broadcast %1522 : f32 to vector<8x128xf32>
    %1524 = arith.mulf %1523, %1520 : vector<8x128xf32>
    %c82 = arith.constant 82 : index
    %1525 = memref.load %arg2[%c82] : memref<376xf32, #tpu.memory_space<smem>>
    %1526 = vector.broadcast %1525 : f32 to vector<8x128xf32>
    %1527 = arith.mulf %1526, %1521 : vector<8x128xf32>
    %1528 = arith.addf %1524, %1527 : vector<8x128xf32>
    %c85 = arith.constant 85 : index
    %1529 = memref.load %arg2[%c85] : memref<376xf32, #tpu.memory_space<smem>>
    %1530 = vector.broadcast %1529 : f32 to vector<8x128xf32>
    %1531 = arith.addf %1528, %1530 : vector<8x128xf32>
    %cst_345 = arith.constant 0.000000e+00 : f32
    %1532 = vector.broadcast %cst_345 : f32 to vector<8x128xf32>
    %1533 = arith.select %1519, %1531, %1532 : vector<8x128xi1>, vector<8x128xf32>
    %c83 = arith.constant 83 : index
    %1534 = memref.load %arg2[%c83] : memref<376xf32, #tpu.memory_space<smem>>
    %1535 = vector.broadcast %1534 : f32 to vector<8x128xf32>
    %1536 = arith.mulf %1535, %1520 : vector<8x128xf32>
    %c84 = arith.constant 84 : index
    %1537 = memref.load %arg2[%c84] : memref<376xf32, #tpu.memory_space<smem>>
    %1538 = vector.broadcast %1537 : f32 to vector<8x128xf32>
    %1539 = arith.mulf %1538, %1521 : vector<8x128xf32>
    %1540 = arith.addf %1536, %1539 : vector<8x128xf32>
    %c86 = arith.constant 86 : index
    %1541 = memref.load %arg2[%c86] : memref<376xf32, #tpu.memory_space<smem>>
    %1542 = vector.broadcast %1541 : f32 to vector<8x128xf32>
    %1543 = arith.addf %1540, %1542 : vector<8x128xf32>
    %cst_346 = arith.constant 0.000000e+00 : f32
    %1544 = vector.broadcast %cst_346 : f32 to vector<8x128xf32>
    %1545 = arith.select %1519, %1543, %1544 : vector<8x128xi1>, vector<8x128xf32>
    %c44_i32 = arith.constant 44 : i32
    %1546 = vector.broadcast %c44_i32 : i32 to vector<8x128xi32>
    %1547 = arith.cmpi slt, %0, %1546 : vector<8x128xi32>
    %c1_i32_347 = arith.constant 1 : i32
    %1548 = tpu.dynamic_rotate %1533 by %c1_i32_347 dim 1 : vector<8x128xf32>, i32 -> vector<8x128xf32>
    %c1_i32_348 = arith.constant 1 : i32
    %1549 = tpu.dynamic_rotate %1545 by %c1_i32_348 dim 1 : vector<8x128xf32>, i32 -> vector<8x128xf32>
    %c87 = arith.constant 87 : index
    %1550 = memref.load %arg2[%c87] : memref<376xf32, #tpu.memory_space<smem>>
    %1551 = vector.broadcast %1550 : f32 to vector<8x128xf32>
    %1552 = arith.mulf %1551, %1548 : vector<8x128xf32>
    %c88 = arith.constant 88 : index
    %1553 = memref.load %arg2[%c88] : memref<376xf32, #tpu.memory_space<smem>>
    %1554 = vector.broadcast %1553 : f32 to vector<8x128xf32>
    %1555 = arith.mulf %1554, %1549 : vector<8x128xf32>
    %1556 = arith.addf %1552, %1555 : vector<8x128xf32>
    %c91 = arith.constant 91 : index
    %1557 = memref.load %arg2[%c91] : memref<376xf32, #tpu.memory_space<smem>>
    %1558 = vector.broadcast %1557 : f32 to vector<8x128xf32>
    %1559 = arith.addf %1556, %1558 : vector<8x128xf32>
    %cst_349 = arith.constant 0.000000e+00 : f32
    %1560 = vector.broadcast %cst_349 : f32 to vector<8x128xf32>
    %1561 = arith.select %1547, %1559, %1560 : vector<8x128xi1>, vector<8x128xf32>
    %c89 = arith.constant 89 : index
    %1562 = memref.load %arg2[%c89] : memref<376xf32, #tpu.memory_space<smem>>
    %1563 = vector.broadcast %1562 : f32 to vector<8x128xf32>
    %1564 = arith.mulf %1563, %1548 : vector<8x128xf32>
    %c90 = arith.constant 90 : index
    %1565 = memref.load %arg2[%c90] : memref<376xf32, #tpu.memory_space<smem>>
    %1566 = vector.broadcast %1565 : f32 to vector<8x128xf32>
    %1567 = arith.mulf %1566, %1549 : vector<8x128xf32>
    %1568 = arith.addf %1564, %1567 : vector<8x128xf32>
    %c92 = arith.constant 92 : index
    %1569 = memref.load %arg2[%c92] : memref<376xf32, #tpu.memory_space<smem>>
    %1570 = vector.broadcast %1569 : f32 to vector<8x128xf32>
    %1571 = arith.addf %1568, %1570 : vector<8x128xf32>
    %cst_350 = arith.constant 0.000000e+00 : f32
    %1572 = vector.broadcast %cst_350 : f32 to vector<8x128xf32>
    %1573 = arith.select %1547, %1571, %1572 : vector<8x128xi1>, vector<8x128xf32>
    %c46_i32 = arith.constant 46 : i32
    %1574 = vector.broadcast %c46_i32 : i32 to vector<8x128xi32>
    %1575 = arith.cmpi slt, %0, %1574 : vector<8x128xi32>
    %c1_i32_351 = arith.constant 1 : i32
    %1576 = tpu.dynamic_rotate %1561 by %c1_i32_351 dim 1 : vector<8x128xf32>, i32 -> vector<8x128xf32>
    %c1_i32_352 = arith.constant 1 : i32
    %1577 = tpu.dynamic_rotate %1573 by %c1_i32_352 dim 1 : vector<8x128xf32>, i32 -> vector<8x128xf32>
    %c93 = arith.constant 93 : index
    %1578 = memref.load %arg2[%c93] : memref<376xf32, #tpu.memory_space<smem>>
    %1579 = vector.broadcast %1578 : f32 to vector<8x128xf32>
    %1580 = arith.mulf %1579, %1576 : vector<8x128xf32>
    %c94 = arith.constant 94 : index
    %1581 = memref.load %arg2[%c94] : memref<376xf32, #tpu.memory_space<smem>>
    %1582 = vector.broadcast %1581 : f32 to vector<8x128xf32>
    %1583 = arith.mulf %1582, %1577 : vector<8x128xf32>
    %1584 = arith.addf %1580, %1583 : vector<8x128xf32>
    %c97 = arith.constant 97 : index
    %1585 = memref.load %arg2[%c97] : memref<376xf32, #tpu.memory_space<smem>>
    %1586 = vector.broadcast %1585 : f32 to vector<8x128xf32>
    %1587 = arith.addf %1584, %1586 : vector<8x128xf32>
    %cst_353 = arith.constant 0.000000e+00 : f32
    %1588 = vector.broadcast %cst_353 : f32 to vector<8x128xf32>
    %1589 = arith.select %1575, %1587, %1588 : vector<8x128xi1>, vector<8x128xf32>
    %c95 = arith.constant 95 : index
    %1590 = memref.load %arg2[%c95] : memref<376xf32, #tpu.memory_space<smem>>
    %1591 = vector.broadcast %1590 : f32 to vector<8x128xf32>
    %1592 = arith.mulf %1591, %1576 : vector<8x128xf32>
    %c96 = arith.constant 96 : index
    %1593 = memref.load %arg2[%c96] : memref<376xf32, #tpu.memory_space<smem>>
    %1594 = vector.broadcast %1593 : f32 to vector<8x128xf32>
    %1595 = arith.mulf %1594, %1577 : vector<8x128xf32>
    %1596 = arith.addf %1592, %1595 : vector<8x128xf32>
    %c98 = arith.constant 98 : index
    %1597 = memref.load %arg2[%c98] : memref<376xf32, #tpu.memory_space<smem>>
    %1598 = vector.broadcast %1597 : f32 to vector<8x128xf32>
    %1599 = arith.addf %1596, %1598 : vector<8x128xf32>
    %cst_354 = arith.constant 0.000000e+00 : f32
    %1600 = vector.broadcast %cst_354 : f32 to vector<8x128xf32>
    %1601 = arith.select %1575, %1599, %1600 : vector<8x128xi1>, vector<8x128xf32>
    %c99 = arith.constant 99 : index
    %1602 = memref.load %arg2[%c99] : memref<376xf32, #tpu.memory_space<smem>>
    %c101 = arith.constant 101 : index
    %1603 = memref.load %arg2[%c101] : memref<376xf32, #tpu.memory_space<smem>>
    %1604 = vector.shape_cast %1589 : vector<8x128xf32> to vector<1x8x128xf32>
    %cst_355 = arith.constant dense<0.000000e+00> : vector<1xf32>
    %1605 = vector.multi_reduction <add>, %1604, %cst_355 [1, 2] : vector<1x8x128xf32> to vector<1xf32>
    %1606 = vector.shape_cast %1605 : vector<1xf32> to vector<1x1x1xf32>
    %1607 = vector.extract %1606[0, 0, 0] : f32 from vector<1x1x1xf32>
    %1608 = arith.mulf %1589, %1589 : vector<8x128xf32>
    %1609 = vector.shape_cast %1608 : vector<8x128xf32> to vector<1x8x128xf32>
    %cst_356 = arith.constant dense<0.000000e+00> : vector<1xf32>
    %1610 = vector.multi_reduction <add>, %1609, %cst_356 [1, 2] : vector<1x8x128xf32> to vector<1xf32>
    %1611 = vector.shape_cast %1610 : vector<1xf32> to vector<1x1x1xf32>
    %1612 = vector.extract %1611[0, 0, 0] : f32 from vector<1x1x1xf32>
    %cst_357 = arith.constant 0.00271739135 : f32
    %1613 = arith.mulf %1607, %cst_357 : f32
    %cst_358 = arith.constant 0.00271739135 : f32
    %1614 = arith.mulf %1612, %cst_358 : f32
    %1615 = arith.mulf %1613, %1613 : f32
    %1616 = arith.subf %1614, %1615 : f32
    %cst_359 = arith.constant 0.000000e+00 : f32
    %1617 = arith.maximumf %1616, %cst_359 : f32
    %1618 = vector.broadcast %1613 : f32 to vector<8x128xf32>
    %1619 = arith.subf %1589, %1618 : vector<8x128xf32>
    %1620 = vector.broadcast %1602 : f32 to vector<8x128xf32>
    %1621 = arith.mulf %1620, %1619 : vector<8x128xf32>
    %cst_360 = arith.constant 9.99999974E-6 : f32
    %1622 = arith.addf %1617, %cst_360 : f32
    %1623 = math.rsqrt %1622 : f32
    %1624 = vector.broadcast %1623 : f32 to vector<8x128xf32>
    %1625 = arith.mulf %1621, %1624 : vector<8x128xf32>
    %1626 = vector.broadcast %1603 : f32 to vector<8x128xf32>
    %1627 = arith.addf %1625, %1626 : vector<8x128xf32>
    %cst_361 = arith.constant 0.000000e+00 : f32
    %1628 = vector.broadcast %cst_361 : f32 to vector<8x128xf32>
    %1629 = arith.select %1575, %1627, %1628 : vector<8x128xi1>, vector<8x128xf32>
    %cst_362 = arith.constant 5.000000e-01 : f32
    %1630 = vector.broadcast %cst_362 : f32 to vector<8x128xf32>
    %1631 = arith.mulf %1630, %1629 : vector<8x128xf32>
    %1632 = math.tanh %1631 : vector<8x128xf32>
    %cst_363 = arith.constant 5.000000e-01 : f32
    %1633 = vector.broadcast %cst_363 : f32 to vector<8x128xf32>
    %1634 = arith.mulf %1633, %1632 : vector<8x128xf32>
    %cst_364 = arith.constant 5.000000e-01 : f32
    %1635 = vector.broadcast %cst_364 : f32 to vector<8x128xf32>
    %1636 = arith.addf %1635, %1634 : vector<8x128xf32>
    %1637 = arith.mulf %1629, %1636 : vector<8x128xf32>
    %c100 = arith.constant 100 : index
    %1638 = memref.load %arg2[%c100] : memref<376xf32, #tpu.memory_space<smem>>
    %c102 = arith.constant 102 : index
    %1639 = memref.load %arg2[%c102] : memref<376xf32, #tpu.memory_space<smem>>
    %1640 = vector.shape_cast %1601 : vector<8x128xf32> to vector<1x8x128xf32>
    %cst_365 = arith.constant dense<0.000000e+00> : vector<1xf32>
    %1641 = vector.multi_reduction <add>, %1640, %cst_365 [1, 2] : vector<1x8x128xf32> to vector<1xf32>
    %1642 = vector.shape_cast %1641 : vector<1xf32> to vector<1x1x1xf32>
    %1643 = vector.extract %1642[0, 0, 0] : f32 from vector<1x1x1xf32>
    %1644 = arith.mulf %1601, %1601 : vector<8x128xf32>
    %1645 = vector.shape_cast %1644 : vector<8x128xf32> to vector<1x8x128xf32>
    %cst_366 = arith.constant dense<0.000000e+00> : vector<1xf32>
    %1646 = vector.multi_reduction <add>, %1645, %cst_366 [1, 2] : vector<1x8x128xf32> to vector<1xf32>
    %1647 = vector.shape_cast %1646 : vector<1xf32> to vector<1x1x1xf32>
    %1648 = vector.extract %1647[0, 0, 0] : f32 from vector<1x1x1xf32>
    %cst_367 = arith.constant 0.00271739135 : f32
    %1649 = arith.mulf %1643, %cst_367 : f32
    %cst_368 = arith.constant 0.00271739135 : f32
    %1650 = arith.mulf %1648, %cst_368 : f32
    %1651 = arith.mulf %1649, %1649 : f32
    %1652 = arith.subf %1650, %1651 : f32
    %cst_369 = arith.constant 0.000000e+00 : f32
    %1653 = arith.maximumf %1652, %cst_369 : f32
    %1654 = vector.broadcast %1649 : f32 to vector<8x128xf32>
    %1655 = arith.subf %1601, %1654 : vector<8x128xf32>
    %1656 = vector.broadcast %1638 : f32 to vector<8x128xf32>
    %1657 = arith.mulf %1656, %1655 : vector<8x128xf32>
    %cst_370 = arith.constant 9.99999974E-6 : f32
    %1658 = arith.addf %1653, %cst_370 : f32
    %1659 = math.rsqrt %1658 : f32
    %1660 = vector.broadcast %1659 : f32 to vector<8x128xf32>
    %1661 = arith.mulf %1657, %1660 : vector<8x128xf32>
    %1662 = vector.broadcast %1639 : f32 to vector<8x128xf32>
    %1663 = arith.addf %1661, %1662 : vector<8x128xf32>
    %cst_371 = arith.constant 0.000000e+00 : f32
    %1664 = vector.broadcast %cst_371 : f32 to vector<8x128xf32>
    %1665 = arith.select %1575, %1663, %1664 : vector<8x128xi1>, vector<8x128xf32>
    %cst_372 = arith.constant 5.000000e-01 : f32
    %1666 = vector.broadcast %cst_372 : f32 to vector<8x128xf32>
    %1667 = arith.mulf %1666, %1665 : vector<8x128xf32>
    %1668 = math.tanh %1667 : vector<8x128xf32>
    %cst_373 = arith.constant 5.000000e-01 : f32
    %1669 = vector.broadcast %cst_373 : f32 to vector<8x128xf32>
    %1670 = arith.mulf %1669, %1668 : vector<8x128xf32>
    %cst_374 = arith.constant 5.000000e-01 : f32
    %1671 = vector.broadcast %cst_374 : f32 to vector<8x128xf32>
    %1672 = arith.addf %1671, %1670 : vector<8x128xf32>
    %1673 = arith.mulf %1665, %1672 : vector<8x128xf32>
    %c48_i32 = arith.constant 48 : i32
    %1674 = vector.broadcast %c48_i32 : i32 to vector<8x128xi32>
    %1675 = arith.cmpi slt, %0, %1674 : vector<8x128xi32>
    %c1_i32_375 = arith.constant 1 : i32
    %1676 = tpu.dynamic_rotate %1637 by %c1_i32_375 dim 1 : vector<8x128xf32>, i32 -> vector<8x128xf32>
    %c1_i32_376 = arith.constant 1 : i32
    %1677 = tpu.dynamic_rotate %1673 by %c1_i32_376 dim 1 : vector<8x128xf32>, i32 -> vector<8x128xf32>
    %c103 = arith.constant 103 : index
    %1678 = memref.load %arg2[%c103] : memref<376xf32, #tpu.memory_space<smem>>
    %1679 = vector.broadcast %1678 : f32 to vector<8x128xf32>
    %1680 = arith.mulf %1679, %1676 : vector<8x128xf32>
    %c104 = arith.constant 104 : index
    %1681 = memref.load %arg2[%c104] : memref<376xf32, #tpu.memory_space<smem>>
    %1682 = vector.broadcast %1681 : f32 to vector<8x128xf32>
    %1683 = arith.mulf %1682, %1677 : vector<8x128xf32>
    %1684 = arith.addf %1680, %1683 : vector<8x128xf32>
    %c105 = arith.constant 105 : index
    %1685 = memref.load %arg2[%c105] : memref<376xf32, #tpu.memory_space<smem>>
    %1686 = vector.broadcast %1685 : f32 to vector<8x128xf32>
    %1687 = arith.addf %1684, %1686 : vector<8x128xf32>
    %cst_377 = arith.constant 0.000000e+00 : f32
    %1688 = vector.broadcast %cst_377 : f32 to vector<8x128xf32>
    %1689 = arith.select %1675, %1687, %1688 : vector<8x128xi1>, vector<8x128xf32>
    %c106 = arith.constant 106 : index
    %1690 = memref.load %arg2[%c106] : memref<376xf32, #tpu.memory_space<smem>>
    %c107 = arith.constant 107 : index
    %1691 = memref.load %arg2[%c107] : memref<376xf32, #tpu.memory_space<smem>>
    %1692 = vector.shape_cast %1689 : vector<8x128xf32> to vector<1x8x128xf32>
    %cst_378 = arith.constant dense<0.000000e+00> : vector<1xf32>
    %1693 = vector.multi_reduction <add>, %1692, %cst_378 [1, 2] : vector<1x8x128xf32> to vector<1xf32>
    %1694 = vector.shape_cast %1693 : vector<1xf32> to vector<1x1x1xf32>
    %1695 = vector.extract %1694[0, 0, 0] : f32 from vector<1x1x1xf32>
    %1696 = arith.mulf %1689, %1689 : vector<8x128xf32>
    %1697 = vector.shape_cast %1696 : vector<8x128xf32> to vector<1x8x128xf32>
    %cst_379 = arith.constant dense<0.000000e+00> : vector<1xf32>
    %1698 = vector.multi_reduction <add>, %1697, %cst_379 [1, 2] : vector<1x8x128xf32> to vector<1xf32>
    %1699 = vector.shape_cast %1698 : vector<1xf32> to vector<1x1x1xf32>
    %1700 = vector.extract %1699[0, 0, 0] : f32 from vector<1x1x1xf32>
    %cst_380 = arith.constant 0.00260416674 : f32
    %1701 = arith.mulf %1695, %cst_380 : f32
    %cst_381 = arith.constant 0.00260416674 : f32
    %1702 = arith.mulf %1700, %cst_381 : f32
    %1703 = arith.mulf %1701, %1701 : f32
    %1704 = arith.subf %1702, %1703 : f32
    %cst_382 = arith.constant 0.000000e+00 : f32
    %1705 = arith.maximumf %1704, %cst_382 : f32
    %1706 = vector.broadcast %1701 : f32 to vector<8x128xf32>
    %1707 = arith.subf %1689, %1706 : vector<8x128xf32>
    %1708 = vector.broadcast %1690 : f32 to vector<8x128xf32>
    %1709 = arith.mulf %1708, %1707 : vector<8x128xf32>
    %cst_383 = arith.constant 9.99999974E-6 : f32
    %1710 = arith.addf %1705, %cst_383 : f32
    %1711 = math.rsqrt %1710 : f32
    %1712 = vector.broadcast %1711 : f32 to vector<8x128xf32>
    %1713 = arith.mulf %1709, %1712 : vector<8x128xf32>
    %1714 = vector.broadcast %1691 : f32 to vector<8x128xf32>
    %1715 = arith.addf %1713, %1714 : vector<8x128xf32>
    %cst_384 = arith.constant 0.000000e+00 : f32
    %1716 = vector.broadcast %cst_384 : f32 to vector<8x128xf32>
    %1717 = arith.select %1675, %1715, %1716 : vector<8x128xi1>, vector<8x128xf32>
    %cst_385 = arith.constant 5.000000e-01 : f32
    %1718 = vector.broadcast %cst_385 : f32 to vector<8x128xf32>
    %1719 = arith.mulf %1718, %1717 : vector<8x128xf32>
    %1720 = math.tanh %1719 : vector<8x128xf32>
    %cst_386 = arith.constant 5.000000e-01 : f32
    %1721 = vector.broadcast %cst_386 : f32 to vector<8x128xf32>
    %1722 = arith.mulf %1721, %1720 : vector<8x128xf32>
    %cst_387 = arith.constant 5.000000e-01 : f32
    %1723 = vector.broadcast %cst_387 : f32 to vector<8x128xf32>
    %1724 = arith.addf %1723, %1722 : vector<8x128xf32>
    %1725 = arith.mulf %1717, %1724 : vector<8x128xf32>
    %c216 = arith.constant 216 : index
    %1726 = memref.load %arg2[%c216] : memref<376xf32, #tpu.memory_space<smem>>
    %c217 = arith.constant 217 : index
    %1727 = memref.load %arg2[%c217] : memref<376xf32, #tpu.memory_space<smem>>
    %1728 = vector.shape_cast %1725 : vector<8x128xf32> to vector<1x8x128xf32>
    %cst_388 = arith.constant dense<0.000000e+00> : vector<1xf32>
    %1729 = vector.multi_reduction <add>, %1728, %cst_388 [1, 2] : vector<1x8x128xf32> to vector<1xf32>
    %1730 = vector.shape_cast %1729 : vector<1xf32> to vector<1x1x1xf32>
    %1731 = vector.extract %1730[0, 0, 0] : f32 from vector<1x1x1xf32>
    %1732 = arith.mulf %1725, %1725 : vector<8x128xf32>
    %1733 = vector.shape_cast %1732 : vector<8x128xf32> to vector<1x8x128xf32>
    %cst_389 = arith.constant dense<0.000000e+00> : vector<1xf32>
    %1734 = vector.multi_reduction <add>, %1733, %cst_389 [1, 2] : vector<1x8x128xf32> to vector<1xf32>
    %1735 = vector.shape_cast %1734 : vector<1xf32> to vector<1x1x1xf32>
    %1736 = vector.extract %1735[0, 0, 0] : f32 from vector<1x1x1xf32>
    %cst_390 = arith.constant 0.00260416674 : f32
    %1737 = arith.mulf %1731, %cst_390 : f32
    %cst_391 = arith.constant 0.00260416674 : f32
    %1738 = arith.mulf %1736, %cst_391 : f32
    %1739 = arith.mulf %1737, %1737 : f32
    %1740 = arith.subf %1738, %1739 : f32
    %cst_392 = arith.constant 0.000000e+00 : f32
    %1741 = arith.maximumf %1740, %cst_392 : f32
    %1742 = vector.broadcast %1737 : f32 to vector<8x128xf32>
    %1743 = arith.subf %1725, %1742 : vector<8x128xf32>
    %1744 = vector.broadcast %1726 : f32 to vector<8x128xf32>
    %1745 = arith.mulf %1744, %1743 : vector<8x128xf32>
    %cst_393 = arith.constant 9.99999974E-6 : f32
    %1746 = arith.addf %1741, %cst_393 : f32
    %1747 = math.rsqrt %1746 : f32
    %1748 = vector.broadcast %1747 : f32 to vector<8x128xf32>
    %1749 = arith.mulf %1745, %1748 : vector<8x128xf32>
    %1750 = vector.broadcast %1727 : f32 to vector<8x128xf32>
    %1751 = arith.addf %1749, %1750 : vector<8x128xf32>
    %cst_394 = arith.constant 0.000000e+00 : f32
    %1752 = vector.broadcast %cst_394 : f32 to vector<8x128xf32>
    %1753 = arith.select %1675, %1751, %1752 : vector<8x128xi1>, vector<8x128xf32>
    %c218 = arith.constant 218 : index
    %1754 = memref.load %arg2[%c218] : memref<376xf32, #tpu.memory_space<smem>>
    %1755 = vector.broadcast %1754 : f32 to vector<8x128xf32>
    %1756 = arith.mulf %1755, %1753 : vector<8x128xf32>
    %c219 = arith.constant 219 : index
    %1757 = memref.load %arg2[%c219] : memref<376xf32, #tpu.memory_space<smem>>
    %1758 = vector.broadcast %1757 : f32 to vector<8x128xf32>
    %1759 = arith.addf %1756, %1758 : vector<8x128xf32>
    %cst_395 = arith.constant 0.000000e+00 : f32
    %1760 = vector.broadcast %cst_395 : f32 to vector<8x128xf32>
    %1761 = arith.select %1675, %1759, %1760 : vector<8x128xi1>, vector<8x128xf32>
    %c220 = arith.constant 220 : index
    %1762 = memref.load %arg2[%c220] : memref<376xf32, #tpu.memory_space<smem>>
    %c221 = arith.constant 221 : index
    %1763 = memref.load %arg2[%c221] : memref<376xf32, #tpu.memory_space<smem>>
    %1764 = vector.shape_cast %1761 : vector<8x128xf32> to vector<1x8x128xf32>
    %cst_396 = arith.constant dense<0.000000e+00> : vector<1xf32>
    %1765 = vector.multi_reduction <add>, %1764, %cst_396 [1, 2] : vector<1x8x128xf32> to vector<1xf32>
    %1766 = vector.shape_cast %1765 : vector<1xf32> to vector<1x1x1xf32>
    %1767 = vector.extract %1766[0, 0, 0] : f32 from vector<1x1x1xf32>
    %1768 = arith.mulf %1761, %1761 : vector<8x128xf32>
    %1769 = vector.shape_cast %1768 : vector<8x128xf32> to vector<1x8x128xf32>
    %cst_397 = arith.constant dense<0.000000e+00> : vector<1xf32>
    %1770 = vector.multi_reduction <add>, %1769, %cst_397 [1, 2] : vector<1x8x128xf32> to vector<1xf32>
    %1771 = vector.shape_cast %1770 : vector<1xf32> to vector<1x1x1xf32>
    %1772 = vector.extract %1771[0, 0, 0] : f32 from vector<1x1x1xf32>
    %cst_398 = arith.constant 0.00260416674 : f32
    %1773 = arith.mulf %1767, %cst_398 : f32
    %cst_399 = arith.constant 0.00260416674 : f32
    %1774 = arith.mulf %1772, %cst_399 : f32
    %1775 = arith.mulf %1773, %1773 : f32
    %1776 = arith.subf %1774, %1775 : f32
    %cst_400 = arith.constant 0.000000e+00 : f32
    %1777 = arith.maximumf %1776, %cst_400 : f32
    %1778 = vector.broadcast %1773 : f32 to vector<8x128xf32>
    %1779 = arith.subf %1761, %1778 : vector<8x128xf32>
    %1780 = vector.broadcast %1762 : f32 to vector<8x128xf32>
    %1781 = arith.mulf %1780, %1779 : vector<8x128xf32>
    %cst_401 = arith.constant 9.99999974E-6 : f32
    %1782 = arith.addf %1777, %cst_401 : f32
    %1783 = math.rsqrt %1782 : f32
    %1784 = vector.broadcast %1783 : f32 to vector<8x128xf32>
    %1785 = arith.mulf %1781, %1784 : vector<8x128xf32>
    %1786 = vector.broadcast %1763 : f32 to vector<8x128xf32>
    %1787 = arith.addf %1785, %1786 : vector<8x128xf32>
    %cst_402 = arith.constant 0.000000e+00 : f32
    %1788 = vector.broadcast %cst_402 : f32 to vector<8x128xf32>
    %1789 = arith.select %1675, %1787, %1788 : vector<8x128xi1>, vector<8x128xf32>
    %cst_403 = arith.constant 5.000000e-01 : f32
    %1790 = vector.broadcast %cst_403 : f32 to vector<8x128xf32>
    %1791 = arith.mulf %1790, %1789 : vector<8x128xf32>
    %1792 = math.tanh %1791 : vector<8x128xf32>
    %cst_404 = arith.constant 5.000000e-01 : f32
    %1793 = vector.broadcast %cst_404 : f32 to vector<8x128xf32>
    %1794 = arith.mulf %1793, %1792 : vector<8x128xf32>
    %cst_405 = arith.constant 5.000000e-01 : f32
    %1795 = vector.broadcast %cst_405 : f32 to vector<8x128xf32>
    %1796 = arith.addf %1795, %1794 : vector<8x128xf32>
    %1797 = arith.mulf %1789, %1796 : vector<8x128xf32>
    %c222 = arith.constant 222 : index
    %1798 = memref.load %arg2[%c222] : memref<376xf32, #tpu.memory_space<smem>>
    %c223 = arith.constant 223 : index
    %1799 = memref.load %arg2[%c223] : memref<376xf32, #tpu.memory_space<smem>>
    %c224 = arith.constant 224 : index
    %1800 = memref.load %arg2[%c224] : memref<376xf32, #tpu.memory_space<smem>>
    %c225 = arith.constant 225 : index
    %1801 = memref.load %arg2[%c225] : memref<376xf32, #tpu.memory_space<smem>>
    %c226 = arith.constant 226 : index
    %1802 = memref.load %arg2[%c226] : memref<376xf32, #tpu.memory_space<smem>>
    %c227 = arith.constant 227 : index
    %1803 = memref.load %arg2[%c227] : memref<376xf32, #tpu.memory_space<smem>>
    %1804 = vector.broadcast %1800 : f32 to vector<8x128xf32>
    %1805 = arith.mulf %1804, %1797 : vector<8x128xf32>
    %c2_i32_406 = arith.constant 2 : i32
    %1806 = tpu.dynamic_rotate %1797 by %c2_i32_406 dim 1 : vector<8x128xf32>, i32 -> vector<8x128xf32>
    %1807 = vector.broadcast %1798 : f32 to vector<8x128xf32>
    %1808 = arith.mulf %1807, %1806 : vector<8x128xf32>
    %1809 = arith.addf %1805, %1808 : vector<8x128xf32>
    %c1_i32_407 = arith.constant 1 : i32
    %1810 = tpu.dynamic_rotate %1797 by %c1_i32_407 dim 1 : vector<8x128xf32>, i32 -> vector<8x128xf32>
    %1811 = vector.broadcast %1799 : f32 to vector<8x128xf32>
    %1812 = arith.mulf %1811, %1810 : vector<8x128xf32>
    %1813 = arith.addf %1809, %1812 : vector<8x128xf32>
    %c127_i32_408 = arith.constant 127 : i32
    %1814 = tpu.dynamic_rotate %1797 by %c127_i32_408 dim 1 : vector<8x128xf32>, i32 -> vector<8x128xf32>
    %1815 = vector.broadcast %1801 : f32 to vector<8x128xf32>
    %1816 = arith.mulf %1815, %1814 : vector<8x128xf32>
    %1817 = arith.addf %1813, %1816 : vector<8x128xf32>
    %c126_i32_409 = arith.constant 126 : i32
    %1818 = tpu.dynamic_rotate %1797 by %c126_i32_409 dim 1 : vector<8x128xf32>, i32 -> vector<8x128xf32>
    %1819 = vector.broadcast %1802 : f32 to vector<8x128xf32>
    %1820 = arith.mulf %1819, %1818 : vector<8x128xf32>
    %1821 = arith.addf %1817, %1820 : vector<8x128xf32>
    %1822 = vector.broadcast %1803 : f32 to vector<8x128xf32>
    %1823 = arith.addf %1821, %1822 : vector<8x128xf32>
    %cst_410 = arith.constant 0.000000e+00 : f32
    %1824 = vector.broadcast %cst_410 : f32 to vector<8x128xf32>
    %1825 = arith.select %1675, %1823, %1824 : vector<8x128xi1>, vector<8x128xf32>
    %c228 = arith.constant 228 : index
    %1826 = memref.load %arg2[%c228] : memref<376xf32, #tpu.memory_space<smem>>
    %c229 = arith.constant 229 : index
    %1827 = memref.load %arg2[%c229] : memref<376xf32, #tpu.memory_space<smem>>
    %1828 = vector.shape_cast %1825 : vector<8x128xf32> to vector<1x8x128xf32>
    %cst_411 = arith.constant dense<0.000000e+00> : vector<1xf32>
    %1829 = vector.multi_reduction <add>, %1828, %cst_411 [1, 2] : vector<1x8x128xf32> to vector<1xf32>
    %1830 = vector.shape_cast %1829 : vector<1xf32> to vector<1x1x1xf32>
    %1831 = vector.extract %1830[0, 0, 0] : f32 from vector<1x1x1xf32>
    %1832 = arith.mulf %1825, %1825 : vector<8x128xf32>
    %1833 = vector.shape_cast %1832 : vector<8x128xf32> to vector<1x8x128xf32>
    %cst_412 = arith.constant dense<0.000000e+00> : vector<1xf32>
    %1834 = vector.multi_reduction <add>, %1833, %cst_412 [1, 2] : vector<1x8x128xf32> to vector<1xf32>
    %1835 = vector.shape_cast %1834 : vector<1xf32> to vector<1x1x1xf32>
    %1836 = vector.extract %1835[0, 0, 0] : f32 from vector<1x1x1xf32>
    %cst_413 = arith.constant 0.00260416674 : f32
    %1837 = arith.mulf %1831, %cst_413 : f32
    %cst_414 = arith.constant 0.00260416674 : f32
    %1838 = arith.mulf %1836, %cst_414 : f32
    %1839 = arith.mulf %1837, %1837 : f32
    %1840 = arith.subf %1838, %1839 : f32
    %cst_415 = arith.constant 0.000000e+00 : f32
    %1841 = arith.maximumf %1840, %cst_415 : f32
    %1842 = vector.broadcast %1837 : f32 to vector<8x128xf32>
    %1843 = arith.subf %1825, %1842 : vector<8x128xf32>
    %1844 = vector.broadcast %1826 : f32 to vector<8x128xf32>
    %1845 = arith.mulf %1844, %1843 : vector<8x128xf32>
    %cst_416 = arith.constant 9.99999974E-6 : f32
    %1846 = arith.addf %1841, %cst_416 : f32
    %1847 = math.rsqrt %1846 : f32
    %1848 = vector.broadcast %1847 : f32 to vector<8x128xf32>
    %1849 = arith.mulf %1845, %1848 : vector<8x128xf32>
    %1850 = vector.broadcast %1827 : f32 to vector<8x128xf32>
    %1851 = arith.addf %1849, %1850 : vector<8x128xf32>
    %cst_417 = arith.constant 0.000000e+00 : f32
    %1852 = vector.broadcast %cst_417 : f32 to vector<8x128xf32>
    %1853 = arith.select %1675, %1851, %1852 : vector<8x128xi1>, vector<8x128xf32>
    %cst_418 = arith.constant 5.000000e-01 : f32
    %1854 = vector.broadcast %cst_418 : f32 to vector<8x128xf32>
    %1855 = arith.mulf %1854, %1853 : vector<8x128xf32>
    %1856 = math.tanh %1855 : vector<8x128xf32>
    %cst_419 = arith.constant 5.000000e-01 : f32
    %1857 = vector.broadcast %cst_419 : f32 to vector<8x128xf32>
    %1858 = arith.mulf %1857, %1856 : vector<8x128xf32>
    %cst_420 = arith.constant 5.000000e-01 : f32
    %1859 = vector.broadcast %cst_420 : f32 to vector<8x128xf32>
    %1860 = arith.addf %1859, %1858 : vector<8x128xf32>
    %1861 = arith.mulf %1853, %1860 : vector<8x128xf32>
    %c230 = arith.constant 230 : index
    %1862 = memref.load %arg2[%c230] : memref<376xf32, #tpu.memory_space<smem>>
    %1863 = vector.broadcast %1862 : f32 to vector<8x128xf32>
    %1864 = arith.mulf %1863, %1861 : vector<8x128xf32>
    %c231 = arith.constant 231 : index
    %1865 = memref.load %arg2[%c231] : memref<376xf32, #tpu.memory_space<smem>>
    %1866 = vector.broadcast %1865 : f32 to vector<8x128xf32>
    %1867 = arith.addf %1864, %1866 : vector<8x128xf32>
    %cst_421 = arith.constant 0.000000e+00 : f32
    %1868 = vector.broadcast %cst_421 : f32 to vector<8x128xf32>
    %1869 = arith.select %1675, %1867, %1868 : vector<8x128xi1>, vector<8x128xf32>
    %c232 = arith.constant 232 : index
    %1870 = memref.load %arg2[%c232] : memref<376xf32, #tpu.memory_space<smem>>
    %c233 = arith.constant 233 : index
    %1871 = memref.load %arg2[%c233] : memref<376xf32, #tpu.memory_space<smem>>
    %1872 = vector.shape_cast %1869 : vector<8x128xf32> to vector<1x8x128xf32>
    %cst_422 = arith.constant dense<0.000000e+00> : vector<1xf32>
    %1873 = vector.multi_reduction <add>, %1872, %cst_422 [1, 2] : vector<1x8x128xf32> to vector<1xf32>
    %1874 = vector.shape_cast %1873 : vector<1xf32> to vector<1x1x1xf32>
    %1875 = vector.extract %1874[0, 0, 0] : f32 from vector<1x1x1xf32>
    %1876 = arith.mulf %1869, %1869 : vector<8x128xf32>
    %1877 = vector.shape_cast %1876 : vector<8x128xf32> to vector<1x8x128xf32>
    %cst_423 = arith.constant dense<0.000000e+00> : vector<1xf32>
    %1878 = vector.multi_reduction <add>, %1877, %cst_423 [1, 2] : vector<1x8x128xf32> to vector<1xf32>
    %1879 = vector.shape_cast %1878 : vector<1xf32> to vector<1x1x1xf32>
    %1880 = vector.extract %1879[0, 0, 0] : f32 from vector<1x1x1xf32>
    %cst_424 = arith.constant 0.00260416674 : f32
    %1881 = arith.mulf %1875, %cst_424 : f32
    %cst_425 = arith.constant 0.00260416674 : f32
    %1882 = arith.mulf %1880, %cst_425 : f32
    %1883 = arith.mulf %1881, %1881 : f32
    %1884 = arith.subf %1882, %1883 : f32
    %cst_426 = arith.constant 0.000000e+00 : f32
    %1885 = arith.maximumf %1884, %cst_426 : f32
    %1886 = vector.broadcast %1881 : f32 to vector<8x128xf32>
    %1887 = arith.subf %1869, %1886 : vector<8x128xf32>
    %1888 = vector.broadcast %1870 : f32 to vector<8x128xf32>
    %1889 = arith.mulf %1888, %1887 : vector<8x128xf32>
    %cst_427 = arith.constant 9.99999974E-6 : f32
    %1890 = arith.addf %1885, %cst_427 : f32
    %1891 = math.rsqrt %1890 : f32
    %1892 = vector.broadcast %1891 : f32 to vector<8x128xf32>
    %1893 = arith.mulf %1889, %1892 : vector<8x128xf32>
    %1894 = vector.broadcast %1871 : f32 to vector<8x128xf32>
    %1895 = arith.addf %1893, %1894 : vector<8x128xf32>
    %cst_428 = arith.constant 0.000000e+00 : f32
    %1896 = vector.broadcast %cst_428 : f32 to vector<8x128xf32>
    %1897 = arith.select %1675, %1895, %1896 : vector<8x128xi1>, vector<8x128xf32>
    %cst_429 = arith.constant 1.000000e-01 : f32
    %1898 = vector.broadcast %cst_429 : f32 to vector<8x128xf32>
    %1899 = arith.mulf %1898, %1897 : vector<8x128xf32>
    %1900 = arith.addf %1725, %1899 : vector<8x128xf32>
    %c324 = arith.constant 324 : index
    %1901 = memref.load %arg2[%c324] : memref<376xf32, #tpu.memory_space<smem>>
    %c325 = arith.constant 325 : index
    %1902 = memref.load %arg2[%c325] : memref<376xf32, #tpu.memory_space<smem>>
    %c326 = arith.constant 326 : index
    %1903 = memref.load %arg2[%c326] : memref<376xf32, #tpu.memory_space<smem>>
    %c327 = arith.constant 327 : index
    %1904 = memref.load %arg2[%c327] : memref<376xf32, #tpu.memory_space<smem>>
    %c328 = arith.constant 328 : index
    %1905 = memref.load %arg2[%c328] : memref<376xf32, #tpu.memory_space<smem>>
    %c329 = arith.constant 329 : index
    %1906 = memref.load %arg2[%c329] : memref<376xf32, #tpu.memory_space<smem>>
    %1907 = vector.broadcast %1903 : f32 to vector<8x128xf32>
    %1908 = arith.mulf %1907, %1900 : vector<8x128xf32>
    %c2_i32_430 = arith.constant 2 : i32
    %1909 = tpu.dynamic_rotate %1900 by %c2_i32_430 dim 1 : vector<8x128xf32>, i32 -> vector<8x128xf32>
    %1910 = vector.broadcast %1901 : f32 to vector<8x128xf32>
    %1911 = arith.mulf %1910, %1909 : vector<8x128xf32>
    %1912 = arith.addf %1908, %1911 : vector<8x128xf32>
    %c1_i32_431 = arith.constant 1 : i32
    %1913 = tpu.dynamic_rotate %1900 by %c1_i32_431 dim 1 : vector<8x128xf32>, i32 -> vector<8x128xf32>
    %1914 = vector.broadcast %1902 : f32 to vector<8x128xf32>
    %1915 = arith.mulf %1914, %1913 : vector<8x128xf32>
    %1916 = arith.addf %1912, %1915 : vector<8x128xf32>
    %c127_i32_432 = arith.constant 127 : i32
    %1917 = tpu.dynamic_rotate %1900 by %c127_i32_432 dim 1 : vector<8x128xf32>, i32 -> vector<8x128xf32>
    %1918 = vector.broadcast %1904 : f32 to vector<8x128xf32>
    %1919 = arith.mulf %1918, %1917 : vector<8x128xf32>
    %1920 = arith.addf %1916, %1919 : vector<8x128xf32>
    %c126_i32_433 = arith.constant 126 : i32
    %1921 = tpu.dynamic_rotate %1900 by %c126_i32_433 dim 1 : vector<8x128xf32>, i32 -> vector<8x128xf32>
    %1922 = vector.broadcast %1905 : f32 to vector<8x128xf32>
    %1923 = arith.mulf %1922, %1921 : vector<8x128xf32>
    %1924 = arith.addf %1920, %1923 : vector<8x128xf32>
    %1925 = vector.broadcast %1906 : f32 to vector<8x128xf32>
    %1926 = arith.addf %1924, %1925 : vector<8x128xf32>
    %cst_434 = arith.constant 0.000000e+00 : f32
    %1927 = vector.broadcast %cst_434 : f32 to vector<8x128xf32>
    %1928 = arith.select %1675, %1926, %1927 : vector<8x128xi1>, vector<8x128xf32>
    %c330 = arith.constant 330 : index
    %1929 = memref.load %arg2[%c330] : memref<376xf32, #tpu.memory_space<smem>>
    %1930 = vector.broadcast %1929 : f32 to vector<8x128xf32>
    %1931 = arith.mulf %1930, %1928 : vector<8x128xf32>
    %c331 = arith.constant 331 : index
    %1932 = memref.load %arg2[%c331] : memref<376xf32, #tpu.memory_space<smem>>
    %1933 = vector.broadcast %1932 : f32 to vector<8x128xf32>
    %1934 = arith.addf %1931, %1933 : vector<8x128xf32>
    %cst_435 = arith.constant 0.000000e+00 : f32
    %1935 = vector.broadcast %cst_435 : f32 to vector<8x128xf32>
    %1936 = arith.select %1675, %1934, %1935 : vector<8x128xi1>, vector<8x128xf32>
    %c332 = arith.constant 332 : index
    %1937 = memref.load %arg2[%c332] : memref<376xf32, #tpu.memory_space<smem>>
    %c333 = arith.constant 333 : index
    %1938 = memref.load %arg2[%c333] : memref<376xf32, #tpu.memory_space<smem>>
    %1939 = vector.shape_cast %1936 : vector<8x128xf32> to vector<1x8x128xf32>
    %cst_436 = arith.constant dense<0.000000e+00> : vector<1xf32>
    %1940 = vector.multi_reduction <add>, %1939, %cst_436 [1, 2] : vector<1x8x128xf32> to vector<1xf32>
    %1941 = vector.shape_cast %1940 : vector<1xf32> to vector<1x1x1xf32>
    %1942 = vector.extract %1941[0, 0, 0] : f32 from vector<1x1x1xf32>
    %1943 = arith.mulf %1936, %1936 : vector<8x128xf32>
    %1944 = vector.shape_cast %1943 : vector<8x128xf32> to vector<1x8x128xf32>
    %cst_437 = arith.constant dense<0.000000e+00> : vector<1xf32>
    %1945 = vector.multi_reduction <add>, %1944, %cst_437 [1, 2] : vector<1x8x128xf32> to vector<1xf32>
    %1946 = vector.shape_cast %1945 : vector<1xf32> to vector<1x1x1xf32>
    %1947 = vector.extract %1946[0, 0, 0] : f32 from vector<1x1x1xf32>
    %cst_438 = arith.constant 0.00260416674 : f32
    %1948 = arith.mulf %1942, %cst_438 : f32
    %cst_439 = arith.constant 0.00260416674 : f32
    %1949 = arith.mulf %1947, %cst_439 : f32
    %1950 = arith.mulf %1948, %1948 : f32
    %1951 = arith.subf %1949, %1950 : f32
    %cst_440 = arith.constant 0.000000e+00 : f32
    %1952 = arith.maximumf %1951, %cst_440 : f32
    %1953 = vector.broadcast %1948 : f32 to vector<8x128xf32>
    %1954 = arith.subf %1936, %1953 : vector<8x128xf32>
    %1955 = vector.broadcast %1937 : f32 to vector<8x128xf32>
    %1956 = arith.mulf %1955, %1954 : vector<8x128xf32>
    %cst_441 = arith.constant 9.99999974E-6 : f32
    %1957 = arith.addf %1952, %cst_441 : f32
    %1958 = math.rsqrt %1957 : f32
    %1959 = vector.broadcast %1958 : f32 to vector<8x128xf32>
    %1960 = arith.mulf %1956, %1959 : vector<8x128xf32>
    %1961 = vector.broadcast %1938 : f32 to vector<8x128xf32>
    %1962 = arith.addf %1960, %1961 : vector<8x128xf32>
    %cst_442 = arith.constant 0.000000e+00 : f32
    %1963 = vector.broadcast %cst_442 : f32 to vector<8x128xf32>
    %1964 = arith.select %1675, %1962, %1963 : vector<8x128xi1>, vector<8x128xf32>
    %cst_443 = arith.constant 5.000000e-01 : f32
    %1965 = vector.broadcast %cst_443 : f32 to vector<8x128xf32>
    %1966 = arith.mulf %1965, %1964 : vector<8x128xf32>
    %1967 = math.tanh %1966 : vector<8x128xf32>
    %cst_444 = arith.constant 5.000000e-01 : f32
    %1968 = vector.broadcast %cst_444 : f32 to vector<8x128xf32>
    %1969 = arith.mulf %1968, %1967 : vector<8x128xf32>
    %cst_445 = arith.constant 5.000000e-01 : f32
    %1970 = vector.broadcast %cst_445 : f32 to vector<8x128xf32>
    %1971 = arith.addf %1970, %1969 : vector<8x128xf32>
    %1972 = arith.mulf %1964, %1971 : vector<8x128xf32>
    %c334 = arith.constant 334 : index
    %1973 = memref.load %arg2[%c334] : memref<376xf32, #tpu.memory_space<smem>>
    %c335 = arith.constant 335 : index
    %1974 = memref.load %arg2[%c335] : memref<376xf32, #tpu.memory_space<smem>>
    %c336 = arith.constant 336 : index
    %1975 = memref.load %arg2[%c336] : memref<376xf32, #tpu.memory_space<smem>>
    %c337 = arith.constant 337 : index
    %1976 = memref.load %arg2[%c337] : memref<376xf32, #tpu.memory_space<smem>>
    %1977 = vector.broadcast %1974 : f32 to vector<8x128xf32>
    %1978 = arith.mulf %1977, %1972 : vector<8x128xf32>
    %c1_i32_446 = arith.constant 1 : i32
    %1979 = tpu.dynamic_rotate %1972 by %c1_i32_446 dim 1 : vector<8x128xf32>, i32 -> vector<8x128xf32>
    %1980 = vector.broadcast %1973 : f32 to vector<8x128xf32>
    %1981 = arith.mulf %1980, %1979 : vector<8x128xf32>
    %1982 = arith.addf %1978, %1981 : vector<8x128xf32>
    %c127_i32_447 = arith.constant 127 : i32
    %1983 = tpu.dynamic_rotate %1972 by %c127_i32_447 dim 1 : vector<8x128xf32>, i32 -> vector<8x128xf32>
    %1984 = vector.broadcast %1975 : f32 to vector<8x128xf32>
    %1985 = arith.mulf %1984, %1983 : vector<8x128xf32>
    %1986 = arith.addf %1982, %1985 : vector<8x128xf32>
    %1987 = vector.broadcast %1976 : f32 to vector<8x128xf32>
    %1988 = arith.addf %1986, %1987 : vector<8x128xf32>
    %cst_448 = arith.constant 0.000000e+00 : f32
    %1989 = vector.broadcast %cst_448 : f32 to vector<8x128xf32>
    %1990 = arith.select %1675, %1988, %1989 : vector<8x128xi1>, vector<8x128xf32>
    %cst_449 = arith.constant 1.000000e-01 : f32
    %1991 = vector.broadcast %cst_449 : f32 to vector<8x128xf32>
    %1992 = arith.mulf %1991, %1990 : vector<8x128xf32>
    %1993 = arith.addf %1900, %1992 : vector<8x128xf32>
    %cst_450 = arith.constant 5.000000e-01 : f32
    %1994 = vector.broadcast %cst_450 : f32 to vector<8x128xf32>
    %1995 = arith.mulf %1994, %1993 : vector<8x128xf32>
    %1996 = math.tanh %1995 : vector<8x128xf32>
    %cst_451 = arith.constant 5.000000e-01 : f32
    %1997 = vector.broadcast %cst_451 : f32 to vector<8x128xf32>
    %1998 = arith.mulf %1997, %1996 : vector<8x128xf32>
    %cst_452 = arith.constant 5.000000e-01 : f32
    %1999 = vector.broadcast %cst_452 : f32 to vector<8x128xf32>
    %2000 = arith.addf %1999, %1998 : vector<8x128xf32>
    %2001 = arith.mulf %1993, %2000 : vector<8x128xf32>
    %c338 = arith.constant 338 : index
    %2002 = memref.load %arg2[%c338] : memref<376xf32, #tpu.memory_space<smem>>
    %2003 = vector.broadcast %2002 : f32 to vector<8x128xf32>
    %2004 = arith.mulf %2003, %2001 : vector<8x128xf32>
    %c340 = arith.constant 340 : index
    %2005 = memref.load %arg2[%c340] : memref<376xf32, #tpu.memory_space<smem>>
    %2006 = vector.broadcast %2005 : f32 to vector<8x128xf32>
    %2007 = arith.addf %2004, %2006 : vector<8x128xf32>
    %c339 = arith.constant 339 : index
    %2008 = memref.load %arg2[%c339] : memref<376xf32, #tpu.memory_space<smem>>
    %2009 = vector.broadcast %2008 : f32 to vector<8x128xf32>
    %2010 = arith.mulf %2009, %2001 : vector<8x128xf32>
    %c341 = arith.constant 341 : index
    %2011 = memref.load %arg2[%c341] : memref<376xf32, #tpu.memory_space<smem>>
    %2012 = vector.broadcast %2011 : f32 to vector<8x128xf32>
    %2013 = arith.addf %2010, %2012 : vector<8x128xf32>
    %cst_453 = arith.constant 5.000000e-01 : f32
    %2014 = vector.broadcast %cst_453 : f32 to vector<8x128xf32>
    %2015 = arith.mulf %2014, %2013 : vector<8x128xf32>
    %2016 = math.exp %2015 : vector<8x128xf32>
    %c3_454 = arith.constant 3 : index
    %c0_455 = arith.constant 0 : index
    %c0_456 = arith.constant 0 : index
    %2017 = vector.load %arg1[%c3_454, %c0_455, %c0_456] : memref<5x8x128xf32, #tpu.memory_space<vmem>>, vector<1x8x128xf32>
    %2018 = vector.shape_cast %2017 : vector<1x8x128xf32> to vector<8x128xf32>
    %2019 = arith.mulf %2016, %2018 : vector<8x128xf32>
    %2020 = arith.addf %2007, %2019 : vector<8x128xf32>
    %cst_457 = arith.constant 0.000000e+00 : f32
    %2021 = vector.broadcast %cst_457 : f32 to vector<8x128xf32>
    %2022 = arith.select %1675, %2020, %2021 : vector<8x128xi1>, vector<8x128xf32>
    %c50_i32 = arith.constant 50 : i32
    %2023 = vector.broadcast %c50_i32 : i32 to vector<8x128xi32>
    %2024 = arith.cmpi slt, %0, %2023 : vector<8x128xi32>
    %c1_i32_458 = arith.constant 1 : i32
    %2025 = tpu.dynamic_rotate %1900 by %c1_i32_458 dim 1 : vector<8x128xf32>, i32 -> vector<8x128xf32>
    %c1_i32_459 = arith.constant 1 : i32
    %2026 = tpu.dynamic_rotate %2022 by %c1_i32_459 dim 1 : vector<8x128xf32>, i32 -> vector<8x128xf32>
    %c108 = arith.constant 108 : index
    %2027 = memref.load %arg2[%c108] : memref<376xf32, #tpu.memory_space<smem>>
    %2028 = vector.broadcast %2027 : f32 to vector<8x128xf32>
    %2029 = arith.mulf %2028, %2025 : vector<8x128xf32>
    %c109 = arith.constant 109 : index
    %2030 = memref.load %arg2[%c109] : memref<376xf32, #tpu.memory_space<smem>>
    %2031 = vector.broadcast %2030 : f32 to vector<8x128xf32>
    %2032 = arith.mulf %2031, %2026 : vector<8x128xf32>
    %2033 = arith.addf %2029, %2032 : vector<8x128xf32>
    %c112 = arith.constant 112 : index
    %2034 = memref.load %arg2[%c112] : memref<376xf32, #tpu.memory_space<smem>>
    %2035 = vector.broadcast %2034 : f32 to vector<8x128xf32>
    %2036 = arith.addf %2033, %2035 : vector<8x128xf32>
    %cst_460 = arith.constant 0.000000e+00 : f32
    %2037 = vector.broadcast %cst_460 : f32 to vector<8x128xf32>
    %2038 = arith.select %2024, %2036, %2037 : vector<8x128xi1>, vector<8x128xf32>
    %c110 = arith.constant 110 : index
    %2039 = memref.load %arg2[%c110] : memref<376xf32, #tpu.memory_space<smem>>
    %2040 = vector.broadcast %2039 : f32 to vector<8x128xf32>
    %2041 = arith.mulf %2040, %2025 : vector<8x128xf32>
    %c111 = arith.constant 111 : index
    %2042 = memref.load %arg2[%c111] : memref<376xf32, #tpu.memory_space<smem>>
    %2043 = vector.broadcast %2042 : f32 to vector<8x128xf32>
    %2044 = arith.mulf %2043, %2026 : vector<8x128xf32>
    %2045 = arith.addf %2041, %2044 : vector<8x128xf32>
    %c113 = arith.constant 113 : index
    %2046 = memref.load %arg2[%c113] : memref<376xf32, #tpu.memory_space<smem>>
    %2047 = vector.broadcast %2046 : f32 to vector<8x128xf32>
    %2048 = arith.addf %2045, %2047 : vector<8x128xf32>
    %cst_461 = arith.constant 0.000000e+00 : f32
    %2049 = vector.broadcast %cst_461 : f32 to vector<8x128xf32>
    %2050 = arith.select %2024, %2048, %2049 : vector<8x128xi1>, vector<8x128xf32>
    %c52_i32 = arith.constant 52 : i32
    %2051 = vector.broadcast %c52_i32 : i32 to vector<8x128xi32>
    %2052 = arith.cmpi slt, %0, %2051 : vector<8x128xi32>
    %c1_i32_462 = arith.constant 1 : i32
    %2053 = tpu.dynamic_rotate %2038 by %c1_i32_462 dim 1 : vector<8x128xf32>, i32 -> vector<8x128xf32>
    %c1_i32_463 = arith.constant 1 : i32
    %2054 = tpu.dynamic_rotate %2050 by %c1_i32_463 dim 1 : vector<8x128xf32>, i32 -> vector<8x128xf32>
    %c114 = arith.constant 114 : index
    %2055 = memref.load %arg2[%c114] : memref<376xf32, #tpu.memory_space<smem>>
    %2056 = vector.broadcast %2055 : f32 to vector<8x128xf32>
    %2057 = arith.mulf %2056, %2053 : vector<8x128xf32>
    %c115 = arith.constant 115 : index
    %2058 = memref.load %arg2[%c115] : memref<376xf32, #tpu.memory_space<smem>>
    %2059 = vector.broadcast %2058 : f32 to vector<8x128xf32>
    %2060 = arith.mulf %2059, %2054 : vector<8x128xf32>
    %2061 = arith.addf %2057, %2060 : vector<8x128xf32>
    %c118 = arith.constant 118 : index
    %2062 = memref.load %arg2[%c118] : memref<376xf32, #tpu.memory_space<smem>>
    %2063 = vector.broadcast %2062 : f32 to vector<8x128xf32>
    %2064 = arith.addf %2061, %2063 : vector<8x128xf32>
    %cst_464 = arith.constant 0.000000e+00 : f32
    %2065 = vector.broadcast %cst_464 : f32 to vector<8x128xf32>
    %2066 = arith.select %2052, %2064, %2065 : vector<8x128xi1>, vector<8x128xf32>
    %c116 = arith.constant 116 : index
    %2067 = memref.load %arg2[%c116] : memref<376xf32, #tpu.memory_space<smem>>
    %2068 = vector.broadcast %2067 : f32 to vector<8x128xf32>
    %2069 = arith.mulf %2068, %2053 : vector<8x128xf32>
    %c117 = arith.constant 117 : index
    %2070 = memref.load %arg2[%c117] : memref<376xf32, #tpu.memory_space<smem>>
    %2071 = vector.broadcast %2070 : f32 to vector<8x128xf32>
    %2072 = arith.mulf %2071, %2054 : vector<8x128xf32>
    %2073 = arith.addf %2069, %2072 : vector<8x128xf32>
    %c119 = arith.constant 119 : index
    %2074 = memref.load %arg2[%c119] : memref<376xf32, #tpu.memory_space<smem>>
    %2075 = vector.broadcast %2074 : f32 to vector<8x128xf32>
    %2076 = arith.addf %2073, %2075 : vector<8x128xf32>
    %cst_465 = arith.constant 0.000000e+00 : f32
    %2077 = vector.broadcast %cst_465 : f32 to vector<8x128xf32>
    %2078 = arith.select %2052, %2076, %2077 : vector<8x128xi1>, vector<8x128xf32>
    %c54_i32 = arith.constant 54 : i32
    %2079 = vector.broadcast %c54_i32 : i32 to vector<8x128xi32>
    %2080 = arith.cmpi slt, %0, %2079 : vector<8x128xi32>
    %c1_i32_466 = arith.constant 1 : i32
    %2081 = tpu.dynamic_rotate %2066 by %c1_i32_466 dim 1 : vector<8x128xf32>, i32 -> vector<8x128xf32>
    %c1_i32_467 = arith.constant 1 : i32
    %2082 = tpu.dynamic_rotate %2078 by %c1_i32_467 dim 1 : vector<8x128xf32>, i32 -> vector<8x128xf32>
    %c120 = arith.constant 120 : index
    %2083 = memref.load %arg2[%c120] : memref<376xf32, #tpu.memory_space<smem>>
    %2084 = vector.broadcast %2083 : f32 to vector<8x128xf32>
    %2085 = arith.mulf %2084, %2081 : vector<8x128xf32>
    %c121 = arith.constant 121 : index
    %2086 = memref.load %arg2[%c121] : memref<376xf32, #tpu.memory_space<smem>>
    %2087 = vector.broadcast %2086 : f32 to vector<8x128xf32>
    %2088 = arith.mulf %2087, %2082 : vector<8x128xf32>
    %2089 = arith.addf %2085, %2088 : vector<8x128xf32>
    %c124 = arith.constant 124 : index
    %2090 = memref.load %arg2[%c124] : memref<376xf32, #tpu.memory_space<smem>>
    %2091 = vector.broadcast %2090 : f32 to vector<8x128xf32>
    %2092 = arith.addf %2089, %2091 : vector<8x128xf32>
    %cst_468 = arith.constant 0.000000e+00 : f32
    %2093 = vector.broadcast %cst_468 : f32 to vector<8x128xf32>
    %2094 = arith.select %2080, %2092, %2093 : vector<8x128xi1>, vector<8x128xf32>
    %c122 = arith.constant 122 : index
    %2095 = memref.load %arg2[%c122] : memref<376xf32, #tpu.memory_space<smem>>
    %2096 = vector.broadcast %2095 : f32 to vector<8x128xf32>
    %2097 = arith.mulf %2096, %2081 : vector<8x128xf32>
    %c123 = arith.constant 123 : index
    %2098 = memref.load %arg2[%c123] : memref<376xf32, #tpu.memory_space<smem>>
    %2099 = vector.broadcast %2098 : f32 to vector<8x128xf32>
    %2100 = arith.mulf %2099, %2082 : vector<8x128xf32>
    %2101 = arith.addf %2097, %2100 : vector<8x128xf32>
    %c125 = arith.constant 125 : index
    %2102 = memref.load %arg2[%c125] : memref<376xf32, #tpu.memory_space<smem>>
    %2103 = vector.broadcast %2102 : f32 to vector<8x128xf32>
    %2104 = arith.addf %2101, %2103 : vector<8x128xf32>
    %cst_469 = arith.constant 0.000000e+00 : f32
    %2105 = vector.broadcast %cst_469 : f32 to vector<8x128xf32>
    %2106 = arith.select %2080, %2104, %2105 : vector<8x128xi1>, vector<8x128xf32>
    %c126 = arith.constant 126 : index
    %2107 = memref.load %arg2[%c126] : memref<376xf32, #tpu.memory_space<smem>>
    %c128 = arith.constant 128 : index
    %2108 = memref.load %arg2[%c128] : memref<376xf32, #tpu.memory_space<smem>>
    %2109 = vector.shape_cast %2094 : vector<8x128xf32> to vector<1x8x128xf32>
    %cst_470 = arith.constant dense<0.000000e+00> : vector<1xf32>
    %2110 = vector.multi_reduction <add>, %2109, %cst_470 [1, 2] : vector<1x8x128xf32> to vector<1xf32>
    %2111 = vector.shape_cast %2110 : vector<1xf32> to vector<1x1x1xf32>
    %2112 = vector.extract %2111[0, 0, 0] : f32 from vector<1x1x1xf32>
    %2113 = arith.mulf %2094, %2094 : vector<8x128xf32>
    %2114 = vector.shape_cast %2113 : vector<8x128xf32> to vector<1x8x128xf32>
    %cst_471 = arith.constant dense<0.000000e+00> : vector<1xf32>
    %2115 = vector.multi_reduction <add>, %2114, %cst_471 [1, 2] : vector<1x8x128xf32> to vector<1xf32>
    %2116 = vector.shape_cast %2115 : vector<1xf32> to vector<1x1x1xf32>
    %2117 = vector.extract %2116[0, 0, 0] : f32 from vector<1x1x1xf32>
    %cst_472 = arith.constant 0.00231481483 : f32
    %2118 = arith.mulf %2112, %cst_472 : f32
    %cst_473 = arith.constant 0.00231481483 : f32
    %2119 = arith.mulf %2117, %cst_473 : f32
    %2120 = arith.mulf %2118, %2118 : f32
    %2121 = arith.subf %2119, %2120 : f32
    %cst_474 = arith.constant 0.000000e+00 : f32
    %2122 = arith.maximumf %2121, %cst_474 : f32
    %2123 = vector.broadcast %2118 : f32 to vector<8x128xf32>
    %2124 = arith.subf %2094, %2123 : vector<8x128xf32>
    %2125 = vector.broadcast %2107 : f32 to vector<8x128xf32>
    %2126 = arith.mulf %2125, %2124 : vector<8x128xf32>
    %cst_475 = arith.constant 9.99999974E-6 : f32
    %2127 = arith.addf %2122, %cst_475 : f32
    %2128 = math.rsqrt %2127 : f32
    %2129 = vector.broadcast %2128 : f32 to vector<8x128xf32>
    %2130 = arith.mulf %2126, %2129 : vector<8x128xf32>
    %2131 = vector.broadcast %2108 : f32 to vector<8x128xf32>
    %2132 = arith.addf %2130, %2131 : vector<8x128xf32>
    %cst_476 = arith.constant 0.000000e+00 : f32
    %2133 = vector.broadcast %cst_476 : f32 to vector<8x128xf32>
    %2134 = arith.select %2080, %2132, %2133 : vector<8x128xi1>, vector<8x128xf32>
    %cst_477 = arith.constant 5.000000e-01 : f32
    %2135 = vector.broadcast %cst_477 : f32 to vector<8x128xf32>
    %2136 = arith.mulf %2135, %2134 : vector<8x128xf32>
    %2137 = math.tanh %2136 : vector<8x128xf32>
    %cst_478 = arith.constant 5.000000e-01 : f32
    %2138 = vector.broadcast %cst_478 : f32 to vector<8x128xf32>
    %2139 = arith.mulf %2138, %2137 : vector<8x128xf32>
    %cst_479 = arith.constant 5.000000e-01 : f32
    %2140 = vector.broadcast %cst_479 : f32 to vector<8x128xf32>
    %2141 = arith.addf %2140, %2139 : vector<8x128xf32>
    %2142 = arith.mulf %2134, %2141 : vector<8x128xf32>
    %c127 = arith.constant 127 : index
    %2143 = memref.load %arg2[%c127] : memref<376xf32, #tpu.memory_space<smem>>
    %c129 = arith.constant 129 : index
    %2144 = memref.load %arg2[%c129] : memref<376xf32, #tpu.memory_space<smem>>
    %2145 = vector.shape_cast %2106 : vector<8x128xf32> to vector<1x8x128xf32>
    %cst_480 = arith.constant dense<0.000000e+00> : vector<1xf32>
    %2146 = vector.multi_reduction <add>, %2145, %cst_480 [1, 2] : vector<1x8x128xf32> to vector<1xf32>
    %2147 = vector.shape_cast %2146 : vector<1xf32> to vector<1x1x1xf32>
    %2148 = vector.extract %2147[0, 0, 0] : f32 from vector<1x1x1xf32>
    %2149 = arith.mulf %2106, %2106 : vector<8x128xf32>
    %2150 = vector.shape_cast %2149 : vector<8x128xf32> to vector<1x8x128xf32>
    %cst_481 = arith.constant dense<0.000000e+00> : vector<1xf32>
    %2151 = vector.multi_reduction <add>, %2150, %cst_481 [1, 2] : vector<1x8x128xf32> to vector<1xf32>
    %2152 = vector.shape_cast %2151 : vector<1xf32> to vector<1x1x1xf32>
    %2153 = vector.extract %2152[0, 0, 0] : f32 from vector<1x1x1xf32>
    %cst_482 = arith.constant 0.00231481483 : f32
    %2154 = arith.mulf %2148, %cst_482 : f32
    %cst_483 = arith.constant 0.00231481483 : f32
    %2155 = arith.mulf %2153, %cst_483 : f32
    %2156 = arith.mulf %2154, %2154 : f32
    %2157 = arith.subf %2155, %2156 : f32
    %cst_484 = arith.constant 0.000000e+00 : f32
    %2158 = arith.maximumf %2157, %cst_484 : f32
    %2159 = vector.broadcast %2154 : f32 to vector<8x128xf32>
    %2160 = arith.subf %2106, %2159 : vector<8x128xf32>
    %2161 = vector.broadcast %2143 : f32 to vector<8x128xf32>
    %2162 = arith.mulf %2161, %2160 : vector<8x128xf32>
    %cst_485 = arith.constant 9.99999974E-6 : f32
    %2163 = arith.addf %2158, %cst_485 : f32
    %2164 = math.rsqrt %2163 : f32
    %2165 = vector.broadcast %2164 : f32 to vector<8x128xf32>
    %2166 = arith.mulf %2162, %2165 : vector<8x128xf32>
    %2167 = vector.broadcast %2144 : f32 to vector<8x128xf32>
    %2168 = arith.addf %2166, %2167 : vector<8x128xf32>
    %cst_486 = arith.constant 0.000000e+00 : f32
    %2169 = vector.broadcast %cst_486 : f32 to vector<8x128xf32>
    %2170 = arith.select %2080, %2168, %2169 : vector<8x128xi1>, vector<8x128xf32>
    %cst_487 = arith.constant 5.000000e-01 : f32
    %2171 = vector.broadcast %cst_487 : f32 to vector<8x128xf32>
    %2172 = arith.mulf %2171, %2170 : vector<8x128xf32>
    %2173 = math.tanh %2172 : vector<8x128xf32>
    %cst_488 = arith.constant 5.000000e-01 : f32
    %2174 = vector.broadcast %cst_488 : f32 to vector<8x128xf32>
    %2175 = arith.mulf %2174, %2173 : vector<8x128xf32>
    %cst_489 = arith.constant 5.000000e-01 : f32
    %2176 = vector.broadcast %cst_489 : f32 to vector<8x128xf32>
    %2177 = arith.addf %2176, %2175 : vector<8x128xf32>
    %2178 = arith.mulf %2170, %2177 : vector<8x128xf32>
    %c56_i32 = arith.constant 56 : i32
    %2179 = vector.broadcast %c56_i32 : i32 to vector<8x128xi32>
    %2180 = arith.cmpi slt, %0, %2179 : vector<8x128xi32>
    %c1_i32_490 = arith.constant 1 : i32
    %2181 = tpu.dynamic_rotate %2142 by %c1_i32_490 dim 1 : vector<8x128xf32>, i32 -> vector<8x128xf32>
    %c1_i32_491 = arith.constant 1 : i32
    %2182 = tpu.dynamic_rotate %2178 by %c1_i32_491 dim 1 : vector<8x128xf32>, i32 -> vector<8x128xf32>
    %c130 = arith.constant 130 : index
    %2183 = memref.load %arg2[%c130] : memref<376xf32, #tpu.memory_space<smem>>
    %2184 = vector.broadcast %2183 : f32 to vector<8x128xf32>
    %2185 = arith.mulf %2184, %2181 : vector<8x128xf32>
    %c131 = arith.constant 131 : index
    %2186 = memref.load %arg2[%c131] : memref<376xf32, #tpu.memory_space<smem>>
    %2187 = vector.broadcast %2186 : f32 to vector<8x128xf32>
    %2188 = arith.mulf %2187, %2182 : vector<8x128xf32>
    %2189 = arith.addf %2185, %2188 : vector<8x128xf32>
    %c132 = arith.constant 132 : index
    %2190 = memref.load %arg2[%c132] : memref<376xf32, #tpu.memory_space<smem>>
    %2191 = vector.broadcast %2190 : f32 to vector<8x128xf32>
    %2192 = arith.addf %2189, %2191 : vector<8x128xf32>
    %cst_492 = arith.constant 0.000000e+00 : f32
    %2193 = vector.broadcast %cst_492 : f32 to vector<8x128xf32>
    %2194 = arith.select %2180, %2192, %2193 : vector<8x128xi1>, vector<8x128xf32>
    %c133 = arith.constant 133 : index
    %2195 = memref.load %arg2[%c133] : memref<376xf32, #tpu.memory_space<smem>>
    %c134 = arith.constant 134 : index
    %2196 = memref.load %arg2[%c134] : memref<376xf32, #tpu.memory_space<smem>>
    %2197 = vector.shape_cast %2194 : vector<8x128xf32> to vector<1x8x128xf32>
    %cst_493 = arith.constant dense<0.000000e+00> : vector<1xf32>
    %2198 = vector.multi_reduction <add>, %2197, %cst_493 [1, 2] : vector<1x8x128xf32> to vector<1xf32>
    %2199 = vector.shape_cast %2198 : vector<1xf32> to vector<1x1x1xf32>
    %2200 = vector.extract %2199[0, 0, 0] : f32 from vector<1x1x1xf32>
    %2201 = arith.mulf %2194, %2194 : vector<8x128xf32>
    %2202 = vector.shape_cast %2201 : vector<8x128xf32> to vector<1x8x128xf32>
    %cst_494 = arith.constant dense<0.000000e+00> : vector<1xf32>
    %2203 = vector.multi_reduction <add>, %2202, %cst_494 [1, 2] : vector<1x8x128xf32> to vector<1xf32>
    %2204 = vector.shape_cast %2203 : vector<1xf32> to vector<1x1x1xf32>
    %2205 = vector.extract %2204[0, 0, 0] : f32 from vector<1x1x1xf32>
    %cst_495 = arith.constant 0.00223214296 : f32
    %2206 = arith.mulf %2200, %cst_495 : f32
    %cst_496 = arith.constant 0.00223214296 : f32
    %2207 = arith.mulf %2205, %cst_496 : f32
    %2208 = arith.mulf %2206, %2206 : f32
    %2209 = arith.subf %2207, %2208 : f32
    %cst_497 = arith.constant 0.000000e+00 : f32
    %2210 = arith.maximumf %2209, %cst_497 : f32
    %2211 = vector.broadcast %2206 : f32 to vector<8x128xf32>
    %2212 = arith.subf %2194, %2211 : vector<8x128xf32>
    %2213 = vector.broadcast %2195 : f32 to vector<8x128xf32>
    %2214 = arith.mulf %2213, %2212 : vector<8x128xf32>
    %cst_498 = arith.constant 9.99999974E-6 : f32
    %2215 = arith.addf %2210, %cst_498 : f32
    %2216 = math.rsqrt %2215 : f32
    %2217 = vector.broadcast %2216 : f32 to vector<8x128xf32>
    %2218 = arith.mulf %2214, %2217 : vector<8x128xf32>
    %2219 = vector.broadcast %2196 : f32 to vector<8x128xf32>
    %2220 = arith.addf %2218, %2219 : vector<8x128xf32>
    %cst_499 = arith.constant 0.000000e+00 : f32
    %2221 = vector.broadcast %cst_499 : f32 to vector<8x128xf32>
    %2222 = arith.select %2180, %2220, %2221 : vector<8x128xi1>, vector<8x128xf32>
    %cst_500 = arith.constant 5.000000e-01 : f32
    %2223 = vector.broadcast %cst_500 : f32 to vector<8x128xf32>
    %2224 = arith.mulf %2223, %2222 : vector<8x128xf32>
    %2225 = math.tanh %2224 : vector<8x128xf32>
    %cst_501 = arith.constant 5.000000e-01 : f32
    %2226 = vector.broadcast %cst_501 : f32 to vector<8x128xf32>
    %2227 = arith.mulf %2226, %2225 : vector<8x128xf32>
    %cst_502 = arith.constant 5.000000e-01 : f32
    %2228 = vector.broadcast %cst_502 : f32 to vector<8x128xf32>
    %2229 = arith.addf %2228, %2227 : vector<8x128xf32>
    %2230 = arith.mulf %2222, %2229 : vector<8x128xf32>
    %c234 = arith.constant 234 : index
    %2231 = memref.load %arg2[%c234] : memref<376xf32, #tpu.memory_space<smem>>
    %c235 = arith.constant 235 : index
    %2232 = memref.load %arg2[%c235] : memref<376xf32, #tpu.memory_space<smem>>
    %2233 = vector.shape_cast %2230 : vector<8x128xf32> to vector<1x8x128xf32>
    %cst_503 = arith.constant dense<0.000000e+00> : vector<1xf32>
    %2234 = vector.multi_reduction <add>, %2233, %cst_503 [1, 2] : vector<1x8x128xf32> to vector<1xf32>
    %2235 = vector.shape_cast %2234 : vector<1xf32> to vector<1x1x1xf32>
    %2236 = vector.extract %2235[0, 0, 0] : f32 from vector<1x1x1xf32>
    %2237 = arith.mulf %2230, %2230 : vector<8x128xf32>
    %2238 = vector.shape_cast %2237 : vector<8x128xf32> to vector<1x8x128xf32>
    %cst_504 = arith.constant dense<0.000000e+00> : vector<1xf32>
    %2239 = vector.multi_reduction <add>, %2238, %cst_504 [1, 2] : vector<1x8x128xf32> to vector<1xf32>
    %2240 = vector.shape_cast %2239 : vector<1xf32> to vector<1x1x1xf32>
    %2241 = vector.extract %2240[0, 0, 0] : f32 from vector<1x1x1xf32>
    %cst_505 = arith.constant 0.00223214296 : f32
    %2242 = arith.mulf %2236, %cst_505 : f32
    %cst_506 = arith.constant 0.00223214296 : f32
    %2243 = arith.mulf %2241, %cst_506 : f32
    %2244 = arith.mulf %2242, %2242 : f32
    %2245 = arith.subf %2243, %2244 : f32
    %cst_507 = arith.constant 0.000000e+00 : f32
    %2246 = arith.maximumf %2245, %cst_507 : f32
    %2247 = vector.broadcast %2242 : f32 to vector<8x128xf32>
    %2248 = arith.subf %2230, %2247 : vector<8x128xf32>
    %2249 = vector.broadcast %2231 : f32 to vector<8x128xf32>
    %2250 = arith.mulf %2249, %2248 : vector<8x128xf32>
    %cst_508 = arith.constant 9.99999974E-6 : f32
    %2251 = arith.addf %2246, %cst_508 : f32
    %2252 = math.rsqrt %2251 : f32
    %2253 = vector.broadcast %2252 : f32 to vector<8x128xf32>
    %2254 = arith.mulf %2250, %2253 : vector<8x128xf32>
    %2255 = vector.broadcast %2232 : f32 to vector<8x128xf32>
    %2256 = arith.addf %2254, %2255 : vector<8x128xf32>
    %cst_509 = arith.constant 0.000000e+00 : f32
    %2257 = vector.broadcast %cst_509 : f32 to vector<8x128xf32>
    %2258 = arith.select %2180, %2256, %2257 : vector<8x128xi1>, vector<8x128xf32>
    %c236 = arith.constant 236 : index
    %2259 = memref.load %arg2[%c236] : memref<376xf32, #tpu.memory_space<smem>>
    %2260 = vector.broadcast %2259 : f32 to vector<8x128xf32>
    %2261 = arith.mulf %2260, %2258 : vector<8x128xf32>
    %c237 = arith.constant 237 : index
    %2262 = memref.load %arg2[%c237] : memref<376xf32, #tpu.memory_space<smem>>
    %2263 = vector.broadcast %2262 : f32 to vector<8x128xf32>
    %2264 = arith.addf %2261, %2263 : vector<8x128xf32>
    %cst_510 = arith.constant 0.000000e+00 : f32
    %2265 = vector.broadcast %cst_510 : f32 to vector<8x128xf32>
    %2266 = arith.select %2180, %2264, %2265 : vector<8x128xi1>, vector<8x128xf32>
    %c238 = arith.constant 238 : index
    %2267 = memref.load %arg2[%c238] : memref<376xf32, #tpu.memory_space<smem>>
    %c239 = arith.constant 239 : index
    %2268 = memref.load %arg2[%c239] : memref<376xf32, #tpu.memory_space<smem>>
    %2269 = vector.shape_cast %2266 : vector<8x128xf32> to vector<1x8x128xf32>
    %cst_511 = arith.constant dense<0.000000e+00> : vector<1xf32>
    %2270 = vector.multi_reduction <add>, %2269, %cst_511 [1, 2] : vector<1x8x128xf32> to vector<1xf32>
    %2271 = vector.shape_cast %2270 : vector<1xf32> to vector<1x1x1xf32>
    %2272 = vector.extract %2271[0, 0, 0] : f32 from vector<1x1x1xf32>
    %2273 = arith.mulf %2266, %2266 : vector<8x128xf32>
    %2274 = vector.shape_cast %2273 : vector<8x128xf32> to vector<1x8x128xf32>
    %cst_512 = arith.constant dense<0.000000e+00> : vector<1xf32>
    %2275 = vector.multi_reduction <add>, %2274, %cst_512 [1, 2] : vector<1x8x128xf32> to vector<1xf32>
    %2276 = vector.shape_cast %2275 : vector<1xf32> to vector<1x1x1xf32>
    %2277 = vector.extract %2276[0, 0, 0] : f32 from vector<1x1x1xf32>
    %cst_513 = arith.constant 0.00223214296 : f32
    %2278 = arith.mulf %2272, %cst_513 : f32
    %cst_514 = arith.constant 0.00223214296 : f32
    %2279 = arith.mulf %2277, %cst_514 : f32
    %2280 = arith.mulf %2278, %2278 : f32
    %2281 = arith.subf %2279, %2280 : f32
    %cst_515 = arith.constant 0.000000e+00 : f32
    %2282 = arith.maximumf %2281, %cst_515 : f32
    %2283 = vector.broadcast %2278 : f32 to vector<8x128xf32>
    %2284 = arith.subf %2266, %2283 : vector<8x128xf32>
    %2285 = vector.broadcast %2267 : f32 to vector<8x128xf32>
    %2286 = arith.mulf %2285, %2284 : vector<8x128xf32>
    %cst_516 = arith.constant 9.99999974E-6 : f32
    %2287 = arith.addf %2282, %cst_516 : f32
    %2288 = math.rsqrt %2287 : f32
    %2289 = vector.broadcast %2288 : f32 to vector<8x128xf32>
    %2290 = arith.mulf %2286, %2289 : vector<8x128xf32>
    %2291 = vector.broadcast %2268 : f32 to vector<8x128xf32>
    %2292 = arith.addf %2290, %2291 : vector<8x128xf32>
    %cst_517 = arith.constant 0.000000e+00 : f32
    %2293 = vector.broadcast %cst_517 : f32 to vector<8x128xf32>
    %2294 = arith.select %2180, %2292, %2293 : vector<8x128xi1>, vector<8x128xf32>
    %cst_518 = arith.constant 5.000000e-01 : f32
    %2295 = vector.broadcast %cst_518 : f32 to vector<8x128xf32>
    %2296 = arith.mulf %2295, %2294 : vector<8x128xf32>
    %2297 = math.tanh %2296 : vector<8x128xf32>
    %cst_519 = arith.constant 5.000000e-01 : f32
    %2298 = vector.broadcast %cst_519 : f32 to vector<8x128xf32>
    %2299 = arith.mulf %2298, %2297 : vector<8x128xf32>
    %cst_520 = arith.constant 5.000000e-01 : f32
    %2300 = vector.broadcast %cst_520 : f32 to vector<8x128xf32>
    %2301 = arith.addf %2300, %2299 : vector<8x128xf32>
    %2302 = arith.mulf %2294, %2301 : vector<8x128xf32>
    %c240 = arith.constant 240 : index
    %2303 = memref.load %arg2[%c240] : memref<376xf32, #tpu.memory_space<smem>>
    %c241 = arith.constant 241 : index
    %2304 = memref.load %arg2[%c241] : memref<376xf32, #tpu.memory_space<smem>>
    %c242 = arith.constant 242 : index
    %2305 = memref.load %arg2[%c242] : memref<376xf32, #tpu.memory_space<smem>>
    %c243 = arith.constant 243 : index
    %2306 = memref.load %arg2[%c243] : memref<376xf32, #tpu.memory_space<smem>>
    %c244 = arith.constant 244 : index
    %2307 = memref.load %arg2[%c244] : memref<376xf32, #tpu.memory_space<smem>>
    %c245 = arith.constant 245 : index
    %2308 = memref.load %arg2[%c245] : memref<376xf32, #tpu.memory_space<smem>>
    %2309 = vector.broadcast %2305 : f32 to vector<8x128xf32>
    %2310 = arith.mulf %2309, %2302 : vector<8x128xf32>
    %c2_i32_521 = arith.constant 2 : i32
    %2311 = tpu.dynamic_rotate %2302 by %c2_i32_521 dim 1 : vector<8x128xf32>, i32 -> vector<8x128xf32>
    %2312 = vector.broadcast %2303 : f32 to vector<8x128xf32>
    %2313 = arith.mulf %2312, %2311 : vector<8x128xf32>
    %2314 = arith.addf %2310, %2313 : vector<8x128xf32>
    %c1_i32_522 = arith.constant 1 : i32
    %2315 = tpu.dynamic_rotate %2302 by %c1_i32_522 dim 1 : vector<8x128xf32>, i32 -> vector<8x128xf32>
    %2316 = vector.broadcast %2304 : f32 to vector<8x128xf32>
    %2317 = arith.mulf %2316, %2315 : vector<8x128xf32>
    %2318 = arith.addf %2314, %2317 : vector<8x128xf32>
    %c127_i32_523 = arith.constant 127 : i32
    %2319 = tpu.dynamic_rotate %2302 by %c127_i32_523 dim 1 : vector<8x128xf32>, i32 -> vector<8x128xf32>
    %2320 = vector.broadcast %2306 : f32 to vector<8x128xf32>
    %2321 = arith.mulf %2320, %2319 : vector<8x128xf32>
    %2322 = arith.addf %2318, %2321 : vector<8x128xf32>
    %c126_i32_524 = arith.constant 126 : i32
    %2323 = tpu.dynamic_rotate %2302 by %c126_i32_524 dim 1 : vector<8x128xf32>, i32 -> vector<8x128xf32>
    %2324 = vector.broadcast %2307 : f32 to vector<8x128xf32>
    %2325 = arith.mulf %2324, %2323 : vector<8x128xf32>
    %2326 = arith.addf %2322, %2325 : vector<8x128xf32>
    %2327 = vector.broadcast %2308 : f32 to vector<8x128xf32>
    %2328 = arith.addf %2326, %2327 : vector<8x128xf32>
    %cst_525 = arith.constant 0.000000e+00 : f32
    %2329 = vector.broadcast %cst_525 : f32 to vector<8x128xf32>
    %2330 = arith.select %2180, %2328, %2329 : vector<8x128xi1>, vector<8x128xf32>
    %c246 = arith.constant 246 : index
    %2331 = memref.load %arg2[%c246] : memref<376xf32, #tpu.memory_space<smem>>
    %c247 = arith.constant 247 : index
    %2332 = memref.load %arg2[%c247] : memref<376xf32, #tpu.memory_space<smem>>
    %2333 = vector.shape_cast %2330 : vector<8x128xf32> to vector<1x8x128xf32>
    %cst_526 = arith.constant dense<0.000000e+00> : vector<1xf32>
    %2334 = vector.multi_reduction <add>, %2333, %cst_526 [1, 2] : vector<1x8x128xf32> to vector<1xf32>
    %2335 = vector.shape_cast %2334 : vector<1xf32> to vector<1x1x1xf32>
    %2336 = vector.extract %2335[0, 0, 0] : f32 from vector<1x1x1xf32>
    %2337 = arith.mulf %2330, %2330 : vector<8x128xf32>
    %2338 = vector.shape_cast %2337 : vector<8x128xf32> to vector<1x8x128xf32>
    %cst_527 = arith.constant dense<0.000000e+00> : vector<1xf32>
    %2339 = vector.multi_reduction <add>, %2338, %cst_527 [1, 2] : vector<1x8x128xf32> to vector<1xf32>
    %2340 = vector.shape_cast %2339 : vector<1xf32> to vector<1x1x1xf32>
    %2341 = vector.extract %2340[0, 0, 0] : f32 from vector<1x1x1xf32>
    %cst_528 = arith.constant 0.00223214296 : f32
    %2342 = arith.mulf %2336, %cst_528 : f32
    %cst_529 = arith.constant 0.00223214296 : f32
    %2343 = arith.mulf %2341, %cst_529 : f32
    %2344 = arith.mulf %2342, %2342 : f32
    %2345 = arith.subf %2343, %2344 : f32
    %cst_530 = arith.constant 0.000000e+00 : f32
    %2346 = arith.maximumf %2345, %cst_530 : f32
    %2347 = vector.broadcast %2342 : f32 to vector<8x128xf32>
    %2348 = arith.subf %2330, %2347 : vector<8x128xf32>
    %2349 = vector.broadcast %2331 : f32 to vector<8x128xf32>
    %2350 = arith.mulf %2349, %2348 : vector<8x128xf32>
    %cst_531 = arith.constant 9.99999974E-6 : f32
    %2351 = arith.addf %2346, %cst_531 : f32
    %2352 = math.rsqrt %2351 : f32
    %2353 = vector.broadcast %2352 : f32 to vector<8x128xf32>
    %2354 = arith.mulf %2350, %2353 : vector<8x128xf32>
    %2355 = vector.broadcast %2332 : f32 to vector<8x128xf32>
    %2356 = arith.addf %2354, %2355 : vector<8x128xf32>
    %cst_532 = arith.constant 0.000000e+00 : f32
    %2357 = vector.broadcast %cst_532 : f32 to vector<8x128xf32>
    %2358 = arith.select %2180, %2356, %2357 : vector<8x128xi1>, vector<8x128xf32>
    %cst_533 = arith.constant 5.000000e-01 : f32
    %2359 = vector.broadcast %cst_533 : f32 to vector<8x128xf32>
    %2360 = arith.mulf %2359, %2358 : vector<8x128xf32>
    %2361 = math.tanh %2360 : vector<8x128xf32>
    %cst_534 = arith.constant 5.000000e-01 : f32
    %2362 = vector.broadcast %cst_534 : f32 to vector<8x128xf32>
    %2363 = arith.mulf %2362, %2361 : vector<8x128xf32>
    %cst_535 = arith.constant 5.000000e-01 : f32
    %2364 = vector.broadcast %cst_535 : f32 to vector<8x128xf32>
    %2365 = arith.addf %2364, %2363 : vector<8x128xf32>
    %2366 = arith.mulf %2358, %2365 : vector<8x128xf32>
    %c248 = arith.constant 248 : index
    %2367 = memref.load %arg2[%c248] : memref<376xf32, #tpu.memory_space<smem>>
    %2368 = vector.broadcast %2367 : f32 to vector<8x128xf32>
    %2369 = arith.mulf %2368, %2366 : vector<8x128xf32>
    %c249 = arith.constant 249 : index
    %2370 = memref.load %arg2[%c249] : memref<376xf32, #tpu.memory_space<smem>>
    %2371 = vector.broadcast %2370 : f32 to vector<8x128xf32>
    %2372 = arith.addf %2369, %2371 : vector<8x128xf32>
    %cst_536 = arith.constant 0.000000e+00 : f32
    %2373 = vector.broadcast %cst_536 : f32 to vector<8x128xf32>
    %2374 = arith.select %2180, %2372, %2373 : vector<8x128xi1>, vector<8x128xf32>
    %c250 = arith.constant 250 : index
    %2375 = memref.load %arg2[%c250] : memref<376xf32, #tpu.memory_space<smem>>
    %c251 = arith.constant 251 : index
    %2376 = memref.load %arg2[%c251] : memref<376xf32, #tpu.memory_space<smem>>
    %2377 = vector.shape_cast %2374 : vector<8x128xf32> to vector<1x8x128xf32>
    %cst_537 = arith.constant dense<0.000000e+00> : vector<1xf32>
    %2378 = vector.multi_reduction <add>, %2377, %cst_537 [1, 2] : vector<1x8x128xf32> to vector<1xf32>
    %2379 = vector.shape_cast %2378 : vector<1xf32> to vector<1x1x1xf32>
    %2380 = vector.extract %2379[0, 0, 0] : f32 from vector<1x1x1xf32>
    %2381 = arith.mulf %2374, %2374 : vector<8x128xf32>
    %2382 = vector.shape_cast %2381 : vector<8x128xf32> to vector<1x8x128xf32>
    %cst_538 = arith.constant dense<0.000000e+00> : vector<1xf32>
    %2383 = vector.multi_reduction <add>, %2382, %cst_538 [1, 2] : vector<1x8x128xf32> to vector<1xf32>
    %2384 = vector.shape_cast %2383 : vector<1xf32> to vector<1x1x1xf32>
    %2385 = vector.extract %2384[0, 0, 0] : f32 from vector<1x1x1xf32>
    %cst_539 = arith.constant 0.00223214296 : f32
    %2386 = arith.mulf %2380, %cst_539 : f32
    %cst_540 = arith.constant 0.00223214296 : f32
    %2387 = arith.mulf %2385, %cst_540 : f32
    %2388 = arith.mulf %2386, %2386 : f32
    %2389 = arith.subf %2387, %2388 : f32
    %cst_541 = arith.constant 0.000000e+00 : f32
    %2390 = arith.maximumf %2389, %cst_541 : f32
    %2391 = vector.broadcast %2386 : f32 to vector<8x128xf32>
    %2392 = arith.subf %2374, %2391 : vector<8x128xf32>
    %2393 = vector.broadcast %2375 : f32 to vector<8x128xf32>
    %2394 = arith.mulf %2393, %2392 : vector<8x128xf32>
    %cst_542 = arith.constant 9.99999974E-6 : f32
    %2395 = arith.addf %2390, %cst_542 : f32
    %2396 = math.rsqrt %2395 : f32
    %2397 = vector.broadcast %2396 : f32 to vector<8x128xf32>
    %2398 = arith.mulf %2394, %2397 : vector<8x128xf32>
    %2399 = vector.broadcast %2376 : f32 to vector<8x128xf32>
    %2400 = arith.addf %2398, %2399 : vector<8x128xf32>
    %cst_543 = arith.constant 0.000000e+00 : f32
    %2401 = vector.broadcast %cst_543 : f32 to vector<8x128xf32>
    %2402 = arith.select %2180, %2400, %2401 : vector<8x128xi1>, vector<8x128xf32>
    %cst_544 = arith.constant 1.000000e-01 : f32
    %2403 = vector.broadcast %cst_544 : f32 to vector<8x128xf32>
    %2404 = arith.mulf %2403, %2402 : vector<8x128xf32>
    %2405 = arith.addf %2230, %2404 : vector<8x128xf32>
    %c342 = arith.constant 342 : index
    %2406 = memref.load %arg2[%c342] : memref<376xf32, #tpu.memory_space<smem>>
    %c343 = arith.constant 343 : index
    %2407 = memref.load %arg2[%c343] : memref<376xf32, #tpu.memory_space<smem>>
    %c344 = arith.constant 344 : index
    %2408 = memref.load %arg2[%c344] : memref<376xf32, #tpu.memory_space<smem>>
    %c345 = arith.constant 345 : index
    %2409 = memref.load %arg2[%c345] : memref<376xf32, #tpu.memory_space<smem>>
    %c346 = arith.constant 346 : index
    %2410 = memref.load %arg2[%c346] : memref<376xf32, #tpu.memory_space<smem>>
    %c347 = arith.constant 347 : index
    %2411 = memref.load %arg2[%c347] : memref<376xf32, #tpu.memory_space<smem>>
    %2412 = vector.broadcast %2408 : f32 to vector<8x128xf32>
    %2413 = arith.mulf %2412, %2405 : vector<8x128xf32>
    %c2_i32_545 = arith.constant 2 : i32
    %2414 = tpu.dynamic_rotate %2405 by %c2_i32_545 dim 1 : vector<8x128xf32>, i32 -> vector<8x128xf32>
    %2415 = vector.broadcast %2406 : f32 to vector<8x128xf32>
    %2416 = arith.mulf %2415, %2414 : vector<8x128xf32>
    %2417 = arith.addf %2413, %2416 : vector<8x128xf32>
    %c1_i32_546 = arith.constant 1 : i32
    %2418 = tpu.dynamic_rotate %2405 by %c1_i32_546 dim 1 : vector<8x128xf32>, i32 -> vector<8x128xf32>
    %2419 = vector.broadcast %2407 : f32 to vector<8x128xf32>
    %2420 = arith.mulf %2419, %2418 : vector<8x128xf32>
    %2421 = arith.addf %2417, %2420 : vector<8x128xf32>
    %c127_i32_547 = arith.constant 127 : i32
    %2422 = tpu.dynamic_rotate %2405 by %c127_i32_547 dim 1 : vector<8x128xf32>, i32 -> vector<8x128xf32>
    %2423 = vector.broadcast %2409 : f32 to vector<8x128xf32>
    %2424 = arith.mulf %2423, %2422 : vector<8x128xf32>
    %2425 = arith.addf %2421, %2424 : vector<8x128xf32>
    %c126_i32_548 = arith.constant 126 : i32
    %2426 = tpu.dynamic_rotate %2405 by %c126_i32_548 dim 1 : vector<8x128xf32>, i32 -> vector<8x128xf32>
    %2427 = vector.broadcast %2410 : f32 to vector<8x128xf32>
    %2428 = arith.mulf %2427, %2426 : vector<8x128xf32>
    %2429 = arith.addf %2425, %2428 : vector<8x128xf32>
    %2430 = vector.broadcast %2411 : f32 to vector<8x128xf32>
    %2431 = arith.addf %2429, %2430 : vector<8x128xf32>
    %cst_549 = arith.constant 0.000000e+00 : f32
    %2432 = vector.broadcast %cst_549 : f32 to vector<8x128xf32>
    %2433 = arith.select %2180, %2431, %2432 : vector<8x128xi1>, vector<8x128xf32>
    %c348 = arith.constant 348 : index
    %2434 = memref.load %arg2[%c348] : memref<376xf32, #tpu.memory_space<smem>>
    %2435 = vector.broadcast %2434 : f32 to vector<8x128xf32>
    %2436 = arith.mulf %2435, %2433 : vector<8x128xf32>
    %c349 = arith.constant 349 : index
    %2437 = memref.load %arg2[%c349] : memref<376xf32, #tpu.memory_space<smem>>
    %2438 = vector.broadcast %2437 : f32 to vector<8x128xf32>
    %2439 = arith.addf %2436, %2438 : vector<8x128xf32>
    %cst_550 = arith.constant 0.000000e+00 : f32
    %2440 = vector.broadcast %cst_550 : f32 to vector<8x128xf32>
    %2441 = arith.select %2180, %2439, %2440 : vector<8x128xi1>, vector<8x128xf32>
    %c350 = arith.constant 350 : index
    %2442 = memref.load %arg2[%c350] : memref<376xf32, #tpu.memory_space<smem>>
    %c351 = arith.constant 351 : index
    %2443 = memref.load %arg2[%c351] : memref<376xf32, #tpu.memory_space<smem>>
    %2444 = vector.shape_cast %2441 : vector<8x128xf32> to vector<1x8x128xf32>
    %cst_551 = arith.constant dense<0.000000e+00> : vector<1xf32>
    %2445 = vector.multi_reduction <add>, %2444, %cst_551 [1, 2] : vector<1x8x128xf32> to vector<1xf32>
    %2446 = vector.shape_cast %2445 : vector<1xf32> to vector<1x1x1xf32>
    %2447 = vector.extract %2446[0, 0, 0] : f32 from vector<1x1x1xf32>
    %2448 = arith.mulf %2441, %2441 : vector<8x128xf32>
    %2449 = vector.shape_cast %2448 : vector<8x128xf32> to vector<1x8x128xf32>
    %cst_552 = arith.constant dense<0.000000e+00> : vector<1xf32>
    %2450 = vector.multi_reduction <add>, %2449, %cst_552 [1, 2] : vector<1x8x128xf32> to vector<1xf32>
    %2451 = vector.shape_cast %2450 : vector<1xf32> to vector<1x1x1xf32>
    %2452 = vector.extract %2451[0, 0, 0] : f32 from vector<1x1x1xf32>
    %cst_553 = arith.constant 0.00223214296 : f32
    %2453 = arith.mulf %2447, %cst_553 : f32
    %cst_554 = arith.constant 0.00223214296 : f32
    %2454 = arith.mulf %2452, %cst_554 : f32
    %2455 = arith.mulf %2453, %2453 : f32
    %2456 = arith.subf %2454, %2455 : f32
    %cst_555 = arith.constant 0.000000e+00 : f32
    %2457 = arith.maximumf %2456, %cst_555 : f32
    %2458 = vector.broadcast %2453 : f32 to vector<8x128xf32>
    %2459 = arith.subf %2441, %2458 : vector<8x128xf32>
    %2460 = vector.broadcast %2442 : f32 to vector<8x128xf32>
    %2461 = arith.mulf %2460, %2459 : vector<8x128xf32>
    %cst_556 = arith.constant 9.99999974E-6 : f32
    %2462 = arith.addf %2457, %cst_556 : f32
    %2463 = math.rsqrt %2462 : f32
    %2464 = vector.broadcast %2463 : f32 to vector<8x128xf32>
    %2465 = arith.mulf %2461, %2464 : vector<8x128xf32>
    %2466 = vector.broadcast %2443 : f32 to vector<8x128xf32>
    %2467 = arith.addf %2465, %2466 : vector<8x128xf32>
    %cst_557 = arith.constant 0.000000e+00 : f32
    %2468 = vector.broadcast %cst_557 : f32 to vector<8x128xf32>
    %2469 = arith.select %2180, %2467, %2468 : vector<8x128xi1>, vector<8x128xf32>
    %cst_558 = arith.constant 5.000000e-01 : f32
    %2470 = vector.broadcast %cst_558 : f32 to vector<8x128xf32>
    %2471 = arith.mulf %2470, %2469 : vector<8x128xf32>
    %2472 = math.tanh %2471 : vector<8x128xf32>
    %cst_559 = arith.constant 5.000000e-01 : f32
    %2473 = vector.broadcast %cst_559 : f32 to vector<8x128xf32>
    %2474 = arith.mulf %2473, %2472 : vector<8x128xf32>
    %cst_560 = arith.constant 5.000000e-01 : f32
    %2475 = vector.broadcast %cst_560 : f32 to vector<8x128xf32>
    %2476 = arith.addf %2475, %2474 : vector<8x128xf32>
    %2477 = arith.mulf %2469, %2476 : vector<8x128xf32>
    %c352 = arith.constant 352 : index
    %2478 = memref.load %arg2[%c352] : memref<376xf32, #tpu.memory_space<smem>>
    %c353 = arith.constant 353 : index
    %2479 = memref.load %arg2[%c353] : memref<376xf32, #tpu.memory_space<smem>>
    %c354 = arith.constant 354 : index
    %2480 = memref.load %arg2[%c354] : memref<376xf32, #tpu.memory_space<smem>>
    %c355 = arith.constant 355 : index
    %2481 = memref.load %arg2[%c355] : memref<376xf32, #tpu.memory_space<smem>>
    %2482 = vector.broadcast %2479 : f32 to vector<8x128xf32>
    %2483 = arith.mulf %2482, %2477 : vector<8x128xf32>
    %c1_i32_561 = arith.constant 1 : i32
    %2484 = tpu.dynamic_rotate %2477 by %c1_i32_561 dim 1 : vector<8x128xf32>, i32 -> vector<8x128xf32>
    %2485 = vector.broadcast %2478 : f32 to vector<8x128xf32>
    %2486 = arith.mulf %2485, %2484 : vector<8x128xf32>
    %2487 = arith.addf %2483, %2486 : vector<8x128xf32>
    %c127_i32_562 = arith.constant 127 : i32
    %2488 = tpu.dynamic_rotate %2477 by %c127_i32_562 dim 1 : vector<8x128xf32>, i32 -> vector<8x128xf32>
    %2489 = vector.broadcast %2480 : f32 to vector<8x128xf32>
    %2490 = arith.mulf %2489, %2488 : vector<8x128xf32>
    %2491 = arith.addf %2487, %2490 : vector<8x128xf32>
    %2492 = vector.broadcast %2481 : f32 to vector<8x128xf32>
    %2493 = arith.addf %2491, %2492 : vector<8x128xf32>
    %cst_563 = arith.constant 0.000000e+00 : f32
    %2494 = vector.broadcast %cst_563 : f32 to vector<8x128xf32>
    %2495 = arith.select %2180, %2493, %2494 : vector<8x128xi1>, vector<8x128xf32>
    %cst_564 = arith.constant 1.000000e-01 : f32
    %2496 = vector.broadcast %cst_564 : f32 to vector<8x128xf32>
    %2497 = arith.mulf %2496, %2495 : vector<8x128xf32>
    %2498 = arith.addf %2405, %2497 : vector<8x128xf32>
    %cst_565 = arith.constant 5.000000e-01 : f32
    %2499 = vector.broadcast %cst_565 : f32 to vector<8x128xf32>
    %2500 = arith.mulf %2499, %2498 : vector<8x128xf32>
    %2501 = math.tanh %2500 : vector<8x128xf32>
    %cst_566 = arith.constant 5.000000e-01 : f32
    %2502 = vector.broadcast %cst_566 : f32 to vector<8x128xf32>
    %2503 = arith.mulf %2502, %2501 : vector<8x128xf32>
    %cst_567 = arith.constant 5.000000e-01 : f32
    %2504 = vector.broadcast %cst_567 : f32 to vector<8x128xf32>
    %2505 = arith.addf %2504, %2503 : vector<8x128xf32>
    %2506 = arith.mulf %2498, %2505 : vector<8x128xf32>
    %c356 = arith.constant 356 : index
    %2507 = memref.load %arg2[%c356] : memref<376xf32, #tpu.memory_space<smem>>
    %2508 = vector.broadcast %2507 : f32 to vector<8x128xf32>
    %2509 = arith.mulf %2508, %2506 : vector<8x128xf32>
    %c358 = arith.constant 358 : index
    %2510 = memref.load %arg2[%c358] : memref<376xf32, #tpu.memory_space<smem>>
    %2511 = vector.broadcast %2510 : f32 to vector<8x128xf32>
    %2512 = arith.addf %2509, %2511 : vector<8x128xf32>
    %c357 = arith.constant 357 : index
    %2513 = memref.load %arg2[%c357] : memref<376xf32, #tpu.memory_space<smem>>
    %2514 = vector.broadcast %2513 : f32 to vector<8x128xf32>
    %2515 = arith.mulf %2514, %2506 : vector<8x128xf32>
    %c359 = arith.constant 359 : index
    %2516 = memref.load %arg2[%c359] : memref<376xf32, #tpu.memory_space<smem>>
    %2517 = vector.broadcast %2516 : f32 to vector<8x128xf32>
    %2518 = arith.addf %2515, %2517 : vector<8x128xf32>
    %cst_568 = arith.constant 5.000000e-01 : f32
    %2519 = vector.broadcast %cst_568 : f32 to vector<8x128xf32>
    %2520 = arith.mulf %2519, %2518 : vector<8x128xf32>
    %2521 = math.exp %2520 : vector<8x128xf32>
    %c4_569 = arith.constant 4 : index
    %c0_570 = arith.constant 0 : index
    %c0_571 = arith.constant 0 : index
    %2522 = vector.load %arg1[%c4_569, %c0_570, %c0_571] : memref<5x8x128xf32, #tpu.memory_space<vmem>>, vector<1x8x128xf32>
    %2523 = vector.shape_cast %2522 : vector<1x8x128xf32> to vector<8x128xf32>
    %2524 = arith.mulf %2521, %2523 : vector<8x128xf32>
    %2525 = arith.addf %2512, %2524 : vector<8x128xf32>
    %cst_572 = arith.constant 0.000000e+00 : f32
    %2526 = vector.broadcast %cst_572 : f32 to vector<8x128xf32>
    %2527 = arith.select %2180, %2525, %2526 : vector<8x128xi1>, vector<8x128xf32>
    %c58_i32 = arith.constant 58 : i32
    %2528 = vector.broadcast %c58_i32 : i32 to vector<8x128xi32>
    %2529 = arith.cmpi slt, %0, %2528 : vector<8x128xi32>
    %c1_i32_573 = arith.constant 1 : i32
    %2530 = tpu.dynamic_rotate %2405 by %c1_i32_573 dim 1 : vector<8x128xf32>, i32 -> vector<8x128xf32>
    %c1_i32_574 = arith.constant 1 : i32
    %2531 = tpu.dynamic_rotate %2527 by %c1_i32_574 dim 1 : vector<8x128xf32>, i32 -> vector<8x128xf32>
    %c135 = arith.constant 135 : index
    %2532 = memref.load %arg2[%c135] : memref<376xf32, #tpu.memory_space<smem>>
    %2533 = vector.broadcast %2532 : f32 to vector<8x128xf32>
    %2534 = arith.mulf %2533, %2530 : vector<8x128xf32>
    %c136 = arith.constant 136 : index
    %2535 = memref.load %arg2[%c136] : memref<376xf32, #tpu.memory_space<smem>>
    %2536 = vector.broadcast %2535 : f32 to vector<8x128xf32>
    %2537 = arith.mulf %2536, %2531 : vector<8x128xf32>
    %2538 = arith.addf %2534, %2537 : vector<8x128xf32>
    %c139 = arith.constant 139 : index
    %2539 = memref.load %arg2[%c139] : memref<376xf32, #tpu.memory_space<smem>>
    %2540 = vector.broadcast %2539 : f32 to vector<8x128xf32>
    %2541 = arith.addf %2538, %2540 : vector<8x128xf32>
    %cst_575 = arith.constant 0.000000e+00 : f32
    %2542 = vector.broadcast %cst_575 : f32 to vector<8x128xf32>
    %2543 = arith.select %2529, %2541, %2542 : vector<8x128xi1>, vector<8x128xf32>
    %c137 = arith.constant 137 : index
    %2544 = memref.load %arg2[%c137] : memref<376xf32, #tpu.memory_space<smem>>
    %2545 = vector.broadcast %2544 : f32 to vector<8x128xf32>
    %2546 = arith.mulf %2545, %2530 : vector<8x128xf32>
    %c138 = arith.constant 138 : index
    %2547 = memref.load %arg2[%c138] : memref<376xf32, #tpu.memory_space<smem>>
    %2548 = vector.broadcast %2547 : f32 to vector<8x128xf32>
    %2549 = arith.mulf %2548, %2531 : vector<8x128xf32>
    %2550 = arith.addf %2546, %2549 : vector<8x128xf32>
    %c140 = arith.constant 140 : index
    %2551 = memref.load %arg2[%c140] : memref<376xf32, #tpu.memory_space<smem>>
    %2552 = vector.broadcast %2551 : f32 to vector<8x128xf32>
    %2553 = arith.addf %2550, %2552 : vector<8x128xf32>
    %cst_576 = arith.constant 0.000000e+00 : f32
    %2554 = vector.broadcast %cst_576 : f32 to vector<8x128xf32>
    %2555 = arith.select %2529, %2553, %2554 : vector<8x128xi1>, vector<8x128xf32>
    %c60_i32 = arith.constant 60 : i32
    %2556 = vector.broadcast %c60_i32 : i32 to vector<8x128xi32>
    %2557 = arith.cmpi slt, %0, %2556 : vector<8x128xi32>
    %c1_i32_577 = arith.constant 1 : i32
    %2558 = tpu.dynamic_rotate %2543 by %c1_i32_577 dim 1 : vector<8x128xf32>, i32 -> vector<8x128xf32>
    %c1_i32_578 = arith.constant 1 : i32
    %2559 = tpu.dynamic_rotate %2555 by %c1_i32_578 dim 1 : vector<8x128xf32>, i32 -> vector<8x128xf32>
    %c141 = arith.constant 141 : index
    %2560 = memref.load %arg2[%c141] : memref<376xf32, #tpu.memory_space<smem>>
    %2561 = vector.broadcast %2560 : f32 to vector<8x128xf32>
    %2562 = arith.mulf %2561, %2558 : vector<8x128xf32>
    %c142 = arith.constant 142 : index
    %2563 = memref.load %arg2[%c142] : memref<376xf32, #tpu.memory_space<smem>>
    %2564 = vector.broadcast %2563 : f32 to vector<8x128xf32>
    %2565 = arith.mulf %2564, %2559 : vector<8x128xf32>
    %2566 = arith.addf %2562, %2565 : vector<8x128xf32>
    %c145 = arith.constant 145 : index
    %2567 = memref.load %arg2[%c145] : memref<376xf32, #tpu.memory_space<smem>>
    %2568 = vector.broadcast %2567 : f32 to vector<8x128xf32>
    %2569 = arith.addf %2566, %2568 : vector<8x128xf32>
    %cst_579 = arith.constant 0.000000e+00 : f32
    %2570 = vector.broadcast %cst_579 : f32 to vector<8x128xf32>
    %2571 = arith.select %2557, %2569, %2570 : vector<8x128xi1>, vector<8x128xf32>
    %c143 = arith.constant 143 : index
    %2572 = memref.load %arg2[%c143] : memref<376xf32, #tpu.memory_space<smem>>
    %2573 = vector.broadcast %2572 : f32 to vector<8x128xf32>
    %2574 = arith.mulf %2573, %2558 : vector<8x128xf32>
    %c144 = arith.constant 144 : index
    %2575 = memref.load %arg2[%c144] : memref<376xf32, #tpu.memory_space<smem>>
    %2576 = vector.broadcast %2575 : f32 to vector<8x128xf32>
    %2577 = arith.mulf %2576, %2559 : vector<8x128xf32>
    %2578 = arith.addf %2574, %2577 : vector<8x128xf32>
    %c146 = arith.constant 146 : index
    %2579 = memref.load %arg2[%c146] : memref<376xf32, #tpu.memory_space<smem>>
    %2580 = vector.broadcast %2579 : f32 to vector<8x128xf32>
    %2581 = arith.addf %2578, %2580 : vector<8x128xf32>
    %cst_580 = arith.constant 0.000000e+00 : f32
    %2582 = vector.broadcast %cst_580 : f32 to vector<8x128xf32>
    %2583 = arith.select %2557, %2581, %2582 : vector<8x128xi1>, vector<8x128xf32>
    %c62_i32 = arith.constant 62 : i32
    %2584 = vector.broadcast %c62_i32 : i32 to vector<8x128xi32>
    %2585 = arith.cmpi slt, %0, %2584 : vector<8x128xi32>
    %c1_i32_581 = arith.constant 1 : i32
    %2586 = tpu.dynamic_rotate %2571 by %c1_i32_581 dim 1 : vector<8x128xf32>, i32 -> vector<8x128xf32>
    %c1_i32_582 = arith.constant 1 : i32
    %2587 = tpu.dynamic_rotate %2583 by %c1_i32_582 dim 1 : vector<8x128xf32>, i32 -> vector<8x128xf32>
    %c147 = arith.constant 147 : index
    %2588 = memref.load %arg2[%c147] : memref<376xf32, #tpu.memory_space<smem>>
    %2589 = vector.broadcast %2588 : f32 to vector<8x128xf32>
    %2590 = arith.mulf %2589, %2586 : vector<8x128xf32>
    %c148 = arith.constant 148 : index
    %2591 = memref.load %arg2[%c148] : memref<376xf32, #tpu.memory_space<smem>>
    %2592 = vector.broadcast %2591 : f32 to vector<8x128xf32>
    %2593 = arith.mulf %2592, %2587 : vector<8x128xf32>
    %2594 = arith.addf %2590, %2593 : vector<8x128xf32>
    %c151 = arith.constant 151 : index
    %2595 = memref.load %arg2[%c151] : memref<376xf32, #tpu.memory_space<smem>>
    %2596 = vector.broadcast %2595 : f32 to vector<8x128xf32>
    %2597 = arith.addf %2594, %2596 : vector<8x128xf32>
    %cst_583 = arith.constant 0.000000e+00 : f32
    %2598 = vector.broadcast %cst_583 : f32 to vector<8x128xf32>
    %2599 = arith.select %2585, %2597, %2598 : vector<8x128xi1>, vector<8x128xf32>
    %c149 = arith.constant 149 : index
    %2600 = memref.load %arg2[%c149] : memref<376xf32, #tpu.memory_space<smem>>
    %2601 = vector.broadcast %2600 : f32 to vector<8x128xf32>
    %2602 = arith.mulf %2601, %2586 : vector<8x128xf32>
    %c150 = arith.constant 150 : index
    %2603 = memref.load %arg2[%c150] : memref<376xf32, #tpu.memory_space<smem>>
    %2604 = vector.broadcast %2603 : f32 to vector<8x128xf32>
    %2605 = arith.mulf %2604, %2587 : vector<8x128xf32>
    %2606 = arith.addf %2602, %2605 : vector<8x128xf32>
    %c152 = arith.constant 152 : index
    %2607 = memref.load %arg2[%c152] : memref<376xf32, #tpu.memory_space<smem>>
    %2608 = vector.broadcast %2607 : f32 to vector<8x128xf32>
    %2609 = arith.addf %2606, %2608 : vector<8x128xf32>
    %cst_584 = arith.constant 0.000000e+00 : f32
    %2610 = vector.broadcast %cst_584 : f32 to vector<8x128xf32>
    %2611 = arith.select %2585, %2609, %2610 : vector<8x128xi1>, vector<8x128xf32>
    %c153 = arith.constant 153 : index
    %2612 = memref.load %arg2[%c153] : memref<376xf32, #tpu.memory_space<smem>>
    %c155 = arith.constant 155 : index
    %2613 = memref.load %arg2[%c155] : memref<376xf32, #tpu.memory_space<smem>>
    %2614 = vector.shape_cast %2599 : vector<8x128xf32> to vector<1x8x128xf32>
    %cst_585 = arith.constant dense<0.000000e+00> : vector<1xf32>
    %2615 = vector.multi_reduction <add>, %2614, %cst_585 [1, 2] : vector<1x8x128xf32> to vector<1xf32>
    %2616 = vector.shape_cast %2615 : vector<1xf32> to vector<1x1x1xf32>
    %2617 = vector.extract %2616[0, 0, 0] : f32 from vector<1x1x1xf32>
    %2618 = arith.mulf %2599, %2599 : vector<8x128xf32>
    %2619 = vector.shape_cast %2618 : vector<8x128xf32> to vector<1x8x128xf32>
    %cst_586 = arith.constant dense<0.000000e+00> : vector<1xf32>
    %2620 = vector.multi_reduction <add>, %2619, %cst_586 [1, 2] : vector<1x8x128xf32> to vector<1xf32>
    %2621 = vector.shape_cast %2620 : vector<1xf32> to vector<1x1x1xf32>
    %2622 = vector.extract %2621[0, 0, 0] : f32 from vector<1x1x1xf32>
    %cst_587 = arith.constant 0.00201612897 : f32
    %2623 = arith.mulf %2617, %cst_587 : f32
    %cst_588 = arith.constant 0.00201612897 : f32
    %2624 = arith.mulf %2622, %cst_588 : f32
    %2625 = arith.mulf %2623, %2623 : f32
    %2626 = arith.subf %2624, %2625 : f32
    %cst_589 = arith.constant 0.000000e+00 : f32
    %2627 = arith.maximumf %2626, %cst_589 : f32
    %2628 = vector.broadcast %2623 : f32 to vector<8x128xf32>
    %2629 = arith.subf %2599, %2628 : vector<8x128xf32>
    %2630 = vector.broadcast %2612 : f32 to vector<8x128xf32>
    %2631 = arith.mulf %2630, %2629 : vector<8x128xf32>
    %cst_590 = arith.constant 9.99999974E-6 : f32
    %2632 = arith.addf %2627, %cst_590 : f32
    %2633 = math.rsqrt %2632 : f32
    %2634 = vector.broadcast %2633 : f32 to vector<8x128xf32>
    %2635 = arith.mulf %2631, %2634 : vector<8x128xf32>
    %2636 = vector.broadcast %2613 : f32 to vector<8x128xf32>
    %2637 = arith.addf %2635, %2636 : vector<8x128xf32>
    %cst_591 = arith.constant 0.000000e+00 : f32
    %2638 = vector.broadcast %cst_591 : f32 to vector<8x128xf32>
    %2639 = arith.select %2585, %2637, %2638 : vector<8x128xi1>, vector<8x128xf32>
    %cst_592 = arith.constant 5.000000e-01 : f32
    %2640 = vector.broadcast %cst_592 : f32 to vector<8x128xf32>
    %2641 = arith.mulf %2640, %2639 : vector<8x128xf32>
    %2642 = math.tanh %2641 : vector<8x128xf32>
    %cst_593 = arith.constant 5.000000e-01 : f32
    %2643 = vector.broadcast %cst_593 : f32 to vector<8x128xf32>
    %2644 = arith.mulf %2643, %2642 : vector<8x128xf32>
    %cst_594 = arith.constant 5.000000e-01 : f32
    %2645 = vector.broadcast %cst_594 : f32 to vector<8x128xf32>
    %2646 = arith.addf %2645, %2644 : vector<8x128xf32>
    %2647 = arith.mulf %2639, %2646 : vector<8x128xf32>
    %c154 = arith.constant 154 : index
    %2648 = memref.load %arg2[%c154] : memref<376xf32, #tpu.memory_space<smem>>
    %c156 = arith.constant 156 : index
    %2649 = memref.load %arg2[%c156] : memref<376xf32, #tpu.memory_space<smem>>
    %2650 = vector.shape_cast %2611 : vector<8x128xf32> to vector<1x8x128xf32>
    %cst_595 = arith.constant dense<0.000000e+00> : vector<1xf32>
    %2651 = vector.multi_reduction <add>, %2650, %cst_595 [1, 2] : vector<1x8x128xf32> to vector<1xf32>
    %2652 = vector.shape_cast %2651 : vector<1xf32> to vector<1x1x1xf32>
    %2653 = vector.extract %2652[0, 0, 0] : f32 from vector<1x1x1xf32>
    %2654 = arith.mulf %2611, %2611 : vector<8x128xf32>
    %2655 = vector.shape_cast %2654 : vector<8x128xf32> to vector<1x8x128xf32>
    %cst_596 = arith.constant dense<0.000000e+00> : vector<1xf32>
    %2656 = vector.multi_reduction <add>, %2655, %cst_596 [1, 2] : vector<1x8x128xf32> to vector<1xf32>
    %2657 = vector.shape_cast %2656 : vector<1xf32> to vector<1x1x1xf32>
    %2658 = vector.extract %2657[0, 0, 0] : f32 from vector<1x1x1xf32>
    %cst_597 = arith.constant 0.00201612897 : f32
    %2659 = arith.mulf %2653, %cst_597 : f32
    %cst_598 = arith.constant 0.00201612897 : f32
    %2660 = arith.mulf %2658, %cst_598 : f32
    %2661 = arith.mulf %2659, %2659 : f32
    %2662 = arith.subf %2660, %2661 : f32
    %cst_599 = arith.constant 0.000000e+00 : f32
    %2663 = arith.maximumf %2662, %cst_599 : f32
    %2664 = vector.broadcast %2659 : f32 to vector<8x128xf32>
    %2665 = arith.subf %2611, %2664 : vector<8x128xf32>
    %2666 = vector.broadcast %2648 : f32 to vector<8x128xf32>
    %2667 = arith.mulf %2666, %2665 : vector<8x128xf32>
    %cst_600 = arith.constant 9.99999974E-6 : f32
    %2668 = arith.addf %2663, %cst_600 : f32
    %2669 = math.rsqrt %2668 : f32
    %2670 = vector.broadcast %2669 : f32 to vector<8x128xf32>
    %2671 = arith.mulf %2667, %2670 : vector<8x128xf32>
    %2672 = vector.broadcast %2649 : f32 to vector<8x128xf32>
    %2673 = arith.addf %2671, %2672 : vector<8x128xf32>
    %cst_601 = arith.constant 0.000000e+00 : f32
    %2674 = vector.broadcast %cst_601 : f32 to vector<8x128xf32>
    %2675 = arith.select %2585, %2673, %2674 : vector<8x128xi1>, vector<8x128xf32>
    %cst_602 = arith.constant 5.000000e-01 : f32
    %2676 = vector.broadcast %cst_602 : f32 to vector<8x128xf32>
    %2677 = arith.mulf %2676, %2675 : vector<8x128xf32>
    %2678 = math.tanh %2677 : vector<8x128xf32>
    %cst_603 = arith.constant 5.000000e-01 : f32
    %2679 = vector.broadcast %cst_603 : f32 to vector<8x128xf32>
    %2680 = arith.mulf %2679, %2678 : vector<8x128xf32>
    %cst_604 = arith.constant 5.000000e-01 : f32
    %2681 = vector.broadcast %cst_604 : f32 to vector<8x128xf32>
    %2682 = arith.addf %2681, %2680 : vector<8x128xf32>
    %2683 = arith.mulf %2675, %2682 : vector<8x128xf32>
    %c64_i32 = arith.constant 64 : i32
    %2684 = vector.broadcast %c64_i32 : i32 to vector<8x128xi32>
    %2685 = arith.cmpi slt, %0, %2684 : vector<8x128xi32>
    %c1_i32_605 = arith.constant 1 : i32
    %2686 = tpu.dynamic_rotate %2647 by %c1_i32_605 dim 1 : vector<8x128xf32>, i32 -> vector<8x128xf32>
    %c1_i32_606 = arith.constant 1 : i32
    %2687 = tpu.dynamic_rotate %2683 by %c1_i32_606 dim 1 : vector<8x128xf32>, i32 -> vector<8x128xf32>
    %c157 = arith.constant 157 : index
    %2688 = memref.load %arg2[%c157] : memref<376xf32, #tpu.memory_space<smem>>
    %2689 = vector.broadcast %2688 : f32 to vector<8x128xf32>
    %2690 = arith.mulf %2689, %2686 : vector<8x128xf32>
    %c158 = arith.constant 158 : index
    %2691 = memref.load %arg2[%c158] : memref<376xf32, #tpu.memory_space<smem>>
    %2692 = vector.broadcast %2691 : f32 to vector<8x128xf32>
    %2693 = arith.mulf %2692, %2687 : vector<8x128xf32>
    %2694 = arith.addf %2690, %2693 : vector<8x128xf32>
    %c159 = arith.constant 159 : index
    %2695 = memref.load %arg2[%c159] : memref<376xf32, #tpu.memory_space<smem>>
    %2696 = vector.broadcast %2695 : f32 to vector<8x128xf32>
    %2697 = arith.addf %2694, %2696 : vector<8x128xf32>
    %cst_607 = arith.constant 0.000000e+00 : f32
    %2698 = vector.broadcast %cst_607 : f32 to vector<8x128xf32>
    %2699 = arith.select %2685, %2697, %2698 : vector<8x128xi1>, vector<8x128xf32>
    %c160 = arith.constant 160 : index
    %2700 = memref.load %arg2[%c160] : memref<376xf32, #tpu.memory_space<smem>>
    %c161 = arith.constant 161 : index
    %2701 = memref.load %arg2[%c161] : memref<376xf32, #tpu.memory_space<smem>>
    %2702 = vector.shape_cast %2699 : vector<8x128xf32> to vector<1x8x128xf32>
    %cst_608 = arith.constant dense<0.000000e+00> : vector<1xf32>
    %2703 = vector.multi_reduction <add>, %2702, %cst_608 [1, 2] : vector<1x8x128xf32> to vector<1xf32>
    %2704 = vector.shape_cast %2703 : vector<1xf32> to vector<1x1x1xf32>
    %2705 = vector.extract %2704[0, 0, 0] : f32 from vector<1x1x1xf32>
    %2706 = arith.mulf %2699, %2699 : vector<8x128xf32>
    %2707 = vector.shape_cast %2706 : vector<8x128xf32> to vector<1x8x128xf32>
    %cst_609 = arith.constant dense<0.000000e+00> : vector<1xf32>
    %2708 = vector.multi_reduction <add>, %2707, %cst_609 [1, 2] : vector<1x8x128xf32> to vector<1xf32>
    %2709 = vector.shape_cast %2708 : vector<1xf32> to vector<1x1x1xf32>
    %2710 = vector.extract %2709[0, 0, 0] : f32 from vector<1x1x1xf32>
    %cst_610 = arith.constant 0.001953125 : f32
    %2711 = arith.mulf %2705, %cst_610 : f32
    %cst_611 = arith.constant 0.001953125 : f32
    %2712 = arith.mulf %2710, %cst_611 : f32
    %2713 = arith.mulf %2711, %2711 : f32
    %2714 = arith.subf %2712, %2713 : f32
    %cst_612 = arith.constant 0.000000e+00 : f32
    %2715 = arith.maximumf %2714, %cst_612 : f32
    %2716 = vector.broadcast %2711 : f32 to vector<8x128xf32>
    %2717 = arith.subf %2699, %2716 : vector<8x128xf32>
    %2718 = vector.broadcast %2700 : f32 to vector<8x128xf32>
    %2719 = arith.mulf %2718, %2717 : vector<8x128xf32>
    %cst_613 = arith.constant 9.99999974E-6 : f32
    %2720 = arith.addf %2715, %cst_613 : f32
    %2721 = math.rsqrt %2720 : f32
    %2722 = vector.broadcast %2721 : f32 to vector<8x128xf32>
    %2723 = arith.mulf %2719, %2722 : vector<8x128xf32>
    %2724 = vector.broadcast %2701 : f32 to vector<8x128xf32>
    %2725 = arith.addf %2723, %2724 : vector<8x128xf32>
    %cst_614 = arith.constant 0.000000e+00 : f32
    %2726 = vector.broadcast %cst_614 : f32 to vector<8x128xf32>
    %2727 = arith.select %2685, %2725, %2726 : vector<8x128xi1>, vector<8x128xf32>
    %cst_615 = arith.constant 5.000000e-01 : f32
    %2728 = vector.broadcast %cst_615 : f32 to vector<8x128xf32>
    %2729 = arith.mulf %2728, %2727 : vector<8x128xf32>
    %2730 = math.tanh %2729 : vector<8x128xf32>
    %cst_616 = arith.constant 5.000000e-01 : f32
    %2731 = vector.broadcast %cst_616 : f32 to vector<8x128xf32>
    %2732 = arith.mulf %2731, %2730 : vector<8x128xf32>
    %cst_617 = arith.constant 5.000000e-01 : f32
    %2733 = vector.broadcast %cst_617 : f32 to vector<8x128xf32>
    %2734 = arith.addf %2733, %2732 : vector<8x128xf32>
    %2735 = arith.mulf %2727, %2734 : vector<8x128xf32>
    %c252 = arith.constant 252 : index
    %2736 = memref.load %arg2[%c252] : memref<376xf32, #tpu.memory_space<smem>>
    %c253 = arith.constant 253 : index
    %2737 = memref.load %arg2[%c253] : memref<376xf32, #tpu.memory_space<smem>>
    %2738 = vector.shape_cast %2735 : vector<8x128xf32> to vector<1x8x128xf32>
    %cst_618 = arith.constant dense<0.000000e+00> : vector<1xf32>
    %2739 = vector.multi_reduction <add>, %2738, %cst_618 [1, 2] : vector<1x8x128xf32> to vector<1xf32>
    %2740 = vector.shape_cast %2739 : vector<1xf32> to vector<1x1x1xf32>
    %2741 = vector.extract %2740[0, 0, 0] : f32 from vector<1x1x1xf32>
    %2742 = arith.mulf %2735, %2735 : vector<8x128xf32>
    %2743 = vector.shape_cast %2742 : vector<8x128xf32> to vector<1x8x128xf32>
    %cst_619 = arith.constant dense<0.000000e+00> : vector<1xf32>
    %2744 = vector.multi_reduction <add>, %2743, %cst_619 [1, 2] : vector<1x8x128xf32> to vector<1xf32>
    %2745 = vector.shape_cast %2744 : vector<1xf32> to vector<1x1x1xf32>
    %2746 = vector.extract %2745[0, 0, 0] : f32 from vector<1x1x1xf32>
    %cst_620 = arith.constant 0.001953125 : f32
    %2747 = arith.mulf %2741, %cst_620 : f32
    %cst_621 = arith.constant 0.001953125 : f32
    %2748 = arith.mulf %2746, %cst_621 : f32
    %2749 = arith.mulf %2747, %2747 : f32
    %2750 = arith.subf %2748, %2749 : f32
    %cst_622 = arith.constant 0.000000e+00 : f32
    %2751 = arith.maximumf %2750, %cst_622 : f32
    %2752 = vector.broadcast %2747 : f32 to vector<8x128xf32>
    %2753 = arith.subf %2735, %2752 : vector<8x128xf32>
    %2754 = vector.broadcast %2736 : f32 to vector<8x128xf32>
    %2755 = arith.mulf %2754, %2753 : vector<8x128xf32>
    %cst_623 = arith.constant 9.99999974E-6 : f32
    %2756 = arith.addf %2751, %cst_623 : f32
    %2757 = math.rsqrt %2756 : f32
    %2758 = vector.broadcast %2757 : f32 to vector<8x128xf32>
    %2759 = arith.mulf %2755, %2758 : vector<8x128xf32>
    %2760 = vector.broadcast %2737 : f32 to vector<8x128xf32>
    %2761 = arith.addf %2759, %2760 : vector<8x128xf32>
    %cst_624 = arith.constant 0.000000e+00 : f32
    %2762 = vector.broadcast %cst_624 : f32 to vector<8x128xf32>
    %2763 = arith.select %2685, %2761, %2762 : vector<8x128xi1>, vector<8x128xf32>
    %c254 = arith.constant 254 : index
    %2764 = memref.load %arg2[%c254] : memref<376xf32, #tpu.memory_space<smem>>
    %2765 = vector.broadcast %2764 : f32 to vector<8x128xf32>
    %2766 = arith.mulf %2765, %2763 : vector<8x128xf32>
    %c255 = arith.constant 255 : index
    %2767 = memref.load %arg2[%c255] : memref<376xf32, #tpu.memory_space<smem>>
    %2768 = vector.broadcast %2767 : f32 to vector<8x128xf32>
    %2769 = arith.addf %2766, %2768 : vector<8x128xf32>
    %cst_625 = arith.constant 0.000000e+00 : f32
    %2770 = vector.broadcast %cst_625 : f32 to vector<8x128xf32>
    %2771 = arith.select %2685, %2769, %2770 : vector<8x128xi1>, vector<8x128xf32>
    %c256 = arith.constant 256 : index
    %2772 = memref.load %arg2[%c256] : memref<376xf32, #tpu.memory_space<smem>>
    %c257 = arith.constant 257 : index
    %2773 = memref.load %arg2[%c257] : memref<376xf32, #tpu.memory_space<smem>>
    %2774 = vector.shape_cast %2771 : vector<8x128xf32> to vector<1x8x128xf32>
    %cst_626 = arith.constant dense<0.000000e+00> : vector<1xf32>
    %2775 = vector.multi_reduction <add>, %2774, %cst_626 [1, 2] : vector<1x8x128xf32> to vector<1xf32>
    %2776 = vector.shape_cast %2775 : vector<1xf32> to vector<1x1x1xf32>
    %2777 = vector.extract %2776[0, 0, 0] : f32 from vector<1x1x1xf32>
    %2778 = arith.mulf %2771, %2771 : vector<8x128xf32>
    %2779 = vector.shape_cast %2778 : vector<8x128xf32> to vector<1x8x128xf32>
    %cst_627 = arith.constant dense<0.000000e+00> : vector<1xf32>
    %2780 = vector.multi_reduction <add>, %2779, %cst_627 [1, 2] : vector<1x8x128xf32> to vector<1xf32>
    %2781 = vector.shape_cast %2780 : vector<1xf32> to vector<1x1x1xf32>
    %2782 = vector.extract %2781[0, 0, 0] : f32 from vector<1x1x1xf32>
    %cst_628 = arith.constant 0.001953125 : f32
    %2783 = arith.mulf %2777, %cst_628 : f32
    %cst_629 = arith.constant 0.001953125 : f32
    %2784 = arith.mulf %2782, %cst_629 : f32
    %2785 = arith.mulf %2783, %2783 : f32
    %2786 = arith.subf %2784, %2785 : f32
    %cst_630 = arith.constant 0.000000e+00 : f32
    %2787 = arith.maximumf %2786, %cst_630 : f32
    %2788 = vector.broadcast %2783 : f32 to vector<8x128xf32>
    %2789 = arith.subf %2771, %2788 : vector<8x128xf32>
    %2790 = vector.broadcast %2772 : f32 to vector<8x128xf32>
    %2791 = arith.mulf %2790, %2789 : vector<8x128xf32>
    %cst_631 = arith.constant 9.99999974E-6 : f32
    %2792 = arith.addf %2787, %cst_631 : f32
    %2793 = math.rsqrt %2792 : f32
    %2794 = vector.broadcast %2793 : f32 to vector<8x128xf32>
    %2795 = arith.mulf %2791, %2794 : vector<8x128xf32>
    %2796 = vector.broadcast %2773 : f32 to vector<8x128xf32>
    %2797 = arith.addf %2795, %2796 : vector<8x128xf32>
    %cst_632 = arith.constant 0.000000e+00 : f32
    %2798 = vector.broadcast %cst_632 : f32 to vector<8x128xf32>
    %2799 = arith.select %2685, %2797, %2798 : vector<8x128xi1>, vector<8x128xf32>
    %cst_633 = arith.constant 5.000000e-01 : f32
    %2800 = vector.broadcast %cst_633 : f32 to vector<8x128xf32>
    %2801 = arith.mulf %2800, %2799 : vector<8x128xf32>
    %2802 = math.tanh %2801 : vector<8x128xf32>
    %cst_634 = arith.constant 5.000000e-01 : f32
    %2803 = vector.broadcast %cst_634 : f32 to vector<8x128xf32>
    %2804 = arith.mulf %2803, %2802 : vector<8x128xf32>
    %cst_635 = arith.constant 5.000000e-01 : f32
    %2805 = vector.broadcast %cst_635 : f32 to vector<8x128xf32>
    %2806 = arith.addf %2805, %2804 : vector<8x128xf32>
    %2807 = arith.mulf %2799, %2806 : vector<8x128xf32>
    %c258 = arith.constant 258 : index
    %2808 = memref.load %arg2[%c258] : memref<376xf32, #tpu.memory_space<smem>>
    %c259 = arith.constant 259 : index
    %2809 = memref.load %arg2[%c259] : memref<376xf32, #tpu.memory_space<smem>>
    %c260 = arith.constant 260 : index
    %2810 = memref.load %arg2[%c260] : memref<376xf32, #tpu.memory_space<smem>>
    %c261 = arith.constant 261 : index
    %2811 = memref.load %arg2[%c261] : memref<376xf32, #tpu.memory_space<smem>>
    %c262 = arith.constant 262 : index
    %2812 = memref.load %arg2[%c262] : memref<376xf32, #tpu.memory_space<smem>>
    %c263 = arith.constant 263 : index
    %2813 = memref.load %arg2[%c263] : memref<376xf32, #tpu.memory_space<smem>>
    %2814 = vector.broadcast %2810 : f32 to vector<8x128xf32>
    %2815 = arith.mulf %2814, %2807 : vector<8x128xf32>
    %c2_i32_636 = arith.constant 2 : i32
    %2816 = tpu.dynamic_rotate %2807 by %c2_i32_636 dim 1 : vector<8x128xf32>, i32 -> vector<8x128xf32>
    %2817 = vector.broadcast %2808 : f32 to vector<8x128xf32>
    %2818 = arith.mulf %2817, %2816 : vector<8x128xf32>
    %2819 = arith.addf %2815, %2818 : vector<8x128xf32>
    %c1_i32_637 = arith.constant 1 : i32
    %2820 = tpu.dynamic_rotate %2807 by %c1_i32_637 dim 1 : vector<8x128xf32>, i32 -> vector<8x128xf32>
    %2821 = vector.broadcast %2809 : f32 to vector<8x128xf32>
    %2822 = arith.mulf %2821, %2820 : vector<8x128xf32>
    %2823 = arith.addf %2819, %2822 : vector<8x128xf32>
    %c127_i32_638 = arith.constant 127 : i32
    %2824 = tpu.dynamic_rotate %2807 by %c127_i32_638 dim 1 : vector<8x128xf32>, i32 -> vector<8x128xf32>
    %2825 = vector.broadcast %2811 : f32 to vector<8x128xf32>
    %2826 = arith.mulf %2825, %2824 : vector<8x128xf32>
    %2827 = arith.addf %2823, %2826 : vector<8x128xf32>
    %c126_i32_639 = arith.constant 126 : i32
    %2828 = tpu.dynamic_rotate %2807 by %c126_i32_639 dim 1 : vector<8x128xf32>, i32 -> vector<8x128xf32>
    %2829 = vector.broadcast %2812 : f32 to vector<8x128xf32>
    %2830 = arith.mulf %2829, %2828 : vector<8x128xf32>
    %2831 = arith.addf %2827, %2830 : vector<8x128xf32>
    %2832 = vector.broadcast %2813 : f32 to vector<8x128xf32>
    %2833 = arith.addf %2831, %2832 : vector<8x128xf32>
    %cst_640 = arith.constant 0.000000e+00 : f32
    %2834 = vector.broadcast %cst_640 : f32 to vector<8x128xf32>
    %2835 = arith.select %2685, %2833, %2834 : vector<8x128xi1>, vector<8x128xf32>
    %c264 = arith.constant 264 : index
    %2836 = memref.load %arg2[%c264] : memref<376xf32, #tpu.memory_space<smem>>
    %c265 = arith.constant 265 : index
    %2837 = memref.load %arg2[%c265] : memref<376xf32, #tpu.memory_space<smem>>
    %2838 = vector.shape_cast %2835 : vector<8x128xf32> to vector<1x8x128xf32>
    %cst_641 = arith.constant dense<0.000000e+00> : vector<1xf32>
    %2839 = vector.multi_reduction <add>, %2838, %cst_641 [1, 2] : vector<1x8x128xf32> to vector<1xf32>
    %2840 = vector.shape_cast %2839 : vector<1xf32> to vector<1x1x1xf32>
    %2841 = vector.extract %2840[0, 0, 0] : f32 from vector<1x1x1xf32>
    %2842 = arith.mulf %2835, %2835 : vector<8x128xf32>
    %2843 = vector.shape_cast %2842 : vector<8x128xf32> to vector<1x8x128xf32>
    %cst_642 = arith.constant dense<0.000000e+00> : vector<1xf32>
    %2844 = vector.multi_reduction <add>, %2843, %cst_642 [1, 2] : vector<1x8x128xf32> to vector<1xf32>
    %2845 = vector.shape_cast %2844 : vector<1xf32> to vector<1x1x1xf32>
    %2846 = vector.extract %2845[0, 0, 0] : f32 from vector<1x1x1xf32>
    %cst_643 = arith.constant 0.001953125 : f32
    %2847 = arith.mulf %2841, %cst_643 : f32
    %cst_644 = arith.constant 0.001953125 : f32
    %2848 = arith.mulf %2846, %cst_644 : f32
    %2849 = arith.mulf %2847, %2847 : f32
    %2850 = arith.subf %2848, %2849 : f32
    %cst_645 = arith.constant 0.000000e+00 : f32
    %2851 = arith.maximumf %2850, %cst_645 : f32
    %2852 = vector.broadcast %2847 : f32 to vector<8x128xf32>
    %2853 = arith.subf %2835, %2852 : vector<8x128xf32>
    %2854 = vector.broadcast %2836 : f32 to vector<8x128xf32>
    %2855 = arith.mulf %2854, %2853 : vector<8x128xf32>
    %cst_646 = arith.constant 9.99999974E-6 : f32
    %2856 = arith.addf %2851, %cst_646 : f32
    %2857 = math.rsqrt %2856 : f32
    %2858 = vector.broadcast %2857 : f32 to vector<8x128xf32>
    %2859 = arith.mulf %2855, %2858 : vector<8x128xf32>
    %2860 = vector.broadcast %2837 : f32 to vector<8x128xf32>
    %2861 = arith.addf %2859, %2860 : vector<8x128xf32>
    %cst_647 = arith.constant 0.000000e+00 : f32
    %2862 = vector.broadcast %cst_647 : f32 to vector<8x128xf32>
    %2863 = arith.select %2685, %2861, %2862 : vector<8x128xi1>, vector<8x128xf32>
    %cst_648 = arith.constant 5.000000e-01 : f32
    %2864 = vector.broadcast %cst_648 : f32 to vector<8x128xf32>
    %2865 = arith.mulf %2864, %2863 : vector<8x128xf32>
    %2866 = math.tanh %2865 : vector<8x128xf32>
    %cst_649 = arith.constant 5.000000e-01 : f32
    %2867 = vector.broadcast %cst_649 : f32 to vector<8x128xf32>
    %2868 = arith.mulf %2867, %2866 : vector<8x128xf32>
    %cst_650 = arith.constant 5.000000e-01 : f32
    %2869 = vector.broadcast %cst_650 : f32 to vector<8x128xf32>
    %2870 = arith.addf %2869, %2868 : vector<8x128xf32>
    %2871 = arith.mulf %2863, %2870 : vector<8x128xf32>
    %c266 = arith.constant 266 : index
    %2872 = memref.load %arg2[%c266] : memref<376xf32, #tpu.memory_space<smem>>
    %2873 = vector.broadcast %2872 : f32 to vector<8x128xf32>
    %2874 = arith.mulf %2873, %2871 : vector<8x128xf32>
    %c267 = arith.constant 267 : index
    %2875 = memref.load %arg2[%c267] : memref<376xf32, #tpu.memory_space<smem>>
    %2876 = vector.broadcast %2875 : f32 to vector<8x128xf32>
    %2877 = arith.addf %2874, %2876 : vector<8x128xf32>
    %cst_651 = arith.constant 0.000000e+00 : f32
    %2878 = vector.broadcast %cst_651 : f32 to vector<8x128xf32>
    %2879 = arith.select %2685, %2877, %2878 : vector<8x128xi1>, vector<8x128xf32>
    %c268 = arith.constant 268 : index
    %2880 = memref.load %arg2[%c268] : memref<376xf32, #tpu.memory_space<smem>>
    %c269 = arith.constant 269 : index
    %2881 = memref.load %arg2[%c269] : memref<376xf32, #tpu.memory_space<smem>>
    %2882 = vector.shape_cast %2879 : vector<8x128xf32> to vector<1x8x128xf32>
    %cst_652 = arith.constant dense<0.000000e+00> : vector<1xf32>
    %2883 = vector.multi_reduction <add>, %2882, %cst_652 [1, 2] : vector<1x8x128xf32> to vector<1xf32>
    %2884 = vector.shape_cast %2883 : vector<1xf32> to vector<1x1x1xf32>
    %2885 = vector.extract %2884[0, 0, 0] : f32 from vector<1x1x1xf32>
    %2886 = arith.mulf %2879, %2879 : vector<8x128xf32>
    %2887 = vector.shape_cast %2886 : vector<8x128xf32> to vector<1x8x128xf32>
    %cst_653 = arith.constant dense<0.000000e+00> : vector<1xf32>
    %2888 = vector.multi_reduction <add>, %2887, %cst_653 [1, 2] : vector<1x8x128xf32> to vector<1xf32>
    %2889 = vector.shape_cast %2888 : vector<1xf32> to vector<1x1x1xf32>
    %2890 = vector.extract %2889[0, 0, 0] : f32 from vector<1x1x1xf32>
    %cst_654 = arith.constant 0.001953125 : f32
    %2891 = arith.mulf %2885, %cst_654 : f32
    %cst_655 = arith.constant 0.001953125 : f32
    %2892 = arith.mulf %2890, %cst_655 : f32
    %2893 = arith.mulf %2891, %2891 : f32
    %2894 = arith.subf %2892, %2893 : f32
    %cst_656 = arith.constant 0.000000e+00 : f32
    %2895 = arith.maximumf %2894, %cst_656 : f32
    %2896 = vector.broadcast %2891 : f32 to vector<8x128xf32>
    %2897 = arith.subf %2879, %2896 : vector<8x128xf32>
    %2898 = vector.broadcast %2880 : f32 to vector<8x128xf32>
    %2899 = arith.mulf %2898, %2897 : vector<8x128xf32>
    %cst_657 = arith.constant 9.99999974E-6 : f32
    %2900 = arith.addf %2895, %cst_657 : f32
    %2901 = math.rsqrt %2900 : f32
    %2902 = vector.broadcast %2901 : f32 to vector<8x128xf32>
    %2903 = arith.mulf %2899, %2902 : vector<8x128xf32>
    %2904 = vector.broadcast %2881 : f32 to vector<8x128xf32>
    %2905 = arith.addf %2903, %2904 : vector<8x128xf32>
    %cst_658 = arith.constant 0.000000e+00 : f32
    %2906 = vector.broadcast %cst_658 : f32 to vector<8x128xf32>
    %2907 = arith.select %2685, %2905, %2906 : vector<8x128xi1>, vector<8x128xf32>
    %cst_659 = arith.constant 1.000000e-01 : f32
    %2908 = vector.broadcast %cst_659 : f32 to vector<8x128xf32>
    %2909 = arith.mulf %2908, %2907 : vector<8x128xf32>
    %2910 = arith.addf %2735, %2909 : vector<8x128xf32>
    %c64_i32_660 = arith.constant 64 : i32
    %2911 = vector.broadcast %c64_i32_660 : i32 to vector<8x128xi32>
    %2912 = arith.cmpi slt, %0, %2911 : vector<8x128xi32>
    %c360 = arith.constant 360 : index
    %2913 = memref.load %arg2[%c360] : memref<376xf32, #tpu.memory_space<smem>>
    %c361 = arith.constant 361 : index
    %2914 = memref.load %arg2[%c361] : memref<376xf32, #tpu.memory_space<smem>>
    %c362 = arith.constant 362 : index
    %2915 = memref.load %arg2[%c362] : memref<376xf32, #tpu.memory_space<smem>>
    %c363 = arith.constant 363 : index
    %2916 = memref.load %arg2[%c363] : memref<376xf32, #tpu.memory_space<smem>>
    %c364 = arith.constant 364 : index
    %2917 = memref.load %arg2[%c364] : memref<376xf32, #tpu.memory_space<smem>>
    %c365 = arith.constant 365 : index
    %2918 = memref.load %arg2[%c365] : memref<376xf32, #tpu.memory_space<smem>>
    %2919 = vector.broadcast %2915 : f32 to vector<8x128xf32>
    %2920 = arith.mulf %2919, %2910 : vector<8x128xf32>
    %c2_i32_661 = arith.constant 2 : i32
    %2921 = tpu.dynamic_rotate %2910 by %c2_i32_661 dim 1 : vector<8x128xf32>, i32 -> vector<8x128xf32>
    %2922 = vector.broadcast %2913 : f32 to vector<8x128xf32>
    %2923 = arith.mulf %2922, %2921 : vector<8x128xf32>
    %2924 = arith.addf %2920, %2923 : vector<8x128xf32>
    %c1_i32_662 = arith.constant 1 : i32
    %2925 = tpu.dynamic_rotate %2910 by %c1_i32_662 dim 1 : vector<8x128xf32>, i32 -> vector<8x128xf32>
    %2926 = vector.broadcast %2914 : f32 to vector<8x128xf32>
    %2927 = arith.mulf %2926, %2925 : vector<8x128xf32>
    %2928 = arith.addf %2924, %2927 : vector<8x128xf32>
    %c127_i32_663 = arith.constant 127 : i32
    %2929 = tpu.dynamic_rotate %2910 by %c127_i32_663 dim 1 : vector<8x128xf32>, i32 -> vector<8x128xf32>
    %2930 = vector.broadcast %2916 : f32 to vector<8x128xf32>
    %2931 = arith.mulf %2930, %2929 : vector<8x128xf32>
    %2932 = arith.addf %2928, %2931 : vector<8x128xf32>
    %c126_i32_664 = arith.constant 126 : i32
    %2933 = tpu.dynamic_rotate %2910 by %c126_i32_664 dim 1 : vector<8x128xf32>, i32 -> vector<8x128xf32>
    %2934 = vector.broadcast %2917 : f32 to vector<8x128xf32>
    %2935 = arith.mulf %2934, %2933 : vector<8x128xf32>
    %2936 = arith.addf %2932, %2935 : vector<8x128xf32>
    %2937 = vector.broadcast %2918 : f32 to vector<8x128xf32>
    %2938 = arith.addf %2936, %2937 : vector<8x128xf32>
    %cst_665 = arith.constant 0.000000e+00 : f32
    %2939 = vector.broadcast %cst_665 : f32 to vector<8x128xf32>
    %2940 = arith.select %2912, %2938, %2939 : vector<8x128xi1>, vector<8x128xf32>
    %c366 = arith.constant 366 : index
    %2941 = memref.load %arg2[%c366] : memref<376xf32, #tpu.memory_space<smem>>
    %2942 = vector.broadcast %2941 : f32 to vector<8x128xf32>
    %2943 = arith.mulf %2942, %2940 : vector<8x128xf32>
    %c367 = arith.constant 367 : index
    %2944 = memref.load %arg2[%c367] : memref<376xf32, #tpu.memory_space<smem>>
    %2945 = vector.broadcast %2944 : f32 to vector<8x128xf32>
    %2946 = arith.addf %2943, %2945 : vector<8x128xf32>
    %cst_666 = arith.constant 0.000000e+00 : f32
    %2947 = vector.broadcast %cst_666 : f32 to vector<8x128xf32>
    %2948 = arith.select %2912, %2946, %2947 : vector<8x128xi1>, vector<8x128xf32>
    %c368 = arith.constant 368 : index
    %2949 = memref.load %arg2[%c368] : memref<376xf32, #tpu.memory_space<smem>>
    %c369 = arith.constant 369 : index
    %2950 = memref.load %arg2[%c369] : memref<376xf32, #tpu.memory_space<smem>>
    %2951 = vector.shape_cast %2948 : vector<8x128xf32> to vector<1x8x128xf32>
    %cst_667 = arith.constant dense<0.000000e+00> : vector<1xf32>
    %2952 = vector.multi_reduction <add>, %2951, %cst_667 [1, 2] : vector<1x8x128xf32> to vector<1xf32>
    %2953 = vector.shape_cast %2952 : vector<1xf32> to vector<1x1x1xf32>
    %2954 = vector.extract %2953[0, 0, 0] : f32 from vector<1x1x1xf32>
    %2955 = arith.mulf %2948, %2948 : vector<8x128xf32>
    %2956 = vector.shape_cast %2955 : vector<8x128xf32> to vector<1x8x128xf32>
    %cst_668 = arith.constant dense<0.000000e+00> : vector<1xf32>
    %2957 = vector.multi_reduction <add>, %2956, %cst_668 [1, 2] : vector<1x8x128xf32> to vector<1xf32>
    %2958 = vector.shape_cast %2957 : vector<1xf32> to vector<1x1x1xf32>
    %2959 = vector.extract %2958[0, 0, 0] : f32 from vector<1x1x1xf32>
    %cst_669 = arith.constant 0.001953125 : f32
    %2960 = arith.mulf %2954, %cst_669 : f32
    %cst_670 = arith.constant 0.001953125 : f32
    %2961 = arith.mulf %2959, %cst_670 : f32
    %2962 = arith.mulf %2960, %2960 : f32
    %2963 = arith.subf %2961, %2962 : f32
    %cst_671 = arith.constant 0.000000e+00 : f32
    %2964 = arith.maximumf %2963, %cst_671 : f32
    %2965 = vector.broadcast %2960 : f32 to vector<8x128xf32>
    %2966 = arith.subf %2948, %2965 : vector<8x128xf32>
    %2967 = vector.broadcast %2949 : f32 to vector<8x128xf32>
    %2968 = arith.mulf %2967, %2966 : vector<8x128xf32>
    %cst_672 = arith.constant 9.99999974E-6 : f32
    %2969 = arith.addf %2964, %cst_672 : f32
    %2970 = math.rsqrt %2969 : f32
    %2971 = vector.broadcast %2970 : f32 to vector<8x128xf32>
    %2972 = arith.mulf %2968, %2971 : vector<8x128xf32>
    %2973 = vector.broadcast %2950 : f32 to vector<8x128xf32>
    %2974 = arith.addf %2972, %2973 : vector<8x128xf32>
    %cst_673 = arith.constant 0.000000e+00 : f32
    %2975 = vector.broadcast %cst_673 : f32 to vector<8x128xf32>
    %2976 = arith.select %2912, %2974, %2975 : vector<8x128xi1>, vector<8x128xf32>
    %cst_674 = arith.constant 5.000000e-01 : f32
    %2977 = vector.broadcast %cst_674 : f32 to vector<8x128xf32>
    %2978 = arith.mulf %2977, %2976 : vector<8x128xf32>
    %2979 = math.tanh %2978 : vector<8x128xf32>
    %cst_675 = arith.constant 5.000000e-01 : f32
    %2980 = vector.broadcast %cst_675 : f32 to vector<8x128xf32>
    %2981 = arith.mulf %2980, %2979 : vector<8x128xf32>
    %cst_676 = arith.constant 5.000000e-01 : f32
    %2982 = vector.broadcast %cst_676 : f32 to vector<8x128xf32>
    %2983 = arith.addf %2982, %2981 : vector<8x128xf32>
    %2984 = arith.mulf %2976, %2983 : vector<8x128xf32>
    %c370 = arith.constant 370 : index
    %2985 = memref.load %arg2[%c370] : memref<376xf32, #tpu.memory_space<smem>>
    %c371 = arith.constant 371 : index
    %2986 = memref.load %arg2[%c371] : memref<376xf32, #tpu.memory_space<smem>>
    %c372 = arith.constant 372 : index
    %2987 = memref.load %arg2[%c372] : memref<376xf32, #tpu.memory_space<smem>>
    %c373 = arith.constant 373 : index
    %2988 = memref.load %arg2[%c373] : memref<376xf32, #tpu.memory_space<smem>>
    %2989 = vector.broadcast %2986 : f32 to vector<8x128xf32>
    %2990 = arith.mulf %2989, %2984 : vector<8x128xf32>
    %c1_i32_677 = arith.constant 1 : i32
    %2991 = tpu.dynamic_rotate %2984 by %c1_i32_677 dim 1 : vector<8x128xf32>, i32 -> vector<8x128xf32>
    %2992 = vector.broadcast %2985 : f32 to vector<8x128xf32>
    %2993 = arith.mulf %2992, %2991 : vector<8x128xf32>
    %2994 = arith.addf %2990, %2993 : vector<8x128xf32>
    %c127_i32_678 = arith.constant 127 : i32
    %2995 = tpu.dynamic_rotate %2984 by %c127_i32_678 dim 1 : vector<8x128xf32>, i32 -> vector<8x128xf32>
    %2996 = vector.broadcast %2987 : f32 to vector<8x128xf32>
    %2997 = arith.mulf %2996, %2995 : vector<8x128xf32>
    %2998 = arith.addf %2994, %2997 : vector<8x128xf32>
    %2999 = vector.broadcast %2988 : f32 to vector<8x128xf32>
    %3000 = arith.addf %2998, %2999 : vector<8x128xf32>
    %cst_679 = arith.constant 0.000000e+00 : f32
    %3001 = vector.broadcast %cst_679 : f32 to vector<8x128xf32>
    %3002 = arith.select %2912, %3000, %3001 : vector<8x128xi1>, vector<8x128xf32>
    %cst_680 = arith.constant 1.000000e-01 : f32
    %3003 = vector.broadcast %cst_680 : f32 to vector<8x128xf32>
    %3004 = arith.mulf %3003, %3002 : vector<8x128xf32>
    %3005 = arith.addf %2910, %3004 : vector<8x128xf32>
    %c374 = arith.constant 374 : index
    %3006 = memref.load %arg2[%c374] : memref<376xf32, #tpu.memory_space<smem>>
    %3007 = vector.broadcast %3006 : f32 to vector<8x128xf32>
    %3008 = arith.mulf %3007, %3005 : vector<8x128xf32>
    %c375 = arith.constant 375 : index
    %3009 = memref.load %arg2[%c375] : memref<376xf32, #tpu.memory_space<smem>>
    %3010 = vector.broadcast %3009 : f32 to vector<8x128xf32>
    %3011 = arith.addf %3008, %3010 : vector<8x128xf32>
    %cst_681 = arith.constant 0.000000e+00 : f32
    %3012 = vector.broadcast %cst_681 : f32 to vector<8x128xf32>
    %3013 = arith.select %2912, %3011, %3012 : vector<8x128xi1>, vector<8x128xf32>
    %c0_682 = arith.constant 0 : index
    %c0_683 = arith.constant 0 : index
    %3014 = vector.load %arg3[%c0_682, %c0_683] : memref<8x128xf32, #tpu.memory_space<vmem>>, vector<8x128xf32>
    tpu.vector_store %arg3[%c0_682, %c0_683], %3013 {strides = array<i32>} : memref<8x128xf32, #tpu.memory_space<vmem>>, vector<8x128xf32>,
    %cst_684 = arith.constant 5.000000e-01 : f32
    %3015 = vector.broadcast %cst_684 : f32 to vector<8x128xf32>
    %3016 = arith.mulf %3015, %3013 : vector<8x128xf32>
    %3017 = math.tanh %3016 : vector<8x128xf32>
    %cst_685 = arith.constant 5.000000e-01 : f32
    %3018 = vector.broadcast %cst_685 : f32 to vector<8x128xf32>
    %3019 = arith.mulf %3018, %3017 : vector<8x128xf32>
    %cst_686 = arith.constant 5.000000e-01 : f32
    %3020 = vector.broadcast %cst_686 : f32 to vector<8x128xf32>
    %3021 = arith.addf %3020, %3019 : vector<8x128xf32>
    %c0_687 = arith.constant 0 : index
    %c0_688 = arith.constant 0 : index
    %3022 = vector.load %arg4[%c0_687, %c0_688] : memref<8x128xf32, #tpu.memory_space<vmem>>, vector<8x128xf32>
    tpu.vector_store %arg4[%c0_687, %c0_688], %3021 {strides = array<i32>} : memref<8x128xf32, #tpu.memory_space<vmem>>, vector<8x128xf32>,
    return
  }
}

</mosaic_0001>

<bundles_post_ra>
// kernel: decoder_forward.1
= control target key start
LH: loop header
LB: loop body
LE: loop exit
PB: predicated region body
PF: predicated region fallthrough
CT: control target
= control target key end

     0   :  { %10 = vsyncpa [#allocation4], 0  ;;  %s5011_s0 = inlined_call_operand.vmem [shape: f32[8,128], index: 0, kind: input, shape index: {}]   ;;  %s5012_s1 = inlined_call_operand.vmem [shape: f32[5,8,128], index: 1, kind: input, shape index: {}]   ;;  %s5013_s2 = inlined_call_operand.vmem [shape: f32[376], index: 2, kind: input, shape index: {}]   ;;  %s5014_s3 = inlined_call_operand.hbm [shape: f32[8,128], index: 3, kind: output, shape index: {0}]   ;;  %s5015_s4 = inlined_call_operand.hbm [shape: f32[8,128], index: 4, kind: output, shape index: {1}]  }
   0x1   :  { %11 = vsyncpa [#allocation3], 0 }
   0x2   :  { %12 = vsyncpa [#allocation7], 0  ;;  %s23_s17 = sshll.u32 %s5013_s2, 4  ;;  %s24_s17 = int_to_ptr.vmem [resolvable:$true] %s23_s17 }
   0x3   :  { %s4326_s18 = scalar_lea.vmem %s24_s17, 48  ;;  %s4330_s19 = scalar_lea.vmem %s24_s17, 64 }
   0x4   :  { %p4327_p0 = scmp.ne.s32.totalorder %s24_s17, %s4326_s18  ;;  %p4331_p1 = scmp.lt.s32.totalorder %s24_s17, %s24_s17 }
   0x5   :  { %p4332_p2 = scmp.lt.s32.totalorder %s4330_s19, %s4326_s18 }
   0x7   :  { %p4333_p3 = por %p4332_p2, %p4331_p1 }
   0x9   :  { %p4334_p4 = pnand %p4333_p3, %p4327_p0 }
   0xb   :  { %4337 = shalt.err (!%p4334_p4)
}
   0xc   :  { %s4388_s20 = smov [#allocation2]  }
   0xd   :  { %26 = dma.vmem_to_smem %s24_s17, 48, %s4388_s20, [#allocation4]  }
   0xe   :  { %4382 = dma.done.wait [#allocation4], 48  }
   0xf   :  { %4383 = vsyncadd [#allocation4], 4294967248 }
  0x10   :  { %30 = sfence }
  0x11   :  { %v4389_v0 = vmov 0.0   ;;  %s4390_s21 = smov 1   ;;  %v33_v1 = vld [vmem:[%s5011_s0] sm:$0xff]  ;;  %s39_s23 = sld [smem:[#allocation2]]  ;;  %v31_v3 = vlaneseq }
  0x12   :  { %35 = vrot.lane.b32.xlu0 %v4389_v0, %s4390_s21  ;;  %s3462_s24 = sld [smem:[#allocation2 + $0x2]]  ;;  %s3460_s25 = sld [smem:[#allocation2 + $0x1]] }
  0x13   :  { %s3463_s26 = sld [smem:[#allocation2 + $0x3]]  ;;  %s3461_s27 = sld [smem:[#allocation2 + $0x4]]  ;;  %v4430_v9 = vand.u32 127, %v31_v3 }
  0x14   :  { %s3464_s28 = sld [smem:[#allocation2 + $0x5]]  ;;  %s3465_s0 = sld [smem:[#allocation2 + $0x6]] }
  0x15   :  { %vm34_vm0 = vcmp.lt.s32.totalorder %v4430_v9, 18  ;;  %s3468_s29 = sld [smem:[#allocation2 + $0x8]]  ;;  %s3466_s30 = sld [smem:[#allocation2 + $0x7]]  ;;  %vm61_vm1 = vcmp.lt.s32.totalorder %v4430_v9, 20  ;;  %vm88_vm2 = vcmp.lt.s32.totalorder %v4430_v9, 22  ;;  %vm203_vm3 = vcmp.lt.s32.totalorder %v4430_v9, 24 }
  0x16   :  { %37 = vrot.lane.b32.xlu0 %v33_v1, %s4390_s21  ;;  %s3469_s5 = sld [smem:[#allocation2 + $0x9]]  ;;  %s3470_s6 = sld [smem:[#allocation2 + $0xb]]  ;;  %vm603_vm4 = vcmp.lt.s32.totalorder %v4430_v9, 26  ;;  %vm628_vm5 = vcmp.lt.s32.totalorder %v4430_v9, 28  ;;  %vm655_vm6 = vcmp.lt.s32.totalorder %v4430_v9, 30  ;;  %vm770_vm7 = vcmp.lt.s32.totalorder %v4430_v9, 32 }
  0x17   :  { %v40_v4 = vstv %s39_s23  ;;  %s3467_s7 = sld [smem:[#allocation2 + $0xa]]  ;;  %s3472_s8 = sld [smem:[#allocation2 + $0xd]]  ;;  %vm1171_vm8 = vcmp.lt.s32.totalorder %v4430_v9, 34  ;;  %vm1196_vm9 = vcmp.lt.s32.totalorder %v4430_v9, 36  ;;  %vm1223_vm10 = vcmp.lt.s32.totalorder %v4430_v9, 38 }
  0x18   :  { %v51_v5 = vstv %s3462_s24  ;;  %v43_v6 = vstv %s3460_s25  ;;  %s3475_s9 = sld [smem:[#allocation2 + $0xf]]  ;;  %s3471_s10 = sld [smem:[#allocation2 + $0xc]]  ;;  %vm1338_vm11 = vcmp.lt.s32.totalorder %v4430_v9, 40  ;;  %vm1739_vm12 = vcmp.lt.s32.totalorder %v4430_v9, 42 }
  0x19   :  { %v54_v7 = vstv %s3463_s26  ;;  %v47_v14 = vstv %s3461_s27  ;;  %s3474_s11 = sld [smem:[#allocation2 + $0xe]]  ;;  %s3473_s12 = sld [smem:[#allocation2 + $0x10]]  ;;  %vm1764_vm13 = vcmp.lt.s32.totalorder %v4430_v9, 44  ;;  %vm1791_vm14 = vcmp.lt.s32.totalorder %v4430_v9, 46 }
  0x1a   :  { %v58_v17 = vstv %s3464_s28  ;;  %v67_v23 = vstv %s3465_s0  ;;  %s3476_s13 = sld [smem:[#allocation2 + $0x11]]  ;;  %s4391_s20 = smov 0.0   ;;  %vm1906_vm15 = vcmp.lt.s32.totalorder %v4430_v9, 48 }
  0x1b   :  { %v78_v24 = vstv %s3468_s29  ;;  %v70_v25 = vstv %s3466_s30  ;;  %s3477_s23 = sld [smem:[#allocation2 + $0x12]]  ;;  %s3478_s24 = sld [smem:[#allocation2 + $0x14]] }
  0x1c   :  { %v81_v26 = vstv %s3469_s5  ;;  %v85_v32 = vstv %s3470_s6 }
  0x1d   :  { %v74_v33 = vstv %s3467_s7  ;;  %v97_v40 = vstv %s3472_s8  ;;  %s3479_s7 = sld [smem:[#allocation2 + $0x13]]  ;;  %s3480_s8 = sld [smem:[#allocation2 + $0x15]] }
  0x1e   :  { %v108_v41 = vstv %s3475_s9  ;;  %v94_v42 = vstv %s3471_s10  ;;  %s3481_s10 = sld [smem:[#allocation2 + $0x16]] }
  0x1f   :  { %v105_v43 = vstv %s3474_s11  ;;  %v101_v50 = vstv %s3473_s12  ;;  %s3482_s11 = sld [smem:[#allocation2 + $0x17]]  ;;  %s3483_s12 = sld [smem:[#allocation2 + $0x18]] }
  0x20   :  { %v112_v53 = vstv %s3476_s13 }
  0x84   :  { %v36_v2 = vpop.permute.xlu0 %35 }
  0x85   :  { %v41_v10 = vmul.f32 %v40_v4, %v36_v2  ;;  %v52_v11 = vmul.f32 %v51_v5, %v36_v2 }
  0x88   :  { %v38_v8 = vpop.permute.xlu0 %37 }
  0x89   :  { %v44_v12 = vmul.f32 %v43_v6, %v38_v8  ;;  %v55_v13 = vmul.f32 %v54_v7, %v38_v8 }
  0x8b   :  { %v56_v15 = vadd.f32 %v55_v13, %v52_v11  ;;  %v45_v16 = vadd.f32 %v44_v12, %v41_v10 }
  0x8d   :  { %v48_v18 = vadd.f32 %v47_v14, %v45_v16  ;;  %v59_v20 = vadd.f32 %v58_v17, %v56_v15 }
  0x8f   :  { %v49_v19 = vsel %vm34_vm0, %v48_v18, 0.0  ;;  %v60_v21 = vsel %vm34_vm0, %v59_v20, 0.0  ;;  %vm2307_vm0 = vcmp.lt.s32.totalorder %v4430_v9, 50 }
  0x90   :  { %62 = vrot.lane.b32.xlu1 %v49_v19, %s4390_s21 }
  0x94   :  { %64 = vrot.lane.b32.xlu1 %v60_v21, %s4390_s21 }
 0x102   :  { %v63_v22 = vpop.permute.xlu1 %62 }
 0x103   :  { %v68_v28 = vmul.f32 %v67_v23, %v63_v22  ;;  %v79_v29 = vmul.f32 %v78_v24, %v63_v22 }
 0x106   :  { %v65_v27 = vpop.permute.xlu1 %64 }
 0x107   :  { %v71_v30 = vmul.f32 %v70_v25, %v65_v27  ;;  %v82_v31 = vmul.f32 %v81_v26, %v65_v27 }
 0x109   :  { %v72_v34 = vadd.f32 %v71_v30, %v68_v28  ;;  %v83_v35 = vadd.f32 %v82_v31, %v79_v29  ;;  %v143_v29 = vstv %s3477_s23  ;;  %s3485_s23 = sld [smem:[#allocation2 + $0x1a]] }
 0x10b   :  { %v86_v36 = vadd.f32 %v85_v32, %v83_v35  ;;  %v75_v37 = vadd.f32 %v74_v33, %v72_v34  ;;  %v151_v32 = vstv %s3478_s24 }
 0x10d   :  { %v87_v38 = vsel %vm61_vm1, %v86_v36, 0.0  ;;  %v76_v39 = vsel %vm61_vm1, %v75_v37, 0.0  ;;  %vm2332_vm1 = vcmp.lt.s32.totalorder %v4430_v9, 52 }
 0x10e   :  { %91 = vrot.lane.b32.xlu1 %v87_v38, %s4390_s21  ;;  %89 = vrot.lane.b32.xlu0 %v76_v39, %s4390_s21 }
 0x180   :  { %v92_v44 = vpop.permute.xlu1 %91  ;;  %v90_v45 = vpop.permute.xlu0 %89 }
 0x181   :  { %v98_v46 = vmul.f32 %v97_v40, %v92_v44  ;;  %v109_v47 = vmul.f32 %v108_v41, %v92_v44  ;;  %v95_v48 = vmul.f32 %v94_v42, %v90_v45  ;;  %v106_v49 = vmul.f32 %v105_v43, %v90_v45 }
 0x182   :  { %v187_v45 = vstv %s3479_s7  ;;  %s3487_s7 = sld [smem:[#allocation2 + $0xa3]] }
 0x183   :  { %v99_v51 = vadd.f32 %v98_v46, %v95_v48  ;;  %v110_v52 = vadd.f32 %v109_v47, %v106_v49  ;;  %v195_v48 = vstv %s3480_s8  ;;  %s3488_s8 = sld [smem:[#allocation2 + $0xa4]] }
 0x185   :  { %v102_v54 = vadd.f32 %v101_v50, %v99_v51  ;;  %v113_v56 = vadd.f32 %v112_v53, %v110_v52 }
 0x187   :  { %v103_v55 = vsel %vm88_vm2, %v102_v54, 0.0  ;;  %v4443_v58 = vsel %vm88_vm2, %v113_v56, 0.0 }
 0x188   :  { %117 = vadd.xlane.f32.xlu0 %v103_v55  ;;  %v126_v57 = vmul.f32 %v103_v55, %v103_v55  ;;  %v170_v59 = vmul.f32 %v4443_v58, %v4443_v58 }
 0x18a   :  { %127 = vadd.xlane.f32.xlu1 %v126_v57  ;;  %v209_v57 = vstv %s3481_s10 }
 0x18c   :  { %161 = vadd.xlane.f32.xlu0 %v4443_v58 }
 0x190   :  { %171 = vadd.xlane.f32.xlu0 %v170_v59  ;;  %v212_v59 = vstv %s3482_s11 }
 0x215   :  { %v118_v60 = vpop.xlane.xlu0 %117 }
 0x216   :  { %v119_v61 = vrot.slane %v118_v60, 4 }
 0x217   :  { %v128_v62 = vpop.xlane.xlu1 %127 }
 0x218   :  { %v120_v63 = vadd.f32 %v119_v61, %v118_v60  ;;  %v129_v0 = vrot.slane %v128_v62, 4 }
 0x219   :  { %v162_v11 = vpop.xlane.xlu0 %161 }
 0x21a   :  { %v130_v1 = vadd.f32 %v129_v0, %v128_v62  ;;  %v121_v2 = vrot.slane %v120_v63, 2  ;;  %v163_v13 = vrot.slane %v162_v11, 4 }
 0x21c   :  { %v122_v3 = vadd.f32 %v121_v2, %v120_v63  ;;  %v131_v4 = vrot.slane %v130_v1, 2  ;;  %v164_v15 = vadd.f32 %v163_v13, %v162_v11  ;;  %v216_v63 = vstv %s3483_s12 }
 0x21d   :  { %v172_v12 = vpop.xlane.xlu0 %171 }
 0x21e   :  { %v123_v5 = vrot.slane %v122_v3, 1  ;;  %v132_v6 = vadd.f32 %v131_v4, %v130_v1  ;;  %v173_v14 = vrot.slane %v172_v12, 4  ;;  %v165_v17 = vrot.slane %v164_v15, 2 }
 0x220   :  { %v124_v7 = vadd.f32 %v123_v5, %v122_v3  ;;  %v133_v8 = vrot.slane %v132_v6, 1  ;;  %v174_v16 = vadd.f32 %v173_v14, %v172_v12  ;;  %v166_v20 = vadd.f32 %v165_v17, %v164_v15 }
 0x222   :  { %3839 = vpush %v124_v7  ;;  %v134_v10 = vadd.f32 %v133_v8, %v132_v6  ;;  %v175_v19 = vrot.slane %v174_v16, 2  ;;  %v167_v22 = vrot.slane %v166_v20, 1 }
 0x224   :  { %3841 = vpush %v134_v10  ;;  %v176_v21 = vadd.f32 %v175_v19, %v174_v16  ;;  %v168_v25 = vadd.f32 %v167_v22, %v166_v20 }
 0x226   :  { %v177_v23 = vrot.slane %v176_v21, 1 }
 0x228   :  { %v178_v26 = vadd.f32 %v177_v23, %v176_v21 }
 0x253   :  { %s3840_s14 = spop %3839 }
 0x254   :  { %s136_s15 = smul.f32 0.0056818184, %s3840_s14 }
 0x255   :  { %s3842_s16 = spop %3841 }
 0x256   :  { %s138_s17 = smul.f32 %s136_s15, %s136_s15  ;;  %v141_v27 = vstv %s136_s15 }
 0x257   :  { %s137_s18 = smul.f32 0.0056818184, %s3842_s16  ;;  %v142_v28 = vsub.f32 %v103_v55, %v141_v27 }
 0x259   :  { %s139_s19 = ssub.f32 %s137_s18, %s138_s17  ;;  %v144_v30 = vmul.f32 %v143_v29, %v142_v28 }
 0x25b   :  { %s140_s22 = smax.f32 %s4391_s20, %s139_s19 }
 0x25c   :  { %s145_s2 = sadd.f32 1e-05, %s140_s22 }
 0x25e   :  { %v146_v18 = vstv %s145_s2  ;;  %s3484_s2 = sld [smem:[#allocation2 + $0x19]] }
 0x25f   :  { %4136 = vrsqrt.f32 %v146_v18 }
 0x264   :  { %v247_v23 = vstv %s3484_s2 }
 0x269   :  { %v4137_v24 = vpop.eup %4136 }
 0x26a   :  { %3843 = vpush %v4137_v24 }
 0x26b   :  { %3845 = vpush %v168_v25 }
 0x26c   :  { %3847 = vpush %v178_v26  ;;  %v255_v26 = vstv %s3485_s23  ;;  %s4392_s23 = smov 2  }
 0x29b   :  { %s3844_s25 = spop %3843 }
 0x29c   :  { %v149_v31 = vstv %s3844_s25  ;;  %s3846_s26 = spop %3845 }
 0x29d   :  { %v150_v33 = vmul.f32 %v149_v31, %v144_v30  ;;  %s180_s27 = smul.f32 0.0056818184, %s3846_s26  ;;  %s3848_s28 = spop %3847 }
 0x29e   :  { %s181_s0 = smul.f32 0.0056818184, %s3848_s28 }
 0x29f   :  { %v152_v34 = vadd.f32 %v151_v32, %v150_v33  ;;  %s182_s29 = smul.f32 %s180_s27, %s180_s27  ;;  %v185_v43 = vstv %s180_s27 }
 0x2a0   :  { %v186_v44 = vsub.f32 %v4443_v58, %v185_v43 }
 0x2a1   :  { %s183_s30 = ssub.f32 %s181_s0, %s182_s29  ;;  %v153_v35 = vsel %vm88_vm2, %v152_v34, 0.0 }
 0x2a2   :  { %v154_v36 = vmul.f32 0.5, %v153_v35  ;;  %v188_v46 = vmul.f32 %v187_v45, %v186_v44 }
 0x2a3   :  { %s184_s5 = smax.f32 %s4391_s20, %s183_s30 }
 0x2a4   :  { %s189_s6 = sadd.f32 1e-05, %s184_s5  ;;  %4138 = vtanh.f32 %v154_v36 }
 0x2a6   :  { %v190_v37 = vstv %s189_s6  ;;  %s3486_s6 = sld [smem:[#allocation2 + $0xa2]] }
 0x2a7   :  { %4140 = vrsqrt.f32 %v190_v37 }
 0x2ae   :  { %v4139_v38 = vpop.eup %4138 }
 0x2af   :  { %v156_v39 = vmul.f32 0.5, %v4139_v38 }
 0x2b1   :  { %v4141_v40 = vpop.eup %4140  ;;  %v157_v41 = vadd.f32 0.5, %v156_v39 }
 0x2b2   :  { %3849 = vpush %v4141_v40 }
 0x2b3   :  { %v158_v42 = vmul.f32 %v157_v41, %v153_v35 }
 0x2b5   :  { %204 = vrot.lane.b32.xlu1 %v158_v42, %s4390_s21 }
 0x2e3   :  { %s3850_s9 = spop %3849 }
 0x2e4   :  { %v193_v47 = vstv %s3850_s9  ;;  %s3489_s9 = sld [smem:[#allocation2 + $0xa5]] }
 0x2e5   :  { %v194_v49 = vmul.f32 %v193_v47, %v188_v46 }
 0x2e7   :  { %v196_v50 = vadd.f32 %v195_v48, %v194_v49 }
 0x2e9   :  { %v197_v51 = vsel %vm88_vm2, %v196_v50, 0.0  ;;  %vm2359_vm2 = vcmp.lt.s32.totalorder %v4430_v9, 54 }
 0x2ea   :  { %v198_v52 = vmul.f32 0.5, %v197_v51 }
 0x2ec   :  { %4142 = vtanh.f32 %v198_v52 }
 0x2f6   :  { %v4143_v53 = vpop.eup %4142 }
 0x2f7   :  { %v200_v54 = vmul.f32 0.5, %v4143_v53 }
 0x2f9   :  { %v201_v55 = vadd.f32 0.5, %v200_v54  ;;  %v291_v54 = vstv %s3486_s6 }
 0x2fb   :  { %v202_v56 = vmul.f32 %v201_v55, %v197_v51 }
 0x2fd   :  { %206 = vrot.lane.b32.xlu0 %v202_v56, %s4390_s21 }
 0x327   :  { %v205_v58 = vpop.permute.xlu1 %204 }
 0x328   :  { %v210_v61 = vmul.f32 %v209_v57, %v205_v58  ;;  %v299_v57 = vstv %s3487_s7 }
 0x36f   :  { %v207_v60 = vpop.permute.xlu0 %206 }
 0x370   :  { %v213_v62 = vmul.f32 %v212_v59, %v207_v60  ;;  %v303_v60 = vstv %s3488_s8 }
 0x372   :  { %v214_v0 = vadd.f32 %v213_v62, %v210_v61  ;;  %v306_v62 = vstv %s3489_s9 }
 0x374   :  { %v217_v1 = vadd.f32 %v216_v63, %v214_v0 }
 0x376   :  { %v218_v2 = vsel %vm203_vm3, %v217_v1, 0.0 }
 0x377   :  { %221 = vadd.xlane.f32.xlu1 %v218_v2  ;;  %v230_v3 = vmul.f32 %v218_v2, %v218_v2 }
 0x379   :  { %231 = vadd.xlane.f32.xlu0 %v230_v3 }
 0x404   :  { %v222_v4 = vpop.xlane.xlu1 %221 }
 0x405   :  { %v223_v5 = vrot.slane %v222_v4, 4 }
 0x406   :  { %v232_v6 = vpop.xlane.xlu0 %231 }
 0x407   :  { %v224_v7 = vadd.f32 %v223_v5, %v222_v4  ;;  %v233_v8 = vrot.slane %v232_v6, 4 }
 0x409   :  { %v234_v10 = vadd.f32 %v233_v8, %v232_v6  ;;  %v225_v11 = vrot.slane %v224_v7, 2 }
 0x40b   :  { %v226_v12 = vadd.f32 %v225_v11, %v224_v7  ;;  %v235_v13 = vrot.slane %v234_v10, 2 }
 0x40d   :  { %v227_v14 = vrot.slane %v226_v12, 1  ;;  %v236_v15 = vadd.f32 %v235_v13, %v234_v10 }
 0x40f   :  { %v228_v16 = vadd.f32 %v227_v14, %v226_v12  ;;  %v237_v17 = vrot.slane %v236_v15, 1 }
 0x411   :  { %3851 = vpush %v228_v16  ;;  %v238_v18 = vadd.f32 %v237_v17, %v236_v15 }
 0x413   :  { %3853 = vpush %v238_v18 }
 0x442   :  { %s3852_s13 = spop %3851 }
 0x443   :  { %s240_s14 = smul.f32 0.0052083335, %s3852_s13 }
 0x444   :  { %s3854_s15 = spop %3853 }
 0x445   :  { %s242_s16 = smul.f32 %s240_s14, %s240_s14  ;;  %v245_v21 = vstv %s240_s14 }
 0x446   :  { %s241_s17 = smul.f32 0.0052083335, %s3854_s15  ;;  %v246_v22 = vsub.f32 %v218_v2, %v245_v21 }
 0x448   :  { %s243_s18 = ssub.f32 %s241_s17, %s242_s16  ;;  %v248_v24 = vmul.f32 %v247_v23, %v246_v22 }
 0x44a   :  { %s244_s19 = smax.f32 %s4391_s20, %s243_s18 }
 0x44b   :  { %s249_s22 = sadd.f32 1e-05, %s244_s19  ;;  %s3490_s19 = sld [smem:[#allocation2 + $0xa6]] }
 0x44d   :  { %v250_v19 = vstv %s249_s22  ;;  %s3491_s22 = sld [smem:[#allocation2 + $0xa7]] }
 0x44e   :  { %4144 = vrsqrt.f32 %v250_v19 }
 0x451   :  { %v337_v22 = vstv %s3490_s19 }
 0x458   :  { %v4145_v20 = vpop.eup %4144 }
 0x459   :  { %3855 = vpush %v4145_v20 }
 0x48a   :  { %s3856_s24 = spop %3855 }
 0x48b   :  { %v253_v25 = vstv %s3856_s24  ;;  %s4393_s24 = smov 127  }
 0x48c   :  { %v254_v27 = vmul.f32 %v253_v25, %v248_v24  ;;  %v345_v25 = vstv %s3491_s22 }
 0x48e   :  { %v256_v28 = vadd.f32 %v255_v26, %v254_v27 }
 0x490   :  { %v257_v29 = vsel %vm203_vm3, %v256_v28, 0.0 }
 0x491   :  { %v258_v30 = vmul.f32 0.5, %v257_v29 }
 0x493   :  { %4146 = vtanh.f32 %v258_v30 }
 0x49d   :  { %v4147_v31 = vpop.eup %4146 }
 0x49e   :  { %v260_v32 = vmul.f32 0.5, %v4147_v31 }
 0x4a0   :  { %v261_v33 = vadd.f32 0.5, %v260_v32 }
 0x4a2   :  { %v4463_v34 = vmul.f32 %v261_v33, %v257_v29 }
 0x4a4   :  { %265 = vadd.xlane.f32.xlu1 %v4463_v34  ;;  %v274_v35 = vmul.f32 %v4463_v34, %v4463_v34 }
 0x4a6   :  { %275 = vadd.xlane.f32.xlu0 %v274_v35 }
 0x531   :  { %v266_v36 = vpop.xlane.xlu1 %265 }
 0x532   :  { %v267_v37 = vrot.slane %v266_v36, 4 }
 0x533   :  { %v276_v38 = vpop.xlane.xlu0 %275 }
 0x534   :  { %v268_v39 = vadd.f32 %v267_v37, %v266_v36  ;;  %v277_v40 = vrot.slane %v276_v38, 4 }
 0x536   :  { %v278_v41 = vadd.f32 %v277_v40, %v276_v38  ;;  %v269_v42 = vrot.slane %v268_v39, 2 }
 0x538   :  { %v270_v43 = vadd.f32 %v269_v42, %v268_v39  ;;  %v279_v44 = vrot.slane %v278_v41, 2 }
 0x53a   :  { %v271_v45 = vrot.slane %v270_v43, 1  ;;  %v280_v46 = vadd.f32 %v279_v44, %v278_v41 }
 0x53c   :  { %v272_v47 = vadd.f32 %v271_v45, %v270_v43  ;;  %v281_v48 = vrot.slane %v280_v46, 1 }
 0x53e   :  { %3857 = vpush %v272_v47  ;;  %v282_v49 = vadd.f32 %v281_v48, %v280_v46 }
 0x540   :  { %3859 = vpush %v282_v49 }
 0x56f   :  { %s3858_s25 = spop %3857 }
 0x570   :  { %s284_s26 = smul.f32 0.0052083335, %s3858_s25  ;;  %s4394_s25 = smov 126  }
 0x571   :  { %s3860_s27 = spop %3859 }
 0x572   :  { %s286_s28 = smul.f32 %s284_s26, %s284_s26  ;;  %v289_v52 = vstv %s284_s26  ;;  %s3492_s26 = sld [smem:[#allocation2 + $0xa8]] }
 0x573   :  { %s285_s0 = smul.f32 0.0052083335, %s3860_s27  ;;  %v290_v53 = vsub.f32 %v4463_v34, %v289_v52  ;;  %s3494_s27 = sld [smem:[#allocation2 + $0xaa]] }
 0x575   :  { %s287_s29 = ssub.f32 %s285_s0, %s286_s28  ;;  %v292_v55 = vmul.f32 %v291_v54, %v290_v53  ;;  %s3493_s28 = sld [smem:[#allocation2 + $0xa9]] }
 0x576   :  { %s3495_s0 = sld [smem:[#allocation2 + $0xab]] }
 0x577   :  { %s288_s30 = smax.f32 %s4391_s20, %s287_s29  ;;  %s3496_s29 = sld [smem:[#allocation2 + $0xac]] }
 0x578   :  { %s293_s5 = sadd.f32 1e-05, %s288_s30  ;;  %v363_v36 = vstv %s3492_s26  ;;  %s3497_s30 = sld [smem:[#allocation2 + $0xad]] }
 0x579   :  { %v359_v35 = vstv %s3494_s27 }
 0x57a   :  { %v294_v50 = vstv %s293_s5 }
 0x57b   :  { %4148 = vrsqrt.f32 %v294_v50  ;;  %v368_v37 = vstv %s3493_s28 }
 0x57c   :  { %v373_v42 = vstv %s3495_s0 }
 0x57d   :  { %v378_v48 = vstv %s3496_s29  ;;  %s3502_s29 = sld [smem:[#allocation2 + $0xb2]] }
 0x57e   :  { %v381_v52 = vstv %s3497_s30  ;;  %s3503_s30 = sld [smem:[#allocation2 + $0xb3]] }
 0x585   :  { %v4149_v51 = vpop.eup %4148 }
 0x586   :  { %3861 = vpush %v4149_v51 }
 0x5b7   :  { %s3862_s10 = spop %3861 }
 0x5b8   :  { %v297_v56 = vstv %s3862_s10 }
 0x5b9   :  { %v298_v58 = vmul.f32 %v297_v56, %v292_v55 }
 0x5bb   :  { %v300_v59 = vadd.f32 %v299_v57, %v298_v58 }
 0x5bd   :  { %v301_v61 = vsel %vm203_vm3, %v300_v59, 0.0 }
 0x5be   :  { %v304_v63 = vmul.f32 %v303_v60, %v301_v61 }
 0x5c0   :  { %v307_v0 = vadd.f32 %v306_v62, %v304_v63 }
 0x5c2   :  { %v308_v1 = vsel %vm203_vm3, %v307_v0, 0.0 }
 0x5c3   :  { %311 = vadd.xlane.f32.xlu1 %v308_v1  ;;  %v320_v2 = vmul.f32 %v308_v1, %v308_v1 }
 0x5c5   :  { %321 = vadd.xlane.f32.xlu0 %v320_v2 }
 0x650   :  { %v312_v3 = vpop.xlane.xlu1 %311 }
 0x651   :  { %v313_v4 = vrot.slane %v312_v3, 4 }
 0x652   :  { %v322_v5 = vpop.xlane.xlu0 %321 }
 0x653   :  { %v314_v6 = vadd.f32 %v313_v4, %v312_v3  ;;  %v323_v7 = vrot.slane %v322_v5, 4 }
 0x655   :  { %v324_v8 = vadd.f32 %v323_v7, %v322_v5  ;;  %v315_v10 = vrot.slane %v314_v6, 2 }
 0x657   :  { %v316_v11 = vadd.f32 %v315_v10, %v314_v6  ;;  %v325_v12 = vrot.slane %v324_v8, 2 }
 0x659   :  { %v317_v13 = vrot.slane %v316_v11, 1  ;;  %v326_v14 = vadd.f32 %v325_v12, %v324_v8 }
 0x65b   :  { %v318_v15 = vadd.f32 %v317_v13, %v316_v11  ;;  %v327_v16 = vrot.slane %v326_v14, 1 }
 0x65d   :  { %3863 = vpush %v318_v15  ;;  %v328_v17 = vadd.f32 %v327_v16, %v326_v14 }
 0x65f   :  { %3865 = vpush %v328_v17 }
 0x68e   :  { %s3864_s11 = spop %3863 }
 0x68f   :  { %s330_s12 = smul.f32 0.0052083335, %s3864_s11 }
 0x690   :  { %s3866_s13 = spop %3865 }
 0x691   :  { %s332_s14 = smul.f32 %s330_s12, %s330_s12  ;;  %v335_v20 = vstv %s330_s12 }
 0x692   :  { %s331_s15 = smul.f32 0.0052083335, %s3866_s13  ;;  %v336_v21 = vsub.f32 %v308_v1, %v335_v20  ;;  %s3498_s13 = sld [smem:[#allocation2 + $0xae]] }
 0x694   :  { %s333_s16 = ssub.f32 %s331_s15, %s332_s14  ;;  %v338_v23 = vmul.f32 %v337_v22, %v336_v21  ;;  %s3499_s14 = sld [smem:[#allocation2 + $0xaf]] }
 0x696   :  { %s334_s17 = smax.f32 %s4391_s20, %s333_s16  ;;  %s3500_s16 = sld [smem:[#allocation2 + $0xb0]] }
 0x697   :  { %s339_s18 = sadd.f32 1e-05, %s334_s17  ;;  %s3501_s17 = sld [smem:[#allocation2 + $0xb1]] }
 0x698   :  { %v412_v12 = vstv %s3498_s13  ;;  %s3511_s13 = sld [smem:[#allocation2 + $0x115]] }
 0x699   :  { %v340_v18 = vstv %s339_s18 }
 0x69a   :  { %4150 = vrsqrt.f32 %v340_v18  ;;  %v420_v15 = vstv %s3499_s14 }
 0x6a4   :  { %v4151_v19 = vpop.eup %4150 }
 0x6a5   :  { %3867 = vpush %v4151_v19 }
 0x6d6   :  { %s3868_s2 = spop %3867 }
 0x6d7   :  { %v343_v24 = vstv %s3868_s2 }
 0x6d8   :  { %v344_v26 = vmul.f32 %v343_v24, %v338_v23  ;;  %v429_v23 = vstv %s3500_s16 }
 0x6da   :  { %v346_v27 = vadd.f32 %v345_v25, %v344_v26  ;;  %v432_v25 = vstv %s3501_s17 }
 0x6dc   :  { %v347_v28 = vsel %vm203_vm3, %v346_v27, 0.0 }
 0x6dd   :  { %v348_v29 = vmul.f32 0.5, %v347_v28 }
 0x6df   :  { %4152 = vtanh.f32 %v348_v29 }
 0x6e9   :  { %v4153_v30 = vpop.eup %4152 }
 0x6ea   :  { %v350_v31 = vmul.f32 0.5, %v4153_v30 }
 0x6ec   :  { %v351_v32 = vadd.f32 0.5, %v350_v31 }
 0x6ee   :  { %v352_v33 = vmul.f32 %v351_v32, %v347_v28 }
 0x6f0   :  { %366 = vrot.lane.b32.xlu0 %v352_v33, %s4390_s21  ;;  %361 = vrot.lane.b32.xlu1 %v352_v33, %s4392_s23  ;;  %v360_v40 = vmul.f32 %v359_v35, %v352_v33 }
 0x6f4   :  { %371 = vrot.lane.b32.xlu1 %v352_v33, %s4393_s24 }
 0x6f8   :  { %376 = vrot.lane.b32.xlu1 %v352_v33, %s4394_s25 }
 0x762   :  { %v367_v38 = vpop.permute.xlu0 %366  ;;  %v362_v39 = vpop.permute.xlu1 %361 }
 0x763   :  { %v364_v41 = vmul.f32 %v363_v36, %v362_v39  ;;  %v369_v43 = vmul.f32 %v368_v37, %v367_v38 }
 0x765   :  { %v365_v44 = vadd.f32 %v364_v41, %v360_v40 }
 0x766   :  { %v372_v45 = vpop.permute.xlu1 %371 }
 0x767   :  { %v370_v46 = vadd.f32 %v369_v43, %v365_v44  ;;  %v374_v47 = vmul.f32 %v373_v42, %v372_v45 }
 0x769   :  { %v375_v50 = vadd.f32 %v374_v47, %v370_v46 }
 0x76a   :  { %v377_v49 = vpop.permute.xlu1 %376 }
 0x76b   :  { %v379_v51 = vmul.f32 %v378_v48, %v377_v49  ;;  %v463_v49 = vstv %s3502_s29  ;;  %s3515_s29 = sld [smem:[#allocation2 + $0x119]] }
 0x76d   :  { %v380_v53 = vadd.f32 %v379_v51, %v375_v50 }
 0x76f   :  { %v382_v54 = vadd.f32 %v381_v52, %v380_v53  ;;  %v471_v52 = vstv %s3503_s30  ;;  %s3516_s30 = sld [smem:[#allocation2 + $0x11a]] }
 0x771   :  { %v383_v55 = vsel %vm203_vm3, %v382_v54, 0.0 }
 0x772   :  { %386 = vadd.xlane.f32.xlu0 %v383_v55  ;;  %v395_v56 = vmul.f32 %v383_v55, %v383_v55 }
 0x774   :  { %396 = vadd.xlane.f32.xlu1 %v395_v56 }
 0x7ff   :  { %v387_v57 = vpop.xlane.xlu0 %386 }
 0x800   :  { %v388_v58 = vrot.slane %v387_v57, 4 }
 0x801   :  { %v397_v59 = vpop.xlane.xlu1 %396 }
 0x802   :  { %v389_v60 = vadd.f32 %v388_v58, %v387_v57  ;;  %v398_v61 = vrot.slane %v397_v59, 4 }
 0x804   :  { %v399_v62 = vadd.f32 %v398_v61, %v397_v59  ;;  %v390_v63 = vrot.slane %v389_v60, 2 }
 0x806   :  { %v391_v0 = vadd.f32 %v390_v63, %v389_v60  ;;  %v400_v1 = vrot.slane %v399_v62, 2 }
 0x808   :  { %v392_v2 = vrot.slane %v391_v0, 1  ;;  %v401_v3 = vadd.f32 %v400_v1, %v399_v62 }
 0x80a   :  { %v393_v4 = vadd.f32 %v392_v2, %v391_v0  ;;  %v402_v5 = vrot.slane %v401_v3, 1 }
 0x80c   :  { %3869 = vpush %v393_v4  ;;  %v403_v6 = vadd.f32 %v402_v5, %v401_v3 }
 0x80e   :  { %3871 = vpush %v403_v6 }
 0x83d   :  { %s3870_s5 = spop %3869 }
 0x83e   :  { %s405_s6 = smul.f32 0.0052083335, %s3870_s5 }
 0x83f   :  { %s3872_s7 = spop %3871 }
 0x840   :  { %s407_s8 = smul.f32 %s405_s6, %s405_s6  ;;  %v410_v10 = vstv %s405_s6  ;;  %s3504_s6 = sld [smem:[#allocation2 + $0x10e]] }
 0x841   :  { %s406_s9 = smul.f32 0.0052083335, %s3872_s7  ;;  %v411_v11 = vsub.f32 %v383_v55, %v410_v10  ;;  %s3506_s7 = sld [smem:[#allocation2 + $0x110]] }
 0x843   :  { %s408_s10 = ssub.f32 %s406_s9, %s407_s8  ;;  %v413_v13 = vmul.f32 %v412_v12, %v411_v11  ;;  %s3505_s8 = sld [smem:[#allocation2 + $0x10f]] }
 0x844   :  { %s3507_s9 = sld [smem:[#allocation2 + $0x111]] }
 0x845   :  { %s409_s11 = smax.f32 %s4391_s20, %s408_s10  ;;  %s3508_s10 = sld [smem:[#allocation2 + $0x112]] }
 0x846   :  { %s414_s12 = sadd.f32 1e-05, %s409_s11  ;;  %v486_v59 = vstv %s3504_s6  ;;  %s3509_s11 = sld [smem:[#allocation2 + $0x113]] }
 0x847   :  { %v482_v58 = vstv %s3506_s7  ;;  %s3520_s6 = sld [smem:[#allocation2 + $0x11d]]  ;;  %s3521_s7 = sld [smem:[#allocation2 + $0x11f]] }
 0x848   :  { %v415_v7 = vstv %s414_s12  ;;  %s3510_s12 = sld [smem:[#allocation2 + $0x114]] }
 0x849   :  { %4154 = vrsqrt.f32 %v415_v7 }
 0x84a   :  { %v496_v0 = vstv %s3507_s9  ;;  %s3519_s9 = sld [smem:[#allocation2 + $0x11e]] }
 0x84b   :  { %v501_v6 = vstv %s3508_s10 }
 0x84c   :  { %v504_v11 = vstv %s3509_s11 }
 0x853   :  { %v4155_v8 = vpop.eup %4154 }
 0x854   :  { %3873 = vpush %v4155_v8 }
 0x885   :  { %s3874_s15 = spop %3873 }
 0x886   :  { %v418_v14 = vstv %s3874_s15 }
 0x887   :  { %v419_v16 = vmul.f32 %v418_v14, %v413_v13  ;;  %v508_v14 = vstv %s3510_s12  ;;  %s3522_s12 = sld [smem:[#allocation2 + $0x1b]] }
 0x889   :  { %v421_v17 = vadd.f32 %v420_v15, %v419_v16  ;;  %v511_v16 = vstv %s3511_s13  ;;  %s3525_s13 = sld [smem:[#allocation2 + $0x1d]] }
 0x88b   :  { %v422_v18 = vsel %vm203_vm3, %v421_v17, 0.0 }
 0x88c   :  { %v423_v19 = vmul.f32 0.5, %v422_v18 }
 0x88e   :  { %4156 = vtanh.f32 %v423_v19 }
 0x898   :  { %v4157_v20 = vpop.eup %4156 }
 0x899   :  { %v425_v21 = vmul.f32 0.5, %v4157_v20 }
 0x89b   :  { %v426_v22 = vadd.f32 0.5, %v425_v21 }
 0x89d   :  { %v427_v24 = vmul.f32 %v426_v22, %v422_v18 }
 0x89f   :  { %v430_v26 = vmul.f32 %v429_v23, %v427_v24 }
 0x8a1   :  { %v433_v27 = vadd.f32 %v432_v25, %v430_v26 }
 0x8a3   :  { %v434_v28 = vsel %vm203_vm3, %v433_v27, 0.0 }
 0x8a4   :  { %437 = vadd.xlane.f32.xlu0 %v434_v28  ;;  %v446_v29 = vmul.f32 %v434_v28, %v434_v28 }
 0x8a8   :  { %447 = vadd.xlane.f32.xlu0 %v446_v29 }
 0x931   :  { %v438_v30 = vpop.xlane.xlu0 %437 }
 0x932   :  { %v439_v31 = vrot.slane %v438_v30, 4 }
 0x934   :  { %v440_v32 = vadd.f32 %v439_v31, %v438_v30 }
 0x935   :  { %v448_v33 = vpop.xlane.xlu0 %447 }
 0x936   :  { %v449_v35 = vrot.slane %v448_v33, 4  ;;  %v441_v36 = vrot.slane %v440_v32, 2 }
 0x938   :  { %v450_v37 = vadd.f32 %v449_v35, %v448_v33  ;;  %v442_v38 = vadd.f32 %v441_v36, %v440_v32 }
 0x93a   :  { %v443_v39 = vrot.slane %v442_v38, 1  ;;  %v451_v40 = vrot.slane %v450_v37, 2 }
 0x93c   :  { %v444_v41 = vadd.f32 %v443_v39, %v442_v38  ;;  %v452_v42 = vadd.f32 %v451_v40, %v450_v37 }
 0x93e   :  { %3875 = vpush %v444_v41  ;;  %v453_v43 = vrot.slane %v452_v42, 1 }
 0x940   :  { %v454_v44 = vadd.f32 %v453_v43, %v452_v42 }
 0x942   :  { %3877 = vpush %v454_v44 }
 0x96f   :  { %s3876_s18 = spop %3875 }
 0x970   :  { %s456_s19 = smul.f32 0.0052083335, %s3876_s18 }
 0x972   :  { %s458_s22 = smul.f32 %s456_s19, %s456_s19  ;;  %v461_v47 = vstv %s456_s19 }
 0x973   :  { %s3878_s2 = spop %3877  ;;  %v462_v48 = vsub.f32 %v434_v28, %v461_v47 }
 0x974   :  { %s457_s26 = smul.f32 0.0052083335, %s3878_s2 }
 0x975   :  { %v464_v50 = vmul.f32 %v463_v49, %v462_v48 }
 0x976   :  { %s459_s27 = ssub.f32 %s457_s26, %s458_s22  ;;  %s3512_s26 = sld [smem:[#allocation2 + $0x116]] }
 0x978   :  { %s460_s28 = smax.f32 %s4391_s20, %s459_s27  ;;  %s3513_s27 = sld [smem:[#allocation2 + $0x117]] }
 0x979   :  { %s465_s0 = sadd.f32 1e-05, %s460_s28 }
 0x97b   :  { %v466_v45 = vstv %s465_s0  ;;  %s3514_s0 = sld [smem:[#allocation2 + $0x118]] }
 0x97c   :  { %4158 = vrsqrt.f32 %v466_v45  ;;  %v542_v40 = vstv %s3512_s26  ;;  %s3533_s26 = sld [smem:[#allocation2 + $0x26]] }
 0x97e   :  { %v550_v43 = vstv %s3513_s27  ;;  %s3530_s27 = sld [smem:[#allocation2 + $0x25]] }
 0x986   :  { %v4159_v46 = vpop.eup %4158 }
 0x987   :  { %3879 = vpush %v4159_v46 }
 0x9b8   :  { %s3880_s5 = spop %3879 }
 0x9b9   :  { %v469_v51 = vstv %s3880_s5  ;;  %s3517_s5 = sld [smem:[#allocation2 + $0x11b]] }
 0x9ba   :  { %v470_v53 = vmul.f32 %v469_v51, %v464_v50 }
 0x9bc   :  { %v472_v54 = vadd.f32 %v471_v52, %v470_v53  ;;  %v562_v52 = vstv %s3515_s29  ;;  %v566_v53 = vstv %s3514_s0  ;;  %s3538_s0 = sld [smem:[#allocation2 + $0x2a]]  ;;  %s3534_s29 = sld [smem:[#allocation2 + $0x27]] }
 0x9be   :  { %v473_v55 = vsel %vm203_vm3, %v472_v54, 0.0  ;;  %v571_v54 = vstv %s3516_s30  ;;  %s3537_s30 = sld [smem:[#allocation2 + $0x29]] }
 0x9bf   :  { %v474_v56 = vmul.f32 0.1, %v473_v55 }
 0x9c1   :  { %v4492_v57 = vadd.f32 %v474_v56, %v4463_v34  ;;  %v491_v34 = vstv %s3505_s8  ;;  %s3518_s8 = sld [smem:[#allocation2 + $0x11c]] }
 0x9c3   :  { %489 = vrot.lane.b32.xlu0 %v4492_v57, %s4390_s21  ;;  %484 = vrot.lane.b32.xlu1 %v4492_v57, %s4392_s23  ;;  %v483_v62 = vmul.f32 %v482_v58, %v4492_v57 }
 0x9c7   :  { %494 = vrot.lane.b32.xlu1 %v4492_v57, %s4393_s24 }
 0x9cb   :  { %499 = vrot.lane.b32.xlu1 %v4492_v57, %s4394_s25 }
 0xa35   :  { %v4502_v60 = vpop.permute.xlu0 %489  ;;  %v485_v61 = vpop.permute.xlu1 %484 }
 0xa36   :  { %v487_v63 = vmul.f32 %v486_v59, %v485_v61  ;;  %v492_v1 = vmul.f32 %v491_v34, %v4502_v60 }
 0xa38   :  { %v488_v2 = vadd.f32 %v487_v63, %v483_v62  ;;  %v574_v62 = vstv %s3517_s5  ;;  %s3536_s5 = sld [smem:[#allocation2 + $0x2b]] }
 0xa39   :  { %v495_v3 = vpop.permute.xlu1 %494 }
 0xa3a   :  { %v493_v4 = vadd.f32 %v492_v1, %v488_v2  ;;  %v497_v5 = vmul.f32 %v496_v0, %v495_v3 }
 0xa3c   :  { %v498_v8 = vadd.f32 %v497_v5, %v493_v4 }
 0xa3d   :  { %v500_v7 = vpop.permute.xlu1 %499 }
 0xa3e   :  { %v502_v10 = vmul.f32 %v501_v6, %v500_v7 }
 0xa40   :  { %v503_v12 = vadd.f32 %v502_v10, %v498_v8  ;;  %v591_v8 = vstv %s3520_s6  ;;  %s3539_s6 = sld [smem:[#allocation2 + $0x2c]] }
 0xa42   :  { %v505_v13 = vadd.f32 %v504_v11, %v503_v12  ;;  %v594_v11 = vstv %s3521_s7 }
 0xa44   :  { %v506_v15 = vsel %vm203_vm3, %v505_v13, 0.0 }
 0xa45   :  { %v509_v17 = vmul.f32 %v508_v14, %v506_v15 }
 0xa47   :  { %v512_v18 = vadd.f32 %v511_v16, %v509_v17  ;;  %v585_v16 = vstv %s3518_s8 }
 0xa49   :  { %v513_v19 = vsel %vm203_vm3, %v512_v18, 0.0  ;;  %v599_v18 = vld [vmem:[%s5012_s1] sm:$0xff] }
 0xa4a   :  { %516 = vadd.xlane.f32.xlu0 %v513_v19  ;;  %v525_v20 = vmul.f32 %v513_v19, %v513_v19 }
 0xa4c   :  { %526 = vadd.xlane.f32.xlu1 %v525_v20 }
 0xad7   :  { %v517_v21 = vpop.xlane.xlu0 %516 }
 0xad8   :  { %v518_v22 = vrot.slane %v517_v21, 4 }
 0xad9   :  { %v527_v23 = vpop.xlane.xlu1 %526 }
 0xada   :  { %v519_v24 = vadd.f32 %v518_v22, %v517_v21  ;;  %v528_v25 = vrot.slane %v527_v23, 4 }
 0xadc   :  { %v529_v26 = vadd.f32 %v528_v25, %v527_v23  ;;  %v520_v27 = vrot.slane %v519_v24, 2  ;;  %v618_v25 = vstv %s3525_s13 }
 0xade   :  { %v521_v28 = vadd.f32 %v520_v27, %v519_v24  ;;  %v530_v29 = vrot.slane %v529_v26, 2  ;;  %v607_v24 = vstv %s3522_s12 }
 0xae0   :  { %v522_v30 = vrot.slane %v521_v28, 1  ;;  %v531_v31 = vadd.f32 %v530_v29, %v529_v26  ;;  %v608_v29 = vmul.f32 %v607_v24, %v4502_v60 }
 0xae2   :  { %v523_v32 = vadd.f32 %v522_v30, %v521_v28  ;;  %v532_v33 = vrot.slane %v531_v31, 1  ;;  %v619_v30 = vmul.f32 %v618_v25, %v4502_v60 }
 0xae4   :  { %3881 = vpush %v523_v32  ;;  %v533_v35 = vadd.f32 %v532_v33, %v531_v31 }
 0xae6   :  { %3883 = vpush %v533_v35 }
 0xb15   :  { %s3882_s14 = spop %3881 }
 0xb16   :  { %s535_s15 = smul.f32 0.0052083335, %s3882_s14  ;;  %s3523_s14 = sld [smem:[#allocation2 + $0x1c]] }
 0xb17   :  { %s3884_s16 = spop %3883 }
 0xb18   :  { %s537_s17 = smul.f32 %s535_s15, %s535_s15  ;;  %v540_v38 = vstv %s535_s15  ;;  %s3526_s15 = sld [smem:[#allocation2 + $0x1e]] }
 0xb19   :  { %s536_s18 = smul.f32 0.0052083335, %s3884_s16  ;;  %v541_v39 = vsub.f32 %v513_v19, %v540_v38  ;;  %s3527_s16 = sld [smem:[#allocation2 + $0x20]] }
 0xb1b   :  { %s538_s19 = ssub.f32 %s536_s18, %s537_s17  ;;  %v543_v41 = vmul.f32 %v542_v40, %v541_v39  ;;  %s3524_s17 = sld [smem:[#allocation2 + $0x1f]] }
 0xb1c   :  { %v610_v26 = vstv %s3523_s14  ;;  %s3529_s18 = sld [smem:[#allocation2 + $0x22]] }
 0xb1d   :  { %s539_s22 = smax.f32 %s4391_s20, %s538_s19  ;;  %s3532_s19 = sld [smem:[#allocation2 + $0x24]] }
 0xb1e   :  { %s544_s2 = sadd.f32 1e-05, %s539_s22  ;;  %v621_v27 = vstv %s3526_s15  ;;  %s3528_s22 = sld [smem:[#allocation2 + $0x21]] }
 0xb1f   :  { %v625_v33 = vstv %s3527_s16  ;;  %s3540_s15 = sld [smem:[#allocation2 + $0x2d]]  ;;  %s3541_s16 = sld [smem:[#allocation2 + $0x2f]] }
 0xb20   :  { %v545_v36 = vstv %s544_s2  ;;  %s3531_s2 = sld [smem:[#allocation2 + $0x23]] }
 0xb21   :  { %4160 = vrsqrt.f32 %v545_v36  ;;  %v614_v35 = vstv %s3524_s17 }
 0xb22   :  { %v637_v60 = vstv %s3529_s18 }
 0xb2b   :  { %v4161_v37 = vpop.eup %4160 }
 0xb2c   :  { %3885 = vpush %v4161_v37 }
 0xb5d   :  { %s3886_s28 = spop %3885 }
 0xb5e   :  { %v548_v42 = vstv %s3886_s28  ;;  %s3535_s28 = sld [smem:[#allocation2 + $0x28]] }
 0xb5f   :  { %v549_v44 = vmul.f32 %v548_v42, %v543_v41  ;;  %v648_v42 = vstv %s3532_s19 }
 0xb61   :  { %v551_v45 = vadd.f32 %v550_v43, %v549_v44  ;;  %v634_v43 = vstv %s3528_s22  ;;  %v645_v44 = vstv %s3531_s2 }
 0xb63   :  { %v552_v46 = vsel %vm203_vm3, %v551_v45, 0.0 }
 0xb64   :  { %v553_v47 = vmul.f32 0.5, %v552_v46 }
 0xb66   :  { %4162 = vtanh.f32 %v553_v47 }
 0xb70   :  { %v4163_v48 = vpop.eup %4162 }
 0xb71   :  { %v555_v49 = vmul.f32 0.5, %v4163_v48 }
 0xb73   :  { %v556_v50 = vadd.f32 0.5, %v555_v49 }
 0xb75   :  { %v557_v51 = vmul.f32 %v556_v50, %v552_v46 }
 0xb77   :  { %569 = vrot.lane.b32.xlu1 %v557_v51, %s4393_s24  ;;  %564 = vrot.lane.b32.xlu0 %v557_v51, %s4390_s21  ;;  %v563_v58 = vmul.f32 %v562_v52, %v557_v51  ;;  %v652_v51 = vstv %s3533_s26  ;;  %v641_v52 = vstv %s3530_s27 }
 0xbe9   :  { %v570_v55 = vpop.permute.xlu1 %569  ;;  %v565_v56 = vpop.permute.xlu0 %564 }
 0xbea   :  { %v567_v59 = vmul.f32 %v566_v53, %v565_v56  ;;  %v572_v34 = vmul.f32 %v571_v54, %v570_v55 }
 0xbec   :  { %v568_v61 = vadd.f32 %v567_v59, %v563_v58 }
 0xbee   :  { %v573_v63 = vadd.f32 %v572_v34, %v568_v61  ;;  %v664_v34 = vstv %s3535_s28  ;;  %v675_v61 = vstv %s3538_s0 }
 0xbf0   :  { %v575_v0 = vadd.f32 %v574_v62, %v573_v63  ;;  %v661_v62 = vstv %s3534_s29  ;;  %v672_v63 = vstv %s3537_s30  ;;  %s3542_s29 = sld [smem:[#allocation2 + $0x2e]]  ;;  %s3543_s30 = sld [smem:[#allocation2 + $0x30]] }
 0xbf2   :  { %v576_v1 = vsel %vm203_vm3, %v575_v0, 0.0 }
 0xbf3   :  { %v577_v2 = vmul.f32 0.1, %v576_v1 }
 0xbf5   :  { %v578_v3 = vadd.f32 %v577_v2, %v4492_v57  ;;  %v588_v57 = vstv %s3519_s9 }
 0xbf7   :  { %v579_v4 = vmul.f32 0.5, %v578_v3 }
 0xbf9   :  { %4164 = vtanh.f32 %v579_v4 }
 0xc03   :  { %v4165_v5 = vpop.eup %4164 }
 0xc04   :  { %v581_v6 = vmul.f32 0.5, %v4165_v5 }
 0xc06   :  { %v582_v7 = vadd.f32 0.5, %v581_v6  ;;  %v668_v6 = vstv %s3536_s5 }
 0xc08   :  { %v583_v10 = vmul.f32 %v582_v7, %v578_v3  ;;  %v679_v7 = vstv %s3539_s6  ;;  %s3544_s6 = sld [smem:[#allocation2 + $0x31]] }
 0xc0a   :  { %v592_v12 = vmul.f32 %v591_v8, %v583_v10  ;;  %v586_v17 = vmul.f32 %v585_v16, %v583_v10 }
 0xc0c   :  { %v595_v13 = vadd.f32 %v594_v11, %v592_v12  ;;  %v589_v20 = vadd.f32 %v588_v57, %v586_v17 }
 0xc0e   :  { %v596_v14 = vmul.f32 0.5, %v595_v13 }
 0xc10   :  { %v597_v15 = vmul.f32 1.442695, %v596_v14 }
 0xc12   :  { %4166 = vpow2.f32 %v597_v15 }
 0xc1c   :  { %v4167_v19 = vpop.eup %4166 }
 0xc1d   :  { %v600_v21 = vmul.f32 %v4167_v19, %v599_v18 }
 0xc1f   :  { %v601_v22 = vadd.f32 %v600_v21, %v589_v20 }
 0xc21   :  { %v602_v23 = vsel %vm203_vm3, %v601_v22, 0.0  ;;  %vm2474_vm3 = vcmp.lt.s32.totalorder %v4430_v9, 56 }
 0xc22   :  { %604 = vrot.lane.b32.xlu0 %v602_v23, %s4390_s21 }
 0xc94   :  { %v605_v28 = vpop.permute.xlu0 %604 }
 0xc95   :  { %v611_v31 = vmul.f32 %v610_v26, %v605_v28  ;;  %v622_v32 = vmul.f32 %v621_v27, %v605_v28 }
 0xc97   :  { %v612_v36 = vadd.f32 %v611_v31, %v608_v29  ;;  %v623_v37 = vadd.f32 %v622_v32, %v619_v30 }
 0xc99   :  { %v626_v38 = vadd.f32 %v625_v33, %v623_v37  ;;  %v615_v39 = vadd.f32 %v614_v35, %v612_v36 }
 0xc9b   :  { %v627_v40 = vsel %vm603_vm4, %v626_v38, 0.0  ;;  %v616_v41 = vsel %vm603_vm4, %v615_v39, 0.0  ;;  %vm2875_vm4 = vcmp.lt.s32.totalorder %v4430_v9, 58 }
 0xc9c   :  { %631 = vrot.lane.b32.xlu0 %v627_v40, %s4390_s21  ;;  %629 = vrot.lane.b32.xlu1 %v616_v41, %s4390_s21 }
 0xd0e   :  { %v632_v45 = vpop.permute.xlu0 %631  ;;  %v630_v46 = vpop.permute.xlu1 %629 }
 0xd0f   :  { %v638_v47 = vmul.f32 %v637_v60, %v632_v45  ;;  %v649_v48 = vmul.f32 %v648_v42, %v632_v45  ;;  %v635_v49 = vmul.f32 %v634_v43, %v630_v46  ;;  %v646_v50 = vmul.f32 %v645_v44, %v630_v46 }
 0xd11   :  { %v639_v53 = vadd.f32 %v638_v47, %v635_v49  ;;  %v650_v54 = vadd.f32 %v649_v48, %v646_v50  ;;  %v710_v48 = vstv %s3540_s15 }
 0xd13   :  { %v653_v55 = vadd.f32 %v652_v51, %v650_v54  ;;  %v642_v56 = vadd.f32 %v641_v52, %v639_v53  ;;  %v718_v51 = vstv %s3541_s16 }
 0xd15   :  { %v654_v58 = vsel %vm628_vm5, %v653_v55, 0.0  ;;  %v643_v59 = vsel %vm628_vm5, %v642_v56, 0.0  ;;  %vm2900_vm5 = vcmp.lt.s32.totalorder %v4430_v9, 60 }
 0xd16   :  { %658 = vrot.lane.b32.xlu0 %v654_v58, %s4390_s21  ;;  %656 = vrot.lane.b32.xlu1 %v643_v59, %s4390_s21 }
 0xd88   :  { %v659_v0 = vpop.permute.xlu0 %658  ;;  %v657_v1 = vpop.permute.xlu1 %656 }
 0xd89   :  { %v665_v2 = vmul.f32 %v664_v34, %v659_v0  ;;  %v676_v3 = vmul.f32 %v675_v61, %v659_v0  ;;  %v662_v4 = vmul.f32 %v661_v62, %v657_v1  ;;  %v673_v5 = vmul.f32 %v672_v63, %v657_v1 }
 0xd8a   :  { %v754_v1 = vstv %s3542_s29 }
 0xd8b   :  { %v666_v8 = vadd.f32 %v665_v2, %v662_v4  ;;  %v677_v10 = vadd.f32 %v676_v3, %v673_v5  ;;  %v762_v4 = vstv %s3543_s30 }
 0xd8d   :  { %v669_v11 = vadd.f32 %v668_v6, %v666_v8  ;;  %v680_v12 = vadd.f32 %v679_v7, %v677_v10 }
 0xd8f   :  { %v670_v13 = vsel %vm655_vm6, %v669_v11, 0.0  ;;  %v4537_v14 = vsel %vm655_vm6, %v680_v12, 0.0 }
 0xd90   :  { %684 = vadd.xlane.f32.xlu1 %v670_v13  ;;  %v693_v15 = vmul.f32 %v670_v13, %v670_v13  ;;  %v737_v16 = vmul.f32 %v4537_v14, %v4537_v14 }
 0xd92   :  { %694 = vadd.xlane.f32.xlu0 %v693_v15 }
 0xd94   :  { %738 = vadd.xlane.f32.xlu1 %v737_v16 }
 0xd96   :  { %728 = vadd.xlane.f32.xlu0 %v4537_v14 }
 0xe1d   :  { %v685_v17 = vpop.xlane.xlu1 %684 }
 0xe1e   :  { %v686_v57 = vrot.slane %v685_v17, 4 }
 0xe1f   :  { %v695_v18 = vpop.xlane.xlu0 %694 }
 0xe20   :  { %v687_v19 = vadd.f32 %v686_v57, %v685_v17  ;;  %v696_v20 = vrot.slane %v695_v18, 4 }
 0xe21   :  { %v739_v31 = vpop.xlane.xlu1 %738 }
 0xe22   :  { %v697_v21 = vadd.f32 %v696_v20, %v695_v18  ;;  %v688_v22 = vrot.slane %v687_v19, 2  ;;  %v740_v33 = vrot.slane %v739_v31, 4 }
 0xe23   :  { %v729_v30 = vpop.xlane.xlu0 %728 }
 0xe24   :  { %v689_v23 = vadd.f32 %v688_v22, %v687_v19  ;;  %v698_v24 = vrot.slane %v697_v21, 2  ;;  %v730_v32 = vrot.slane %v729_v30, 4  ;;  %v741_v36 = vadd.f32 %v740_v33, %v739_v31 }
 0xe26   :  { %v690_v25 = vrot.slane %v689_v23, 1  ;;  %v699_v26 = vadd.f32 %v698_v24, %v697_v21  ;;  %v731_v35 = vadd.f32 %v730_v32, %v729_v30  ;;  %v742_v39 = vrot.slane %v741_v36, 2 }
 0xe28   :  { %v691_v27 = vadd.f32 %v690_v25, %v689_v23  ;;  %v700_v28 = vrot.slane %v699_v26, 1  ;;  %v732_v37 = vrot.slane %v731_v35, 2  ;;  %v743_v41 = vadd.f32 %v742_v39, %v741_v36 }
 0xe2a   :  { %3887 = vpush %v691_v27  ;;  %v701_v29 = vadd.f32 %v700_v28, %v699_v26  ;;  %v733_v40 = vadd.f32 %v732_v37, %v731_v35  ;;  %v744_v42 = vrot.slane %v743_v41, 1 }
 0xe2c   :  { %3889 = vpush %v701_v29  ;;  %v734_v60 = vrot.slane %v733_v40, 1  ;;  %v745_v45 = vadd.f32 %v744_v42, %v743_v41 }
 0xe2e   :  { %v735_v44 = vadd.f32 %v734_v60, %v733_v40 }
 0xe5b   :  { %s3888_s7 = spop %3887 }
 0xe5c   :  { %s703_s8 = smul.f32 0.004166667, %s3888_s7  ;;  %s3545_s7 = sld [smem:[#allocation2 + $0x32]] }
 0xe5d   :  { %s3890_s9 = spop %3889 }
 0xe5e   :  { %s705_s10 = smul.f32 %s703_s8, %s703_s8  ;;  %v708_v46 = vstv %s703_s8  ;;  %s3546_s8 = sld [smem:[#allocation2 + $0x33]] }
 0xe5f   :  { %s704_s11 = smul.f32 0.004166667, %s3890_s9  ;;  %v709_v47 = vsub.f32 %v670_v13, %v708_v46 }
 0xe61   :  { %s706_s12 = ssub.f32 %s704_s11, %s705_s10  ;;  %v711_v49 = vmul.f32 %v710_v48, %v709_v47 }
 0xe62   :  { %v779_v16 = vstv %s3545_s7  ;;  %s3551_s7 = sld [smem:[#allocation2 + $0xb6]] }
 0xe63   :  { %s707_s13 = smax.f32 %s4391_s20, %s706_s12 }
 0xe64   :  { %s712_s14 = sadd.f32 1e-05, %s707_s13  ;;  %v783_v19 = vstv %s3546_s8  ;;  %s3552_s8 = sld [smem:[#allocation2 + $0xb7]] }
 0xe66   :  { %v713_v38 = vstv %s712_s14 }
 0xe67   :  { %4168 = vrsqrt.f32 %v713_v38 }
 0xe71   :  { %v4169_v43 = vpop.eup %4168 }
 0xe72   :  { %3891 = vpush %v4169_v43 }
 0xe73   :  { %3893 = vpush %v735_v44 }
 0xe74   :  { %3895 = vpush %v745_v45 }
 0xea3   :  { %s3892_s17 = spop %3891 }
 0xea4   :  { %v716_v50 = vstv %s3892_s17  ;;  %s3894_s18 = spop %3893  ;;  %s3547_s17 = sld [smem:[#allocation2 + $0x34]] }
 0xea5   :  { %v717_v52 = vmul.f32 %v716_v50, %v711_v49  ;;  %s747_s19 = smul.f32 0.004166667, %s3894_s18  ;;  %s3896_s22 = spop %3895 }
 0xea6   :  { %s748_s2 = smul.f32 0.004166667, %s3896_s22  ;;  %s3548_s18 = sld [smem:[#allocation2 + $0x35]] }
 0xea7   :  { %v719_v53 = vadd.f32 %v718_v51, %v717_v52  ;;  %s749_s26 = smul.f32 %s747_s19, %s747_s19  ;;  %v752_v63 = vstv %s747_s19 }
 0xea8   :  { %v753_v0 = vsub.f32 %v4537_v14, %v752_v63  ;;  %v776_v14 = vstv %s3544_s6  ;;  %s3550_s6 = sld [smem:[#allocation2 + $0xb5]] }
 0xea9   :  { %s750_s27 = ssub.f32 %s748_s2, %s749_s26  ;;  %v720_v54 = vsel %vm655_vm6, %v719_v53, 0.0 }
 0xeaa   :  { %v721_v55 = vmul.f32 0.5, %v720_v54  ;;  %v755_v2 = vmul.f32 %v754_v1, %v753_v0  ;;  %v814_v42 = vstv %s3547_s17 }
 0xeab   :  { %s751_s28 = smax.f32 %s4391_s20, %s750_s27 }
 0xeac   :  { %s756_s0 = sadd.f32 1e-05, %s751_s28  ;;  %4170 = vtanh.f32 %v721_v55  ;;  %v822_v45 = vstv %s3548_s18  ;;  %s3553_s18 = sld [smem:[#allocation2 + $0xb8]] }
 0xeae   :  { %v757_v56 = vstv %s756_s0 }
 0xeaf   :  { %4172 = vrsqrt.f32 %v757_v56 }
 0xeb6   :  { %v4171_v58 = vpop.eup %4170 }
 0xeb7   :  { %v723_v59 = vmul.f32 0.5, %v4171_v58 }
 0xeb9   :  { %v4173_v34 = vpop.eup %4172  ;;  %v724_v61 = vadd.f32 0.5, %v723_v59 }
 0xeba   :  { %3897 = vpush %v4173_v34 }
 0xebb   :  { %v725_v62 = vmul.f32 %v724_v61, %v720_v54 }
 0xebd   :  { %771 = vrot.lane.b32.xlu0 %v725_v62, %s4390_s21 }
 0xeeb   :  { %s3898_s5 = spop %3897 }
 0xeec   :  { %v760_v3 = vstv %s3898_s5  ;;  %s3549_s5 = sld [smem:[#allocation2 + $0xb4]] }
 0xeed   :  { %v761_v5 = vmul.f32 %v760_v3, %v755_v2 }
 0xeef   :  { %v763_v6 = vadd.f32 %v762_v4, %v761_v5 }
 0xef1   :  { %v764_v7 = vsel %vm655_vm6, %v763_v6, 0.0  ;;  %vm2927_vm6 = vcmp.lt.s32.totalorder %v4430_v9, 62 }
 0xef2   :  { %v765_v8 = vmul.f32 0.5, %v764_v7 }
 0xef4   :  { %4174 = vtanh.f32 %v765_v8 }
 0xefe   :  { %v4175_v10 = vpop.eup %4174 }
 0xeff   :  { %v767_v11 = vmul.f32 0.5, %v4175_v10 }
 0xf01   :  { %v768_v12 = vadd.f32 0.5, %v767_v11  ;;  %v858_v11 = vstv %s3549_s5 }
 0xf03   :  { %v769_v13 = vmul.f32 %v768_v12, %v764_v7 }
 0xf05   :  { %773 = vrot.lane.b32.xlu1 %v769_v13, %s4390_s21 }
 0xf2f   :  { %v772_v15 = vpop.permute.xlu0 %771 }
 0xf30   :  { %v777_v57 = vmul.f32 %v776_v14, %v772_v15  ;;  %v866_v14 = vstv %s3550_s6 }
 0xf77   :  { %v774_v17 = vpop.permute.xlu1 %773 }
 0xf78   :  { %v780_v18 = vmul.f32 %v779_v16, %v774_v17  ;;  %v870_v17 = vstv %s3551_s7 }
 0xf7a   :  { %v781_v20 = vadd.f32 %v780_v18, %v777_v57  ;;  %v873_v18 = vstv %s3552_s8 }
 0xf7c   :  { %v784_v21 = vadd.f32 %v783_v19, %v781_v20 }
 0xf7e   :  { %v785_v22 = vsel %vm770_vm7, %v784_v21, 0.0 }
 0xf7f   :  { %788 = vadd.xlane.f32.xlu1 %v785_v22  ;;  %v797_v23 = vmul.f32 %v785_v22, %v785_v22 }
 0xf81   :  { %798 = vadd.xlane.f32.xlu0 %v797_v23 }
0x100c   :  { %v789_v24 = vpop.xlane.xlu1 %788 }
0x100d   :  { %v790_v25 = vrot.slane %v789_v24, 4 }
0x100e   :  { %v799_v26 = vpop.xlane.xlu0 %798 }
0x100f   :  { %v791_v27 = vadd.f32 %v790_v25, %v789_v24  ;;  %v800_v28 = vrot.slane %v799_v26, 4 }
0x1011   :  { %v801_v29 = vadd.f32 %v800_v28, %v799_v26  ;;  %v792_v30 = vrot.slane %v791_v27, 2 }
0x1013   :  { %v793_v31 = vadd.f32 %v792_v30, %v791_v27  ;;  %v802_v32 = vrot.slane %v801_v29, 2 }
0x1015   :  { %v794_v33 = vrot.slane %v793_v31, 1  ;;  %v803_v35 = vadd.f32 %v802_v32, %v801_v29 }
0x1017   :  { %v795_v36 = vadd.f32 %v794_v33, %v793_v31  ;;  %v804_v37 = vrot.slane %v803_v35, 1 }
0x1019   :  { %3899 = vpush %v795_v36  ;;  %v805_v38 = vadd.f32 %v804_v37, %v803_v35 }
0x101b   :  { %3901 = vpush %v805_v38 }
0x104a   :  { %s3900_s9 = spop %3899 }
0x104b   :  { %s807_s10 = smul.f32 0.00390625, %s3900_s9 }
0x104c   :  { %s3902_s11 = spop %3901 }
0x104d   :  { %s809_s12 = smul.f32 %s807_s10, %s807_s10  ;;  %v812_v41 = vstv %s807_s10 }
0x104e   :  { %s808_s13 = smul.f32 0.00390625, %s3902_s11  ;;  %v813_v60 = vsub.f32 %v785_v22, %v812_v41 }
0x1050   :  { %s810_s14 = ssub.f32 %s808_s13, %s809_s12  ;;  %v815_v43 = vmul.f32 %v814_v42, %v813_v60  ;;  %v904_v60 = vstv %s3553_s18 }
0x1052   :  { %s811_s15 = smax.f32 %s4391_s20, %s810_s14 }
0x1053   :  { %s816_s16 = sadd.f32 1e-05, %s811_s15 }
0x1055   :  { %v817_v39 = vstv %s816_s16 }
0x1056   :  { %4176 = vrsqrt.f32 %v817_v39 }
0x1060   :  { %v4177_v40 = vpop.eup %4176 }
0x1061   :  { %3903 = vpush %v4177_v40 }
0x1092   :  { %s3904_s19 = spop %3903 }
0x1093   :  { %v820_v44 = vstv %s3904_s19  ;;  %s3554_s19 = sld [smem:[#allocation2 + $0xb9]] }
0x1094   :  { %v821_v46 = vmul.f32 %v820_v44, %v815_v43 }
0x1096   :  { %v823_v47 = vadd.f32 %v822_v45, %v821_v46 }
0x1098   :  { %v824_v48 = vsel %vm770_vm7, %v823_v47, 0.0 }
0x1099   :  { %v825_v49 = vmul.f32 0.5, %v824_v48  ;;  %v912_v44 = vstv %s3554_s19 }
0x109b   :  { %4178 = vtanh.f32 %v825_v49 }
0x10a5   :  { %v4179_v50 = vpop.eup %4178 }
0x10a6   :  { %v827_v51 = vmul.f32 0.5, %v4179_v50 }
0x10a8   :  { %v828_v52 = vadd.f32 0.5, %v827_v51 }
0x10aa   :  { %v4557_v53 = vmul.f32 %v828_v52, %v824_v48 }
0x10ac   :  { %832 = vadd.xlane.f32.xlu0 %v4557_v53  ;;  %v841_v54 = vmul.f32 %v4557_v53, %v4557_v53 }
0x10ae   :  { %842 = vadd.xlane.f32.xlu1 %v841_v54 }
0x1139   :  { %v833_v55 = vpop.xlane.xlu0 %832 }
0x113a   :  { %v834_v56 = vrot.slane %v833_v55, 4 }
0x113b   :  { %v843_v58 = vpop.xlane.xlu1 %842 }
0x113c   :  { %v835_v59 = vadd.f32 %v834_v56, %v833_v55  ;;  %v844_v34 = vrot.slane %v843_v58, 4 }
0x113e   :  { %v845_v61 = vadd.f32 %v844_v34, %v843_v58  ;;  %v836_v62 = vrot.slane %v835_v59, 2 }
0x1140   :  { %v837_v63 = vadd.f32 %v836_v62, %v835_v59  ;;  %v846_v0 = vrot.slane %v845_v61, 2 }
0x1142   :  { %v838_v1 = vrot.slane %v837_v63, 1  ;;  %v847_v2 = vadd.f32 %v846_v0, %v845_v61 }
0x1144   :  { %v839_v3 = vadd.f32 %v838_v1, %v837_v63  ;;  %v848_v4 = vrot.slane %v847_v2, 1 }
0x1146   :  { %3905 = vpush %v839_v3  ;;  %v849_v5 = vadd.f32 %v848_v4, %v847_v2 }
0x1148   :  { %3907 = vpush %v849_v5 }
0x1177   :  { %s3906_s22 = spop %3905 }
0x1178   :  { %s851_s2 = smul.f32 0.00390625, %s3906_s22 }
0x1179   :  { %s3908_s26 = spop %3907 }
0x117a   :  { %s853_s27 = smul.f32 %s851_s2, %s851_s2  ;;  %v856_v8 = vstv %s851_s2  ;;  %s3555_s2 = sld [smem:[#allocation2 + $0xba]] }
0x117b   :  { %s852_s28 = smul.f32 0.00390625, %s3908_s26  ;;  %v857_v10 = vsub.f32 %v4557_v53, %v856_v8  ;;  %s3557_s26 = sld [smem:[#allocation2 + $0xbc]] }
0x117d   :  { %s854_s0 = ssub.f32 %s852_s28, %s853_s27  ;;  %v859_v12 = vmul.f32 %v858_v11, %v857_v10  ;;  %s3556_s27 = sld [smem:[#allocation2 + $0xbb]] }
0x117e   :  { %s3558_s28 = sld [smem:[#allocation2 + $0xbd]] }
0x117f   :  { %s855_s29 = smax.f32 %s4391_s20, %s854_s0  ;;  %s3559_s0 = sld [smem:[#allocation2 + $0xbe]] }
0x1180   :  { %s860_s30 = sadd.f32 1e-05, %s855_s29  ;;  %v930_v55 = vstv %s3555_s2  ;;  %s3560_s29 = sld [smem:[#allocation2 + $0xbf]] }
0x1181   :  { %v926_v54 = vstv %s3557_s26 }
0x1182   :  { %v861_v6 = vstv %s860_s30 }
0x1183   :  { %4180 = vrsqrt.f32 %v861_v6  ;;  %v935_v56 = vstv %s3556_s27 }
0x1184   :  { %v940_v62 = vstv %s3558_s28 }
0x1185   :  { %v945_v2 = vstv %s3559_s0  ;;  %s3565_s0 = sld [smem:[#allocation2 + $0xc4]] }
0x1186   :  { %v948_v8 = vstv %s3560_s29  ;;  %s3566_s29 = sld [smem:[#allocation2 + $0xc5]] }
0x118d   :  { %v4181_v7 = vpop.eup %4180 }
0x118e   :  { %3909 = vpush %v4181_v7 }
0x11bf   :  { %s3910_s9 = spop %3909 }
0x11c0   :  { %v864_v13 = vstv %s3910_s9 }
0x11c1   :  { %v865_v15 = vmul.f32 %v864_v13, %v859_v12 }
0x11c3   :  { %v867_v16 = vadd.f32 %v866_v14, %v865_v15 }
0x11c5   :  { %v868_v57 = vsel %vm770_vm7, %v867_v16, 0.0 }
0x11c6   :  { %v871_v19 = vmul.f32 %v870_v17, %v868_v57 }
0x11c8   :  { %v874_v20 = vadd.f32 %v873_v18, %v871_v19 }
0x11ca   :  { %v875_v21 = vsel %vm770_vm7, %v874_v20, 0.0 }
0x11cb   :  { %878 = vadd.xlane.f32.xlu0 %v875_v21  ;;  %v887_v22 = vmul.f32 %v875_v21, %v875_v21 }
0x11cd   :  { %888 = vadd.xlane.f32.xlu1 %v887_v22 }
0x1258   :  { %v879_v23 = vpop.xlane.xlu0 %878 }
0x1259   :  { %v880_v24 = vrot.slane %v879_v23, 4 }
0x125a   :  { %v889_v25 = vpop.xlane.xlu1 %888 }
0x125b   :  { %v881_v26 = vadd.f32 %v880_v24, %v879_v23  ;;  %v890_v27 = vrot.slane %v889_v25, 4 }
0x125d   :  { %v891_v28 = vadd.f32 %v890_v27, %v889_v25  ;;  %v882_v29 = vrot.slane %v881_v26, 2 }
0x125f   :  { %v883_v30 = vadd.f32 %v882_v29, %v881_v26  ;;  %v892_v31 = vrot.slane %v891_v28, 2 }
0x1261   :  { %v884_v32 = vrot.slane %v883_v30, 1  ;;  %v893_v33 = vadd.f32 %v892_v31, %v891_v28 }
0x1263   :  { %v885_v35 = vadd.f32 %v884_v32, %v883_v30  ;;  %v894_v36 = vrot.slane %v893_v33, 1 }
0x1265   :  { %3911 = vpush %v885_v35  ;;  %v895_v37 = vadd.f32 %v894_v36, %v893_v33 }
0x1267   :  { %3913 = vpush %v895_v37 }
0x1296   :  { %s3912_s10 = spop %3911 }
0x1297   :  { %s897_s11 = smul.f32 0.00390625, %s3912_s10 }
0x1298   :  { %s3914_s12 = spop %3913 }
0x1299   :  { %s899_s13 = smul.f32 %s897_s11, %s897_s11  ;;  %v902_v40 = vstv %s897_s11 }
0x129a   :  { %s898_s14 = smul.f32 0.00390625, %s3914_s12  ;;  %v903_v41 = vsub.f32 %v875_v21, %v902_v40  ;;  %s3561_s12 = sld [smem:[#allocation2 + $0xc0]] }
0x129c   :  { %s900_s15 = ssub.f32 %s898_s14, %s899_s13  ;;  %v905_v42 = vmul.f32 %v904_v60, %v903_v41  ;;  %s3562_s13 = sld [smem:[#allocation2 + $0xc1]] }
0x129e   :  { %s901_s16 = smax.f32 %s4391_s20, %s900_s15  ;;  %s3563_s15 = sld [smem:[#allocation2 + $0xc2]] }
0x129f   :  { %s906_s17 = sadd.f32 1e-05, %s901_s16  ;;  %s3564_s16 = sld [smem:[#allocation2 + $0xc3]] }
0x12a0   :  { %v979_v31 = vstv %s3561_s12  ;;  %s3574_s12 = sld [smem:[#allocation2 + $0x127]] }
0x12a1   :  { %v907_v38 = vstv %s906_s17 }
0x12a2   :  { %4182 = vrsqrt.f32 %v907_v38  ;;  %v987_v35 = vstv %s3562_s13 }
0x12ac   :  { %v4183_v39 = vpop.eup %4182 }
0x12ad   :  { %3915 = vpush %v4183_v39 }
0x12de   :  { %s3916_s22 = spop %3915 }
0x12df   :  { %v910_v43 = vstv %s3916_s22 }
0x12e0   :  { %v911_v45 = vmul.f32 %v910_v43, %v905_v42  ;;  %v996_v42 = vstv %s3563_s15 }
0x12e2   :  { %v913_v46 = vadd.f32 %v912_v44, %v911_v45  ;;  %v999_v44 = vstv %s3564_s16 }
0x12e4   :  { %v914_v47 = vsel %vm770_vm7, %v913_v46, 0.0 }
0x12e5   :  { %v915_v48 = vmul.f32 0.5, %v914_v47 }
0x12e7   :  { %4184 = vtanh.f32 %v915_v48 }
0x12f1   :  { %v4185_v49 = vpop.eup %4184 }
0x12f2   :  { %v917_v50 = vmul.f32 0.5, %v4185_v49 }
0x12f4   :  { %v918_v51 = vadd.f32 0.5, %v917_v50 }
0x12f6   :  { %v919_v52 = vmul.f32 %v918_v51, %v914_v47 }
0x12f8   :  { %933 = vrot.lane.b32.xlu1 %v919_v52, %s4390_s21  ;;  %928 = vrot.lane.b32.xlu0 %v919_v52, %s4392_s23  ;;  %v927_v34 = vmul.f32 %v926_v54, %v919_v52 }
0x12fc   :  { %938 = vrot.lane.b32.xlu1 %v919_v52, %s4393_s24  ;;  %943 = vrot.lane.b32.xlu0 %v919_v52, %s4394_s25 }
0x136a   :  { %v934_v58 = vpop.permute.xlu1 %933  ;;  %v929_v59 = vpop.permute.xlu0 %928 }
0x136b   :  { %v931_v61 = vmul.f32 %v930_v55, %v929_v59  ;;  %v936_v63 = vmul.f32 %v935_v56, %v934_v58 }
0x136d   :  { %v932_v0 = vadd.f32 %v931_v61, %v927_v34 }
0x136e   :  { %v939_v1 = vpop.permute.xlu1 %938  ;;  %v944_v3 = vpop.permute.xlu0 %943 }
0x136f   :  { %v937_v4 = vadd.f32 %v936_v63, %v932_v0  ;;  %v941_v5 = vmul.f32 %v940_v62, %v939_v1  ;;  %v946_v7 = vmul.f32 %v945_v2, %v944_v3 }
0x1371   :  { %v942_v6 = vadd.f32 %v941_v5, %v937_v4  ;;  %v1030_v5 = vstv %s3565_s0  ;;  %s3578_s0 = sld [smem:[#allocation2 + $0x12b]] }
0x1373   :  { %v947_v10 = vadd.f32 %v946_v7, %v942_v6 }
0x1375   :  { %v949_v11 = vadd.f32 %v948_v8, %v947_v10  ;;  %v1038_v8 = vstv %s3566_s29  ;;  %s3579_s29 = sld [smem:[#allocation2 + $0x12c]] }
0x1377   :  { %v950_v12 = vsel %vm770_vm7, %v949_v11, 0.0 }
0x1378   :  { %953 = vadd.xlane.f32.xlu1 %v950_v12  ;;  %v962_v13 = vmul.f32 %v950_v12, %v950_v12 }
0x137a   :  { %963 = vadd.xlane.f32.xlu0 %v962_v13 }
0x1405   :  { %v954_v14 = vpop.xlane.xlu1 %953 }
0x1406   :  { %v955_v15 = vrot.slane %v954_v14, 4 }
0x1407   :  { %v964_v16 = vpop.xlane.xlu0 %963 }
0x1408   :  { %v956_v17 = vadd.f32 %v955_v15, %v954_v14  ;;  %v965_v57 = vrot.slane %v964_v16, 4 }
0x140a   :  { %v966_v18 = vadd.f32 %v965_v57, %v964_v16  ;;  %v957_v19 = vrot.slane %v956_v17, 2 }
0x140c   :  { %v958_v20 = vadd.f32 %v957_v19, %v956_v17  ;;  %v967_v21 = vrot.slane %v966_v18, 2 }
0x140e   :  { %v959_v22 = vrot.slane %v958_v20, 1  ;;  %v968_v23 = vadd.f32 %v967_v21, %v966_v18 }
0x1410   :  { %v960_v24 = vadd.f32 %v959_v22, %v958_v20  ;;  %v969_v25 = vrot.slane %v968_v23, 1 }
0x1412   :  { %3917 = vpush %v960_v24  ;;  %v970_v26 = vadd.f32 %v969_v25, %v968_v23 }
0x1414   :  { %3919 = vpush %v970_v26 }
0x1443   :  { %s3918_s30 = spop %3917 }
0x1444   :  { %s972_s5 = smul.f32 0.00390625, %s3918_s30 }
0x1445   :  { %s3920_s6 = spop %3919 }
0x1446   :  { %s974_s7 = smul.f32 %s972_s5, %s972_s5  ;;  %v977_v29 = vstv %s972_s5  ;;  %s3567_s5 = sld [smem:[#allocation2 + $0x120]] }
0x1447   :  { %s973_s8 = smul.f32 0.00390625, %s3920_s6  ;;  %v978_v30 = vsub.f32 %v950_v12, %v977_v29  ;;  %s3569_s6 = sld [smem:[#allocation2 + $0x122]] }
0x1449   :  { %s975_s9 = ssub.f32 %s973_s8, %s974_s7  ;;  %v980_v32 = vmul.f32 %v979_v31, %v978_v30  ;;  %s3568_s7 = sld [smem:[#allocation2 + $0x121]] }
0x144a   :  { %s3570_s8 = sld [smem:[#allocation2 + $0x123]] }
0x144b   :  { %s976_s10 = smax.f32 %s4391_s20, %s975_s9  ;;  %s3571_s9 = sld [smem:[#allocation2 + $0x124]] }
0x144c   :  { %s981_s11 = sadd.f32 1e-05, %s976_s10  ;;  %s3572_s10 = sld [smem:[#allocation2 + $0x125]] }
0x144d   :  { %v1049_v15 = vstv %s3569_s6  ;;  %s3584_s6 = sld [smem:[#allocation2 + $0x131]] }
0x144e   :  { %v982_v27 = vstv %s981_s11  ;;  %s3573_s11 = sld [smem:[#allocation2 + $0x126]] }
0x144f   :  { %4186 = vrsqrt.f32 %v982_v27  ;;  %v1058_v16 = vstv %s3568_s7  ;;  %s3581_s7 = sld [smem:[#allocation2 + $0x12e]] }
0x1450   :  { %v1063_v20 = vstv %s3570_s8  ;;  %s3582_s8 = sld [smem:[#allocation2 + $0x130]] }
0x1451   :  { %v1068_v24 = vstv %s3571_s9 }
0x1452   :  { %v1071_v30 = vstv %s3572_s10 }
0x1459   :  { %v4187_v28 = vpop.eup %4186 }
0x145a   :  { %3921 = vpush %v4187_v28 }
0x148b   :  { %s3922_s14 = spop %3921 }
0x148c   :  { %v985_v33 = vstv %s3922_s14 }
0x148d   :  { %v986_v36 = vmul.f32 %v985_v33, %v980_v32  ;;  %v1075_v33 = vstv %s3573_s11  ;;  %s3586_s11 = sld [smem:[#allocation2 + $0x36]] }
0x148f   :  { %v988_v37 = vadd.f32 %v987_v35, %v986_v36  ;;  %v1078_v36 = vstv %s3574_s12  ;;  %s3589_s12 = sld [smem:[#allocation2 + $0x38]] }
0x1491   :  { %v989_v38 = vsel %vm770_vm7, %v988_v37, 0.0 }
0x1492   :  { %v990_v39 = vmul.f32 0.5, %v989_v38 }
0x1494   :  { %4188 = vtanh.f32 %v990_v39 }
0x149e   :  { %v4189_v40 = vpop.eup %4188 }
0x149f   :  { %v992_v41 = vmul.f32 0.5, %v4189_v40 }
0x14a1   :  { %v993_v60 = vadd.f32 0.5, %v992_v41 }
0x14a3   :  { %v994_v43 = vmul.f32 %v993_v60, %v989_v38 }
0x14a5   :  { %v997_v45 = vmul.f32 %v996_v42, %v994_v43 }
0x14a7   :  { %v1000_v46 = vadd.f32 %v999_v44, %v997_v45 }
0x14a9   :  { %v1001_v47 = vsel %vm770_vm7, %v1000_v46, 0.0 }
0x14aa   :  { %1004 = vadd.xlane.f32.xlu0 %v1001_v47  ;;  %v1013_v48 = vmul.f32 %v1001_v47, %v1001_v47 }
0x14ac   :  { %1014 = vadd.xlane.f32.xlu1 %v1013_v48 }
0x1537   :  { %v1005_v49 = vpop.xlane.xlu0 %1004 }
0x1538   :  { %v1006_v50 = vrot.slane %v1005_v49, 4 }
0x1539   :  { %v1015_v51 = vpop.xlane.xlu1 %1014 }
0x153a   :  { %v1007_v52 = vadd.f32 %v1006_v50, %v1005_v49  ;;  %v1016_v54 = vrot.slane %v1015_v51, 4 }
0x153c   :  { %v1017_v55 = vadd.f32 %v1016_v54, %v1015_v51  ;;  %v1008_v56 = vrot.slane %v1007_v52, 2 }
0x153e   :  { %v1009_v58 = vadd.f32 %v1008_v56, %v1007_v52  ;;  %v1018_v59 = vrot.slane %v1017_v55, 2 }
0x1540   :  { %v1010_v34 = vrot.slane %v1009_v58, 1  ;;  %v1019_v61 = vadd.f32 %v1018_v59, %v1017_v55 }
0x1542   :  { %v1011_v62 = vadd.f32 %v1010_v34, %v1009_v58  ;;  %v1020_v63 = vrot.slane %v1019_v61, 1 }
0x1544   :  { %3923 = vpush %v1011_v62  ;;  %v1021_v0 = vadd.f32 %v1020_v63, %v1019_v61 }
0x1546   :  { %3925 = vpush %v1021_v0 }
0x1575   :  { %s3924_s17 = spop %3923 }
0x1576   :  { %s1023_s18 = smul.f32 0.00390625, %s3924_s17 }
0x1577   :  { %s3926_s19 = spop %3925 }
0x1578   :  { %s1025_s22 = smul.f32 %s1023_s18, %s1023_s18  ;;  %v1028_v3 = vstv %s1023_s18 }
0x1579   :  { %s1024_s2 = smul.f32 0.00390625, %s3926_s19  ;;  %v1029_v4 = vsub.f32 %v1001_v47, %v1028_v3 }
0x157b   :  { %s1026_s26 = ssub.f32 %s1024_s2, %s1025_s22  ;;  %v1031_v6 = vmul.f32 %v1030_v5, %v1029_v4  ;;  %s3575_s2 = sld [smem:[#allocation2 + $0x128]] }
0x157d   :  { %s1027_s27 = smax.f32 %s4391_s20, %s1026_s26  ;;  %s3576_s26 = sld [smem:[#allocation2 + $0x129]] }
0x157e   :  { %s1032_s28 = sadd.f32 1e-05, %s1027_s27 }
0x1580   :  { %v1033_v1 = vstv %s1032_s28  ;;  %s3577_s28 = sld [smem:[#allocation2 + $0x12a]] }
0x1581   :  { %4190 = vrsqrt.f32 %v1033_v1  ;;  %v1109_v34 = vstv %s3575_s2  ;;  %s3597_s2 = sld [smem:[#allocation2 + $0x41]] }
0x1583   :  { %v1117_v63 = vstv %s3576_s26  ;;  %s3594_s26 = sld [smem:[#allocation2 + $0x40]] }
0x158b   :  { %v4191_v2 = vpop.eup %4190 }
0x158c   :  { %3927 = vpush %v4191_v2 }
0x15bd   :  { %s3928_s30 = spop %3927 }
0x15be   :  { %v1036_v7 = vstv %s3928_s30  ;;  %s3580_s30 = sld [smem:[#allocation2 + $0x12d]] }
0x15bf   :  { %v1037_v10 = vmul.f32 %v1036_v7, %v1031_v6 }
0x15c1   :  { %v1039_v11 = vadd.f32 %v1038_v8, %v1037_v10  ;;  %v1129_v8 = vstv %s3578_s0  ;;  %v1133_v10 = vstv %s3577_s28  ;;  %s3602_s28 = sld [smem:[#allocation2 + $0x45]]  ;;  %s3598_s0 = sld [smem:[#allocation2 + $0x42]] }
0x15c3   :  { %v1040_v12 = vsel %vm770_vm7, %v1039_v11, 0.0  ;;  %v1138_v11 = vstv %s3579_s29  ;;  %s3601_s29 = sld [smem:[#allocation2 + $0x44]] }
0x15c4   :  { %v1041_v13 = vmul.f32 0.1, %v1040_v12 }
0x15c6   :  { %v4586_v14 = vadd.f32 %v1041_v13, %v4557_v53  ;;  %v1053_v53 = vstv %s3567_s5  ;;  %s3583_s5 = sld [smem:[#allocation2 + $0x12f]] }
0x15c8   :  { %1056 = vrot.lane.b32.xlu1 %v4586_v14, %s4390_s21  ;;  %1051 = vrot.lane.b32.xlu0 %v4586_v14, %s4392_s23  ;;  %v1050_v18 = vmul.f32 %v1049_v15, %v4586_v14 }
0x15cc   :  { %1061 = vrot.lane.b32.xlu1 %v4586_v14, %s4393_s24  ;;  %1066 = vrot.lane.b32.xlu0 %v4586_v14, %s4394_s25 }
0x163a   :  { %v4596_v17 = vpop.permute.xlu1 %1056  ;;  %v1052_v57 = vpop.permute.xlu0 %1051 }
0x163b   :  { %v1054_v19 = vmul.f32 %v1053_v53, %v1052_v57  ;;  %v1059_v21 = vmul.f32 %v1058_v16, %v4596_v17 }
0x163d   :  { %v1055_v22 = vadd.f32 %v1054_v19, %v1050_v18  ;;  %v1141_v18 = vstv %s3580_s30  ;;  %s3600_s30 = sld [smem:[#allocation2 + $0x46]] }
0x163e   :  { %v1062_v23 = vpop.permute.xlu1 %1061  ;;  %v1067_v25 = vpop.permute.xlu0 %1066 }
0x163f   :  { %v1060_v26 = vadd.f32 %v1059_v21, %v1055_v22  ;;  %v1064_v27 = vmul.f32 %v1063_v20, %v1062_v23  ;;  %v1069_v29 = vmul.f32 %v1068_v24, %v1067_v25 }
0x1641   :  { %v1065_v28 = vadd.f32 %v1064_v27, %v1060_v26 }
0x1643   :  { %v1070_v31 = vadd.f32 %v1069_v29, %v1065_v28  ;;  %v1158_v28 = vstv %s3583_s5  ;;  %s3603_s5 = sld [smem:[#allocation2 + $0x47]] }
0x1645   :  { %v1072_v32 = vadd.f32 %v1071_v30, %v1070_v31  ;;  %v1161_v30 = vstv %s3584_s6 }
0x1647   :  { %v1073_v35 = vsel %vm770_vm7, %v1072_v32, 0.0 }
0x1648   :  { %v1076_v37 = vmul.f32 %v1075_v33, %v1073_v35 }
0x164a   :  { %v1079_v38 = vadd.f32 %v1078_v36, %v1076_v37  ;;  %v1152_v36 = vstv %s3581_s7 }
0x164c   :  { %v1080_v39 = vsel %vm770_vm7, %v1079_v38, 0.0  ;;  %v3585_v38 = vld [vmem:[%s5012_s1 + $0x8] sm:$0xff] }
0x164d   :  { %1083 = vadd.xlane.f32.xlu1 %v1080_v39  ;;  %v1092_v40 = vmul.f32 %v1080_v39, %v1080_v39 }
0x164f   :  { %1093 = vadd.xlane.f32.xlu0 %v1092_v40 }
0x16da   :  { %v1084_v41 = vpop.xlane.xlu1 %1083 }
0x16db   :  { %v1085_v60 = vrot.slane %v1084_v41, 4 }
0x16dc   :  { %v1094_v42 = vpop.xlane.xlu0 %1093 }
0x16dd   :  { %v1086_v43 = vadd.f32 %v1085_v60, %v1084_v41  ;;  %v1095_v44 = vrot.slane %v1094_v42, 4 }
0x16df   :  { %v1096_v45 = vadd.f32 %v1095_v44, %v1094_v42  ;;  %v1087_v46 = vrot.slane %v1086_v43, 2  ;;  %v1186_v44 = vstv %s3589_s12 }
0x16e1   :  { %v1088_v47 = vadd.f32 %v1087_v46, %v1086_v43  ;;  %v1097_v48 = vrot.slane %v1096_v45, 2  ;;  %v1175_v43 = vstv %s3586_s11 }
0x16e3   :  { %v1089_v49 = vrot.slane %v1088_v47, 1  ;;  %v1098_v50 = vadd.f32 %v1097_v48, %v1096_v45  ;;  %v1176_v48 = vmul.f32 %v1175_v43, %v4596_v17 }
0x16e5   :  { %v1090_v51 = vadd.f32 %v1089_v49, %v1088_v47  ;;  %v1099_v52 = vrot.slane %v1098_v50, 1  ;;  %v1187_v49 = vmul.f32 %v1186_v44, %v4596_v17 }
0x16e7   :  { %3929 = vpush %v1090_v51  ;;  %v1100_v54 = vadd.f32 %v1099_v52, %v1098_v50 }
0x16e9   :  { %3931 = vpush %v1100_v54 }
0x1718   :  { %s3930_s13 = spop %3929 }
0x1719   :  { %s1102_s14 = smul.f32 0.00390625, %s3930_s13  ;;  %s3587_s13 = sld [smem:[#allocation2 + $0x37]] }
0x171a   :  { %s3932_s15 = spop %3931 }
0x171b   :  { %s1104_s16 = smul.f32 %s1102_s14, %s1102_s14  ;;  %v1107_v58 = vstv %s1102_s14  ;;  %s3590_s14 = sld [smem:[#allocation2 + $0x39]] }
0x171c   :  { %s1103_s17 = smul.f32 0.00390625, %s3932_s15  ;;  %v1108_v59 = vsub.f32 %v1080_v39, %v1107_v58  ;;  %s3591_s15 = sld [smem:[#allocation2 + $0x3b]] }
0x171e   :  { %s1105_s18 = ssub.f32 %s1103_s17, %s1104_s16  ;;  %v1110_v61 = vmul.f32 %v1109_v34, %v1108_v59  ;;  %s3588_s16 = sld [smem:[#allocation2 + $0x3a]] }
0x171f   :  { %v1178_v45 = vstv %s3587_s13  ;;  %s3593_s17 = sld [smem:[#allocation2 + $0x3d]] }
0x1720   :  { %s1106_s19 = smax.f32 %s4391_s20, %s1105_s18  ;;  %s3596_s18 = sld [smem:[#allocation2 + $0x3f]] }
0x1721   :  { %s1111_s22 = sadd.f32 1e-05, %s1106_s19  ;;  %v1189_v46 = vstv %s3590_s14  ;;  %s3592_s19 = sld [smem:[#allocation2 + $0x3c]] }
0x1722   :  { %v1193_v52 = vstv %s3591_s15  ;;  %s3604_s14 = sld [smem:[#allocation2 + $0x48]]  ;;  %s3605_s15 = sld [smem:[#allocation2 + $0x4a]] }
0x1723   :  { %v1112_v55 = vstv %s1111_s22  ;;  %s3595_s22 = sld [smem:[#allocation2 + $0x3e]] }
0x1724   :  { %4192 = vrsqrt.f32 %v1112_v55  ;;  %v1182_v54 = vstv %s3588_s16 }
0x1725   :  { %v1205_v17 = vstv %s3593_s17 }
0x172e   :  { %v4193_v56 = vpop.eup %4192 }
0x172f   :  { %3933 = vpush %v4193_v56 }
0x1760   :  { %s3934_s27 = spop %3933 }
0x1761   :  { %v1115_v62 = vstv %s3934_s27  ;;  %s3599_s27 = sld [smem:[#allocation2 + $0x43]] }
0x1762   :  { %v1116_v0 = vmul.f32 %v1115_v62, %v1110_v61  ;;  %v1216_v62 = vstv %s3596_s18 }
0x1764   :  { %v1118_v1 = vadd.f32 %v1117_v63, %v1116_v0  ;;  %v1202_v63 = vstv %s3592_s19  ;;  %v1213_v0 = vstv %s3595_s22 }
0x1766   :  { %v1119_v2 = vsel %vm770_vm7, %v1118_v1, 0.0 }
0x1767   :  { %v1120_v3 = vmul.f32 0.5, %v1119_v2 }
0x1769   :  { %4194 = vtanh.f32 %v1120_v3 }
0x1773   :  { %v4195_v4 = vpop.eup %4194 }
0x1774   :  { %v1122_v5 = vmul.f32 0.5, %v4195_v4 }
0x1776   :  { %v1123_v6 = vadd.f32 0.5, %v1122_v5 }
0x1778   :  { %v1124_v7 = vmul.f32 %v1123_v6, %v1119_v2 }
0x177a   :  { %1136 = vrot.lane.b32.xlu1 %v1124_v7, %s4393_s24  ;;  %1131 = vrot.lane.b32.xlu0 %v1124_v7, %s4390_s21  ;;  %v1130_v15 = vmul.f32 %v1129_v8, %v1124_v7  ;;  %v1220_v7 = vstv %s3597_s2  ;;  %v1209_v8 = vstv %s3594_s26 }
0x17ec   :  { %v1137_v12 = vpop.permute.xlu1 %1136  ;;  %v1132_v13 = vpop.permute.xlu0 %1131 }
0x17ed   :  { %v1134_v53 = vmul.f32 %v1133_v10, %v1132_v13  ;;  %v1139_v16 = vmul.f32 %v1138_v11, %v1137_v12 }
0x17ef   :  { %v1135_v57 = vadd.f32 %v1134_v53, %v1130_v15 }
0x17f1   :  { %v1140_v19 = vadd.f32 %v1139_v16, %v1135_v57  ;;  %v1232_v16 = vstv %s3599_s27  ;;  %v1243_v57 = vstv %s3602_s28 }
0x17f3   :  { %v1142_v20 = vadd.f32 %v1141_v18, %v1140_v19  ;;  %v1229_v18 = vstv %s3598_s0  ;;  %v1240_v19 = vstv %s3601_s29  ;;  %s3606_s0 = sld [smem:[#allocation2 + $0x49]]  ;;  %s3607_s29 = sld [smem:[#allocation2 + $0x4b]] }
0x17f5   :  { %v1143_v21 = vsel %vm770_vm7, %v1142_v20, 0.0 }
0x17f6   :  { %v1144_v22 = vmul.f32 0.1, %v1143_v21 }
0x17f8   :  { %v1145_v23 = vadd.f32 %v1144_v22, %v4586_v14  ;;  %v1155_v14 = vstv %s3582_s8 }
0x17fa   :  { %v1146_v24 = vmul.f32 0.5, %v1145_v23 }
0x17fc   :  { %4196 = vtanh.f32 %v1146_v24 }
0x1806   :  { %v4197_v25 = vpop.eup %4196 }
0x1807   :  { %v1148_v26 = vmul.f32 0.5, %v4197_v25 }
0x1809   :  { %v1149_v27 = vadd.f32 0.5, %v1148_v26  ;;  %v1236_v26 = vstv %s3600_s30 }
0x180b   :  { %v1150_v29 = vmul.f32 %v1149_v27, %v1145_v23 }
0x180d   :  { %v1159_v31 = vmul.f32 %v1158_v28, %v1150_v29  ;;  %v1153_v37 = vmul.f32 %v1152_v36, %v1150_v29  ;;  %v1247_v29 = vstv %s3603_s5  ;;  %s3608_s5 = sld [smem:[#allocation2 + $0x4c]] }
0x180f   :  { %v1162_v32 = vadd.f32 %v1161_v30, %v1159_v31  ;;  %v1156_v40 = vadd.f32 %v1155_v14, %v1153_v37 }
0x1811   :  { %v1163_v33 = vmul.f32 0.5, %v1162_v32 }
0x1813   :  { %v1164_v35 = vmul.f32 1.442695, %v1163_v33 }
0x1815   :  { %4198 = vpow2.f32 %v1164_v35 }
0x181f   :  { %v4199_v39 = vpop.eup %4198 }
0x1820   :  { %v1168_v41 = vmul.f32 %v4199_v39, %v3585_v38 }
0x1822   :  { %v1169_v60 = vadd.f32 %v1168_v41, %v1156_v40 }
0x1824   :  { %v1170_v42 = vsel %vm770_vm7, %v1169_v60, 0.0  ;;  %vm3042_vm7 = vcmp.lt.s32.totalorder %v4430_v9, 64 }
0x1825   :  { %1172 = vrot.lane.b32.xlu1 %v1170_v42, %s4390_s21 }
0x1897   :  { %v1173_v47 = vpop.permute.xlu1 %1172 }
0x1898   :  { %v1179_v50 = vmul.f32 %v1178_v45, %v1173_v47  ;;  %v1190_v51 = vmul.f32 %v1189_v46, %v1173_v47 }
0x189a   :  { %v1180_v55 = vadd.f32 %v1179_v50, %v1176_v48  ;;  %v1191_v56 = vadd.f32 %v1190_v51, %v1187_v49 }
0x189c   :  { %v1194_v58 = vadd.f32 %v1193_v52, %v1191_v56  ;;  %v1183_v59 = vadd.f32 %v1182_v54, %v1180_v55 }
0x189e   :  { %v1195_v34 = vsel %vm1171_vm8, %v1194_v58, 0.0  ;;  %v1184_v61 = vsel %vm1171_vm8, %v1183_v59, 0.0 }
0x189f   :  { %1199 = vrot.lane.b32.xlu1 %v1195_v34, %s4390_s21  ;;  %1197 = vrot.lane.b32.xlu0 %v1184_v61, %s4390_s21 }
0x1911   :  { %v1200_v1 = vpop.permute.xlu1 %1199  ;;  %v1198_v2 = vpop.permute.xlu0 %1197 }
0x1912   :  { %v1206_v3 = vmul.f32 %v1205_v17, %v1200_v1  ;;  %v1217_v4 = vmul.f32 %v1216_v62, %v1200_v1  ;;  %v1203_v5 = vmul.f32 %v1202_v63, %v1198_v2  ;;  %v1214_v6 = vmul.f32 %v1213_v0, %v1198_v2 }
0x1914   :  { %v1207_v10 = vadd.f32 %v1206_v3, %v1203_v5  ;;  %v1218_v11 = vadd.f32 %v1217_v4, %v1214_v6  ;;  %v1278_v4 = vstv %s3604_s14 }
0x1916   :  { %v1221_v12 = vadd.f32 %v1220_v7, %v1218_v11  ;;  %v1210_v13 = vadd.f32 %v1209_v8, %v1207_v10  ;;  %v1286_v7 = vstv %s3605_s15 }
0x1918   :  { %v1222_v15 = vsel %vm1196_vm9, %v1221_v12, 0.0  ;;  %v1211_v53 = vsel %vm1196_vm9, %v1210_v13, 0.0 }
0x1919   :  { %1226 = vrot.lane.b32.xlu1 %v1222_v15, %s4390_s21  ;;  %1224 = vrot.lane.b32.xlu0 %v1211_v53, %s4390_s21 }
0x198b   :  { %v1227_v20 = vpop.permute.xlu1 %1226  ;;  %v1225_v21 = vpop.permute.xlu0 %1224 }
0x198c   :  { %v1233_v22 = vmul.f32 %v1232_v16, %v1227_v20  ;;  %v1244_v23 = vmul.f32 %v1243_v57, %v1227_v20  ;;  %v1230_v24 = vmul.f32 %v1229_v18, %v1225_v21  ;;  %v1241_v25 = vmul.f32 %v1240_v19, %v1225_v21 }
0x198d   :  { %v1322_v21 = vstv %s3606_s0 }
0x198e   :  { %v1234_v27 = vadd.f32 %v1233_v22, %v1230_v24  ;;  %v1245_v28 = vadd.f32 %v1244_v23, %v1241_v25  ;;  %v1330_v24 = vstv %s3607_s29 }
0x1990   :  { %v1237_v30 = vadd.f32 %v1236_v26, %v1234_v27  ;;  %v1248_v32 = vadd.f32 %v1247_v29, %v1245_v28 }
0x1992   :  { %v1238_v31 = vsel %vm1223_vm10, %v1237_v30, 0.0  ;;  %v4631_v35 = vsel %vm1223_vm10, %v1248_v32, 0.0 }
0x1993   :  { %1252 = vadd.xlane.f32.xlu0 %v1238_v31  ;;  %v1261_v33 = vmul.f32 %v1238_v31, %v1238_v31  ;;  %v1305_v36 = vmul.f32 %v4631_v35, %v4631_v35 }
0x1995   :  { %1262 = vadd.xlane.f32.xlu1 %v1261_v33  ;;  %v1344_v33 = vstv %s3608_s5  ;;  %s3614_s5 = sld [smem:[#allocation2 + $0xc7]] }
0x1997   :  { %1296 = vadd.xlane.f32.xlu0 %v4631_v35 }
0x199b   :  { %1306 = vadd.xlane.f32.xlu0 %v1305_v36 }
0x1a20   :  { %v1253_v37 = vpop.xlane.xlu0 %1252 }
0x1a21   :  { %v1254_v14 = vrot.slane %v1253_v37, 4 }
0x1a22   :  { %v1263_v38 = vpop.xlane.xlu1 %1262 }
0x1a23   :  { %v1255_v39 = vadd.f32 %v1254_v14, %v1253_v37  ;;  %v1264_v40 = vrot.slane %v1263_v38, 4 }
0x1a24   :  { %v1297_v49 = vpop.xlane.xlu0 %1296 }
0x1a25   :  { %v1265_v41 = vadd.f32 %v1264_v40, %v1263_v38  ;;  %v1256_v60 = vrot.slane %v1255_v39, 2  ;;  %v1298_v51 = vrot.slane %v1297_v49, 4 }
0x1a27   :  { %v1257_v42 = vadd.f32 %v1256_v60, %v1255_v39  ;;  %v1266_v43 = vrot.slane %v1265_v41, 2  ;;  %v1299_v54 = vadd.f32 %v1298_v51, %v1297_v49 }
0x1a28   :  { %v1307_v50 = vpop.xlane.xlu0 %1306 }
0x1a29   :  { %v1258_v44 = vrot.slane %v1257_v42, 1  ;;  %v1267_v45 = vadd.f32 %v1266_v43, %v1265_v41  ;;  %v1308_v52 = vrot.slane %v1307_v50, 4  ;;  %v1300_v56 = vrot.slane %v1299_v54, 2 }
0x1a2b   :  { %v1259_v46 = vadd.f32 %v1258_v44, %v1257_v42  ;;  %v1268_v47 = vrot.slane %v1267_v45, 1  ;;  %v1309_v55 = vadd.f32 %v1308_v52, %v1307_v50  ;;  %v1301_v34 = vadd.f32 %v1300_v56, %v1299_v54 }
0x1a2d   :  { %3935 = vpush %v1259_v46  ;;  %v1269_v48 = vadd.f32 %v1268_v47, %v1267_v45  ;;  %v1310_v59 = vrot.slane %v1309_v55, 2  ;;  %v1302_v17 = vrot.slane %v1301_v34, 1 }
0x1a2f   :  { %3937 = vpush %v1269_v48  ;;  %v1311_v61 = vadd.f32 %v1310_v59, %v1309_v55  ;;  %v1303_v0 = vadd.f32 %v1302_v17, %v1301_v34 }
0x1a31   :  { %v1312_v62 = vrot.slane %v1311_v61, 1 }
0x1a33   :  { %v1313_v1 = vadd.f32 %v1312_v62, %v1311_v61 }
0x1a5e   :  { %s3936_s6 = spop %3935 }
0x1a5f   :  { %s1271_s7 = smul.f32 0.0032894737, %s3936_s6  ;;  %s3609_s6 = sld [smem:[#allocation2 + $0x4d]] }
0x1a60   :  { %s3938_s8 = spop %3937 }
0x1a61   :  { %s1273_s9 = smul.f32 %s1271_s7, %s1271_s7  ;;  %v1276_v2 = vstv %s1271_s7  ;;  %s3610_s7 = sld [smem:[#allocation2 + $0x4e]] }
0x1a62   :  { %s1272_s10 = smul.f32 0.0032894737, %s3938_s8  ;;  %v1277_v3 = vsub.f32 %v1238_v31, %v1276_v2 }
0x1a64   :  { %s1274_s11 = ssub.f32 %s1272_s10, %s1273_s9  ;;  %v1279_v5 = vmul.f32 %v1278_v4, %v1277_v3 }
0x1a65   :  { %v1347_v36 = vstv %s3609_s6  ;;  %s3615_s6 = sld [smem:[#allocation2 + $0xc8]] }
0x1a66   :  { %s1275_s12 = smax.f32 %s4391_s20, %s1274_s11 }
0x1a67   :  { %s1280_s13 = sadd.f32 1e-05, %s1275_s12  ;;  %v1351_v39 = vstv %s3610_s7  ;;  %s3616_s7 = sld [smem:[#allocation2 + $0xc9]] }
0x1a69   :  { %v1281_v58 = vstv %s1280_s13 }
0x1a6a   :  { %4200 = vrsqrt.f32 %v1281_v58 }
0x1a74   :  { %v4201_v63 = vpop.eup %4200 }
0x1a75   :  { %3939 = vpush %v4201_v63 }
0x1a76   :  { %3941 = vpush %v1303_v0 }
0x1a77   :  { %3943 = vpush %v1313_v1 }
0x1aa6   :  { %s3940_s16 = spop %3939 }
0x1aa7   :  { %v1284_v6 = vstv %s3940_s16  ;;  %s3942_s17 = spop %3941  ;;  %s3611_s16 = sld [smem:[#allocation2 + $0x4f]] }
0x1aa8   :  { %v1285_v8 = vmul.f32 %v1284_v6, %v1279_v5  ;;  %s1315_s18 = smul.f32 0.0032894737, %s3942_s17  ;;  %s3944_s19 = spop %3943 }
0x1aa9   :  { %s1316_s22 = smul.f32 0.0032894737, %s3944_s19  ;;  %s3612_s17 = sld [smem:[#allocation2 + $0x50]] }
0x1aaa   :  { %v1287_v10 = vadd.f32 %v1286_v7, %v1285_v8  ;;  %s1317_s2 = smul.f32 %s1315_s18, %s1315_s18  ;;  %v1320_v19 = vstv %s1315_s18 }
0x1aab   :  { %v1321_v20 = vsub.f32 %v4631_v35, %v1320_v19 }
0x1aac   :  { %s1318_s26 = ssub.f32 %s1316_s22, %s1317_s2  ;;  %v1288_v11 = vsel %vm1223_vm10, %v1287_v10, 0.0 }
0x1aad   :  { %v1289_v12 = vmul.f32 0.5, %v1288_v11  ;;  %v1323_v22 = vmul.f32 %v1322_v21, %v1321_v20  ;;  %v1382_v62 = vstv %s3611_s16 }
0x1aae   :  { %s1319_s27 = smax.f32 %s4391_s20, %s1318_s26 }
0x1aaf   :  { %s1324_s28 = sadd.f32 1e-05, %s1319_s27  ;;  %4202 = vtanh.f32 %v1289_v12  ;;  %v1390_v1 = vstv %s3612_s17  ;;  %s3617_s17 = sld [smem:[#allocation2 + $0xca]] }
0x1ab1   :  { %v1325_v13 = vstv %s1324_s28 }
0x1ab2   :  { %4204 = vrsqrt.f32 %v1325_v13 }
0x1ab9   :  { %v4203_v15 = vpop.eup %4202 }
0x1aba   :  { %v1291_v53 = vmul.f32 0.5, %v4203_v15 }
0x1abc   :  { %v4205_v16 = vpop.eup %4204  ;;  %v1292_v57 = vadd.f32 0.5, %v1291_v53 }
0x1abd   :  { %3945 = vpush %v4205_v16 }
0x1abe   :  { %v1293_v18 = vmul.f32 %v1292_v57, %v1288_v11 }
0x1ac0   :  { %1339 = vrot.lane.b32.xlu1 %v1293_v18, %s4390_s21 }
0x1aee   :  { %s3946_s30 = spop %3945 }
0x1aef   :  { %v1328_v23 = vstv %s3946_s30  ;;  %s3613_s30 = sld [smem:[#allocation2 + $0xc6]] }
0x1af0   :  { %v1329_v25 = vmul.f32 %v1328_v23, %v1323_v22 }
0x1af2   :  { %v1331_v26 = vadd.f32 %v1330_v24, %v1329_v25 }
0x1af4   :  { %v1332_v27 = vsel %vm1223_vm10, %v1331_v26, 0.0 }
0x1af5   :  { %v1333_v28 = vmul.f32 0.5, %v1332_v27 }
0x1af7   :  { %4206 = vtanh.f32 %v1333_v28 }
0x1b01   :  { %v4207_v29 = vpop.eup %4206 }
0x1b02   :  { %v1335_v30 = vmul.f32 0.5, %v4207_v29 }
0x1b04   :  { %v1336_v31 = vadd.f32 0.5, %v1335_v30  ;;  %v1426_v30 = vstv %s3613_s30 }
0x1b06   :  { %v1337_v32 = vmul.f32 %v1336_v31, %v1332_v27 }
0x1b08   :  { %1341 = vrot.lane.b32.xlu0 %v1337_v32, %s4390_s21 }
0x1b32   :  { %v1340_v35 = vpop.permute.xlu1 %1339 }
0x1b33   :  { %v1345_v14 = vmul.f32 %v1344_v33, %v1340_v35  ;;  %v1434_v33 = vstv %s3614_s5 }
0x1b7a   :  { %v1342_v37 = vpop.permute.xlu0 %1341 }
0x1b7b   :  { %v1348_v38 = vmul.f32 %v1347_v36, %v1342_v37  ;;  %v1438_v37 = vstv %s3615_s6 }
0x1b7d   :  { %v1349_v40 = vadd.f32 %v1348_v38, %v1345_v14  ;;  %v1441_v38 = vstv %s3616_s7 }
0x1b7f   :  { %v1352_v41 = vadd.f32 %v1351_v39, %v1349_v40 }
0x1b81   :  { %v1353_v60 = vsel %vm1338_vm11, %v1352_v41, 0.0 }
0x1b82   :  { %1356 = vadd.xlane.f32.xlu1 %v1353_v60  ;;  %v1365_v42 = vmul.f32 %v1353_v60, %v1353_v60 }
0x1b84   :  { %1366 = vadd.xlane.f32.xlu0 %v1365_v42 }
0x1c0f   :  { %v1357_v43 = vpop.xlane.xlu1 %1356 }
0x1c10   :  { %v1358_v44 = vrot.slane %v1357_v43, 4 }
0x1c11   :  { %v1367_v45 = vpop.xlane.xlu0 %1366 }
0x1c12   :  { %v1359_v46 = vadd.f32 %v1358_v44, %v1357_v43  ;;  %v1368_v47 = vrot.slane %v1367_v45, 4 }
0x1c14   :  { %v1369_v48 = vadd.f32 %v1368_v47, %v1367_v45  ;;  %v1360_v49 = vrot.slane %v1359_v46, 2 }
0x1c16   :  { %v1361_v50 = vadd.f32 %v1360_v49, %v1359_v46  ;;  %v1370_v51 = vrot.slane %v1369_v48, 2 }
0x1c18   :  { %v1362_v52 = vrot.slane %v1361_v50, 1  ;;  %v1371_v54 = vadd.f32 %v1370_v51, %v1369_v48 }
0x1c1a   :  { %v1363_v55 = vadd.f32 %v1362_v52, %v1361_v50  ;;  %v1372_v56 = vrot.slane %v1371_v54, 1 }
0x1c1c   :  { %3947 = vpush %v1363_v55  ;;  %v1373_v58 = vadd.f32 %v1372_v56, %v1371_v54 }
0x1c1e   :  { %3949 = vpush %v1373_v58 }
0x1c4d   :  { %s3948_s8 = spop %3947 }
0x1c4e   :  { %s1375_s9 = smul.f32 0.003125, %s3948_s8 }
0x1c4f   :  { %s3950_s10 = spop %3949 }
0x1c50   :  { %s1377_s11 = smul.f32 %s1375_s9, %s1375_s9  ;;  %v1380_v61 = vstv %s1375_s9 }
0x1c51   :  { %s1376_s12 = smul.f32 0.003125, %s3950_s10  ;;  %v1381_v17 = vsub.f32 %v1353_v60, %v1380_v61 }
0x1c53   :  { %s1378_s13 = ssub.f32 %s1376_s12, %s1377_s11  ;;  %v1383_v63 = vmul.f32 %v1382_v62, %v1381_v17  ;;  %v1472_v17 = vstv %s3617_s17 }
0x1c55   :  { %s1379_s14 = smax.f32 %s4391_s20, %s1378_s13 }
0x1c56   :  { %s1384_s15 = sadd.f32 1e-05, %s1379_s14 }
0x1c58   :  { %v1385_v59 = vstv %s1384_s15 }
0x1c59   :  { %4208 = vrsqrt.f32 %v1385_v59 }
0x1c63   :  { %v4209_v34 = vpop.eup %4208 }
0x1c64   :  { %3951 = vpush %v4209_v34 }
0x1c95   :  { %s3952_s18 = spop %3951 }
0x1c96   :  { %v1388_v0 = vstv %s3952_s18  ;;  %s3618_s18 = sld [smem:[#allocation2 + $0xcb]] }
0x1c97   :  { %v1389_v2 = vmul.f32 %v1388_v0, %v1383_v63 }
0x1c99   :  { %v1391_v3 = vadd.f32 %v1390_v1, %v1389_v2 }
0x1c9b   :  { %v1392_v4 = vsel %vm1338_vm11, %v1391_v3, 0.0 }
0x1c9c   :  { %v1393_v5 = vmul.f32 0.5, %v1392_v4  ;;  %v1480_v0 = vstv %s3618_s18 }
0x1c9e   :  { %4210 = vtanh.f32 %v1393_v5 }
0x1ca8   :  { %v4211_v6 = vpop.eup %4210 }
0x1ca9   :  { %v1395_v7 = vmul.f32 0.5, %v4211_v6 }
0x1cab   :  { %v1396_v8 = vadd.f32 0.5, %v1395_v7 }
0x1cad   :  { %v4651_v10 = vmul.f32 %v1396_v8, %v1392_v4 }
0x1caf   :  { %1400 = vadd.xlane.f32.xlu1 %v4651_v10  ;;  %v1409_v11 = vmul.f32 %v4651_v10, %v4651_v10 }
0x1cb1   :  { %1410 = vadd.xlane.f32.xlu0 %v1409_v11 }
0x1d3c   :  { %v1401_v12 = vpop.xlane.xlu1 %1400 }
0x1d3d   :  { %v1402_v13 = vrot.slane %v1401_v12, 4 }
0x1d3e   :  { %v1411_v15 = vpop.xlane.xlu0 %1410 }
0x1d3f   :  { %v1403_v53 = vadd.f32 %v1402_v13, %v1401_v12  ;;  %v1412_v16 = vrot.slane %v1411_v15, 4 }
0x1d41   :  { %v1413_v57 = vadd.f32 %v1412_v16, %v1411_v15  ;;  %v1404_v18 = vrot.slane %v1403_v53, 2 }
0x1d43   :  { %v1405_v19 = vadd.f32 %v1404_v18, %v1403_v53  ;;  %v1414_v20 = vrot.slane %v1413_v57, 2 }
0x1d45   :  { %v1406_v21 = vrot.slane %v1405_v19, 1  ;;  %v1415_v22 = vadd.f32 %v1414_v20, %v1413_v57 }
0x1d47   :  { %v1407_v23 = vadd.f32 %v1406_v21, %v1405_v19  ;;  %v1416_v24 = vrot.slane %v1415_v22, 1 }
0x1d49   :  { %3953 = vpush %v1407_v23  ;;  %v1417_v25 = vadd.f32 %v1416_v24, %v1415_v22 }
0x1d4b   :  { %3955 = vpush %v1417_v25 }
0x1d7a   :  { %s3954_s19 = spop %3953 }
0x1d7b   :  { %s1419_s22 = smul.f32 0.003125, %s3954_s19 }
0x1d7c   :  { %s3956_s2 = spop %3955 }
0x1d7d   :  { %s1421_s26 = smul.f32 %s1419_s22, %s1419_s22  ;;  %v1424_v28 = vstv %s1419_s22  ;;  %s3619_s22 = sld [smem:[#allocation2 + $0xcc]] }
0x1d7e   :  { %s1420_s27 = smul.f32 0.003125, %s3956_s2  ;;  %v1425_v29 = vsub.f32 %v4651_v10, %v1424_v28  ;;  %s3621_s2 = sld [smem:[#allocation2 + $0xce]] }
0x1d80   :  { %s1422_s28 = ssub.f32 %s1420_s27, %s1421_s26  ;;  %v1427_v31 = vmul.f32 %v1426_v30, %v1425_v29  ;;  %s3620_s26 = sld [smem:[#allocation2 + $0xcd]] }
0x1d81   :  { %s3622_s27 = sld [smem:[#allocation2 + $0xcf]] }
0x1d82   :  { %s1423_s0 = smax.f32 %s4391_s20, %s1422_s28  ;;  %s3623_s28 = sld [smem:[#allocation2 + $0xd0]] }
0x1d83   :  { %s1428_s29 = sadd.f32 1e-05, %s1423_s0  ;;  %v1498_v12 = vstv %s3619_s22  ;;  %s3624_s0 = sld [smem:[#allocation2 + $0xd1]] }
0x1d84   :  { %v1494_v11 = vstv %s3621_s2 }
0x1d85   :  { %v1429_v26 = vstv %s1428_s29 }
0x1d86   :  { %4212 = vrsqrt.f32 %v1429_v26  ;;  %v1503_v13 = vstv %s3620_s26 }
0x1d87   :  { %v1508_v18 = vstv %s3622_s27 }
0x1d88   :  { %v1513_v24 = vstv %s3623_s28  ;;  %s3629_s28 = sld [smem:[#allocation2 + $0xd6]] }
0x1d89   :  { %v1516_v28 = vstv %s3624_s0  ;;  %s3630_s0 = sld [smem:[#allocation2 + $0xd7]] }
0x1d90   :  { %v4213_v27 = vpop.eup %4212 }
0x1d91   :  { %3957 = vpush %v4213_v27 }
0x1dc2   :  { %s3958_s8 = spop %3957 }
0x1dc3   :  { %v1432_v32 = vstv %s3958_s8 }
0x1dc4   :  { %v1433_v35 = vmul.f32 %v1432_v32, %v1427_v31 }
0x1dc6   :  { %v1435_v36 = vadd.f32 %v1434_v33, %v1433_v35 }
0x1dc8   :  { %v1436_v14 = vsel %vm1338_vm11, %v1435_v36, 0.0 }
0x1dc9   :  { %v1439_v39 = vmul.f32 %v1438_v37, %v1436_v14 }
0x1dcb   :  { %v1442_v40 = vadd.f32 %v1441_v38, %v1439_v39 }
0x1dcd   :  { %v1443_v41 = vsel %vm1338_vm11, %v1442_v40, 0.0 }
0x1dce   :  { %1446 = vadd.xlane.f32.xlu1 %v1443_v41  ;;  %v1455_v60 = vmul.f32 %v1443_v41, %v1443_v41 }
0x1dd0   :  { %1456 = vadd.xlane.f32.xlu0 %v1455_v60 }
0x1e5b   :  { %v1447_v42 = vpop.xlane.xlu1 %1446 }
0x1e5c   :  { %v1448_v43 = vrot.slane %v1447_v42, 4 }
0x1e5d   :  { %v1457_v44 = vpop.xlane.xlu0 %1456 }
0x1e5e   :  { %v1449_v45 = vadd.f32 %v1448_v43, %v1447_v42  ;;  %v1458_v46 = vrot.slane %v1457_v44, 4 }
0x1e60   :  { %v1459_v47 = vadd.f32 %v1458_v46, %v1457_v44  ;;  %v1450_v48 = vrot.slane %v1449_v45, 2 }
0x1e62   :  { %v1451_v49 = vadd.f32 %v1450_v48, %v1449_v45  ;;  %v1460_v50 = vrot.slane %v1459_v47, 2 }
0x1e64   :  { %v1452_v51 = vrot.slane %v1451_v49, 1  ;;  %v1461_v52 = vadd.f32 %v1460_v50, %v1459_v47 }
0x1e66   :  { %v1453_v54 = vadd.f32 %v1452_v51, %v1451_v49  ;;  %v1462_v55 = vrot.slane %v1461_v52, 1 }
0x1e68   :  { %3959 = vpush %v1453_v54  ;;  %v1463_v56 = vadd.f32 %v1462_v55, %v1461_v52 }
0x1e6a   :  { %3961 = vpush %v1463_v56 }
0x1e99   :  { %s3960_s9 = spop %3959 }
0x1e9a   :  { %s1465_s10 = smul.f32 0.003125, %s3960_s9 }
0x1e9b   :  { %s3962_s11 = spop %3961 }
0x1e9c   :  { %s1467_s12 = smul.f32 %s1465_s10, %s1465_s10  ;;  %v1470_v34 = vstv %s1465_s10 }
0x1e9d   :  { %s1466_s13 = smul.f32 0.003125, %s3962_s11  ;;  %v1471_v61 = vsub.f32 %v1443_v41, %v1470_v34  ;;  %s3625_s11 = sld [smem:[#allocation2 + $0xd2]] }
0x1e9f   :  { %s1468_s14 = ssub.f32 %s1466_s13, %s1467_s12  ;;  %v1473_v62 = vmul.f32 %v1472_v17, %v1471_v61  ;;  %s3626_s12 = sld [smem:[#allocation2 + $0xd3]] }
0x1ea1   :  { %s1469_s15 = smax.f32 %s4391_s20, %s1468_s14  ;;  %s3627_s14 = sld [smem:[#allocation2 + $0xd4]] }
0x1ea2   :  { %s1474_s16 = sadd.f32 1e-05, %s1469_s15  ;;  %s3628_s15 = sld [smem:[#allocation2 + $0xd5]] }
0x1ea3   :  { %v1547_v50 = vstv %s3625_s11  ;;  %s3638_s11 = sld [smem:[#allocation2 + $0x139]] }
0x1ea4   :  { %v1475_v58 = vstv %s1474_s16 }
0x1ea5   :  { %4214 = vrsqrt.f32 %v1475_v58  ;;  %v1555_v54 = vstv %s3626_s12 }
0x1eaf   :  { %v4215_v59 = vpop.eup %4214 }
0x1eb0   :  { %3963 = vpush %v4215_v59 }
0x1ee1   :  { %s3964_s19 = spop %3963 }
0x1ee2   :  { %v1478_v63 = vstv %s3964_s19 }
0x1ee3   :  { %v1479_v1 = vmul.f32 %v1478_v63, %v1473_v62  ;;  %v1564_v62 = vstv %s3627_s14 }
0x1ee5   :  { %v1481_v2 = vadd.f32 %v1480_v0, %v1479_v1  ;;  %v1567_v0 = vstv %s3628_s15 }
0x1ee7   :  { %v1482_v3 = vsel %vm1338_vm11, %v1481_v2, 0.0 }
0x1ee8   :  { %v1483_v4 = vmul.f32 0.5, %v1482_v3 }
0x1eea   :  { %4216 = vtanh.f32 %v1483_v4 }
0x1ef4   :  { %v4217_v5 = vpop.eup %4216 }
0x1ef5   :  { %v1485_v6 = vmul.f32 0.5, %v4217_v5 }
0x1ef7   :  { %v1486_v7 = vadd.f32 0.5, %v1485_v6 }
0x1ef9   :  { %v1487_v8 = vmul.f32 %v1486_v7, %v1482_v3 }
0x1efb   :  { %1501 = vrot.lane.b32.xlu0 %v1487_v8, %s4390_s21  ;;  %1496 = vrot.lane.b32.xlu1 %v1487_v8, %s4392_s23  ;;  %v1495_v16 = vmul.f32 %v1494_v11, %v1487_v8 }
0x1eff   :  { %1506 = vrot.lane.b32.xlu1 %v1487_v8, %s4393_s24 }
0x1f03   :  { %1511 = vrot.lane.b32.xlu1 %v1487_v8, %s4394_s25 }
0x1f6d   :  { %v1502_v15 = vpop.permute.xlu0 %1501  ;;  %v1497_v53 = vpop.permute.xlu1 %1496 }
0x1f6e   :  { %v1499_v57 = vmul.f32 %v1498_v12, %v1497_v53  ;;  %v1504_v19 = vmul.f32 %v1503_v13, %v1502_v15 }
0x1f70   :  { %v1500_v20 = vadd.f32 %v1499_v57, %v1495_v16 }
0x1f71   :  { %v1507_v21 = vpop.permute.xlu1 %1506 }
0x1f72   :  { %v1505_v22 = vadd.f32 %v1504_v19, %v1500_v20  ;;  %v1509_v23 = vmul.f32 %v1508_v18, %v1507_v21 }
0x1f74   :  { %v1510_v26 = vadd.f32 %v1509_v23, %v1505_v22 }
0x1f75   :  { %v1512_v25 = vpop.permute.xlu1 %1511 }
0x1f76   :  { %v1514_v27 = vmul.f32 %v1513_v24, %v1512_v25  ;;  %v1598_v25 = vstv %s3629_s28  ;;  %s3642_s28 = sld [smem:[#allocation2 + $0x13d]] }
0x1f78   :  { %v1515_v29 = vadd.f32 %v1514_v27, %v1510_v26 }
0x1f7a   :  { %v1517_v30 = vadd.f32 %v1516_v28, %v1515_v29  ;;  %v1606_v28 = vstv %s3630_s0  ;;  %s3643_s0 = sld [smem:[#allocation2 + $0x13e]] }
0x1f7c   :  { %v1518_v31 = vsel %vm1338_vm11, %v1517_v30, 0.0 }
0x1f7d   :  { %1521 = vadd.xlane.f32.xlu0 %v1518_v31  ;;  %v1530_v32 = vmul.f32 %v1518_v31, %v1518_v31 }
0x1f7f   :  { %1531 = vadd.xlane.f32.xlu1 %v1530_v32 }
0x200a   :  { %v1522_v33 = vpop.xlane.xlu0 %1521 }
0x200b   :  { %v1523_v35 = vrot.slane %v1522_v33, 4 }
0x200c   :  { %v1532_v36 = vpop.xlane.xlu1 %1531 }
0x200d   :  { %v1524_v37 = vadd.f32 %v1523_v35, %v1522_v33  ;;  %v1533_v14 = vrot.slane %v1532_v36, 4 }
0x200f   :  { %v1534_v38 = vadd.f32 %v1533_v14, %v1532_v36  ;;  %v1525_v39 = vrot.slane %v1524_v37, 2 }
0x2011   :  { %v1526_v40 = vadd.f32 %v1525_v39, %v1524_v37  ;;  %v1535_v41 = vrot.slane %v1534_v38, 2 }
0x2013   :  { %v1527_v60 = vrot.slane %v1526_v40, 1  ;;  %v1536_v42 = vadd.f32 %v1535_v41, %v1534_v38 }
0x2015   :  { %v1528_v43 = vadd.f32 %v1527_v60, %v1526_v40  ;;  %v1537_v44 = vrot.slane %v1536_v42, 1 }
0x2017   :  { %3965 = vpush %v1528_v43  ;;  %v1538_v45 = vadd.f32 %v1537_v44, %v1536_v42 }
0x2019   :  { %3967 = vpush %v1538_v45 }
0x2048   :  { %s3966_s29 = spop %3965 }
0x2049   :  { %s1540_s30 = smul.f32 0.003125, %s3966_s29 }
0x204a   :  { %s3968_s5 = spop %3967 }
0x204b   :  { %s1542_s6 = smul.f32 %s1540_s30, %s1540_s30  ;;  %v1545_v48 = vstv %s1540_s30  ;;  %s3631_s30 = sld [smem:[#allocation2 + $0x132]] }
0x204c   :  { %s1541_s7 = smul.f32 0.003125, %s3968_s5  ;;  %v1546_v49 = vsub.f32 %v1518_v31, %v1545_v48  ;;  %s3633_s5 = sld [smem:[#allocation2 + $0x134]] }
0x204e   :  { %s1543_s8 = ssub.f32 %s1541_s7, %s1542_s6  ;;  %v1548_v51 = vmul.f32 %v1547_v50, %v1546_v49  ;;  %s3632_s6 = sld [smem:[#allocation2 + $0x133]] }
0x204f   :  { %s3634_s7 = sld [smem:[#allocation2 + $0x135]] }
0x2050   :  { %s1544_s9 = smax.f32 %s4391_s20, %s1543_s8  ;;  %s3635_s8 = sld [smem:[#allocation2 + $0x136]] }
0x2051   :  { %s1549_s10 = sadd.f32 1e-05, %s1544_s9  ;;  %v1621_v36 = vstv %s3631_s30  ;;  %s3636_s9 = sld [smem:[#allocation2 + $0x137]] }
0x2052   :  { %v1617_v35 = vstv %s3633_s5  ;;  %s3647_s30 = sld [smem:[#allocation2 + $0x141]]  ;;  %s3648_s5 = sld [smem:[#allocation2 + $0x143]] }
0x2053   :  { %v1550_v46 = vstv %s1549_s10  ;;  %s3637_s10 = sld [smem:[#allocation2 + $0x138]] }
0x2054   :  { %4218 = vrsqrt.f32 %v1550_v46 }
0x2055   :  { %v1631_v40 = vstv %s3634_s7  ;;  %s3646_s7 = sld [smem:[#allocation2 + $0x142]] }
0x2056   :  { %v1636_v45 = vstv %s3635_s8 }
0x2057   :  { %v1639_v49 = vstv %s3636_s9 }
0x205e   :  { %v4219_v47 = vpop.eup %4218 }
0x205f   :  { %3969 = vpush %v4219_v47 }
0x2090   :  { %s3970_s13 = spop %3969 }
0x2091   :  { %v1553_v52 = vstv %s3970_s13 }
0x2092   :  { %v1554_v55 = vmul.f32 %v1553_v52, %v1548_v51  ;;  %v1643_v52 = vstv %s3637_s10  ;;  %s3650_s10 = sld [smem:[#allocation2 + $0x51]] }
0x2094   :  { %v1556_v56 = vadd.f32 %v1555_v54, %v1554_v55  ;;  %v1646_v55 = vstv %s3638_s11  ;;  %s3653_s11 = sld [smem:[#allocation2 + $0x53]] }
0x2096   :  { %v1557_v58 = vsel %vm1338_vm11, %v1556_v56, 0.0 }
0x2097   :  { %v1558_v59 = vmul.f32 0.5, %v1557_v58 }
0x2099   :  { %4220 = vtanh.f32 %v1558_v59 }
0x20a3   :  { %v4221_v34 = vpop.eup %4220 }
0x20a4   :  { %v1560_v61 = vmul.f32 0.5, %v4221_v34 }
0x20a6   :  { %v1561_v17 = vadd.f32 0.5, %v1560_v61 }
0x20a8   :  { %v1562_v63 = vmul.f32 %v1561_v17, %v1557_v58 }
0x20aa   :  { %v1565_v1 = vmul.f32 %v1564_v62, %v1562_v63 }
0x20ac   :  { %v1568_v2 = vadd.f32 %v1567_v0, %v1565_v1 }
0x20ae   :  { %v1569_v3 = vsel %vm1338_vm11, %v1568_v2, 0.0 }
0x20af   :  { %1572 = vadd.xlane.f32.xlu0 %v1569_v3  ;;  %v1581_v4 = vmul.f32 %v1569_v3, %v1569_v3 }
0x20b3   :  { %1582 = vadd.xlane.f32.xlu0 %v1581_v4 }
0x213c   :  { %v1573_v5 = vpop.xlane.xlu0 %1572 }
0x213d   :  { %v1574_v6 = vrot.slane %v1573_v5, 4 }
0x213f   :  { %v1575_v7 = vadd.f32 %v1574_v6, %v1573_v5 }
0x2140   :  { %v1583_v8 = vpop.xlane.xlu0 %1582 }
0x2141   :  { %v1584_v11 = vrot.slane %v1583_v8, 4  ;;  %v1576_v12 = vrot.slane %v1575_v7, 2 }
0x2143   :  { %v1585_v13 = vadd.f32 %v1584_v11, %v1583_v8  ;;  %v1577_v15 = vadd.f32 %v1576_v12, %v1575_v7 }
0x2145   :  { %v1578_v53 = vrot.slane %v1577_v15, 1  ;;  %v1586_v16 = vrot.slane %v1585_v13, 2 }
0x2147   :  { %v1579_v57 = vadd.f32 %v1578_v53, %v1577_v15  ;;  %v1587_v18 = vadd.f32 %v1586_v16, %v1585_v13 }
0x2149   :  { %3971 = vpush %v1579_v57  ;;  %v1588_v19 = vrot.slane %v1587_v18, 1 }
0x214b   :  { %v1589_v20 = vadd.f32 %v1588_v19, %v1587_v18 }
0x214d   :  { %3973 = vpush %v1589_v20 }
0x217a   :  { %s3972_s16 = spop %3971 }
0x217b   :  { %s1591_s17 = smul.f32 0.003125, %s3972_s16 }
0x217d   :  { %s1593_s18 = smul.f32 %s1591_s17, %s1591_s17  ;;  %v1596_v23 = vstv %s1591_s17 }
0x217e   :  { %s3974_s19 = spop %3973  ;;  %v1597_v24 = vsub.f32 %v1569_v3, %v1596_v23 }
0x217f   :  { %s1592_s22 = smul.f32 0.003125, %s3974_s19 }
0x2180   :  { %v1599_v26 = vmul.f32 %v1598_v25, %v1597_v24 }
0x2181   :  { %s1594_s2 = ssub.f32 %s1592_s22, %s1593_s18  ;;  %s3639_s22 = sld [smem:[#allocation2 + $0x13a]] }
0x2183   :  { %s1595_s26 = smax.f32 %s4391_s20, %s1594_s2  ;;  %s3640_s2 = sld [smem:[#allocation2 + $0x13b]] }
0x2184   :  { %s1600_s27 = sadd.f32 1e-05, %s1595_s26 }
0x2186   :  { %v1601_v21 = vstv %s1600_s27  ;;  %s3641_s27 = sld [smem:[#allocation2 + $0x13c]] }
0x2187   :  { %4222 = vrsqrt.f32 %v1601_v21  ;;  %v1677_v16 = vstv %s3639_s22  ;;  %s3661_s22 = sld [smem:[#allocation2 + $0x5c]] }
0x2189   :  { %v1685_v19 = vstv %s3640_s2  ;;  %s3658_s2 = sld [smem:[#allocation2 + $0x5b]] }
0x2191   :  { %v4223_v22 = vpop.eup %4222 }
0x2192   :  { %3975 = vpush %v4223_v22 }
0x21c3   :  { %s3976_s29 = spop %3975 }
0x21c4   :  { %v1604_v27 = vstv %s3976_s29  ;;  %s3644_s29 = sld [smem:[#allocation2 + $0x13f]] }
0x21c5   :  { %v1605_v29 = vmul.f32 %v1604_v27, %v1599_v26 }
0x21c7   :  { %v1607_v30 = vadd.f32 %v1606_v28, %v1605_v29  ;;  %v1697_v28 = vstv %s3642_s28  ;;  %v1701_v29 = vstv %s3641_s27  ;;  %s3666_s27 = sld [smem:[#allocation2 + $0x60]]  ;;  %s3662_s28 = sld [smem:[#allocation2 + $0x5d]] }
0x21c9   :  { %v1608_v31 = vsel %vm1338_vm11, %v1607_v30, 0.0  ;;  %v1706_v30 = vstv %s3643_s0  ;;  %s3665_s0 = sld [smem:[#allocation2 + $0x5f]] }
0x21ca   :  { %v1609_v32 = vmul.f32 0.1, %v1608_v31 }
0x21cc   :  { %v4680_v33 = vadd.f32 %v1609_v32, %v4651_v10  ;;  %v1626_v10 = vstv %s3632_s6  ;;  %s3645_s6 = sld [smem:[#allocation2 + $0x140]] }
0x21ce   :  { %1624 = vrot.lane.b32.xlu0 %v4680_v33, %s4390_s21  ;;  %1619 = vrot.lane.b32.xlu1 %v4680_v33, %s4392_s23  ;;  %v1618_v38 = vmul.f32 %v1617_v35, %v4680_v33 }
0x21d2   :  { %1629 = vrot.lane.b32.xlu1 %v4680_v33, %s4393_s24 }
0x21d6   :  { %1634 = vrot.lane.b32.xlu1 %v4680_v33, %s4394_s25 }
0x2240   :  { %v4690_v37 = vpop.permute.xlu0 %1624  ;;  %v1620_v14 = vpop.permute.xlu1 %1619 }
0x2241   :  { %v1622_v39 = vmul.f32 %v1621_v36, %v1620_v14  ;;  %v1627_v41 = vmul.f32 %v1626_v10, %v4690_v37 }
0x2243   :  { %v1623_v60 = vadd.f32 %v1622_v39, %v1618_v38  ;;  %v1709_v38 = vstv %s3644_s29  ;;  %s3667_s29 = sld [smem:[#allocation2 + $0x62]] }
0x2244   :  { %v1630_v42 = vpop.permute.xlu1 %1629 }
0x2245   :  { %v1628_v43 = vadd.f32 %v1627_v41, %v1623_v60  ;;  %v1632_v44 = vmul.f32 %v1631_v40, %v1630_v42 }
0x2247   :  { %v1633_v47 = vadd.f32 %v1632_v44, %v1628_v43 }
0x2248   :  { %v1635_v46 = vpop.permute.xlu1 %1634 }
0x2249   :  { %v1637_v48 = vmul.f32 %v1636_v45, %v1635_v46 }
0x224b   :  { %v1638_v50 = vadd.f32 %v1637_v48, %v1633_v47  ;;  %v1726_v47 = vstv %s3647_s30  ;;  %s3664_s30 = sld [smem:[#allocation2 + $0x61]] }
0x224d   :  { %v1640_v51 = vadd.f32 %v1639_v49, %v1638_v50  ;;  %v1729_v49 = vstv %s3648_s5 }
0x224f   :  { %v1641_v54 = vsel %vm1338_vm11, %v1640_v51, 0.0 }
0x2250   :  { %v1644_v56 = vmul.f32 %v1643_v52, %v1641_v54 }
0x2252   :  { %v1647_v58 = vadd.f32 %v1646_v55, %v1644_v56  ;;  %v1720_v55 = vstv %s3645_s6 }
0x2254   :  { %v1648_v59 = vsel %vm1338_vm11, %v1647_v58, 0.0  ;;  %v3649_v58 = vld [vmem:[%s5012_s1 + $0x10] sm:$0xff] }
0x2255   :  { %1651 = vadd.xlane.f32.xlu0 %v1648_v59  ;;  %v1660_v34 = vmul.f32 %v1648_v59, %v1648_v59 }
0x2257   :  { %1661 = vadd.xlane.f32.xlu1 %v1660_v34 }
0x22e2   :  { %v1652_v61 = vpop.xlane.xlu0 %1651 }
0x22e3   :  { %v1653_v17 = vrot.slane %v1652_v61, 4 }
0x22e4   :  { %v1662_v62 = vpop.xlane.xlu1 %1661 }
0x22e5   :  { %v1654_v63 = vadd.f32 %v1653_v17, %v1652_v61  ;;  %v1663_v0 = vrot.slane %v1662_v62, 4 }
0x22e7   :  { %v1664_v1 = vadd.f32 %v1663_v0, %v1662_v62  ;;  %v1655_v2 = vrot.slane %v1654_v63, 2  ;;  %v1754_v0 = vstv %s3653_s11 }
0x22e9   :  { %v1656_v3 = vadd.f32 %v1655_v2, %v1654_v63  ;;  %v1665_v4 = vrot.slane %v1664_v1, 2  ;;  %v1743_v63 = vstv %s3650_s10 }
0x22eb   :  { %v1657_v5 = vrot.slane %v1656_v3, 1  ;;  %v1666_v6 = vadd.f32 %v1665_v4, %v1664_v1  ;;  %v1744_v4 = vmul.f32 %v1743_v63, %v4690_v37 }
0x22ed   :  { %v1658_v7 = vadd.f32 %v1657_v5, %v1656_v3  ;;  %v1667_v8 = vrot.slane %v1666_v6, 1  ;;  %v1755_v5 = vmul.f32 %v1754_v0, %v4690_v37 }
0x22ef   :  { %3977 = vpush %v1658_v7  ;;  %v1668_v11 = vadd.f32 %v1667_v8, %v1666_v6 }
0x22f1   :  { %3979 = vpush %v1668_v11 }
0x2320   :  { %s3978_s12 = spop %3977 }
0x2321   :  { %s1670_s13 = smul.f32 0.003125, %s3978_s12  ;;  %s3651_s12 = sld [smem:[#allocation2 + $0x52]] }
0x2322   :  { %s3980_s14 = spop %3979 }
0x2323   :  { %s1672_s15 = smul.f32 %s1670_s13, %s1670_s13  ;;  %v1675_v15 = vstv %s1670_s13  ;;  %s3654_s13 = sld [smem:[#allocation2 + $0x54]] }
0x2324   :  { %s1671_s16 = smul.f32 0.003125, %s3980_s14  ;;  %v1676_v53 = vsub.f32 %v1648_v59, %v1675_v15  ;;  %s3655_s14 = sld [smem:[#allocation2 + $0x56]] }
0x2326   :  { %s1673_s17 = ssub.f32 %s1671_s16, %s1672_s15  ;;  %v1678_v57 = vmul.f32 %v1677_v16, %v1676_v53  ;;  %s3652_s15 = sld [smem:[#allocation2 + $0x55]] }
0x2327   :  { %v1746_v1 = vstv %s3651_s12  ;;  %s3657_s16 = sld [smem:[#allocation2 + $0x58]] }
0x2328   :  { %s1674_s18 = smax.f32 %s4391_s20, %s1673_s17  ;;  %s3660_s17 = sld [smem:[#allocation2 + $0x5a]] }
0x2329   :  { %s1679_s19 = sadd.f32 1e-05, %s1674_s18  ;;  %v1757_v2 = vstv %s3654_s13  ;;  %s3656_s18 = sld [smem:[#allocation2 + $0x57]] }
0x232a   :  { %v1761_v8 = vstv %s3655_s14  ;;  %s3668_s13 = sld [smem:[#allocation2 + $0x63]]  ;;  %s3669_s14 = sld [smem:[#allocation2 + $0x65]] }
0x232b   :  { %v1680_v12 = vstv %s1679_s19  ;;  %s3659_s19 = sld [smem:[#allocation2 + $0x59]] }
0x232c   :  { %4224 = vrsqrt.f32 %v1680_v12  ;;  %v1750_v11 = vstv %s3652_s15 }
0x232d   :  { %v1773_v37 = vstv %s3657_s16 }
0x2336   :  { %v4225_v13 = vpop.eup %4224 }
0x2337   :  { %3981 = vpush %v4225_v13 }
0x2368   :  { %s3982_s26 = spop %3981 }
0x2369   :  { %v1683_v18 = vstv %s3982_s26  ;;  %s3663_s26 = sld [smem:[#allocation2 + $0x5e]] }
0x236a   :  { %v1684_v20 = vmul.f32 %v1683_v18, %v1678_v57  ;;  %v1784_v18 = vstv %s3660_s17 }
0x236c   :  { %v1686_v21 = vadd.f32 %v1685_v19, %v1684_v20  ;;  %v1770_v19 = vstv %s3656_s18  ;;  %v1781_v20 = vstv %s3659_s19 }
0x236e   :  { %v1687_v22 = vsel %vm1338_vm11, %v1686_v21, 0.0 }
0x236f   :  { %v1688_v23 = vmul.f32 0.5, %v1687_v22 }
0x2371   :  { %4226 = vtanh.f32 %v1688_v23 }
0x237b   :  { %v4227_v24 = vpop.eup %4226 }
0x237c   :  { %v1690_v25 = vmul.f32 0.5, %v4227_v24 }
0x237e   :  { %v1691_v26 = vadd.f32 0.5, %v1690_v25 }
0x2380   :  { %v1692_v27 = vmul.f32 %v1691_v26, %v1687_v22 }
0x2382   :  { %1704 = vrot.lane.b32.xlu1 %v1692_v27, %s4393_s24  ;;  %1699 = vrot.lane.b32.xlu0 %v1692_v27, %s4390_s21  ;;  %v1698_v35 = vmul.f32 %v1697_v28, %v1692_v27  ;;  %v1788_v27 = vstv %s3661_s22  ;;  %v1777_v28 = vstv %s3658_s2 }
0x23f4   :  { %v1705_v31 = vpop.permute.xlu1 %1704  ;;  %v1700_v32 = vpop.permute.xlu0 %1699 }
0x23f5   :  { %v1702_v36 = vmul.f32 %v1701_v29, %v1700_v32  ;;  %v1707_v10 = vmul.f32 %v1706_v30, %v1705_v31 }
0x23f7   :  { %v1703_v14 = vadd.f32 %v1702_v36, %v1698_v35 }
0x23f9   :  { %v1708_v39 = vadd.f32 %v1707_v10, %v1703_v14  ;;  %v1800_v10 = vstv %s3663_s26  ;;  %v1811_v14 = vstv %s3666_s27 }
0x23fb   :  { %v1710_v40 = vadd.f32 %v1709_v38, %v1708_v39  ;;  %v1797_v38 = vstv %s3662_s28  ;;  %v1808_v39 = vstv %s3665_s0  ;;  %s3670_s28 = sld [smem:[#allocation2 + $0x64]]  ;;  %s3671_s0 = sld [smem:[#allocation2 + $0x66]] }
0x23fd   :  { %v1711_v41 = vsel %vm1338_vm11, %v1710_v40, 0.0 }
0x23fe   :  { %v1712_v60 = vmul.f32 0.1, %v1711_v41 }
0x2400   :  { %v1713_v42 = vadd.f32 %v1712_v60, %v4680_v33  ;;  %v1723_v33 = vstv %s3646_s7 }
0x2402   :  { %v1714_v43 = vmul.f32 0.5, %v1713_v42 }
0x2404   :  { %4228 = vtanh.f32 %v1714_v43 }
0x240e   :  { %v4229_v44 = vpop.eup %4228 }
0x240f   :  { %v1716_v45 = vmul.f32 0.5, %v4229_v44 }
0x2411   :  { %v1717_v46 = vadd.f32 0.5, %v1716_v45  ;;  %v1815_v45 = vstv %s3667_s29 }
0x2413   :  { %v1718_v48 = vmul.f32 %v1717_v46, %v1713_v42  ;;  %v1804_v46 = vstv %s3664_s30  ;;  %s3672_s30 = sld [smem:[#allocation2 + $0x67]] }
0x2415   :  { %v1727_v50 = vmul.f32 %v1726_v47, %v1718_v48  ;;  %v1721_v56 = vmul.f32 %v1720_v55, %v1718_v48 }
0x2417   :  { %v1730_v51 = vadd.f32 %v1729_v49, %v1727_v50  ;;  %v1724_v34 = vadd.f32 %v1723_v33, %v1721_v56 }
0x2419   :  { %v1731_v52 = vmul.f32 0.5, %v1730_v51 }
0x241b   :  { %v1732_v54 = vmul.f32 1.442695, %v1731_v52 }
0x241d   :  { %4230 = vpow2.f32 %v1732_v54 }
0x2427   :  { %v4231_v59 = vpop.eup %4230 }
0x2428   :  { %v1736_v61 = vmul.f32 %v4231_v59, %v3649_v58 }
0x242a   :  { %v1737_v17 = vadd.f32 %v1736_v61, %v1724_v34 }
0x242c   :  { %v1738_v62 = vsel %vm1338_vm11, %v1737_v17, 0.0 }
0x242d   :  { %1740 = vrot.lane.b32.xlu0 %v1738_v62, %s4390_s21 }
0x249f   :  { %v1741_v3 = vpop.permute.xlu0 %1740 }
0x24a0   :  { %v1747_v6 = vmul.f32 %v1746_v1, %v1741_v3  ;;  %v1758_v7 = vmul.f32 %v1757_v2, %v1741_v3 }
0x24a2   :  { %v1748_v12 = vadd.f32 %v1747_v6, %v1744_v4  ;;  %v1759_v13 = vadd.f32 %v1758_v7, %v1755_v5 }
0x24a4   :  { %v1762_v15 = vadd.f32 %v1761_v8, %v1759_v13  ;;  %v1751_v53 = vadd.f32 %v1750_v11, %v1748_v12 }
0x24a6   :  { %v1763_v16 = vsel %vm1739_vm12, %v1762_v15, 0.0  ;;  %v1752_v57 = vsel %vm1739_vm12, %v1751_v53, 0.0 }
0x24a7   :  { %1767 = vrot.lane.b32.xlu0 %v1763_v16, %s4390_s21  ;;  %1765 = vrot.lane.b32.xlu1 %v1752_v57, %s4390_s21 }
0x2519   :  { %v1768_v21 = vpop.permute.xlu0 %1767  ;;  %v1766_v22 = vpop.permute.xlu1 %1765 }
0x251a   :  { %v1774_v23 = vmul.f32 %v1773_v37, %v1768_v21  ;;  %v1785_v24 = vmul.f32 %v1784_v18, %v1768_v21  ;;  %v1771_v25 = vmul.f32 %v1770_v19, %v1766_v22  ;;  %v1782_v26 = vmul.f32 %v1781_v20, %v1766_v22 }
0x251c   :  { %v1775_v29 = vadd.f32 %v1774_v23, %v1771_v25  ;;  %v1786_v30 = vadd.f32 %v1785_v24, %v1782_v26  ;;  %v1846_v24 = vstv %s3668_s13 }
0x251e   :  { %v1789_v31 = vadd.f32 %v1788_v27, %v1786_v30  ;;  %v1778_v32 = vadd.f32 %v1777_v28, %v1775_v29  ;;  %v1854_v27 = vstv %s3669_s14 }
0x2520   :  { %v1790_v35 = vsel %vm1764_vm13, %v1789_v31, 0.0  ;;  %v1779_v36 = vsel %vm1764_vm13, %v1778_v32, 0.0 }
0x2521   :  { %1794 = vrot.lane.b32.xlu0 %v1790_v35, %s4390_s21  ;;  %1792 = vrot.lane.b32.xlu1 %v1779_v36, %s4390_s21 }
0x2593   :  { %v1795_v40 = vpop.permute.xlu0 %1794  ;;  %v1793_v41 = vpop.permute.xlu1 %1792 }
0x2594   :  { %v1801_v60 = vmul.f32 %v1800_v10, %v1795_v40  ;;  %v1812_v42 = vmul.f32 %v1811_v14, %v1795_v40  ;;  %v1798_v43 = vmul.f32 %v1797_v38, %v1793_v41  ;;  %v1809_v44 = vmul.f32 %v1808_v39, %v1793_v41 }
0x2595   :  { %v1890_v41 = vstv %s3670_s28 }
0x2596   :  { %v1802_v47 = vadd.f32 %v1801_v60, %v1798_v43  ;;  %v1813_v48 = vadd.f32 %v1812_v42, %v1809_v44  ;;  %v1898_v43 = vstv %s3671_s0 }
0x2598   :  { %v1816_v49 = vadd.f32 %v1815_v45, %v1813_v48  ;;  %v1805_v50 = vadd.f32 %v1804_v46, %v1802_v47 }
0x259a   :  { %v1806_v51 = vsel %vm1791_vm14, %v1805_v50, 0.0  ;;  %v4725_v52 = vsel %vm1791_vm14, %v1816_v49, 0.0 }
0x259b   :  { %1820 = vadd.xlane.f32.xlu1 %v1806_v51  ;;  %v1829_v54 = vmul.f32 %v1806_v51, %v1806_v51  ;;  %v1873_v55 = vmul.f32 %v4725_v52, %v4725_v52 }
0x259d   :  { %1830 = vadd.xlane.f32.xlu0 %v1829_v54 }
0x259f   :  { %1874 = vadd.xlane.f32.xlu1 %v1873_v55 }
0x25a1   :  { %1864 = vadd.xlane.f32.xlu0 %v4725_v52 }
0x2628   :  { %v1821_v56 = vpop.xlane.xlu1 %1820 }
0x2629   :  { %v1822_v33 = vrot.slane %v1821_v56, 4 }
0x262a   :  { %v1831_v58 = vpop.xlane.xlu0 %1830 }
0x262b   :  { %v1823_v59 = vadd.f32 %v1822_v33, %v1821_v56  ;;  %v1832_v34 = vrot.slane %v1831_v58, 4 }
0x262c   :  { %v1875_v6 = vpop.xlane.xlu1 %1874 }
0x262d   :  { %v1824_v61 = vrot.slane %v1823_v59, 2  ;;  %v1833_v17 = vadd.f32 %v1832_v34, %v1831_v58  ;;  %v1876_v8 = vrot.slane %v1875_v6, 4 }
0x262e   :  { %v1865_v5 = vpop.xlane.xlu0 %1864 }
0x262f   :  { %v1834_v62 = vrot.slane %v1833_v17, 2  ;;  %v1825_v63 = vadd.f32 %v1824_v61, %v1823_v59  ;;  %v1866_v7 = vrot.slane %v1865_v5, 4  ;;  %v1877_v12 = vadd.f32 %v1876_v8, %v1875_v6 }
0x2631   :  { %v1826_v0 = vrot.slane %v1825_v63, 1  ;;  %v1835_v1 = vadd.f32 %v1834_v62, %v1833_v17  ;;  %v1867_v11 = vadd.f32 %v1866_v7, %v1865_v5  ;;  %v1878_v15 = vrot.slane %v1877_v12, 2 }
0x2633   :  { %v1827_v2 = vadd.f32 %v1826_v0, %v1825_v63  ;;  %v1836_v3 = vrot.slane %v1835_v1, 1  ;;  %v1868_v13 = vrot.slane %v1867_v11, 2  ;;  %v1879_v57 = vadd.f32 %v1878_v15, %v1877_v12 }
0x2635   :  { %3983 = vpush %v1827_v2  ;;  %v1837_v4 = vadd.f32 %v1836_v3, %v1835_v1  ;;  %v1869_v16 = vadd.f32 %v1868_v13, %v1867_v11  ;;  %v1880_v18 = vrot.slane %v1879_v57, 1 }
0x2637   :  { %3985 = vpush %v1837_v4  ;;  %v1870_v37 = vrot.slane %v1869_v16, 1  ;;  %v1881_v21 = vadd.f32 %v1880_v18, %v1879_v57 }
0x2639   :  { %v1871_v20 = vadd.f32 %v1870_v37, %v1869_v16 }
0x2666   :  { %s3984_s5 = spop %3983 }
0x2667   :  { %s1839_s6 = smul.f32 0.0027173914, %s3984_s5  ;;  %s3673_s5 = sld [smem:[#allocation2 + $0x68]] }
0x2668   :  { %s3986_s7 = spop %3985 }
0x2669   :  { %s1841_s8 = smul.f32 %s1839_s6, %s1839_s6  ;;  %v1844_v22 = vstv %s1839_s6  ;;  %s3674_s6 = sld [smem:[#allocation2 + $0x69]] }
0x266a   :  { %s1840_s9 = smul.f32 0.0027173914, %s3986_s7  ;;  %v1845_v23 = vsub.f32 %v1806_v51, %v1844_v22 }
0x266c   :  { %s1842_s10 = ssub.f32 %s1840_s9, %s1841_s8  ;;  %v1847_v25 = vmul.f32 %v1846_v24, %v1845_v23 }
0x266d   :  { %v1915_v55 = vstv %s3673_s5  ;;  %s3679_s5 = sld [smem:[#allocation2 + $0xda]] }
0x266e   :  { %s1843_s11 = smax.f32 %s4391_s20, %s1842_s10 }
0x266f   :  { %s1848_s12 = sadd.f32 1e-05, %s1843_s11  ;;  %v1919_v59 = vstv %s3674_s6  ;;  %s3680_s6 = sld [smem:[#allocation2 + $0xdb]] }
0x2671   :  { %v1849_v53 = vstv %s1848_s12 }
0x2672   :  { %4232 = vrsqrt.f32 %v1849_v53 }
0x267c   :  { %v4233_v19 = vpop.eup %4232 }
0x267d   :  { %3987 = vpush %v4233_v19 }
0x267e   :  { %3989 = vpush %v1871_v20 }
0x267f   :  { %3991 = vpush %v1881_v21 }
0x26ae   :  { %s3988_s15 = spop %3987 }
0x26af   :  { %v1852_v26 = vstv %s3988_s15  ;;  %s3990_s16 = spop %3989  ;;  %s3675_s15 = sld [smem:[#allocation2 + $0x6a]] }
0x26b0   :  { %v1853_v28 = vmul.f32 %v1852_v26, %v1847_v25  ;;  %s1883_s17 = smul.f32 0.0027173914, %s3990_s16  ;;  %s3992_s18 = spop %3991 }
0x26b1   :  { %s1884_s19 = smul.f32 0.0027173914, %s3992_s18  ;;  %s3676_s16 = sld [smem:[#allocation2 + $0x6b]] }
0x26b2   :  { %v1855_v29 = vadd.f32 %v1854_v27, %v1853_v28  ;;  %s1885_s22 = smul.f32 %s1883_s17, %s1883_s17  ;;  %v1888_v39 = vstv %s1883_s17 }
0x26b3   :  { %v1889_v40 = vsub.f32 %v4725_v52, %v1888_v39  ;;  %v1912_v52 = vstv %s3672_s30  ;;  %s3678_s30 = sld [smem:[#allocation2 + $0xd9]] }
0x26b4   :  { %v1856_v30 = vsel %vm1791_vm14, %v1855_v29, 0.0  ;;  %s1886_s2 = ssub.f32 %s1884_s19, %s1885_s22 }
0x26b5   :  { %v1857_v31 = vmul.f32 0.5, %v1856_v30  ;;  %v1891_v60 = vmul.f32 %v1890_v41, %v1889_v40  ;;  %v1950_v18 = vstv %s3675_s15 }
0x26b6   :  { %s1887_s26 = smax.f32 %s4391_s20, %s1886_s2 }
0x26b7   :  { %4234 = vtanh.f32 %v1857_v31  ;;  %s1892_s27 = sadd.f32 1e-05, %s1887_s26  ;;  %v1958_v21 = vstv %s3676_s16  ;;  %s3681_s16 = sld [smem:[#allocation2 + $0xdc]] }
0x26b9   :  { %v1893_v32 = vstv %s1892_s27 }
0x26ba   :  { %4236 = vrsqrt.f32 %v1893_v32 }
0x26c1   :  { %v4235_v35 = vpop.eup %4234 }
0x26c2   :  { %v1859_v36 = vmul.f32 0.5, %v4235_v35 }
0x26c4   :  { %v4237_v10 = vpop.eup %4236  ;;  %v1860_v14 = vadd.f32 0.5, %v1859_v36 }
0x26c5   :  { %3993 = vpush %v4237_v10 }
0x26c6   :  { %v1861_v38 = vmul.f32 %v1860_v14, %v1856_v30 }
0x26c8   :  { %1907 = vrot.lane.b32.xlu0 %v1861_v38, %s4390_s21 }
0x26f6   :  { %s3994_s29 = spop %3993 }
0x26f7   :  { %v1896_v42 = vstv %s3994_s29  ;;  %s3677_s29 = sld [smem:[#allocation2 + $0xd8]] }
0x26f8   :  { %v1897_v44 = vmul.f32 %v1896_v42, %v1891_v60 }
0x26fa   :  { %v1899_v45 = vadd.f32 %v1898_v43, %v1897_v44 }
0x26fc   :  { %v1900_v46 = vsel %vm1791_vm14, %v1899_v45, 0.0 }
0x26fd   :  { %v1901_v47 = vmul.f32 0.5, %v1900_v46 }
0x26ff   :  { %4238 = vtanh.f32 %v1901_v47 }
0x2709   :  { %v4239_v48 = vpop.eup %4238 }
0x270a   :  { %v1903_v49 = vmul.f32 0.5, %v4239_v48 }
0x270c   :  { %v1904_v50 = vadd.f32 0.5, %v1903_v49  ;;  %v1994_v49 = vstv %s3677_s29 }
0x270e   :  { %v1905_v51 = vmul.f32 %v1904_v50, %v1900_v46 }
0x2710   :  { %1909 = vrot.lane.b32.xlu1 %v1905_v51, %s4390_s21 }
0x273a   :  { %v1908_v54 = vpop.permute.xlu0 %1907 }
0x273b   :  { %v1913_v33 = vmul.f32 %v1912_v52, %v1908_v54  ;;  %v2002_v52 = vstv %s3678_s30 }
0x2782   :  { %v1910_v56 = vpop.permute.xlu1 %1909 }
0x2783   :  { %v1916_v58 = vmul.f32 %v1915_v55, %v1910_v56  ;;  %v2006_v56 = vstv %s3679_s5 }
0x2785   :  { %v1917_v34 = vadd.f32 %v1916_v58, %v1913_v33  ;;  %v2009_v58 = vstv %s3680_s6 }
0x2787   :  { %v1920_v61 = vadd.f32 %v1919_v59, %v1917_v34 }
0x2789   :  { %v1921_v17 = vsel %vm1906_vm15, %v1920_v61, 0.0 }
0x278a   :  { %1924 = vadd.xlane.f32.xlu1 %v1921_v17  ;;  %v1933_v62 = vmul.f32 %v1921_v17, %v1921_v17 }
0x278c   :  { %1934 = vadd.xlane.f32.xlu0 %v1933_v62 }
0x2817   :  { %v1925_v63 = vpop.xlane.xlu1 %1924 }
0x2818   :  { %v1926_v0 = vrot.slane %v1925_v63, 4 }
0x2819   :  { %v1935_v1 = vpop.xlane.xlu0 %1934 }
0x281a   :  { %v1927_v2 = vadd.f32 %v1926_v0, %v1925_v63  ;;  %v1936_v3 = vrot.slane %v1935_v1, 4 }
0x281c   :  { %v1928_v4 = vrot.slane %v1927_v2, 2  ;;  %v1937_v5 = vadd.f32 %v1936_v3, %v1935_v1 }
0x281e   :  { %v1938_v6 = vrot.slane %v1937_v5, 2  ;;  %v1929_v7 = vadd.f32 %v1928_v4, %v1927_v2 }
0x2820   :  { %v1930_v8 = vrot.slane %v1929_v7, 1  ;;  %v1939_v11 = vadd.f32 %v1938_v6, %v1937_v5 }
0x2822   :  { %v1931_v12 = vadd.f32 %v1930_v8, %v1929_v7  ;;  %v1940_v13 = vrot.slane %v1939_v11, 1 }
0x2824   :  { %3995 = vpush %v1931_v12  ;;  %v1941_v15 = vadd.f32 %v1940_v13, %v1939_v11 }
0x2826   :  { %3997 = vpush %v1941_v15 }
0x2855   :  { %s3996_s7 = spop %3995 }
0x2856   :  { %s1943_s8 = smul.f32 0.0026041667, %s3996_s7 }
0x2857   :  { %s3998_s9 = spop %3997 }
0x2858   :  { %s1945_s10 = smul.f32 %s1943_s8, %s1943_s8  ;;  %v1948_v57 = vstv %s1943_s8 }
0x2859   :  { %s1944_s11 = smul.f32 0.0026041667, %s3998_s9  ;;  %v1949_v37 = vsub.f32 %v1921_v17, %v1948_v57 }
0x285b   :  { %s1946_s12 = ssub.f32 %s1944_s11, %s1945_s10  ;;  %v1951_v19 = vmul.f32 %v1950_v18, %v1949_v37  ;;  %v2040_v37 = vstv %s3681_s16 }
0x285d   :  { %s1947_s13 = smax.f32 %s4391_s20, %s1946_s12 }
0x285e   :  { %s1952_s14 = sadd.f32 1e-05, %s1947_s13 }
0x2860   :  { %v1953_v53 = vstv %s1952_s14 }
0x2861   :  { %4240 = vrsqrt.f32 %v1953_v53 }
0x286b   :  { %v4241_v16 = vpop.eup %4240 }
0x286c   :  { %3999 = vpush %v4241_v16 }
0x289d   :  { %s4000_s17 = spop %3999 }
0x289e   :  { %v1956_v20 = vstv %s4000_s17  ;;  %s3682_s17 = sld [smem:[#allocation2 + $0xdd]] }
0x289f   :  { %v1957_v22 = vmul.f32 %v1956_v20, %v1951_v19 }
0x28a1   :  { %v1959_v23 = vadd.f32 %v1958_v21, %v1957_v22 }
0x28a3   :  { %v1960_v24 = vsel %vm1906_vm15, %v1959_v23, 0.0 }
0x28a4   :  { %v1961_v25 = vmul.f32 0.5, %v1960_v24  ;;  %v2048_v20 = vstv %s3682_s17 }
0x28a6   :  { %4242 = vtanh.f32 %v1961_v25 }
0x28b0   :  { %v4243_v26 = vpop.eup %4242 }
0x28b1   :  { %v1963_v27 = vmul.f32 0.5, %v4243_v26 }
0x28b3   :  { %v1964_v28 = vadd.f32 0.5, %v1963_v27 }
0x28b5   :  { %v4745_v29 = vmul.f32 %v1964_v28, %v1960_v24 }
0x28b7   :  { %1968 = vadd.xlane.f32.xlu0 %v4745_v29  ;;  %v1977_v30 = vmul.f32 %v4745_v29, %v4745_v29 }
0x28b9   :  { %1978 = vadd.xlane.f32.xlu1 %v1977_v30 }
0x2944   :  { %v1969_v31 = vpop.xlane.xlu0 %1968 }
0x2945   :  { %v1970_v32 = vrot.slane %v1969_v31, 4 }
0x2946   :  { %v1979_v35 = vpop.xlane.xlu1 %1978 }
0x2947   :  { %v1971_v36 = vadd.f32 %v1970_v32, %v1969_v31  ;;  %v1980_v10 = vrot.slane %v1979_v35, 4 }
0x2949   :  { %v1972_v14 = vrot.slane %v1971_v36, 2  ;;  %v1981_v38 = vadd.f32 %v1980_v10, %v1979_v35 }
0x294b   :  { %v1982_v39 = vrot.slane %v1981_v38, 2  ;;  %v1973_v40 = vadd.f32 %v1972_v14, %v1971_v36 }
0x294d   :  { %v1974_v41 = vrot.slane %v1973_v40, 1  ;;  %v1983_v60 = vadd.f32 %v1982_v39, %v1981_v38 }
0x294f   :  { %v1975_v42 = vadd.f32 %v1974_v41, %v1973_v40  ;;  %v1984_v43 = vrot.slane %v1983_v60, 1 }
0x2951   :  { %4001 = vpush %v1975_v42  ;;  %v1985_v44 = vadd.f32 %v1984_v43, %v1983_v60 }
0x2953   :  { %4003 = vpush %v1985_v44 }
0x2982   :  { %s4002_s18 = spop %4001 }
0x2983   :  { %s1987_s19 = smul.f32 0.0026041667, %s4002_s18 }
0x2984   :  { %s4004_s22 = spop %4003 }
0x2985   :  { %s1989_s2 = smul.f32 %s1987_s19, %s1987_s19  ;;  %v1992_v47 = vstv %s1987_s19  ;;  %s3683_s19 = sld [smem:[#allocation2 + $0xde]] }
0x2986   :  { %s1988_s26 = smul.f32 0.0026041667, %s4004_s22  ;;  %v1993_v48 = vsub.f32 %v4745_v29, %v1992_v47  ;;  %s3685_s22 = sld [smem:[#allocation2 + $0xe0]] }
0x2988   :  { %s1990_s27 = ssub.f32 %s1988_s26, %s1989_s2  ;;  %v1995_v50 = vmul.f32 %v1994_v49, %v1993_v48  ;;  %s3684_s2 = sld [smem:[#allocation2 + $0xdf]] }
0x2989   :  { %s3686_s26 = sld [smem:[#allocation2 + $0xe1]] }
0x298a   :  { %s1991_s28 = smax.f32 %s4391_s20, %s1990_s27  ;;  %s3687_s27 = sld [smem:[#allocation2 + $0xe2]] }
0x298b   :  { %s1996_s0 = sadd.f32 1e-05, %s1991_s28  ;;  %v2066_v31 = vstv %s3683_s19  ;;  %s3688_s28 = sld [smem:[#allocation2 + $0xe3]] }
0x298c   :  { %v2062_v30 = vstv %s3685_s22 }
0x298d   :  { %v1997_v45 = vstv %s1996_s0 }
0x298e   :  { %4244 = vrsqrt.f32 %v1997_v45  ;;  %v2071_v32 = vstv %s3684_s2 }
0x298f   :  { %v2076_v38 = vstv %s3686_s26 }
0x2990   :  { %v2081_v60 = vstv %s3687_s27  ;;  %s3693_s27 = sld [smem:[#allocation2 + $0xe8]] }
0x2991   :  { %v2084_v47 = vstv %s3688_s28  ;;  %s3694_s28 = sld [smem:[#allocation2 + $0xe9]] }
0x2998   :  { %v4245_v46 = vpop.eup %4244 }
0x2999   :  { %4005 = vpush %v4245_v46 }
0x29ca   :  { %s4006_s7 = spop %4005 }
0x29cb   :  { %v2000_v51 = vstv %s4006_s7 }
0x29cc   :  { %v2001_v54 = vmul.f32 %v2000_v51, %v1995_v50 }
0x29ce   :  { %v2003_v55 = vadd.f32 %v2002_v52, %v2001_v54 }
0x29d0   :  { %v2004_v33 = vsel %vm1906_vm15, %v2003_v55, 0.0 }
0x29d1   :  { %v2007_v59 = vmul.f32 %v2006_v56, %v2004_v33 }
0x29d3   :  { %v2010_v34 = vadd.f32 %v2009_v58, %v2007_v59 }
0x29d5   :  { %v2011_v61 = vsel %vm1906_vm15, %v2010_v34, 0.0 }
0x29d6   :  { %2014 = vadd.xlane.f32.xlu0 %v2011_v61  ;;  %v2023_v17 = vmul.f32 %v2011_v61, %v2011_v61 }
0x29d8   :  { %2024 = vadd.xlane.f32.xlu1 %v2023_v17 }
0x2a63   :  { %v2015_v62 = vpop.xlane.xlu0 %2014 }
0x2a64   :  { %v2016_v63 = vrot.slane %v2015_v62, 4 }
0x2a65   :  { %v2025_v0 = vpop.xlane.xlu1 %2024 }
0x2a66   :  { %v2017_v1 = vadd.f32 %v2016_v63, %v2015_v62  ;;  %v2026_v2 = vrot.slane %v2025_v0, 4 }
0x2a68   :  { %v2018_v3 = vrot.slane %v2017_v1, 2  ;;  %v2027_v4 = vadd.f32 %v2026_v2, %v2025_v0 }
0x2a6a   :  { %v2028_v5 = vrot.slane %v2027_v4, 2  ;;  %v2019_v6 = vadd.f32 %v2018_v3, %v2017_v1 }
0x2a6c   :  { %v2020_v7 = vrot.slane %v2019_v6, 1  ;;  %v2029_v8 = vadd.f32 %v2028_v5, %v2027_v4 }
0x2a6e   :  { %v2021_v11 = vadd.f32 %v2020_v7, %v2019_v6  ;;  %v2030_v12 = vrot.slane %v2029_v8, 1 }
0x2a70   :  { %4007 = vpush %v2021_v11  ;;  %v2031_v13 = vadd.f32 %v2030_v12, %v2029_v8 }
0x2a72   :  { %4009 = vpush %v2031_v13 }
0x2aa1   :  { %s4008_s8 = spop %4007 }
0x2aa2   :  { %s2033_s9 = smul.f32 0.0026041667, %s4008_s8 }
0x2aa3   :  { %s4010_s10 = spop %4009 }
0x2aa4   :  { %s2035_s11 = smul.f32 %s2033_s9, %s2033_s9  ;;  %v2038_v16 = vstv %s2033_s9 }
0x2aa5   :  { %s2034_s12 = smul.f32 0.0026041667, %s4010_s10  ;;  %v2039_v57 = vsub.f32 %v2011_v61, %v2038_v16  ;;  %s3689_s10 = sld [smem:[#allocation2 + $0xe4]] }
0x2aa7   :  { %s2036_s13 = ssub.f32 %s2034_s12, %s2035_s11  ;;  %v2041_v18 = vmul.f32 %v2040_v37, %v2039_v57  ;;  %s3690_s11 = sld [smem:[#allocation2 + $0xe5]] }
0x2aa9   :  { %s2037_s14 = smax.f32 %s4391_s20, %s2036_s13  ;;  %s3691_s13 = sld [smem:[#allocation2 + $0xe6]] }
0x2aaa   :  { %s2042_s15 = sadd.f32 1e-05, %s2037_s14  ;;  %s3692_s14 = sld [smem:[#allocation2 + $0xe7]] }
0x2aab   :  { %v2115_v6 = vstv %s3689_s10  ;;  %s3702_s10 = sld [smem:[#allocation2 + $0x14b]] }
0x2aac   :  { %v2043_v15 = vstv %s2042_s15 }
0x2aad   :  { %4246 = vrsqrt.f32 %v2043_v15  ;;  %v2123_v11 = vstv %s3690_s11 }
0x2ab7   :  { %v4247_v53 = vpop.eup %4246 }
0x2ab8   :  { %4011 = vpush %v4247_v53 }
0x2ae9   :  { %s4012_s18 = spop %4011 }
0x2aea   :  { %v2046_v19 = vstv %s4012_s18 }
0x2aeb   :  { %v2047_v21 = vmul.f32 %v2046_v19, %v2041_v18  ;;  %v2132_v18 = vstv %s3691_s13 }
0x2aed   :  { %v2049_v22 = vadd.f32 %v2048_v20, %v2047_v21  ;;  %v2135_v20 = vstv %s3692_s14 }
0x2aef   :  { %v2050_v23 = vsel %vm1906_vm15, %v2049_v22, 0.0 }
0x2af0   :  { %v2051_v24 = vmul.f32 0.5, %v2050_v23 }
0x2af2   :  { %4248 = vtanh.f32 %v2051_v24 }
0x2afc   :  { %v4249_v25 = vpop.eup %4248 }
0x2afd   :  { %v2053_v26 = vmul.f32 0.5, %v4249_v25 }
0x2aff   :  { %v2054_v27 = vadd.f32 0.5, %v2053_v26 }
0x2b01   :  { %v2055_v28 = vmul.f32 %v2054_v27, %v2050_v23 }
0x2b03   :  { %2069 = vrot.lane.b32.xlu1 %v2055_v28, %s4390_s21  ;;  %2064 = vrot.lane.b32.xlu0 %v2055_v28, %s4392_s23  ;;  %v2063_v10 = vmul.f32 %v2062_v30, %v2055_v28 }
0x2b07   :  { %2074 = vrot.lane.b32.xlu1 %v2055_v28, %s4393_s24  ;;  %2079 = vrot.lane.b32.xlu0 %v2055_v28, %s4394_s25 }
0x2b75   :  { %v2070_v35 = vpop.permute.xlu1 %2069  ;;  %v2065_v36 = vpop.permute.xlu0 %2064 }
0x2b76   :  { %v2067_v14 = vmul.f32 %v2066_v31, %v2065_v36  ;;  %v2072_v39 = vmul.f32 %v2071_v32, %v2070_v35 }
0x2b78   :  { %v2068_v40 = vadd.f32 %v2067_v14, %v2063_v10 }
0x2b79   :  { %v2075_v41 = vpop.permute.xlu1 %2074  ;;  %v2080_v42 = vpop.permute.xlu0 %2079 }
0x2b7a   :  { %v2073_v43 = vadd.f32 %v2072_v39, %v2068_v40  ;;  %v2077_v44 = vmul.f32 %v2076_v38, %v2075_v41  ;;  %v2082_v46 = vmul.f32 %v2081_v60, %v2080_v42 }
0x2b7c   :  { %v2078_v45 = vadd.f32 %v2077_v44, %v2073_v43  ;;  %v2166_v44 = vstv %s3693_s27  ;;  %s3706_s27 = sld [smem:[#allocation2 + $0x14f]] }
0x2b7e   :  { %v2083_v48 = vadd.f32 %v2082_v46, %v2078_v45 }
0x2b80   :  { %v2085_v49 = vadd.f32 %v2084_v47, %v2083_v48  ;;  %v2174_v47 = vstv %s3694_s28  ;;  %s3707_s28 = sld [smem:[#allocation2 + $0x150]] }
0x2b82   :  { %v2086_v50 = vsel %vm1906_vm15, %v2085_v49, 0.0 }
0x2b83   :  { %2089 = vadd.xlane.f32.xlu1 %v2086_v50  ;;  %v2098_v51 = vmul.f32 %v2086_v50, %v2086_v50 }
0x2b85   :  { %2099 = vadd.xlane.f32.xlu0 %v2098_v51 }
0x2c10   :  { %v2090_v52 = vpop.xlane.xlu1 %2089 }
0x2c11   :  { %v2091_v54 = vrot.slane %v2090_v52, 4 }
0x2c12   :  { %v2100_v55 = vpop.xlane.xlu0 %2099 }
0x2c13   :  { %v2092_v56 = vadd.f32 %v2091_v54, %v2090_v52  ;;  %v2101_v33 = vrot.slane %v2100_v55, 4 }
0x2c15   :  { %v2093_v58 = vrot.slane %v2092_v56, 2  ;;  %v2102_v59 = vadd.f32 %v2101_v33, %v2100_v55 }
0x2c17   :  { %v2103_v34 = vrot.slane %v2102_v59, 2  ;;  %v2094_v61 = vadd.f32 %v2093_v58, %v2092_v56 }
0x2c19   :  { %v2095_v17 = vrot.slane %v2094_v61, 1  ;;  %v2104_v62 = vadd.f32 %v2103_v34, %v2102_v59 }
0x2c1b   :  { %v2096_v63 = vadd.f32 %v2095_v17, %v2094_v61  ;;  %v2105_v0 = vrot.slane %v2104_v62, 1 }
0x2c1d   :  { %4013 = vpush %v2096_v63  ;;  %v2106_v1 = vadd.f32 %v2105_v0, %v2104_v62 }
0x2c1f   :  { %4015 = vpush %v2106_v1 }
0x2c4e   :  { %s4014_s0 = spop %4013 }
0x2c4f   :  { %s2108_s29 = smul.f32 0.0026041667, %s4014_s0 }
0x2c50   :  { %s4016_s30 = spop %4015 }
0x2c51   :  { %s2110_s5 = smul.f32 %s2108_s29, %s2108_s29  ;;  %v2113_v4 = vstv %s2108_s29  ;;  %s3695_s29 = sld [smem:[#allocation2 + $0x144]] }
0x2c52   :  { %s2109_s6 = smul.f32 0.0026041667, %s4016_s30  ;;  %v2114_v5 = vsub.f32 %v2086_v50, %v2113_v4  ;;  %s3697_s30 = sld [smem:[#allocation2 + $0x146]] }
0x2c54   :  { %s2111_s7 = ssub.f32 %s2109_s6, %s2110_s5  ;;  %v2116_v7 = vmul.f32 %v2115_v6, %v2114_v5  ;;  %s3696_s5 = sld [smem:[#allocation2 + $0x145]] }
0x2c55   :  { %s3698_s6 = sld [smem:[#allocation2 + $0x147]] }
0x2c56   :  { %s2112_s8 = smax.f32 %s4391_s20, %s2111_s7  ;;  %s3699_s7 = sld [smem:[#allocation2 + $0x148]] }
0x2c57   :  { %s2117_s9 = sadd.f32 1e-05, %s2112_s8  ;;  %s3700_s8 = sld [smem:[#allocation2 + $0x149]] }
0x2c58   :  { %v2185_v54 = vstv %s3697_s30  ;;  %s3712_s30 = sld [smem:[#allocation2 + $0x155]] }
0x2c59   :  { %v2118_v2 = vstv %s2117_s9  ;;  %s3701_s9 = sld [smem:[#allocation2 + $0x14a]] }
0x2c5a   :  { %4250 = vrsqrt.f32 %v2118_v2  ;;  %v2194_v55 = vstv %s3696_s5  ;;  %s3709_s5 = sld [smem:[#allocation2 + $0x152]] }
0x2c5b   :  { %v2199_v34 = vstv %s3698_s6  ;;  %s3710_s6 = sld [smem:[#allocation2 + $0x154]] }
0x2c5c   :  { %v2204_v63 = vstv %s3699_s7 }
0x2c5d   :  { %v2207_v5 = vstv %s3700_s8 }
0x2c64   :  { %v4251_v3 = vpop.eup %4250 }
0x2c65   :  { %4017 = vpush %v4251_v3 }
0x2c96   :  { %s4018_s12 = spop %4017 }
0x2c97   :  { %v2121_v8 = vstv %s4018_s12 }
0x2c98   :  { %v2122_v12 = vmul.f32 %v2121_v8, %v2116_v7  ;;  %v2211_v8 = vstv %s3701_s9  ;;  %s3714_s9 = sld [smem:[#allocation2 + $0x6c]] }
0x2c9a   :  { %v2124_v13 = vadd.f32 %v2123_v11, %v2122_v12  ;;  %v2214_v12 = vstv %s3702_s10  ;;  %s3717_s10 = sld [smem:[#allocation2 + $0x6e]] }
0x2c9c   :  { %v2125_v15 = vsel %vm1906_vm15, %v2124_v13, 0.0 }
0x2c9d   :  { %v2126_v53 = vmul.f32 0.5, %v2125_v15 }
0x2c9f   :  { %4252 = vtanh.f32 %v2126_v53 }
0x2ca9   :  { %v4253_v16 = vpop.eup %4252 }
0x2caa   :  { %v2128_v57 = vmul.f32 0.5, %v4253_v16 }
0x2cac   :  { %v2129_v37 = vadd.f32 0.5, %v2128_v57 }
0x2cae   :  { %v2130_v19 = vmul.f32 %v2129_v37, %v2125_v15 }
0x2cb0   :  { %v2133_v21 = vmul.f32 %v2132_v18, %v2130_v19 }
0x2cb2   :  { %v2136_v22 = vadd.f32 %v2135_v20, %v2133_v21 }
0x2cb4   :  { %v2137_v23 = vsel %vm1906_vm15, %v2136_v22, 0.0 }
0x2cb5   :  { %2140 = vadd.xlane.f32.xlu0 %v2137_v23  ;;  %v2149_v24 = vmul.f32 %v2137_v23, %v2137_v23 }
0x2cb7   :  { %2150 = vadd.xlane.f32.xlu1 %v2149_v24 }
0x2d42   :  { %v2141_v25 = vpop.xlane.xlu0 %2140 }
0x2d43   :  { %v2142_v26 = vrot.slane %v2141_v25, 4 }
0x2d44   :  { %v2151_v27 = vpop.xlane.xlu1 %2150 }
0x2d45   :  { %v2143_v28 = vadd.f32 %v2142_v26, %v2141_v25  ;;  %v2152_v30 = vrot.slane %v2151_v27, 4 }
0x2d47   :  { %v2144_v31 = vrot.slane %v2143_v28, 2  ;;  %v2153_v32 = vadd.f32 %v2152_v30, %v2151_v27 }
0x2d49   :  { %v2154_v35 = vrot.slane %v2153_v32, 2  ;;  %v2145_v36 = vadd.f32 %v2144_v31, %v2143_v28 }
0x2d4b   :  { %v2146_v10 = vrot.slane %v2145_v36, 1  ;;  %v2155_v14 = vadd.f32 %v2154_v35, %v2153_v32 }
0x2d4d   :  { %v2147_v38 = vadd.f32 %v2146_v10, %v2145_v36  ;;  %v2156_v39 = vrot.slane %v2155_v14, 1 }
0x2d4f   :  { %4019 = vpush %v2147_v38  ;;  %v2157_v40 = vadd.f32 %v2156_v39, %v2155_v14 }
0x2d51   :  { %4021 = vpush %v2157_v40 }
0x2d80   :  { %s4020_s15 = spop %4019 }
0x2d81   :  { %s2159_s16 = smul.f32 0.0026041667, %s4020_s15 }
0x2d82   :  { %s4022_s17 = spop %4021 }
0x2d83   :  { %s2161_s18 = smul.f32 %s2159_s16, %s2159_s16  ;;  %v2164_v42 = vstv %s2159_s16 }
0x2d84   :  { %s2160_s19 = smul.f32 0.0026041667, %s4022_s17  ;;  %v2165_v43 = vsub.f32 %v2137_v23, %v2164_v42 }
0x2d86   :  { %s2162_s22 = ssub.f32 %s2160_s19, %s2161_s18  ;;  %v2167_v45 = vmul.f32 %v2166_v44, %v2165_v43  ;;  %s3703_s19 = sld [smem:[#allocation2 + $0x14c]] }
0x2d88   :  { %s2163_s2 = smax.f32 %s4391_s20, %s2162_s22  ;;  %s3704_s22 = sld [smem:[#allocation2 + $0x14d]] }
0x2d89   :  { %s2168_s26 = sadd.f32 1e-05, %s2163_s2 }
0x2d8b   :  { %v2169_v41 = vstv %s2168_s26  ;;  %s3705_s26 = sld [smem:[#allocation2 + $0x14e]] }
0x2d8c   :  { %4254 = vrsqrt.f32 %v2169_v41  ;;  %v2245_v10 = vstv %s3703_s19  ;;  %s3725_s19 = sld [smem:[#allocation2 + $0x77]] }
0x2d8e   :  { %v2253_v39 = vstv %s3704_s22  ;;  %s3722_s22 = sld [smem:[#allocation2 + $0x76]] }
0x2d96   :  { %v4255_v60 = vpop.eup %4254 }
0x2d97   :  { %4023 = vpush %v4255_v60 }
0x2dc8   :  { %s4024_s0 = spop %4023 }
0x2dc9   :  { %v2172_v46 = vstv %s4024_s0  ;;  %s3708_s0 = sld [smem:[#allocation2 + $0x151]] }
0x2dca   :  { %v2173_v48 = vmul.f32 %v2172_v46, %v2167_v45 }
0x2dcc   :  { %v2175_v49 = vadd.f32 %v2174_v47, %v2173_v48  ;;  %v2265_v47 = vstv %s3706_s27  ;;  %v2269_v48 = vstv %s3705_s26  ;;  %s3730_s26 = sld [smem:[#allocation2 + $0x7b]]  ;;  %s3726_s27 = sld [smem:[#allocation2 + $0x78]] }
0x2dce   :  { %v2176_v50 = vsel %vm1906_vm15, %v2175_v49, 0.0  ;;  %v2274_v49 = vstv %s3707_s28  ;;  %s3729_s28 = sld [smem:[#allocation2 + $0x7a]] }
0x2dcf   :  { %v2177_v51 = vmul.f32 0.1, %v2176_v50 }
0x2dd1   :  { %v4774_v52 = vadd.f32 %v2177_v51, %v4745_v29  ;;  %v2189_v29 = vstv %s3695_s29  ;;  %s3711_s29 = sld [smem:[#allocation2 + $0x153]] }
0x2dd3   :  { %2192 = vrot.lane.b32.xlu1 %v4774_v52, %s4390_s21  ;;  %2187 = vrot.lane.b32.xlu0 %v4774_v52, %s4392_s23  ;;  %v2186_v58 = vmul.f32 %v2185_v54, %v4774_v52 }
0x2dd7   :  { %2197 = vrot.lane.b32.xlu1 %v4774_v52, %s4393_s24  ;;  %2202 = vrot.lane.b32.xlu0 %v4774_v52, %s4394_s25 }
0x2e45   :  { %v4784_v56 = vpop.permute.xlu1 %2192  ;;  %v2188_v33 = vpop.permute.xlu0 %2187 }
0x2e46   :  { %v2190_v59 = vmul.f32 %v2189_v29, %v2188_v33  ;;  %v2195_v61 = vmul.f32 %v2194_v55, %v4784_v56 }
0x2e48   :  { %v2191_v17 = vadd.f32 %v2190_v59, %v2186_v58  ;;  %v2277_v58 = vstv %s3708_s0  ;;  %s3728_s0 = sld [smem:[#allocation2 + $0x7c]] }
0x2e49   :  { %v2198_v62 = vpop.permute.xlu1 %2197  ;;  %v2203_v0 = vpop.permute.xlu0 %2202 }
0x2e4a   :  { %v2196_v1 = vadd.f32 %v2195_v61, %v2191_v17  ;;  %v2200_v2 = vmul.f32 %v2199_v34, %v2198_v62  ;;  %v2205_v4 = vmul.f32 %v2204_v63, %v2203_v0 }
0x2e4c   :  { %v2201_v3 = vadd.f32 %v2200_v2, %v2196_v1 }
0x2e4e   :  { %v2206_v6 = vadd.f32 %v2205_v4, %v2201_v3  ;;  %v2294_v3 = vstv %s3711_s29  ;;  %s3731_s29 = sld [smem:[#allocation2 + $0x7d]] }
0x2e50   :  { %v2208_v7 = vadd.f32 %v2207_v5, %v2206_v6  ;;  %v2297_v5 = vstv %s3712_s30 }
0x2e52   :  { %v2209_v11 = vsel %vm1906_vm15, %v2208_v7, 0.0 }
0x2e53   :  { %v2212_v13 = vmul.f32 %v2211_v8, %v2209_v11 }
0x2e55   :  { %v2215_v15 = vadd.f32 %v2214_v12, %v2212_v13  ;;  %v2288_v12 = vstv %s3709_s5 }
0x2e57   :  { %v2216_v53 = vsel %vm1906_vm15, %v2215_v15, 0.0  ;;  %v3713_v15 = vld [vmem:[%s5012_s1 + $0x18] sm:$0xff] }
0x2e58   :  { %2219 = vadd.xlane.f32.xlu1 %v2216_v53  ;;  %v2228_v16 = vmul.f32 %v2216_v53, %v2216_v53 }
0x2e5a   :  { %2229 = vadd.xlane.f32.xlu0 %v2228_v16 }
0x2ee5   :  { %v2220_v57 = vpop.xlane.xlu1 %2219 }
0x2ee6   :  { %v2221_v37 = vrot.slane %v2220_v57, 4 }
0x2ee7   :  { %v2230_v18 = vpop.xlane.xlu0 %2229 }
0x2ee8   :  { %v2222_v19 = vadd.f32 %v2221_v37, %v2220_v57  ;;  %v2231_v20 = vrot.slane %v2230_v18, 4 }
0x2eea   :  { %v2223_v21 = vrot.slane %v2222_v19, 2  ;;  %v2232_v22 = vadd.f32 %v2231_v20, %v2230_v18  ;;  %v2322_v20 = vstv %s3717_s10 }
0x2eec   :  { %v2233_v23 = vrot.slane %v2232_v22, 2  ;;  %v2224_v24 = vadd.f32 %v2223_v21, %v2222_v19  ;;  %v2311_v19 = vstv %s3714_s9 }
0x2eee   :  { %v2225_v25 = vrot.slane %v2224_v24, 1  ;;  %v2234_v26 = vadd.f32 %v2233_v23, %v2232_v22 }
0x2ef0   :  { %v2226_v27 = vadd.f32 %v2225_v25, %v2224_v24  ;;  %v2235_v28 = vrot.slane %v2234_v26, 1  ;;  %v2312_v24 = vmul.f32 %v2311_v19, %v4784_v56  ;;  %v2323_v25 = vmul.f32 %v2322_v20, %v4784_v56 }
0x2ef2   :  { %4025 = vpush %v2226_v27  ;;  %v2236_v30 = vadd.f32 %v2235_v28, %v2234_v26 }
0x2ef4   :  { %4027 = vpush %v2236_v30 }
0x2f23   :  { %s4026_s11 = spop %4025 }
0x2f24   :  { %s2238_s12 = smul.f32 0.0026041667, %s4026_s11  ;;  %s3715_s11 = sld [smem:[#allocation2 + $0x6d]] }
0x2f25   :  { %s4028_s13 = spop %4027 }
0x2f26   :  { %s2240_s14 = smul.f32 %s2238_s12, %s2238_s12  ;;  %v2243_v35 = vstv %s2238_s12  ;;  %s3718_s12 = sld [smem:[#allocation2 + $0x6f]] }
0x2f27   :  { %s2239_s15 = smul.f32 0.0026041667, %s4028_s13  ;;  %v2244_v36 = vsub.f32 %v2216_v53, %v2243_v35  ;;  %s3719_s13 = sld [smem:[#allocation2 + $0x71]] }
0x2f29   :  { %s2241_s16 = ssub.f32 %s2239_s15, %s2240_s14  ;;  %v2246_v14 = vmul.f32 %v2245_v10, %v2244_v36  ;;  %s3716_s14 = sld [smem:[#allocation2 + $0x70]] }
0x2f2a   :  { %v2314_v21 = vstv %s3715_s11  ;;  %s3721_s15 = sld [smem:[#allocation2 + $0x73]] }
0x2f2b   :  { %s2242_s17 = smax.f32 %s4391_s20, %s2241_s16  ;;  %s3724_s16 = sld [smem:[#allocation2 + $0x75]] }
0x2f2c   :  { %s2247_s18 = sadd.f32 1e-05, %s2242_s17  ;;  %v2325_v22 = vstv %s3718_s12  ;;  %s3720_s17 = sld [smem:[#allocation2 + $0x72]] }
0x2f2d   :  { %v2329_v28 = vstv %s3719_s13  ;;  %s3732_s12 = sld [smem:[#allocation2 + $0x7e]]  ;;  %s3733_s13 = sld [smem:[#allocation2 + $0x80]] }
0x2f2e   :  { %v2248_v31 = vstv %s2247_s18  ;;  %s3723_s18 = sld [smem:[#allocation2 + $0x74]] }
0x2f2f   :  { %4256 = vrsqrt.f32 %v2248_v31  ;;  %v2318_v30 = vstv %s3716_s14 }
0x2f30   :  { %v2341_v56 = vstv %s3721_s15 }
0x2f39   :  { %v4257_v32 = vpop.eup %4256 }
0x2f3a   :  { %4029 = vpush %v4257_v32 }
0x2f6b   :  { %s4030_s2 = spop %4029 }
0x2f6c   :  { %v2251_v38 = vstv %s4030_s2  ;;  %s3727_s2 = sld [smem:[#allocation2 + $0x79]] }
0x2f6d   :  { %v2252_v40 = vmul.f32 %v2251_v38, %v2246_v14  ;;  %v2352_v38 = vstv %s3724_s16 }
0x2f6f   :  { %v2254_v41 = vadd.f32 %v2253_v39, %v2252_v40  ;;  %v2338_v39 = vstv %s3720_s17  ;;  %v2349_v40 = vstv %s3723_s18 }
0x2f71   :  { %v2255_v60 = vsel %vm1906_vm15, %v2254_v41, 0.0 }
0x2f72   :  { %v2256_v42 = vmul.f32 0.5, %v2255_v60 }
0x2f74   :  { %4258 = vtanh.f32 %v2256_v42 }
0x2f7e   :  { %v4259_v43 = vpop.eup %4258 }
0x2f7f   :  { %v2258_v44 = vmul.f32 0.5, %v4259_v43 }
0x2f81   :  { %v2259_v45 = vadd.f32 0.5, %v2258_v44 }
0x2f83   :  { %v2260_v46 = vmul.f32 %v2259_v45, %v2255_v60 }
0x2f85   :  { %2272 = vrot.lane.b32.xlu1 %v2260_v46, %s4393_s24  ;;  %2267 = vrot.lane.b32.xlu0 %v2260_v46, %s4390_s21  ;;  %v2266_v54 = vmul.f32 %v2265_v47, %v2260_v46  ;;  %v2356_v46 = vstv %s3725_s19  ;;  %v2345_v47 = vstv %s3722_s22 }
0x2ff7   :  { %v2273_v50 = vpop.permute.xlu1 %2272  ;;  %v2268_v51 = vpop.permute.xlu0 %2267 }
0x2ff8   :  { %v2270_v29 = vmul.f32 %v2269_v48, %v2268_v51  ;;  %v2275_v55 = vmul.f32 %v2274_v49, %v2273_v50 }
0x2ffa   :  { %v2271_v33 = vadd.f32 %v2270_v29, %v2266_v54 }
0x2ffc   :  { %v2276_v59 = vadd.f32 %v2275_v55, %v2271_v33  ;;  %v2368_v55 = vstv %s3727_s2  ;;  %v2379_v33 = vstv %s3730_s26 }
0x2ffe   :  { %v2278_v34 = vadd.f32 %v2277_v58, %v2276_v59  ;;  %v2365_v58 = vstv %s3726_s27  ;;  %v2376_v59 = vstv %s3729_s28  ;;  %s3734_s27 = sld [smem:[#allocation2 + $0x7f]]  ;;  %s3735_s28 = sld [smem:[#allocation2 + $0x81]] }
0x3000   :  { %v2279_v61 = vsel %vm1906_vm15, %v2278_v34, 0.0 }
0x3001   :  { %v2280_v17 = vmul.f32 0.1, %v2279_v61 }
0x3003   :  { %v2281_v62 = vadd.f32 %v2280_v17, %v4774_v52  ;;  %v2291_v52 = vstv %s3710_s6 }
0x3005   :  { %v2282_v63 = vmul.f32 0.5, %v2281_v62 }
0x3007   :  { %4260 = vtanh.f32 %v2282_v63 }
0x3011   :  { %v4261_v0 = vpop.eup %4260 }
0x3012   :  { %v2284_v1 = vmul.f32 0.5, %v4261_v0 }
0x3014   :  { %v2285_v2 = vadd.f32 0.5, %v2284_v1  ;;  %v2372_v1 = vstv %s3728_s0 }
0x3016   :  { %v2286_v4 = vmul.f32 %v2285_v2, %v2281_v62 }
0x3018   :  { %v2295_v6 = vmul.f32 %v2294_v3, %v2286_v4  ;;  %v2289_v13 = vmul.f32 %v2288_v12, %v2286_v4  ;;  %v2383_v4 = vstv %s3731_s29  ;;  %s3736_s29 = sld [smem:[#allocation2 + $0x82]] }
0x301a   :  { %v2298_v7 = vadd.f32 %v2297_v5, %v2295_v6  ;;  %v2292_v16 = vadd.f32 %v2291_v52, %v2289_v13 }
0x301c   :  { %v2299_v8 = vmul.f32 0.5, %v2298_v7 }
0x301e   :  { %v2300_v11 = vmul.f32 1.442695, %v2299_v8 }
0x3020   :  { %4262 = vpow2.f32 %v2300_v11 }
0x302a   :  { %v4263_v53 = vpop.eup %4262 }
0x302b   :  { %v2304_v57 = vmul.f32 %v4263_v53, %v3713_v15 }
0x302d   :  { %v2305_v37 = vadd.f32 %v2304_v57, %v2292_v16 }
0x302f   :  { %v2306_v18 = vsel %vm1906_vm15, %v2305_v37, 0.0 }
0x3030   :  { %2308 = vrot.lane.b32.xlu1 %v2306_v18, %s4390_s21 }
0x30a2   :  { %v2309_v23 = vpop.permute.xlu1 %2308 }
0x30a3   :  { %v2315_v26 = vmul.f32 %v2314_v21, %v2309_v23  ;;  %v2326_v27 = vmul.f32 %v2325_v22, %v2309_v23 }
0x30a5   :  { %v2316_v31 = vadd.f32 %v2315_v26, %v2312_v24  ;;  %v2327_v32 = vadd.f32 %v2326_v27, %v2323_v25 }
0x30a7   :  { %v2330_v35 = vadd.f32 %v2329_v28, %v2327_v32  ;;  %v2319_v36 = vadd.f32 %v2318_v30, %v2316_v31 }
0x30a9   :  { %v2331_v10 = vsel %vm2307_vm0, %v2330_v35, 0.0  ;;  %v2320_v14 = vsel %vm2307_vm0, %v2319_v36, 0.0 }
0x30aa   :  { %2335 = vrot.lane.b32.xlu1 %v2331_v10, %s4390_s21  ;;  %2333 = vrot.lane.b32.xlu0 %v2320_v14, %s4390_s21 }
0x311c   :  { %v2336_v41 = vpop.permute.xlu1 %2335  ;;  %v2334_v60 = vpop.permute.xlu0 %2333 }
0x311d   :  { %v2342_v42 = vmul.f32 %v2341_v56, %v2336_v41  ;;  %v2353_v43 = vmul.f32 %v2352_v38, %v2336_v41  ;;  %v2339_v44 = vmul.f32 %v2338_v39, %v2334_v60  ;;  %v2350_v45 = vmul.f32 %v2349_v40, %v2334_v60 }
0x311f   :  { %v2343_v48 = vadd.f32 %v2342_v42, %v2339_v44  ;;  %v2354_v49 = vadd.f32 %v2353_v43, %v2350_v45  ;;  %v2414_v43 = vstv %s3732_s12 }
0x3121   :  { %v2357_v50 = vadd.f32 %v2356_v46, %v2354_v49  ;;  %v2346_v51 = vadd.f32 %v2345_v47, %v2343_v48  ;;  %v2422_v46 = vstv %s3733_s13 }
0x3123   :  { %v2358_v54 = vsel %vm2332_vm1, %v2357_v50, 0.0  ;;  %v2347_v29 = vsel %vm2332_vm1, %v2346_v51, 0.0 }
0x3124   :  { %2362 = vrot.lane.b32.xlu1 %v2358_v54, %s4390_s21  ;;  %2360 = vrot.lane.b32.xlu0 %v2347_v29, %s4390_s21 }
0x3196   :  { %v2363_v34 = vpop.permute.xlu1 %2362  ;;  %v2361_v61 = vpop.permute.xlu0 %2360 }
0x3197   :  { %v2369_v17 = vmul.f32 %v2368_v55, %v2363_v34  ;;  %v2380_v62 = vmul.f32 %v2379_v33, %v2363_v34  ;;  %v2366_v63 = vmul.f32 %v2365_v58, %v2361_v61  ;;  %v2377_v0 = vmul.f32 %v2376_v59, %v2361_v61 }
0x3198   :  { %v2458_v61 = vstv %s3734_s27 }
0x3199   :  { %v2370_v2 = vadd.f32 %v2369_v17, %v2366_v63  ;;  %v2381_v3 = vadd.f32 %v2380_v62, %v2377_v0  ;;  %v2466_v63 = vstv %s3735_s28 }
0x319b   :  { %v2373_v5 = vadd.f32 %v2372_v1, %v2370_v2  ;;  %v2384_v7 = vadd.f32 %v2383_v4, %v2381_v3 }
0x319d   :  { %v2374_v6 = vsel %vm2359_vm2, %v2373_v5, 0.0  ;;  %v4819_v11 = vsel %vm2359_vm2, %v2384_v7, 0.0 }
0x319e   :  { %2388 = vadd.xlane.f32.xlu0 %v2374_v6  ;;  %v2397_v8 = vmul.f32 %v2374_v6, %v2374_v6  ;;  %v2441_v12 = vmul.f32 %v4819_v11, %v4819_v11 }
0x31a0   :  { %2398 = vadd.xlane.f32.xlu1 %v2397_v8  ;;  %v2480_v8 = vstv %s3736_s29  ;;  %s3742_s29 = sld [smem:[#allocation2 + $0xeb]] }
0x31a2   :  { %2432 = vadd.xlane.f32.xlu0 %v4819_v11 }
0x31a6   :  { %2442 = vadd.xlane.f32.xlu0 %v2441_v12 }
0x322b   :  { %v2389_v13 = vpop.xlane.xlu0 %2388 }
0x322c   :  { %v2390_v52 = vrot.slane %v2389_v13, 4 }
0x322d   :  { %v2399_v15 = vpop.xlane.xlu1 %2398 }
0x322e   :  { %v2391_v53 = vadd.f32 %v2390_v52, %v2389_v13  ;;  %v2400_v16 = vrot.slane %v2399_v15, 4 }
0x322f   :  { %v2433_v25 = vpop.xlane.xlu0 %2432 }
0x3230   :  { %v2392_v57 = vrot.slane %v2391_v53, 2  ;;  %v2401_v37 = vadd.f32 %v2400_v16, %v2399_v15  ;;  %v2434_v27 = vrot.slane %v2433_v25, 4 }
0x3232   :  { %v2402_v18 = vrot.slane %v2401_v37, 2  ;;  %v2393_v19 = vadd.f32 %v2392_v57, %v2391_v53  ;;  %v2435_v30 = vadd.f32 %v2434_v27, %v2433_v25 }
0x3233   :  { %v2443_v26 = vpop.xlane.xlu0 %2442 }
0x3234   :  { %v2394_v20 = vrot.slane %v2393_v19, 1  ;;  %v2403_v21 = vadd.f32 %v2402_v18, %v2401_v37  ;;  %v2444_v28 = vrot.slane %v2443_v26, 4  ;;  %v2436_v32 = vrot.slane %v2435_v30, 2 }
0x3236   :  { %v2395_v22 = vadd.f32 %v2394_v20, %v2393_v19  ;;  %v2404_v23 = vrot.slane %v2403_v21, 1  ;;  %v2445_v31 = vadd.f32 %v2444_v28, %v2443_v26  ;;  %v2437_v10 = vadd.f32 %v2436_v32, %v2435_v30 }
0x3238   :  { %4031 = vpush %v2395_v22  ;;  %v2405_v24 = vadd.f32 %v2404_v23, %v2403_v21  ;;  %v2446_v35 = vrot.slane %v2445_v31, 2  ;;  %v2438_v56 = vrot.slane %v2437_v10, 1 }
0x323a   :  { %4033 = vpush %v2405_v24  ;;  %v2447_v14 = vadd.f32 %v2446_v35, %v2445_v31  ;;  %v2439_v40 = vadd.f32 %v2438_v56, %v2437_v10 }
0x323c   :  { %v2448_v38 = vrot.slane %v2447_v14, 1 }
0x323e   :  { %v2449_v41 = vadd.f32 %v2448_v38, %v2447_v14 }
0x3269   :  { %s4032_s30 = spop %4031 }
0x326a   :  { %s2407_s5 = smul.f32 0.0023148148, %s4032_s30  ;;  %s3737_s30 = sld [smem:[#allocation2 + $0x83]] }
0x326b   :  { %s4034_s6 = spop %4033 }
0x326c   :  { %s2409_s7 = smul.f32 %s2407_s5, %s2407_s5  ;;  %v2412_v60 = vstv %s2407_s5  ;;  %s3738_s5 = sld [smem:[#allocation2 + $0x84]] }
0x326d   :  { %s2408_s8 = smul.f32 0.0023148148, %s4034_s6  ;;  %v2413_v42 = vsub.f32 %v2374_v6, %v2412_v60 }
0x326f   :  { %s2410_s9 = ssub.f32 %s2408_s8, %s2409_s7  ;;  %v2415_v44 = vmul.f32 %v2414_v43, %v2413_v42 }
0x3270   :  { %v2483_v12 = vstv %s3737_s30  ;;  %s3743_s30 = sld [smem:[#allocation2 + $0xec]] }
0x3271   :  { %s2411_s10 = smax.f32 %s4391_s20, %s2410_s9 }
0x3272   :  { %s2416_s11 = sadd.f32 1e-05, %s2411_s10  ;;  %v2487_v53 = vstv %s3738_s5  ;;  %s3744_s5 = sld [smem:[#allocation2 + $0xed]] }
0x3274   :  { %v2417_v36 = vstv %s2416_s11 }
0x3275   :  { %4264 = vrsqrt.f32 %v2417_v36 }
0x327f   :  { %v4265_v39 = vpop.eup %4264 }
0x3280   :  { %4035 = vpush %v4265_v39 }
0x3281   :  { %4037 = vpush %v2439_v40 }
0x3282   :  { %4039 = vpush %v2449_v41 }
0x32b1   :  { %s4036_s14 = spop %4035 }
0x32b2   :  { %v2420_v45 = vstv %s4036_s14  ;;  %s4038_s15 = spop %4037  ;;  %s3739_s14 = sld [smem:[#allocation2 + $0x85]] }
0x32b3   :  { %v2421_v47 = vmul.f32 %v2420_v45, %v2415_v44  ;;  %s2451_s16 = smul.f32 0.0023148148, %s4038_s15  ;;  %s4040_s17 = spop %4039 }
0x32b4   :  { %s2452_s18 = smul.f32 0.0023148148, %s4040_s17  ;;  %s3740_s15 = sld [smem:[#allocation2 + $0x86]] }
0x32b5   :  { %v2423_v48 = vadd.f32 %v2422_v46, %v2421_v47  ;;  %s2453_s19 = smul.f32 %s2451_s16, %s2451_s16  ;;  %v2456_v59 = vstv %s2451_s16 }
0x32b6   :  { %v2457_v34 = vsub.f32 %v4819_v11, %v2456_v59 }
0x32b7   :  { %v2424_v49 = vsel %vm2359_vm2, %v2423_v48, 0.0  ;;  %s2454_s22 = ssub.f32 %s2452_s18, %s2453_s19 }
0x32b8   :  { %v2425_v50 = vmul.f32 0.5, %v2424_v49  ;;  %v2459_v17 = vmul.f32 %v2458_v61, %v2457_v34  ;;  %v2518_v38 = vstv %s3739_s14 }
0x32b9   :  { %s2455_s2 = smax.f32 %s4391_s20, %s2454_s22 }
0x32ba   :  { %4266 = vtanh.f32 %v2425_v50  ;;  %s2460_s26 = sadd.f32 1e-05, %s2455_s2  ;;  %v2526_v41 = vstv %s3740_s15  ;;  %s3745_s15 = sld [smem:[#allocation2 + $0xee]] }
0x32bc   :  { %v2461_v51 = vstv %s2460_s26 }
0x32bd   :  { %4268 = vrsqrt.f32 %v2461_v51 }
0x32c4   :  { %v4267_v54 = vpop.eup %4266 }
0x32c5   :  { %v2427_v29 = vmul.f32 0.5, %v4267_v54 }
0x32c7   :  { %v4269_v55 = vpop.eup %4268  ;;  %v2428_v33 = vadd.f32 0.5, %v2427_v29 }
0x32c8   :  { %4041 = vpush %v4269_v55 }
0x32c9   :  { %v2429_v58 = vmul.f32 %v2428_v33, %v2424_v49 }
0x32cb   :  { %2475 = vrot.lane.b32.xlu1 %v2429_v58, %s4390_s21 }
0x32f9   :  { %s4042_s0 = spop %4041 }
0x32fa   :  { %v2464_v62 = vstv %s4042_s0  ;;  %s3741_s0 = sld [smem:[#allocation2 + $0xea]] }
0x32fb   :  { %v2465_v0 = vmul.f32 %v2464_v62, %v2459_v17 }
0x32fd   :  { %v2467_v1 = vadd.f32 %v2466_v63, %v2465_v0 }
0x32ff   :  { %v2468_v2 = vsel %vm2359_vm2, %v2467_v1, 0.0 }
0x3300   :  { %v2469_v3 = vmul.f32 0.5, %v2468_v2 }
0x3302   :  { %4270 = vtanh.f32 %v2469_v3 }
0x330c   :  { %v4271_v4 = vpop.eup %4270 }
0x330d   :  { %v2471_v5 = vmul.f32 0.5, %v4271_v4 }
0x330f   :  { %v2472_v6 = vadd.f32 0.5, %v2471_v5  ;;  %v2562_v5 = vstv %s3741_s0 }
0x3311   :  { %v2473_v7 = vmul.f32 %v2472_v6, %v2468_v2 }
0x3313   :  { %2477 = vrot.lane.b32.xlu0 %v2473_v7, %s4390_s21 }
0x333d   :  { %v2476_v11 = vpop.permute.xlu1 %2475 }
0x333e   :  { %v2481_v52 = vmul.f32 %v2480_v8, %v2476_v11  ;;  %v2570_v8 = vstv %s3742_s29 }
0x3385   :  { %v2478_v13 = vpop.permute.xlu0 %2477 }
0x3386   :  { %v2484_v15 = vmul.f32 %v2483_v12, %v2478_v13  ;;  %v2574_v13 = vstv %s3743_s30 }
0x3388   :  { %v2485_v16 = vadd.f32 %v2484_v15, %v2481_v52  ;;  %v2577_v15 = vstv %s3744_s5 }
0x338a   :  { %v2488_v57 = vadd.f32 %v2487_v53, %v2485_v16 }
0x338c   :  { %v2489_v37 = vsel %vm2474_vm3, %v2488_v57, 0.0 }
0x338d   :  { %2492 = vadd.xlane.f32.xlu1 %v2489_v37  ;;  %v2501_v18 = vmul.f32 %v2489_v37, %v2489_v37 }
0x338f   :  { %2502 = vadd.xlane.f32.xlu0 %v2501_v18 }
0x341a   :  { %v2493_v19 = vpop.xlane.xlu1 %2492 }
0x341b   :  { %v2494_v20 = vrot.slane %v2493_v19, 4 }
0x341c   :  { %v2503_v21 = vpop.xlane.xlu0 %2502 }
0x341d   :  { %v2495_v22 = vadd.f32 %v2494_v20, %v2493_v19  ;;  %v2504_v23 = vrot.slane %v2503_v21, 4 }
0x341f   :  { %v2496_v24 = vrot.slane %v2495_v22, 2  ;;  %v2505_v25 = vadd.f32 %v2504_v23, %v2503_v21 }
0x3421   :  { %v2506_v26 = vrot.slane %v2505_v25, 2  ;;  %v2497_v27 = vadd.f32 %v2496_v24, %v2495_v22 }
0x3423   :  { %v2498_v28 = vrot.slane %v2497_v27, 1  ;;  %v2507_v30 = vadd.f32 %v2506_v26, %v2505_v25 }
0x3425   :  { %v2499_v31 = vadd.f32 %v2498_v28, %v2497_v27  ;;  %v2508_v32 = vrot.slane %v2507_v30, 1 }
0x3427   :  { %4043 = vpush %v2499_v31  ;;  %v2509_v35 = vadd.f32 %v2508_v32, %v2507_v30 }
0x3429   :  { %4045 = vpush %v2509_v35 }
0x3458   :  { %s4044_s6 = spop %4043 }
0x3459   :  { %s2511_s7 = smul.f32 0.002232143, %s4044_s6 }
0x345a   :  { %s4046_s8 = spop %4045 }
0x345b   :  { %s2513_s9 = smul.f32 %s2511_s7, %s2511_s7  ;;  %v2516_v14 = vstv %s2511_s7 }
0x345c   :  { %s2512_s10 = smul.f32 0.002232143, %s4046_s8  ;;  %v2517_v56 = vsub.f32 %v2489_v37, %v2516_v14 }
0x345e   :  { %s2514_s11 = ssub.f32 %s2512_s10, %s2513_s9  ;;  %v2519_v39 = vmul.f32 %v2518_v38, %v2517_v56  ;;  %v2608_v56 = vstv %s3745_s15 }
0x3460   :  { %s2515_s12 = smax.f32 %s4391_s20, %s2514_s11 }
0x3461   :  { %s2520_s13 = sadd.f32 1e-05, %s2515_s12 }
0x3463   :  { %v2521_v36 = vstv %s2520_s13 }
0x3464   :  { %4272 = vrsqrt.f32 %v2521_v36 }
0x346e   :  { %v4273_v10 = vpop.eup %4272 }
0x346f   :  { %4047 = vpush %v4273_v10 }
0x34a0   :  { %s4048_s16 = spop %4047 }
0x34a1   :  { %v2524_v40 = vstv %s4048_s16  ;;  %s3746_s16 = sld [smem:[#allocation2 + $0xef]] }
0x34a2   :  { %v2525_v60 = vmul.f32 %v2524_v40, %v2519_v39 }
0x34a4   :  { %v2527_v42 = vadd.f32 %v2526_v41, %v2525_v60 }
0x34a6   :  { %v2528_v43 = vsel %vm2474_vm3, %v2527_v42, 0.0 }
0x34a7   :  { %v2529_v44 = vmul.f32 0.5, %v2528_v43  ;;  %v2616_v40 = vstv %s3746_s16 }
0x34a9   :  { %4274 = vtanh.f32 %v2529_v44 }
0x34b3   :  { %v4275_v45 = vpop.eup %4274 }
0x34b4   :  { %v2531_v46 = vmul.f32 0.5, %v4275_v45 }
0x34b6   :  { %v2532_v47 = vadd.f32 0.5, %v2531_v46 }
0x34b8   :  { %v4839_v48 = vmul.f32 %v2532_v47, %v2528_v43 }
0x34ba   :  { %2536 = vadd.xlane.f32.xlu1 %v4839_v48  ;;  %v2545_v49 = vmul.f32 %v4839_v48, %v4839_v48 }
0x34bc   :  { %2546 = vadd.xlane.f32.xlu0 %v2545_v49 }
0x3547   :  { %v2537_v50 = vpop.xlane.xlu1 %2536 }
0x3548   :  { %v2538_v51 = vrot.slane %v2537_v50, 4 }
0x3549   :  { %v2547_v54 = vpop.xlane.xlu0 %2546 }
0x354a   :  { %v2539_v29 = vadd.f32 %v2538_v51, %v2537_v50  ;;  %v2548_v55 = vrot.slane %v2547_v54, 4 }
0x354c   :  { %v2540_v33 = vrot.slane %v2539_v29, 2  ;;  %v2549_v58 = vadd.f32 %v2548_v55, %v2547_v54 }
0x354e   :  { %v2550_v59 = vrot.slane %v2549_v58, 2  ;;  %v2541_v34 = vadd.f32 %v2540_v33, %v2539_v29 }
0x3550   :  { %v2542_v61 = vrot.slane %v2541_v34, 1  ;;  %v2551_v17 = vadd.f32 %v2550_v59, %v2549_v58 }
0x3552   :  { %v2543_v62 = vadd.f32 %v2542_v61, %v2541_v34  ;;  %v2552_v63 = vrot.slane %v2551_v17, 1 }
0x3554   :  { %4049 = vpush %v2543_v62  ;;  %v2553_v0 = vadd.f32 %v2552_v63, %v2551_v17 }
0x3556   :  { %4051 = vpush %v2553_v0 }
0x3585   :  { %s4050_s17 = spop %4049 }
0x3586   :  { %s2555_s18 = smul.f32 0.002232143, %s4050_s17 }
0x3587   :  { %s4052_s19 = spop %4051 }
0x3588   :  { %s2557_s22 = smul.f32 %s2555_s18, %s2555_s18  ;;  %v2560_v3 = vstv %s2555_s18  ;;  %s3747_s18 = sld [smem:[#allocation2 + $0xf0]] }
0x3589   :  { %s2556_s2 = smul.f32 0.002232143, %s4052_s19  ;;  %v2561_v4 = vsub.f32 %v4839_v48, %v2560_v3  ;;  %s3749_s19 = sld [smem:[#allocation2 + $0xf2]] }
0x358b   :  { %s2558_s26 = ssub.f32 %s2556_s2, %s2557_s22  ;;  %v2563_v6 = vmul.f32 %v2562_v5, %v2561_v4  ;;  %s3748_s22 = sld [smem:[#allocation2 + $0xf1]] }
0x358c   :  { %s3750_s2 = sld [smem:[#allocation2 + $0xf3]] }
0x358d   :  { %s2559_s27 = smax.f32 %s4391_s20, %s2558_s26  ;;  %s3751_s26 = sld [smem:[#allocation2 + $0xf4]] }
0x358e   :  { %s2564_s28 = sadd.f32 1e-05, %s2559_s27  ;;  %v2634_v50 = vstv %s3747_s18  ;;  %s3752_s27 = sld [smem:[#allocation2 + $0xf5]] }
0x358f   :  { %v2630_v49 = vstv %s3749_s19 }
0x3590   :  { %v2565_v1 = vstv %s2564_s28 }
0x3591   :  { %4276 = vrsqrt.f32 %v2565_v1  ;;  %v2639_v51 = vstv %s3748_s22 }
0x3592   :  { %v2644_v58 = vstv %s3750_s2 }
0x3593   :  { %v2649_v63 = vstv %s3751_s26  ;;  %s3757_s26 = sld [smem:[#allocation2 + $0xfa]] }
0x3594   :  { %v2652_v3 = vstv %s3752_s27  ;;  %s3758_s27 = sld [smem:[#allocation2 + $0xfb]] }
0x359b   :  { %v4277_v2 = vpop.eup %4276 }
0x359c   :  { %4053 = vpush %v4277_v2 }
0x35cd   :  { %s4054_s6 = spop %4053 }
0x35ce   :  { %v2568_v7 = vstv %s4054_s6 }
0x35cf   :  { %v2569_v11 = vmul.f32 %v2568_v7, %v2563_v6 }
0x35d1   :  { %v2571_v12 = vadd.f32 %v2570_v8, %v2569_v11 }
0x35d3   :  { %v2572_v52 = vsel %vm2474_vm3, %v2571_v12, 0.0 }
0x35d4   :  { %v2575_v53 = vmul.f32 %v2574_v13, %v2572_v52 }
0x35d6   :  { %v2578_v16 = vadd.f32 %v2577_v15, %v2575_v53 }
0x35d8   :  { %v2579_v57 = vsel %vm2474_vm3, %v2578_v16, 0.0 }
0x35d9   :  { %2582 = vadd.xlane.f32.xlu1 %v2579_v57  ;;  %v2591_v37 = vmul.f32 %v2579_v57, %v2579_v57 }
0x35db   :  { %2592 = vadd.xlane.f32.xlu0 %v2591_v37 }
0x3666   :  { %v2583_v18 = vpop.xlane.xlu1 %2582 }
0x3667   :  { %v2584_v19 = vrot.slane %v2583_v18, 4 }
0x3668   :  { %v2593_v20 = vpop.xlane.xlu0 %2592 }
0x3669   :  { %v2585_v21 = vadd.f32 %v2584_v19, %v2583_v18  ;;  %v2594_v22 = vrot.slane %v2593_v20, 4 }
0x366b   :  { %v2586_v23 = vrot.slane %v2585_v21, 2  ;;  %v2595_v24 = vadd.f32 %v2594_v22, %v2593_v20 }
0x366d   :  { %v2596_v25 = vrot.slane %v2595_v24, 2  ;;  %v2587_v26 = vadd.f32 %v2586_v23, %v2585_v21 }
0x366f   :  { %v2588_v27 = vrot.slane %v2587_v26, 1  ;;  %v2597_v28 = vadd.f32 %v2596_v25, %v2595_v24 }
0x3671   :  { %v2589_v30 = vadd.f32 %v2588_v27, %v2587_v26  ;;  %v2598_v31 = vrot.slane %v2597_v28, 1 }
0x3673   :  { %4055 = vpush %v2589_v30  ;;  %v2599_v32 = vadd.f32 %v2598_v31, %v2597_v28 }
0x3675   :  { %4057 = vpush %v2599_v32 }
0x36a4   :  { %s4056_s7 = spop %4055 }
0x36a5   :  { %s2601_s8 = smul.f32 0.002232143, %s4056_s7 }
0x36a6   :  { %s4058_s9 = spop %4057 }
0x36a7   :  { %s2603_s10 = smul.f32 %s2601_s8, %s2601_s8  ;;  %v2606_v10 = vstv %s2601_s8 }
0x36a8   :  { %s2602_s11 = smul.f32 0.002232143, %s4058_s9  ;;  %v2607_v14 = vsub.f32 %v2579_v57, %v2606_v10  ;;  %s3753_s9 = sld [smem:[#allocation2 + $0xf6]] }
0x36aa   :  { %s2604_s12 = ssub.f32 %s2602_s11, %s2603_s10  ;;  %v2609_v38 = vmul.f32 %v2608_v56, %v2607_v14  ;;  %s3754_s10 = sld [smem:[#allocation2 + $0xf7]] }
0x36ac   :  { %s2605_s13 = smax.f32 %s4391_s20, %s2604_s12  ;;  %s3755_s12 = sld [smem:[#allocation2 + $0xf8]] }
0x36ad   :  { %s2610_s14 = sadd.f32 1e-05, %s2605_s13  ;;  %s3756_s13 = sld [smem:[#allocation2 + $0xf9]] }
0x36ae   :  { %v2683_v26 = vstv %s3753_s9  ;;  %s3766_s9 = sld [smem:[#allocation2 + $0x15d]] }
0x36af   :  { %v2611_v35 = vstv %s2610_s14 }
0x36b0   :  { %4278 = vrsqrt.f32 %v2611_v35  ;;  %v2691_v30 = vstv %s3754_s10 }
0x36ba   :  { %v4279_v36 = vpop.eup %4278 }
0x36bb   :  { %4059 = vpush %v4279_v36 }
0x36ec   :  { %s4060_s17 = spop %4059 }
0x36ed   :  { %v2614_v39 = vstv %s4060_s17 }
0x36ee   :  { %v2615_v41 = vmul.f32 %v2614_v39, %v2609_v38  ;;  %v2700_v38 = vstv %s3755_s12 }
0x36f0   :  { %v2617_v60 = vadd.f32 %v2616_v40, %v2615_v41  ;;  %v2703_v40 = vstv %s3756_s13 }
0x36f2   :  { %v2618_v42 = vsel %vm2474_vm3, %v2617_v60, 0.0 }
0x36f3   :  { %v2619_v43 = vmul.f32 0.5, %v2618_v42 }
0x36f5   :  { %4280 = vtanh.f32 %v2619_v43 }
0x36ff   :  { %v4281_v44 = vpop.eup %4280 }
0x3700   :  { %v2621_v45 = vmul.f32 0.5, %v4281_v44 }
0x3702   :  { %v2622_v46 = vadd.f32 0.5, %v2621_v45 }
0x3704   :  { %v2623_v47 = vmul.f32 %v2622_v46, %v2618_v42 }
0x3706   :  { %2637 = vrot.lane.b32.xlu0 %v2623_v47, %s4390_s21  ;;  %2632 = vrot.lane.b32.xlu1 %v2623_v47, %s4392_s23  ;;  %v2631_v55 = vmul.f32 %v2630_v49, %v2623_v47 }
0x370a   :  { %2642 = vrot.lane.b32.xlu1 %v2623_v47, %s4393_s24 }
0x370e   :  { %2647 = vrot.lane.b32.xlu1 %v2623_v47, %s4394_s25 }
0x3778   :  { %v2638_v54 = vpop.permute.xlu0 %2637  ;;  %v2633_v29 = vpop.permute.xlu1 %2632 }
0x3779   :  { %v2635_v33 = vmul.f32 %v2634_v50, %v2633_v29  ;;  %v2640_v59 = vmul.f32 %v2639_v51, %v2638_v54 }
0x377b   :  { %v2636_v34 = vadd.f32 %v2635_v33, %v2631_v55 }
0x377c   :  { %v2643_v61 = vpop.permute.xlu1 %2642 }
0x377d   :  { %v2641_v17 = vadd.f32 %v2640_v59, %v2636_v34  ;;  %v2645_v62 = vmul.f32 %v2644_v58, %v2643_v61 }
0x377f   :  { %v2646_v1 = vadd.f32 %v2645_v62, %v2641_v17 }
0x3780   :  { %v2648_v0 = vpop.permute.xlu1 %2647 }
0x3781   :  { %v2650_v2 = vmul.f32 %v2649_v63, %v2648_v0  ;;  %v2734_v0 = vstv %s3757_s26  ;;  %s3770_s26 = sld [smem:[#allocation2 + $0x161]] }
0x3783   :  { %v2651_v4 = vadd.f32 %v2650_v2, %v2646_v1 }
0x3785   :  { %v2653_v5 = vadd.f32 %v2652_v3, %v2651_v4  ;;  %v2742_v3 = vstv %s3758_s27  ;;  %s3771_s27 = sld [smem:[#allocation2 + $0x162]] }
0x3787   :  { %v2654_v6 = vsel %vm2474_vm3, %v2653_v5, 0.0 }
0x3788   :  { %2657 = vadd.xlane.f32.xlu0 %v2654_v6  ;;  %v2666_v7 = vmul.f32 %v2654_v6, %v2654_v6 }
0x378a   :  { %2667 = vadd.xlane.f32.xlu1 %v2666_v7 }
0x3815   :  { %v2658_v8 = vpop.xlane.xlu0 %2657 }
0x3816   :  { %v2659_v11 = vrot.slane %v2658_v8, 4 }
0x3817   :  { %v2668_v12 = vpop.xlane.xlu1 %2667 }
0x3818   :  { %v2660_v13 = vadd.f32 %v2659_v11, %v2658_v8  ;;  %v2669_v52 = vrot.slane %v2668_v12, 4 }
0x381a   :  { %v2661_v15 = vrot.slane %v2660_v13, 2  ;;  %v2670_v53 = vadd.f32 %v2669_v52, %v2668_v12 }
0x381c   :  { %v2671_v16 = vrot.slane %v2670_v53, 2  ;;  %v2662_v57 = vadd.f32 %v2661_v15, %v2660_v13 }
0x381e   :  { %v2663_v37 = vrot.slane %v2662_v57, 1  ;;  %v2672_v18 = vadd.f32 %v2671_v16, %v2670_v53 }
0x3820   :  { %v2664_v19 = vadd.f32 %v2663_v37, %v2662_v57  ;;  %v2673_v20 = vrot.slane %v2672_v18, 1 }
0x3822   :  { %4061 = vpush %v2664_v19  ;;  %v2674_v21 = vadd.f32 %v2673_v20, %v2672_v18 }
0x3824   :  { %4063 = vpush %v2674_v21 }
0x3853   :  { %s4062_s28 = spop %4061 }
0x3854   :  { %s2676_s0 = smul.f32 0.002232143, %s4062_s28 }
0x3855   :  { %s4064_s29 = spop %4063 }
0x3856   :  { %s2678_s30 = smul.f32 %s2676_s0, %s2676_s0  ;;  %v2681_v24 = vstv %s2676_s0  ;;  %s3759_s0 = sld [smem:[#allocation2 + $0x156]] }
0x3857   :  { %s2677_s5 = smul.f32 0.002232143, %s4064_s29  ;;  %v2682_v25 = vsub.f32 %v2654_v6, %v2681_v24  ;;  %s3761_s29 = sld [smem:[#allocation2 + $0x158]] }
0x3859   :  { %s2679_s6 = ssub.f32 %s2677_s5, %s2678_s30  ;;  %v2684_v27 = vmul.f32 %v2683_v26, %v2682_v25  ;;  %s3760_s30 = sld [smem:[#allocation2 + $0x157]] }
0x385a   :  { %s3762_s5 = sld [smem:[#allocation2 + $0x159]] }
0x385b   :  { %s2680_s7 = smax.f32 %s4391_s20, %s2679_s6  ;;  %s3763_s6 = sld [smem:[#allocation2 + $0x15a]] }
0x385c   :  { %s2685_s8 = sadd.f32 1e-05, %s2680_s7  ;;  %v2757_v12 = vstv %s3759_s0  ;;  %s3764_s7 = sld [smem:[#allocation2 + $0x15b]] }
0x385d   :  { %v2753_v11 = vstv %s3761_s29  ;;  %s3775_s0 = sld [smem:[#allocation2 + $0x165]]  ;;  %s3776_s29 = sld [smem:[#allocation2 + $0x167]] }
0x385e   :  { %v2686_v22 = vstv %s2685_s8  ;;  %s3765_s8 = sld [smem:[#allocation2 + $0x15c]] }
0x385f   :  { %4282 = vrsqrt.f32 %v2686_v22 }
0x3860   :  { %v2767_v16 = vstv %s3762_s5  ;;  %s3774_s5 = sld [smem:[#allocation2 + $0x166]] }
0x3861   :  { %v2772_v21 = vstv %s3763_s6 }
0x3862   :  { %v2775_v25 = vstv %s3764_s7 }
0x3869   :  { %v4283_v23 = vpop.eup %4282 }
0x386a   :  { %4065 = vpush %v4283_v23 }
0x389b   :  { %s4066_s11 = spop %4065 }
0x389c   :  { %v2689_v28 = vstv %s4066_s11 }
0x389d   :  { %v2690_v31 = vmul.f32 %v2689_v28, %v2684_v27  ;;  %v2779_v28 = vstv %s3765_s8  ;;  %s3778_s8 = sld [smem:[#allocation2 + $0x87]] }
0x389f   :  { %v2692_v32 = vadd.f32 %v2691_v30, %v2690_v31  ;;  %v2782_v31 = vstv %s3766_s9  ;;  %s3781_s9 = sld [smem:[#allocation2 + $0x89]] }
0x38a1   :  { %v2693_v35 = vsel %vm2474_vm3, %v2692_v32, 0.0 }
0x38a2   :  { %v2694_v36 = vmul.f32 0.5, %v2693_v35 }
0x38a4   :  { %4284 = vtanh.f32 %v2694_v36 }
0x38ae   :  { %v4285_v10 = vpop.eup %4284 }
0x38af   :  { %v2696_v14 = vmul.f32 0.5, %v4285_v10 }
0x38b1   :  { %v2697_v56 = vadd.f32 0.5, %v2696_v14 }
0x38b3   :  { %v2698_v39 = vmul.f32 %v2697_v56, %v2693_v35 }
0x38b5   :  { %v2701_v41 = vmul.f32 %v2700_v38, %v2698_v39 }
0x38b7   :  { %v2704_v60 = vadd.f32 %v2703_v40, %v2701_v41 }
0x38b9   :  { %v2705_v42 = vsel %vm2474_vm3, %v2704_v60, 0.0 }
0x38ba   :  { %2708 = vadd.xlane.f32.xlu0 %v2705_v42  ;;  %v2717_v43 = vmul.f32 %v2705_v42, %v2705_v42 }
0x38be   :  { %2718 = vadd.xlane.f32.xlu0 %v2717_v43 }
0x3947   :  { %v2709_v44 = vpop.xlane.xlu0 %2708 }
0x3948   :  { %v2710_v45 = vrot.slane %v2709_v44, 4 }
0x394a   :  { %v2711_v46 = vadd.f32 %v2710_v45, %v2709_v44 }
0x394b   :  { %v2719_v47 = vpop.xlane.xlu0 %2718 }
0x394c   :  { %v2712_v49 = vrot.slane %v2711_v46, 2  ;;  %v2720_v50 = vrot.slane %v2719_v47, 4 }
0x394e   :  { %v2721_v51 = vadd.f32 %v2720_v50, %v2719_v47  ;;  %v2713_v54 = vadd.f32 %v2712_v49, %v2711_v46 }
0x3950   :  { %v2722_v29 = vrot.slane %v2721_v51, 2  ;;  %v2714_v55 = vrot.slane %v2713_v54, 1 }
0x3952   :  { %v2715_v33 = vadd.f32 %v2714_v55, %v2713_v54  ;;  %v2723_v58 = vadd.f32 %v2722_v29, %v2721_v51 }
0x3954   :  { %4067 = vpush %v2715_v33  ;;  %v2724_v59 = vrot.slane %v2723_v58, 1 }
0x3956   :  { %v2725_v34 = vadd.f32 %v2724_v59, %v2723_v58 }
0x3958   :  { %4069 = vpush %v2725_v34 }
0x3985   :  { %s4068_s14 = spop %4067 }
0x3986   :  { %s2727_s15 = smul.f32 0.002232143, %s4068_s14 }
0x3988   :  { %s2729_s16 = smul.f32 %s2727_s15, %s2727_s15  ;;  %v2732_v62 = vstv %s2727_s15 }
0x3989   :  { %s4070_s17 = spop %4069  ;;  %v2733_v63 = vsub.f32 %v2705_v42, %v2732_v62 }
0x398a   :  { %s2728_s18 = smul.f32 0.002232143, %s4070_s17 }
0x398b   :  { %v2735_v1 = vmul.f32 %v2734_v0, %v2733_v63 }
0x398c   :  { %s2730_s19 = ssub.f32 %s2728_s18, %s2729_s16  ;;  %s3767_s18 = sld [smem:[#allocation2 + $0x15e]] }
0x398e   :  { %s2731_s22 = smax.f32 %s4391_s20, %s2730_s19  ;;  %s3768_s19 = sld [smem:[#allocation2 + $0x15f]] }
0x398f   :  { %s2736_s2 = sadd.f32 1e-05, %s2731_s22 }
0x3991   :  { %v2737_v61 = vstv %s2736_s2  ;;  %s3769_s2 = sld [smem:[#allocation2 + $0x160]] }
0x3992   :  { %4286 = vrsqrt.f32 %v2737_v61  ;;  %v2813_v55 = vstv %s3767_s18  ;;  %s3786_s18 = sld [smem:[#allocation2 + $0x91]] }
0x3994   :  { %v2821_v59 = vstv %s3768_s19  ;;  %s3791_s19 = sld [smem:[#allocation2 + $0x94]] }
0x399c   :  { %v4287_v17 = vpop.eup %4286 }
0x399d   :  { %4071 = vpush %v4287_v17 }
0x39ce   :  { %s4072_s28 = spop %4071 }
0x39cf   :  { %v2740_v2 = vstv %s4072_s28  ;;  %s3772_s28 = sld [smem:[#allocation2 + $0x163]] }
0x39d0   :  { %v2741_v4 = vmul.f32 %v2740_v2, %v2735_v1 }
0x39d2   :  { %v2743_v5 = vadd.f32 %v2742_v3, %v2741_v4  ;;  %v2833_v3 = vstv %s3770_s26  ;;  %v2837_v4 = vstv %s3769_s2  ;;  %s3790_s2 = sld [smem:[#allocation2 + $0x93]]  ;;  %s3793_s26 = sld [smem:[#allocation2 + $0x95]] }
0x39d4   :  { %v2744_v6 = vsel %vm2474_vm3, %v2743_v5, 0.0  ;;  %v2842_v5 = vstv %s3771_s27  ;;  %s3795_s27 = sld [smem:[#allocation2 + $0x98]] }
0x39d5   :  { %v2745_v7 = vmul.f32 0.1, %v2744_v6 }
0x39d7   :  { %v4868_v8 = vadd.f32 %v2745_v7, %v4839_v48  ;;  %v2762_v48 = vstv %s3760_s30  ;;  %s3773_s30 = sld [smem:[#allocation2 + $0x164]] }
0x39d9   :  { %2760 = vrot.lane.b32.xlu0 %v4868_v8, %s4390_s21  ;;  %2755 = vrot.lane.b32.xlu1 %v4868_v8, %s4392_s23  ;;  %v2754_v15 = vmul.f32 %v2753_v11, %v4868_v8 }
0x39dd   :  { %2765 = vrot.lane.b32.xlu1 %v4868_v8, %s4393_s24 }
0x39e1   :  { %2770 = vrot.lane.b32.xlu1 %v4868_v8, %s4394_s25 }
0x3a4b   :  { %v4878_v13 = vpop.permute.xlu0 %2760  ;;  %v2756_v52 = vpop.permute.xlu1 %2755 }
0x3a4c   :  { %v2758_v53 = vmul.f32 %v2757_v12, %v2756_v52  ;;  %v2763_v57 = vmul.f32 %v2762_v48, %v4878_v13 }
0x3a4e   :  { %v2759_v37 = vadd.f32 %v2758_v53, %v2754_v15  ;;  %v2845_v15 = vstv %s3772_s28  ;;  %s3792_s28 = sld [smem:[#allocation2 + $0x97]] }
0x3a4f   :  { %v2766_v18 = vpop.permute.xlu1 %2765 }
0x3a50   :  { %v2764_v19 = vadd.f32 %v2763_v57, %v2759_v37  ;;  %v2768_v20 = vmul.f32 %v2767_v16, %v2766_v18 }
0x3a52   :  { %v2769_v23 = vadd.f32 %v2768_v20, %v2764_v19 }
0x3a53   :  { %v2771_v22 = vpop.permute.xlu1 %2770 }
0x3a54   :  { %v2773_v24 = vmul.f32 %v2772_v21, %v2771_v22 }
0x3a56   :  { %v2774_v26 = vadd.f32 %v2773_v24, %v2769_v23  ;;  %v2862_v23 = vstv %s3775_s0 }
0x3a58   :  { %v2776_v27 = vadd.f32 %v2775_v25, %v2774_v26  ;;  %v2865_v25 = vstv %s3776_s29 }
0x3a5a   :  { %v2777_v30 = vsel %vm2474_vm3, %v2776_v27, 0.0 }
0x3a5b   :  { %v2780_v32 = vmul.f32 %v2779_v28, %v2777_v30 }
0x3a5d   :  { %v2783_v35 = vadd.f32 %v2782_v31, %v2780_v32  ;;  %v2856_v31 = vstv %s3773_s30 }
0x3a5f   :  { %v2784_v36 = vsel %vm2474_vm3, %v2783_v35, 0.0  ;;  %v3777_v35 = vld [vmem:[%s5012_s1 + $0x20] sm:$0xff]  ;;  %s3785_s1 = sld [smem:[#allocation2 + $0x8e]] }
0x3a60   :  { %2787 = vadd.xlane.f32.xlu0 %v2784_v36  ;;  %v2796_v10 = vmul.f32 %v2784_v36, %v2784_v36 }
0x3a62   :  { %2797 = vadd.xlane.f32.xlu1 %v2796_v10 }
0x3aed   :  { %v2788_v14 = vpop.xlane.xlu0 %2787 }
0x3aee   :  { %v2789_v56 = vrot.slane %v2788_v14, 4 }
0x3aef   :  { %v2798_v38 = vpop.xlane.xlu1 %2797 }
0x3af0   :  { %v2790_v39 = vadd.f32 %v2789_v56, %v2788_v14  ;;  %v2799_v40 = vrot.slane %v2798_v38, 4 }
0x3af2   :  { %v2791_v41 = vrot.slane %v2790_v39, 2  ;;  %v2800_v60 = vadd.f32 %v2799_v40, %v2798_v38  ;;  %v2890_v40 = vstv %s3781_s9 }
0x3af4   :  { %v2801_v42 = vrot.slane %v2800_v60, 2  ;;  %v2792_v43 = vadd.f32 %v2791_v41, %v2790_v39  ;;  %v2879_v39 = vstv %s3778_s8 }
0x3af6   :  { %v2793_v44 = vrot.slane %v2792_v43, 1  ;;  %v2802_v45 = vadd.f32 %v2801_v42, %v2800_v60 }
0x3af8   :  { %v2794_v46 = vadd.f32 %v2793_v44, %v2792_v43  ;;  %v2803_v47 = vrot.slane %v2802_v45, 1  ;;  %v2880_v43 = vmul.f32 %v2879_v39, %v4878_v13  ;;  %v2891_v44 = vmul.f32 %v2890_v40, %v4878_v13 }
0x3af9   :  { %v2909_v13 = vstv %s3785_s1 }
0x3afa   :  { %4073 = vpush %v2794_v46  ;;  %v2804_v49 = vadd.f32 %v2803_v47, %v2802_v45 }
0x3afc   :  { %4075 = vpush %v2804_v49 }
0x3b2b   :  { %s4074_s10 = spop %4073 }
0x3b2c   :  { %s2806_s11 = smul.f32 0.002232143, %s4074_s10  ;;  %s3779_s10 = sld [smem:[#allocation2 + $0x88]] }
0x3b2d   :  { %s4076_s12 = spop %4075 }
0x3b2e   :  { %s2808_s13 = smul.f32 %s2806_s11, %s2806_s11  ;;  %v2811_v54 = vstv %s2806_s11  ;;  %s3782_s11 = sld [smem:[#allocation2 + $0x8a]] }
0x3b2f   :  { %s2807_s14 = smul.f32 0.002232143, %s4076_s12  ;;  %v2812_v29 = vsub.f32 %v2784_v36, %v2811_v54  ;;  %s3783_s12 = sld [smem:[#allocation2 + $0x8c]] }
0x3b31   :  { %s2809_s15 = ssub.f32 %s2807_s14, %s2808_s13  ;;  %v2814_v33 = vmul.f32 %v2813_v55, %v2812_v29  ;;  %s3780_s13 = sld [smem:[#allocation2 + $0x8b]] }
0x3b32   :  { %v2882_v41 = vstv %s3779_s10  ;;  %s3788_s14 = sld [smem:[#allocation2 + $0x90]]  ;;  %s3796_s10 = sld [smem:[#allocation2 + $0x99]] }
0x3b33   :  { %s2810_s16 = smax.f32 %s4391_s20, %s2809_s15  ;;  %s3784_s15 = sld [smem:[#allocation2 + $0x8d]] }
0x3b34   :  { %s2815_s17 = sadd.f32 1e-05, %s2810_s16  ;;  %v2893_v60 = vstv %s3782_s11  ;;  %s3787_s16 = sld [smem:[#allocation2 + $0x8f]] }
0x3b35   :  { %v2897_v47 = vstv %s3783_s12  ;;  %s3797_s11 = sld [smem:[#allocation2 + $0x9b]] }
0x3b36   :  { %v2816_v50 = vstv %s2815_s17  ;;  %s3789_s17 = sld [smem:[#allocation2 + $0x92]] }
0x3b37   :  { %4288 = vrsqrt.f32 %v2816_v50  ;;  %v2886_v49 = vstv %s3780_s13 }
0x3b41   :  { %v4289_v51 = vpop.eup %4288 }
0x3b42   :  { %4077 = vpush %v4289_v51 }
0x3b73   :  { %s4078_s22 = spop %4077 }
0x3b74   :  { %v2819_v58 = vstv %s4078_s22  ;;  %s3794_s22 = sld [smem:[#allocation2 + $0x96]] }
0x3b75   :  { %v2820_v34 = vmul.f32 %v2819_v58, %v2814_v33  ;;  %v2920_v58 = vstv %s3788_s14 }
0x3b77   :  { %v2822_v61 = vadd.f32 %v2821_v59, %v2820_v34  ;;  %v2906_v59 = vstv %s3784_s15  ;;  %v2917_v34 = vstv %s3787_s16 }
0x3b79   :  { %v2823_v17 = vsel %vm2474_vm3, %v2822_v61, 0.0 }
0x3b7a   :  { %v2824_v62 = vmul.f32 0.5, %v2823_v17 }
0x3b7c   :  { %4290 = vtanh.f32 %v2824_v62 }
0x3b86   :  { %v4291_v63 = vpop.eup %4290 }
0x3b87   :  { %v2826_v0 = vmul.f32 0.5, %v4291_v63 }
0x3b89   :  { %v2827_v1 = vadd.f32 0.5, %v2826_v0 }
0x3b8b   :  { %v2828_v2 = vmul.f32 %v2827_v1, %v2823_v17 }
0x3b8d   :  { %2840 = vrot.lane.b32.xlu1 %v2828_v2, %s4393_s24  ;;  %2835 = vrot.lane.b32.xlu0 %v2828_v2, %s4390_s21  ;;  %v2834_v11 = vmul.f32 %v2833_v3, %v2828_v2  ;;  %v2924_v2 = vstv %s3789_s17  ;;  %v2913_v3 = vstv %s3786_s18 }
0x3bff   :  { %v2841_v6 = vpop.permute.xlu1 %2840  ;;  %v2836_v7 = vpop.permute.xlu0 %2835 }
0x3c00   :  { %v2838_v12 = vmul.f32 %v2837_v4, %v2836_v7  ;;  %v2843_v48 = vmul.f32 %v2842_v5, %v2841_v6 }
0x3c02   :  { %v2839_v52 = vadd.f32 %v2838_v12, %v2834_v11 }
0x3c04   :  { %v2844_v53 = vadd.f32 %v2843_v48, %v2839_v52  ;;  %v2936_v48 = vstv %s3791_s19  ;;  %v2947_v52 = vstv %s3794_s22  ;;  %s3798_s22 = sld [smem:[#allocation2 + $0x9a]] }
0x3c06   :  { %v2846_v16 = vadd.f32 %v2845_v15, %v2844_v53  ;;  %v2933_v15 = vstv %s3790_s2  ;;  %v2944_v53 = vstv %s3793_s26  ;;  %s3799_s2 = sld [smem:[#allocation2 + $0x9c]] }
0x3c08   :  { %v2847_v57 = vsel %vm2474_vm3, %v2846_v16, 0.0 }
0x3c09   :  { %v2848_v37 = vmul.f32 0.1, %v2847_v57 }
0x3c0b   :  { %v2849_v18 = vadd.f32 %v2848_v37, %v4868_v8  ;;  %v2859_v8 = vstv %s3774_s5 }
0x3c0d   :  { %v2850_v19 = vmul.f32 0.5, %v2849_v18 }
0x3c0f   :  { %4292 = vtanh.f32 %v2850_v19 }
0x3c19   :  { %v4293_v20 = vpop.eup %4292 }
0x3c1a   :  { %v2852_v21 = vmul.f32 0.5, %v4293_v20 }
0x3c1c   :  { %v2853_v22 = vadd.f32 0.5, %v2852_v21  ;;  %v2951_v21 = vstv %s3795_s27  ;;  %s3800_s27 = sld [smem:[#allocation2 + $0x9d]] }
0x3c1e   :  { %v2854_v24 = vmul.f32 %v2853_v22, %v2849_v18  ;;  %v2940_v22 = vstv %s3792_s28  ;;  %s3801_s28 = sld [smem:[#allocation2 + $0x9e]] }
0x3c20   :  { %v2863_v26 = vmul.f32 %v2862_v23, %v2854_v24  ;;  %v2857_v32 = vmul.f32 %v2856_v31, %v2854_v24 }
0x3c22   :  { %v2866_v27 = vadd.f32 %v2865_v25, %v2863_v26  ;;  %v2860_v10 = vadd.f32 %v2859_v8, %v2857_v32 }
0x3c24   :  { %v2867_v28 = vmul.f32 0.5, %v2866_v27 }
0x3c26   :  { %v2868_v30 = vmul.f32 1.442695, %v2867_v28 }
0x3c28   :  { %4294 = vpow2.f32 %v2868_v30 }
0x3c32   :  { %v4295_v36 = vpop.eup %4294 }
0x3c33   :  { %v2872_v14 = vmul.f32 %v4295_v36, %v3777_v35 }
0x3c35   :  { %v2873_v56 = vadd.f32 %v2872_v14, %v2860_v10 }
0x3c37   :  { %v2874_v38 = vsel %vm2474_vm3, %v2873_v56, 0.0 }
0x3c38   :  { %2876 = vrot.lane.b32.xlu0 %v2874_v38, %s4390_s21 }
0x3caa   :  { %v2877_v42 = vpop.permute.xlu0 %2876 }
0x3cab   :  { %v2883_v45 = vmul.f32 %v2882_v41, %v2877_v42  ;;  %v2894_v46 = vmul.f32 %v2893_v60, %v2877_v42 }
0x3cad   :  { %v2884_v50 = vadd.f32 %v2883_v45, %v2880_v43  ;;  %v2895_v51 = vadd.f32 %v2894_v46, %v2891_v44 }
0x3caf   :  { %v2898_v54 = vadd.f32 %v2897_v47, %v2895_v51  ;;  %v2887_v29 = vadd.f32 %v2886_v49, %v2884_v50 }
0x3cb1   :  { %v2899_v55 = vsel %vm2875_vm4, %v2898_v54, 0.0  ;;  %v2888_v33 = vsel %vm2875_vm4, %v2887_v29, 0.0 }
0x3cb2   :  { %2903 = vrot.lane.b32.xlu0 %v2899_v55, %s4390_s21  ;;  %2901 = vrot.lane.b32.xlu1 %v2888_v33, %s4390_s21 }
0x3d24   :  { %v2904_v61 = vpop.permute.xlu0 %2903  ;;  %v2902_v17 = vpop.permute.xlu1 %2901 }
0x3d25   :  { %v2910_v62 = vmul.f32 %v2909_v13, %v2904_v61  ;;  %v2921_v63 = vmul.f32 %v2920_v58, %v2904_v61  ;;  %v2907_v0 = vmul.f32 %v2906_v59, %v2902_v17  ;;  %v2918_v1 = vmul.f32 %v2917_v34, %v2902_v17 }
0x3d27   :  { %v2911_v4 = vadd.f32 %v2910_v62, %v2907_v0  ;;  %v2922_v5 = vadd.f32 %v2921_v63, %v2918_v1  ;;  %v2982_v63 = vstv %s3796_s10 }
0x3d29   :  { %v2925_v6 = vadd.f32 %v2924_v2, %v2922_v5  ;;  %v2914_v7 = vadd.f32 %v2913_v3, %v2911_v4  ;;  %v2990_v2 = vstv %s3797_s11  ;;  %s3803_s11 = sld [smem:[#allocation2 + $0xa0]] }
0x3d2b   :  { %v2926_v11 = vsel %vm2900_vm5, %v2925_v6, 0.0  ;;  %v2915_v12 = vsel %vm2900_vm5, %v2914_v7, 0.0 }
0x3d2c   :  { %2930 = vrot.lane.b32.xlu0 %v2926_v11, %s4390_s21  ;;  %2928 = vrot.lane.b32.xlu1 %v2915_v12, %s4390_s21 }
0x3d9e   :  { %v2931_v16 = vpop.permute.xlu0 %2930  ;;  %v2929_v57 = vpop.permute.xlu1 %2928 }
0x3d9f   :  { %v2937_v37 = vmul.f32 %v2936_v48, %v2931_v16  ;;  %v2948_v18 = vmul.f32 %v2947_v52, %v2931_v16  ;;  %v2934_v19 = vmul.f32 %v2933_v15, %v2929_v57  ;;  %v2945_v20 = vmul.f32 %v2944_v53, %v2929_v57 }
0x3da0   :  { %v3026_v57 = vstv %s3798_s22 }
0x3da1   :  { %v2938_v23 = vadd.f32 %v2937_v37, %v2934_v19  ;;  %v2949_v24 = vadd.f32 %v2948_v18, %v2945_v20  ;;  %v3034_v19 = vstv %s3799_s2  ;;  %s3805_s2 = sld [smem:[#allocation2 + $0xfc]] }
0x3da3   :  { %v2952_v25 = vadd.f32 %v2951_v21, %v2949_v24  ;;  %v2941_v26 = vadd.f32 %v2940_v22, %v2938_v23 }
0x3da5   :  { %v2942_v27 = vsel %vm2927_vm6, %v2941_v26, 0.0  ;;  %v4913_v28 = vsel %vm2927_vm6, %v2952_v25, 0.0 }
0x3da6   :  { %2956 = vadd.xlane.f32.xlu1 %v2942_v27  ;;  %v2965_v30 = vmul.f32 %v2942_v27, %v2942_v27  ;;  %v3009_v31 = vmul.f32 %v4913_v28, %v4913_v28 }
0x3da8   :  { %2966 = vadd.xlane.f32.xlu0 %v2965_v30 }
0x3daa   :  { %3010 = vadd.xlane.f32.xlu1 %v3009_v31  ;;  %v3051_v31 = vstv %s3801_s28  ;;  %s3808_s28 = sld [smem:[#allocation2 + $0xff]] }
0x3dac   :  { %3000 = vadd.xlane.f32.xlu0 %v4913_v28 }
0x3e33   :  { %v2957_v32 = vpop.xlane.xlu1 %2956 }
0x3e34   :  { %v2958_v8 = vrot.slane %v2957_v32, 4 }
0x3e35   :  { %v2967_v35 = vpop.xlane.xlu0 %2966 }
0x3e36   :  { %v2959_v36 = vadd.f32 %v2958_v8, %v2957_v32  ;;  %v2968_v10 = vrot.slane %v2967_v35, 4 }
0x3e37   :  { %v3011_v45 = vpop.xlane.xlu1 %3010 }
0x3e38   :  { %v2960_v14 = vrot.slane %v2959_v36, 2  ;;  %v2969_v56 = vadd.f32 %v2968_v10, %v2967_v35  ;;  %v3012_v47 = vrot.slane %v3011_v45, 4 }
0x3e39   :  { %v3001_v44 = vpop.xlane.xlu0 %3000 }
0x3e3a   :  { %v2970_v38 = vrot.slane %v2969_v56, 2  ;;  %v2961_v39 = vadd.f32 %v2960_v14, %v2959_v36  ;;  %v3002_v46 = vrot.slane %v3001_v44, 4  ;;  %v3013_v50 = vadd.f32 %v3012_v47, %v3011_v45 }
0x3e3c   :  { %v2962_v40 = vrot.slane %v2961_v39, 1  ;;  %v2971_v41 = vadd.f32 %v2970_v38, %v2969_v56  ;;  %v3003_v49 = vadd.f32 %v3002_v46, %v3001_v44  ;;  %v3014_v54 = vrot.slane %v3013_v50, 2 }
0x3e3e   :  { %v2963_v60 = vadd.f32 %v2962_v40, %v2961_v39  ;;  %v2972_v42 = vrot.slane %v2971_v41, 1  ;;  %v3004_v51 = vrot.slane %v3003_v49, 2  ;;  %v3015_v33 = vadd.f32 %v3014_v54, %v3013_v50 }
0x3e40   :  { %4079 = vpush %v2963_v60  ;;  %v2973_v43 = vadd.f32 %v2972_v42, %v2971_v41  ;;  %v3005_v55 = vadd.f32 %v3004_v51, %v3003_v49  ;;  %v3016_v58 = vrot.slane %v3015_v33, 1 }
0x3e42   :  { %4081 = vpush %v2973_v43  ;;  %v3006_v13 = vrot.slane %v3005_v55, 1  ;;  %v3017_v61 = vadd.f32 %v3016_v58, %v3015_v33  ;;  %v3086_v58 = vstv %s3803_s11  ;;  %s3809_s11 = sld [smem:[#allocation2 + $0x100]] }
0x3e44   :  { %v3007_v34 = vadd.f32 %v3006_v13, %v3005_v55 }
0x3e71   :  { %s4080_s0 = spop %4079 }
0x3e72   :  { %s2975_s29 = smul.f32 0.002016129, %s4080_s0  ;;  %s3802_s0 = sld [smem:[#allocation2 + $0x9f]] }
0x3e73   :  { %s4082_s30 = spop %4081 }
0x3e74   :  { %s2977_s5 = smul.f32 %s2975_s29, %s2975_s29  ;;  %v2980_v17 = vstv %s2975_s29 }
0x3e75   :  { %s2976_s6 = smul.f32 0.002016129, %s4082_s30  ;;  %v2981_v62 = vsub.f32 %v2942_v27, %v2980_v17 }
0x3e77   :  { %s2978_s7 = ssub.f32 %s2976_s6, %s2977_s5  ;;  %v2983_v0 = vmul.f32 %v2982_v63, %v2981_v62 }
0x3e78   :  { %v3055_v36 = vstv %s3802_s0 }
0x3e79   :  { %s2979_s8 = smax.f32 %s4391_s20, %s2978_s7 }
0x3e7a   :  { %s2984_s9 = sadd.f32 1e-05, %s2979_s8 }
0x3e7c   :  { %v2985_v29 = vstv %s2984_s9 }
0x3e7d   :  { %4296 = vrsqrt.f32 %v2985_v29 }
0x3e87   :  { %v4297_v59 = vpop.eup %4296 }
0x3e88   :  { %4083 = vpush %v4297_v59 }
0x3e89   :  { %4085 = vpush %v3007_v34 }
0x3e8a   :  { %4087 = vpush %v3017_v61 }
0x3eb9   :  { %s4084_s12 = spop %4083 }
0x3eba   :  { %v2988_v1 = vstv %s4084_s12  ;;  %s4086_s13 = spop %4085  ;;  %s3804_s12 = sld [smem:[#allocation2 + $0xa1]] }
0x3ebb   :  { %v2989_v3 = vmul.f32 %v2988_v1, %v2983_v0  ;;  %s3019_s1 = smul.f32 0.002016129, %s4086_s13  ;;  %s4088_s14 = spop %4087 }
0x3ebc   :  { %s3020_s15 = smul.f32 0.002016129, %s4088_s14 }
0x3ebd   :  { %v2991_v4 = vadd.f32 %v2990_v2, %v2989_v3  ;;  %s3021_s16 = smul.f32 %s3019_s1, %s3019_s1  ;;  %v3024_v53 = vstv %s3019_s1 }
0x3ebe   :  { %v3025_v16 = vsub.f32 %v4913_v28, %v3024_v53  ;;  %v3048_v28 = vstv %s3800_s27  ;;  %s3807_s27 = sld [smem:[#allocation2 + $0xfe]] }
0x3ebf   :  { %v2992_v5 = vsel %vm2927_vm6, %v2991_v4, 0.0  ;;  %s3022_s17 = ssub.f32 %s3020_s15, %s3021_s16 }
0x3ec0   :  { %v2993_v6 = vmul.f32 0.5, %v2992_v5  ;;  %v3027_v37 = vmul.f32 %v3026_v57, %v3025_v16  ;;  %v3094_v61 = vstv %s3804_s12  ;;  %s3810_s12 = sld [smem:[#allocation2 + $0x101]] }
0x3ec1   :  { %s3023_s18 = smax.f32 %s4391_s20, %s3022_s17 }
0x3ec2   :  { %4298 = vtanh.f32 %v2993_v6  ;;  %s3028_s19 = sadd.f32 1e-05, %s3023_s18 }
0x3ec4   :  { %v3029_v7 = vstv %s3028_s19 }
0x3ec5   :  { %4300 = vrsqrt.f32 %v3029_v7 }
0x3ecc   :  { %v4299_v11 = vpop.eup %4298 }
0x3ecd   :  { %v2995_v12 = vmul.f32 0.5, %v4299_v11 }
0x3ecf   :  { %v4301_v48 = vpop.eup %4300  ;;  %v2996_v52 = vadd.f32 0.5, %v2995_v12 }
0x3ed0   :  { %4089 = vpush %v4301_v48 }
0x3ed1   :  { %v2997_v15 = vmul.f32 %v2996_v52, %v2992_v5 }
0x3ed3   :  { %3043 = vrot.lane.b32.xlu0 %v2997_v15, %s4390_s21 }
0x3f01   :  { %s4090_s26 = spop %4089 }
0x3f02   :  { %v3032_v18 = vstv %s4090_s26  ;;  %s3806_s26 = sld [smem:[#allocation2 + $0xfd]] }
0x3f03   :  { %v3033_v20 = vmul.f32 %v3032_v18, %v3027_v37 }
0x3f05   :  { %v3035_v21 = vadd.f32 %v3034_v19, %v3033_v20 }
0x3f07   :  { %v3036_v22 = vsel %vm2927_vm6, %v3035_v21, 0.0 }
0x3f08   :  { %v3037_v23 = vmul.f32 0.5, %v3036_v22 }
0x3f0a   :  { %4302 = vtanh.f32 %v3037_v23 }
0x3f14   :  { %v4303_v24 = vpop.eup %4302 }
0x3f15   :  { %v3039_v25 = vmul.f32 0.5, %v4303_v24 }
0x3f17   :  { %v3040_v26 = vadd.f32 0.5, %v3039_v25  ;;  %v3130_v25 = vstv %s3805_s2 }
0x3f19   :  { %v3041_v27 = vmul.f32 %v3040_v26, %v3036_v22 }
0x3f1b   :  { %3045 = vrot.lane.b32.xlu1 %v3041_v27, %s4390_s21 }
0x3f45   :  { %v3044_v30 = vpop.permute.xlu0 %3043 }
0x3f46   :  { %v3049_v8 = vmul.f32 %v3048_v28, %v3044_v30  ;;  %v3138_v28 = vstv %s3806_s26 }
0x3f8d   :  { %v3046_v32 = vpop.permute.xlu1 %3045 }
0x3f8e   :  { %v3052_v35 = vmul.f32 %v3051_v31, %v3046_v32  ;;  %v3142_v32 = vstv %s3807_s27 }
0x3f90   :  { %v3053_v10 = vadd.f32 %v3052_v35, %v3049_v8  ;;  %v3145_v35 = vstv %s3808_s28 }
0x3f92   :  { %v3056_v14 = vadd.f32 %v3055_v36, %v3053_v10 }
0x3f94   :  { %v3057_v56 = vsel %vm3042_vm7, %v3056_v14, 0.0 }
0x3f95   :  { %3060 = vadd.xlane.f32.xlu1 %v3057_v56  ;;  %v3069_v38 = vmul.f32 %v3057_v56, %v3057_v56 }
0x3f97   :  { %3070 = vadd.xlane.f32.xlu0 %v3069_v38 }
0x4022   :  { %v3061_v39 = vpop.xlane.xlu1 %3060 }
0x4023   :  { %v3062_v40 = vrot.slane %v3061_v39, 4 }
0x4024   :  { %v3071_v41 = vpop.xlane.xlu0 %3070 }
0x4025   :  { %v3063_v60 = vadd.f32 %v3062_v40, %v3061_v39  ;;  %v3072_v42 = vrot.slane %v3071_v41, 4 }
0x4027   :  { %v3064_v43 = vrot.slane %v3063_v60, 2  ;;  %v3073_v44 = vadd.f32 %v3072_v42, %v3071_v41 }
0x4029   :  { %v3074_v45 = vrot.slane %v3073_v44, 2  ;;  %v3065_v46 = vadd.f32 %v3064_v43, %v3063_v60 }
0x402b   :  { %v3066_v47 = vrot.slane %v3065_v46, 1  ;;  %v3075_v49 = vadd.f32 %v3074_v45, %v3073_v44 }
0x402d   :  { %v3067_v50 = vadd.f32 %v3066_v47, %v3065_v46  ;;  %v3076_v51 = vrot.slane %v3075_v49, 1 }
0x402f   :  { %4091 = vpush %v3067_v50  ;;  %v3077_v54 = vadd.f32 %v3076_v51, %v3075_v49 }
0x4031   :  { %4093 = vpush %v3077_v54 }
0x4060   :  { %s4092_s29 = spop %4091 }
0x4061   :  { %s3079_s30 = smul.f32 0.001953125, %s4092_s29 }
0x4062   :  { %s4094_s5 = spop %4093 }
0x4063   :  { %s3081_s6 = smul.f32 %s3079_s30, %s3079_s30  ;;  %v3084_v33 = vstv %s3079_s30 }
0x4064   :  { %s3080_s7 = smul.f32 0.001953125, %s4094_s5  ;;  %v3085_v13 = vsub.f32 %v3057_v56, %v3084_v33 }
0x4066   :  { %s3082_s8 = ssub.f32 %s3080_s7, %s3081_s6  ;;  %v3087_v59 = vmul.f32 %v3086_v58, %v3085_v13  ;;  %v3176_v13 = vstv %s3809_s11 }
0x4068   :  { %s3083_s9 = smax.f32 %s4391_s20, %s3082_s8 }
0x4069   :  { %s3088_s10 = sadd.f32 1e-05, %s3083_s9 }
0x406b   :  { %v3089_v29 = vstv %s3088_s10 }
0x406c   :  { %4304 = vrsqrt.f32 %v3089_v29 }
0x4076   :  { %v4305_v55 = vpop.eup %4304 }
0x4077   :  { %4095 = vpush %v4305_v55 }
0x40a8   :  { %s4096_s13 = spop %4095 }
0x40a9   :  { %v3092_v34 = vstv %s4096_s13 }
0x40aa   :  { %v3093_v17 = vmul.f32 %v3092_v34, %v3087_v59  ;;  %v3184_v34 = vstv %s3810_s12 }
0x40ac   :  { %v3095_v62 = vadd.f32 %v3094_v61, %v3093_v17 }
0x40ae   :  { %v3096_v63 = vsel %vm3042_vm7, %v3095_v62, 0.0 }
0x40af   :  { %v3097_v0 = vmul.f32 0.5, %v3096_v63 }
0x40b1   :  { %4306 = vtanh.f32 %v3097_v0 }
0x40bb   :  { %v4307_v1 = vpop.eup %4306 }
0x40bc   :  { %v3099_v2 = vmul.f32 0.5, %v4307_v1 }
0x40be   :  { %v3100_v3 = vadd.f32 0.5, %v3099_v2 }
0x40c0   :  { %v4933_v4 = vmul.f32 %v3100_v3, %v3096_v63 }
0x40c2   :  { %3104 = vadd.xlane.f32.xlu0 %v4933_v4  ;;  %v3113_v5 = vmul.f32 %v4933_v4, %v4933_v4 }
0x40c4   :  { %3114 = vadd.xlane.f32.xlu1 %v3113_v5 }
0x414f   :  { %v3105_v6 = vpop.xlane.xlu0 %3104 }
0x4150   :  { %v3106_v7 = vrot.slane %v3105_v6, 4 }
0x4151   :  { %v3115_v11 = vpop.xlane.xlu1 %3114 }
0x4152   :  { %v3107_v12 = vadd.f32 %v3106_v7, %v3105_v6  ;;  %v3116_v48 = vrot.slane %v3115_v11, 4 }
0x4154   :  { %v3108_v52 = vrot.slane %v3107_v12, 2  ;;  %v3117_v15 = vadd.f32 %v3116_v48, %v3115_v11 }
0x4156   :  { %v3109_v53 = vadd.f32 %v3108_v52, %v3107_v12  ;;  %v3118_v16 = vrot.slane %v3117_v15, 2 }
0x4158   :  { %v3110_v57 = vrot.slane %v3109_v53, 1  ;;  %v3119_v37 = vadd.f32 %v3118_v16, %v3117_v15 }
0x415a   :  { %v3120_v18 = vrot.slane %v3119_v37, 1  ;;  %v3111_v19 = vadd.f32 %v3110_v57, %v3109_v53 }
0x415c   :  { %4097 = vpush %v3111_v19  ;;  %v3121_v20 = vadd.f32 %v3120_v18, %v3119_v37 }
0x415e   :  { %4099 = vpush %v3121_v20 }
0x418d   :  { %s4098_s1 = spop %4097 }
0x418e   :  { %s3123_s14 = smul.f32 0.001953125, %s4098_s1  ;;  %s3811_s1 = sld [smem:[#allocation2 + $0x102]] }
0x418f   :  { %s4100_s15 = spop %4099 }
0x4190   :  { %s3125_s16 = smul.f32 %s3123_s14, %s3123_s14  ;;  %v3128_v23 = vstv %s3123_s14  ;;  %s3813_s14 = sld [smem:[#allocation2 + $0x104]] }
0x4191   :  { %s3124_s17 = smul.f32 0.001953125, %s4100_s15  ;;  %v3129_v24 = vsub.f32 %v4933_v4, %v3128_v23  ;;  %s3812_s15 = sld [smem:[#allocation2 + $0x103]] }
0x4193   :  { %s3126_s18 = ssub.f32 %s3124_s17, %s3125_s16  ;;  %v3131_v26 = vmul.f32 %v3130_v25, %v3129_v24  ;;  %s3814_s16 = sld [smem:[#allocation2 + $0x105]] }
0x4194   :  { %s3815_s17 = sld [smem:[#allocation2 + $0x106]]  ;;  %v3202_v6 = vstv %s3811_s1 }
0x4195   :  { %s3127_s19 = smax.f32 %s4391_s20, %s3126_s18  ;;  %s3816_s18 = sld [smem:[#allocation2 + $0x107]] }
0x4196   :  { %s3132_s22 = sadd.f32 1e-05, %s3127_s19  ;;  %v3198_v5 = vstv %s3813_s14 }
0x4197   :  { %v3207_v7 = vstv %s3812_s15 }
0x4198   :  { %v3133_v21 = vstv %s3132_s22 }
0x4199   :  { %4308 = vrsqrt.f32 %v3133_v21  ;;  %v3212_v15 = vstv %s3814_s16  ;;  %s3821_s16 = sld [smem:[#allocation2 + $0x10c]] }
0x419a   :  { %v3217_v37 = vstv %s3815_s17  ;;  %s3822_s17 = sld [smem:[#allocation2 + $0x10d]] }
0x419b   :  { %v3220_v23 = vstv %s3816_s18 }
0x41a3   :  { %v4309_v22 = vpop.eup %4308 }
0x41a4   :  { %4101 = vpush %v4309_v22 }
0x41d5   :  { %s4102_s0 = spop %4101 }
0x41d6   :  { %v3136_v27 = vstv %s4102_s0 }
0x41d7   :  { %v3137_v30 = vmul.f32 %v3136_v27, %v3131_v26 }
0x41d9   :  { %v3139_v31 = vadd.f32 %v3138_v28, %v3137_v30 }
0x41db   :  { %v3140_v8 = vsel %vm3042_vm7, %v3139_v31, 0.0 }
0x41dc   :  { %v3143_v36 = vmul.f32 %v3142_v32, %v3140_v8 }
0x41de   :  { %v3146_v10 = vadd.f32 %v3145_v35, %v3143_v36 }
0x41e0   :  { %v3147_v14 = vsel %vm3042_vm7, %v3146_v10, 0.0 }
0x41e1   :  { %3150 = vadd.xlane.f32.xlu0 %v3147_v14  ;;  %v3159_v56 = vmul.f32 %v3147_v14, %v3147_v14 }
0x41e3   :  { %3160 = vadd.xlane.f32.xlu1 %v3159_v56 }
0x426e   :  { %v3151_v38 = vpop.xlane.xlu0 %3150 }
0x426f   :  { %v3152_v39 = vrot.slane %v3151_v38, 4 }
0x4270   :  { %v3161_v40 = vpop.xlane.xlu1 %3160 }
0x4271   :  { %v3153_v41 = vadd.f32 %v3152_v39, %v3151_v38  ;;  %v3162_v60 = vrot.slane %v3161_v40, 4 }
0x4273   :  { %v3154_v42 = vrot.slane %v3153_v41, 2  ;;  %v3163_v43 = vadd.f32 %v3162_v60, %v3161_v40 }
0x4275   :  { %v3155_v44 = vadd.f32 %v3154_v42, %v3153_v41  ;;  %v3164_v45 = vrot.slane %v3163_v43, 2 }
0x4277   :  { %v3156_v46 = vrot.slane %v3155_v44, 1  ;;  %v3165_v47 = vadd.f32 %v3164_v45, %v3163_v43 }
0x4279   :  { %v3166_v49 = vrot.slane %v3165_v47, 1  ;;  %v3157_v50 = vadd.f32 %v3156_v46, %v3155_v44 }
0x427b   :  { %4103 = vpush %v3157_v50  ;;  %v3167_v51 = vadd.f32 %v3166_v49, %v3165_v47 }
0x427d   :  { %4105 = vpush %v3167_v51 }
0x42ac   :  { %s4104_s29 = spop %4103 }
0x42ad   :  { %s3169_s30 = smul.f32 0.001953125, %s4104_s29 }
0x42ae   :  { %s4106_s5 = spop %4105 }
0x42af   :  { %s3171_s6 = smul.f32 %s3169_s30, %s3169_s30  ;;  %v3174_v55 = vstv %s3169_s30  ;;  %s3817_s30 = sld [smem:[#allocation2 + $0x108]] }
0x42b0   :  { %s3170_s7 = smul.f32 0.001953125, %s4106_s5  ;;  %v3175_v33 = vsub.f32 %v3147_v14, %v3174_v55  ;;  %s3818_s5 = sld [smem:[#allocation2 + $0x109]] }
0x42b2   :  { %s3172_s8 = ssub.f32 %s3170_s7, %s3171_s6  ;;  %v3177_v58 = vmul.f32 %v3176_v13, %v3175_v33  ;;  %s3819_s7 = sld [smem:[#allocation2 + $0x10a]] }
0x42b4   :  { %s3173_s9 = smax.f32 %s4391_s20, %s3172_s8  ;;  %s3820_s8 = sld [smem:[#allocation2 + $0x10b]] }
0x42b5   :  { %s3178_s10 = sadd.f32 1e-05, %s3173_s9  ;;  %v3251_v45 = vstv %s3817_s30 }
0x42b6   :  { %v3259_v49 = vstv %s3818_s5 }
0x42b7   :  { %v3179_v54 = vstv %s3178_s10 }
0x42b8   :  { %4310 = vrsqrt.f32 %v3179_v54 }
0x42c2   :  { %v4311_v29 = vpop.eup %4310 }
0x42c3   :  { %4107 = vpush %v4311_v29 }
0x42f4   :  { %s4108_s13 = spop %4107 }
0x42f5   :  { %v3182_v59 = vstv %s4108_s13 }
0x42f6   :  { %v3183_v61 = vmul.f32 %v3182_v59, %v3177_v58  ;;  %v3268_v58 = vstv %s3819_s7 }
0x42f8   :  { %v3185_v17 = vadd.f32 %v3184_v34, %v3183_v61  ;;  %v3271_v34 = vstv %s3820_s8 }
0x42fa   :  { %v3186_v62 = vsel %vm3042_vm7, %v3185_v17, 0.0 }
0x42fb   :  { %v3187_v63 = vmul.f32 0.5, %v3186_v62 }
0x42fd   :  { %4312 = vtanh.f32 %v3187_v63 }
0x4307   :  { %v4313_v0 = vpop.eup %4312 }
0x4308   :  { %v3189_v1 = vmul.f32 0.5, %v4313_v0 }
0x430a   :  { %v3190_v2 = vadd.f32 0.5, %v3189_v1 }
0x430c   :  { %v3191_v3 = vmul.f32 %v3190_v2, %v3186_v62 }
0x430e   :  { %3205 = vrot.lane.b32.xlu1 %v3191_v3, %s4390_s21  ;;  %3200 = vrot.lane.b32.xlu0 %v3191_v3, %s4392_s23  ;;  %v3199_v48 = vmul.f32 %v3198_v5, %v3191_v3 }
0x4312   :  { %3210 = vrot.lane.b32.xlu1 %v3191_v3, %s4393_s24  ;;  %3215 = vrot.lane.b32.xlu0 %v3191_v3, %s4394_s25 }
0x4380   :  { %v3206_v11 = vpop.permute.xlu1 %3205  ;;  %v3201_v12 = vpop.permute.xlu0 %3200 }
0x4381   :  { %v3203_v52 = vmul.f32 %v3202_v6, %v3201_v12  ;;  %v3208_v53 = vmul.f32 %v3207_v7, %v3206_v11 }
0x4383   :  { %v3204_v16 = vadd.f32 %v3203_v52, %v3199_v48 }
0x4384   :  { %v3211_v57 = vpop.permute.xlu1 %3210  ;;  %v3216_v18 = vpop.permute.xlu0 %3215 }
0x4385   :  { %v3209_v19 = vadd.f32 %v3208_v53, %v3204_v16  ;;  %v3213_v20 = vmul.f32 %v3212_v15, %v3211_v57  ;;  %v3218_v22 = vmul.f32 %v3217_v37, %v3216_v18 }
0x4387   :  { %v3214_v21 = vadd.f32 %v3213_v20, %v3209_v19  ;;  %v3302_v20 = vstv %s3821_s16  ;;  %s3838_s16 = sld [smem:[#allocation2 + $0x177]] }
0x4389   :  { %v3219_v24 = vadd.f32 %v3218_v22, %v3214_v21 }
0x438b   :  { %v3221_v25 = vadd.f32 %v3220_v23, %v3219_v24  ;;  %v3310_v23 = vstv %s3822_s17 }
0x438d   :  { %v3222_v26 = vsel %vm3042_vm7, %v3221_v25, 0.0 }
0x438e   :  { %3225 = vadd.xlane.f32.xlu1 %v3222_v26  ;;  %v3234_v27 = vmul.f32 %v3222_v26, %v3222_v26 }
0x4390   :  { %3235 = vadd.xlane.f32.xlu0 %v3234_v27 }
0x441b   :  { %v3226_v28 = vpop.xlane.xlu1 %3225 }
0x441c   :  { %v3227_v30 = vrot.slane %v3226_v28, 4 }
0x441d   :  { %v3236_v31 = vpop.xlane.xlu0 %3235 }
0x441e   :  { %v3228_v32 = vadd.f32 %v3227_v30, %v3226_v28  ;;  %v3237_v8 = vrot.slane %v3236_v31, 4 }
0x4420   :  { %v3229_v35 = vrot.slane %v3228_v32, 2  ;;  %v3238_v36 = vadd.f32 %v3237_v8, %v3236_v31 }
0x4422   :  { %v3230_v10 = vadd.f32 %v3229_v35, %v3228_v32  ;;  %v3239_v14 = vrot.slane %v3238_v36, 2 }
0x4424   :  { %v3231_v56 = vrot.slane %v3230_v10, 1  ;;  %v3240_v38 = vadd.f32 %v3239_v14, %v3238_v36 }
0x4426   :  { %v3241_v39 = vrot.slane %v3240_v38, 1  ;;  %v3232_v40 = vadd.f32 %v3231_v56, %v3230_v10 }
0x4428   :  { %4109 = vpush %v3232_v40  ;;  %v3242_v41 = vadd.f32 %v3241_v39, %v3240_v38 }
0x442a   :  { %4111 = vpush %v3242_v41 }
0x4459   :  { %s4110_s19 = spop %4109 }
0x445a   :  { %s3244_s22 = smul.f32 0.001953125, %s4110_s19  ;;  %s3823_s19 = sld [smem:[#allocation2 + $0x168]] }
0x445b   :  { %s4112_s2 = spop %4111 }
0x445c   :  { %s3246_s26 = smul.f32 %s3244_s22, %s3244_s22  ;;  %v3249_v43 = vstv %s3244_s22  ;;  %s3825_s22 = sld [smem:[#allocation2 + $0x16a]] }
0x445d   :  { %s3245_s27 = smul.f32 0.001953125, %s4112_s2  ;;  %v3250_v44 = vsub.f32 %v3222_v26, %v3249_v43  ;;  %s3824_s2 = sld [smem:[#allocation2 + $0x169]] }
0x445f   :  { %s3247_s28 = ssub.f32 %s3245_s27, %s3246_s26  ;;  %v3252_v46 = vmul.f32 %v3251_v45, %v3250_v44  ;;  %s3826_s26 = sld [smem:[#allocation2 + $0x16b]] }
0x4460   :  { %s3827_s27 = sld [smem:[#allocation2 + $0x16c]] }
0x4461   :  { %s3248_s0 = smax.f32 %s4391_s20, %s3247_s28  ;;  %s3828_s28 = sld [smem:[#allocation2 + $0x16d]] }
0x4462   :  { %s3253_s29 = sadd.f32 1e-05, %s3248_s0  ;;  %v3321_v30 = vstv %s3825_s22 }
0x4463   :  { %v3330_v31 = vstv %s3824_s2 }
0x4464   :  { %v3254_v60 = vstv %s3253_s29 }
0x4465   :  { %4314 = vrsqrt.f32 %v3254_v60  ;;  %v3335_v10 = vstv %s3826_s26 }
0x4466   :  { %v3340_v39 = vstv %s3827_s27 }
0x4467   :  { %v3343_v44 = vstv %s3828_s28 }
0x446f   :  { %v4315_v42 = vpop.eup %4314 }
0x4470   :  { %4113 = vpush %v4315_v42 }
0x44a1   :  { %s4114_s6 = spop %4113 }
0x44a2   :  { %v3257_v47 = vstv %s4114_s6 }
0x44a3   :  { %v3258_v50 = vmul.f32 %v3257_v47, %v3252_v46 }
0x44a5   :  { %v3260_v51 = vadd.f32 %v3259_v49, %v3258_v50 }
0x44a7   :  { %v3261_v54 = vsel %vm3042_vm7, %v3260_v51, 0.0 }
0x44a8   :  { %v3262_v29 = vmul.f32 0.5, %v3261_v54 }
0x44aa   :  { %4316 = vtanh.f32 %v3262_v29 }
0x44b4   :  { %v4317_v55 = vpop.eup %4316 }
0x44b5   :  { %v3264_v33 = vmul.f32 0.5, %v4317_v55 }
0x44b7   :  { %v3265_v13 = vadd.f32 0.5, %v3264_v33 }
0x44b9   :  { %v3266_v59 = vmul.f32 %v3265_v13, %v3261_v54 }
0x44bb   :  { %v3269_v61 = vmul.f32 %v3268_v58, %v3266_v59 }
0x44bd   :  { %v3272_v17 = vadd.f32 %v3271_v34, %v3269_v61 }
0x44bf   :  { %v3273_v62 = vsel %vm3042_vm7, %v3272_v17, 0.0 }
0x44c0   :  { %3276 = vadd.xlane.f32.xlu0 %v3273_v62  ;;  %v3285_v63 = vmul.f32 %v3273_v62, %v3273_v62 }
0x44c2   :  { %3286 = vadd.xlane.f32.xlu1 %v3285_v63 }
0x454d   :  { %v3277_v0 = vpop.xlane.xlu0 %3276 }
0x454e   :  { %v3278_v1 = vrot.slane %v3277_v0, 4 }
0x454f   :  { %v3287_v2 = vpop.xlane.xlu1 %3286 }
0x4550   :  { %v3279_v3 = vadd.f32 %v3278_v1, %v3277_v0  ;;  %v3288_v5 = vrot.slane %v3287_v2, 4 }
0x4552   :  { %v3280_v6 = vrot.slane %v3279_v3, 2  ;;  %v3289_v7 = vadd.f32 %v3288_v5, %v3287_v2 }
0x4554   :  { %v3281_v11 = vadd.f32 %v3280_v6, %v3279_v3  ;;  %v3290_v12 = vrot.slane %v3289_v7, 2 }
0x4556   :  { %v3282_v48 = vrot.slane %v3281_v11, 1  ;;  %v3291_v52 = vadd.f32 %v3290_v12, %v3289_v7 }
0x4558   :  { %v3292_v15 = vrot.slane %v3291_v52, 1  ;;  %v3283_v53 = vadd.f32 %v3282_v48, %v3281_v11 }
0x455a   :  { %4115 = vpush %v3283_v53  ;;  %v3293_v16 = vadd.f32 %v3292_v15, %v3291_v52 }
0x455c   :  { %4117 = vpush %v3293_v16 }
0x458b   :  { %s4116_s9 = spop %4115 }
0x458c   :  { %s3295_s10 = smul.f32 0.001953125, %s4116_s9 }
0x458d   :  { %s4118_s11 = spop %4117 }
0x458e   :  { %s3297_s12 = smul.f32 %s3295_s10, %s3295_s10  ;;  %v3300_v18 = vstv %s3295_s10  ;;  %s3831_s10 = sld [smem:[#allocation2 + $0x170]] }
0x458f   :  { %s3296_s13 = smul.f32 0.001953125, %s4118_s11  ;;  %v3301_v19 = vsub.f32 %v3273_v62, %v3300_v18  ;;  %s3832_s11 = sld [smem:[#allocation2 + $0x171]] }
0x4591   :  { %s3298_s1 = ssub.f32 %s3296_s13, %s3297_s12  ;;  %v3303_v21 = vmul.f32 %v3302_v20, %v3301_v19  ;;  %s3834_s13 = sld [smem:[#allocation2 + $0x173]] }
0x4593   :  { %s3299_s14 = smax.f32 %s4391_s20, %s3298_s1  ;;  %s3835_s1 = sld [smem:[#allocation2 + $0x174]] }
0x4594   :  { %s3304_s15 = sadd.f32 1e-05, %s3299_s14  ;;  %v3381_v48 = vstv %s3831_s10  ;;  %s3836_s14 = sld [smem:[#allocation2 + $0x175]] }
0x4595   :  { %v3389_v53 = vstv %s3832_s11 }
0x4596   :  { %v3305_v57 = vstv %s3304_s15  ;;  %s3837_s15 = sld [smem:[#allocation2 + $0x176]] }
0x4597   :  { %4318 = vrsqrt.f32 %v3305_v57 }
0x45a1   :  { %v4319_v37 = vpop.eup %4318 }
0x45a2   :  { %4119 = vpush %v4319_v37 }
0x45d3   :  { %s4120_s18 = spop %4119 }
0x45d4   :  { %v3308_v22 = vstv %s4120_s18 }
0x45d5   :  { %v3309_v24 = vmul.f32 %v3308_v22, %v3303_v21 }
0x45d7   :  { %v3311_v25 = vadd.f32 %v3310_v23, %v3309_v24  ;;  %v3401_v23 = vstv %s3834_s13 }
0x45d9   :  { %v3312_v26 = vsel %vm3042_vm7, %v3311_v25, 0.0  ;;  %v3410_v25 = vstv %s3835_s1 }
0x45da   :  { %v3313_v27 = vmul.f32 0.1, %v3312_v26 }
0x45dc   :  { %v4962_v28 = vadd.f32 %v3313_v27, %v4933_v4  ;;  %v3325_v4 = vstv %s3823_s19 }
0x45de   :  { %3328 = vrot.lane.b32.xlu1 %v4962_v28, %s4390_s21  ;;  %3323 = vrot.lane.b32.xlu0 %v4962_v28, %s4392_s23  ;;  %v3322_v35 = vmul.f32 %v3321_v30, %v4962_v28  ;;  %s3829_s23 = sld [smem:[#allocation2 + $0x16e]] }
0x45e2   :  { %3333 = vrot.lane.b32.xlu1 %v4962_v28, %s4393_s24  ;;  %3338 = vrot.lane.b32.xlu0 %v4962_v28, %s4394_s25  ;;  %s3830_s25 = sld [smem:[#allocation2 + $0x16f]] }
0x45e4   :  { %v3347_v47 = vstv %s3829_s23 }
0x45e8   :  { %v3350_v50 = vstv %s3830_s25 }
0x4650   :  { %v3329_v32 = vpop.permute.xlu1 %3328  ;;  %v3324_v8 = vpop.permute.xlu0 %3323 }
0x4651   :  { %v3326_v36 = vmul.f32 %v3325_v4, %v3324_v8  ;;  %v3331_v14 = vmul.f32 %v3330_v31, %v3329_v32  ;;  %v3413_v8 = vstv %s3836_s14 }
0x4653   :  { %v3327_v56 = vadd.f32 %v3326_v36, %v3322_v35 }
0x4654   :  { %v3334_v38 = vpop.permute.xlu1 %3333  ;;  %v3339_v40 = vpop.permute.xlu0 %3338 }
0x4655   :  { %v3332_v41 = vadd.f32 %v3331_v14, %v3327_v56  ;;  %v3336_v60 = vmul.f32 %v3335_v10, %v3334_v38  ;;  %v3341_v43 = vmul.f32 %v3340_v39, %v3339_v40  ;;  %v3419_v56 = vstv %s3837_s15 }
0x4656   :  { %v3422_v39 = vstv %s3838_s16 }
0x4657   :  { %v3337_v42 = vadd.f32 %v3336_v60, %v3332_v41 }
0x4659   :  { %v3342_v45 = vadd.f32 %v3341_v43, %v3337_v42 }
0x465b   :  { %v3344_v46 = vadd.f32 %v3343_v44, %v3342_v45 }
0x465d   :  { %v3345_v49 = vsel %vm3042_vm7, %v3344_v46, 0.0 }
0x465e   :  { %v3348_v51 = vmul.f32 %v3347_v47, %v3345_v49 }
0x4660   :  { %v3351_v54 = vadd.f32 %v3350_v50, %v3348_v51 }
0x4662   :  { %v3352_v29 = vsel %vm3042_vm7, %v3351_v54, 0.0 }
0x4663   :  { %3355 = vadd.xlane.f32.xlu1 %v3352_v29  ;;  %v3364_v55 = vmul.f32 %v3352_v29, %v3352_v29 }
0x4665   :  { %3365 = vadd.xlane.f32.xlu0 %v3364_v55 }
0x46f0   :  { %v3356_v33 = vpop.xlane.xlu1 %3355 }
0x46f1   :  { %v3357_v13 = vrot.slane %v3356_v33, 4 }
0x46f2   :  { %v3366_v58 = vpop.xlane.xlu0 %3365 }
0x46f3   :  { %v3358_v59 = vadd.f32 %v3357_v13, %v3356_v33  ;;  %v3367_v34 = vrot.slane %v3366_v58, 4 }
0x46f5   :  { %v3359_v61 = vrot.slane %v3358_v59, 2  ;;  %v3368_v17 = vadd.f32 %v3367_v34, %v3366_v58 }
0x46f7   :  { %v3360_v62 = vadd.f32 %v3359_v61, %v3358_v59  ;;  %v3369_v63 = vrot.slane %v3368_v17, 2 }
0x46f9   :  { %v3361_v0 = vrot.slane %v3360_v62, 1  ;;  %v3370_v1 = vadd.f32 %v3369_v63, %v3368_v17 }
0x46fb   :  { %v3371_v2 = vrot.slane %v3370_v1, 1  ;;  %v3362_v3 = vadd.f32 %v3361_v0, %v3360_v62 }
0x46fd   :  { %4121 = vpush %v3362_v3  ;;  %v3372_v5 = vadd.f32 %v3371_v2, %v3370_v1 }
0x46ff   :  { %4123 = vpush %v3372_v5 }
0x472e   :  { %s4122_s0 = spop %4121 }
0x472f   :  { %s3374_s29 = smul.f32 0.001953125, %s4122_s0 }
0x4730   :  { %s4124_s30 = spop %4123 }
0x4731   :  { %s3376_s5 = smul.f32 %s3374_s29, %s3374_s29  ;;  %v3379_v11 = vstv %s3374_s29 }
0x4732   :  { %s3375_s6 = smul.f32 0.001953125, %s4124_s30  ;;  %v3380_v12 = vsub.f32 %v3352_v29, %v3379_v11 }
0x4734   :  { %s3377_s7 = ssub.f32 %s3375_s6, %s3376_s5  ;;  %v3382_v52 = vmul.f32 %v3381_v48, %v3380_v12 }
0x4736   :  { %s3378_s8 = smax.f32 %s4391_s20, %s3377_s7  ;;  %s3833_s20 = sld [smem:[#allocation2 + $0x172]] }
0x4737   :  { %s3383_s9 = sadd.f32 1e-05, %s3378_s8 }
0x4739   :  { %v3384_v6 = vstv %s3383_s9 }
0x473a   :  { %4320 = vrsqrt.f32 %v3384_v6 }
0x473c   :  { %v3405_v24 = vstv %s3833_s20 }
0x4744   :  { %v4321_v7 = vpop.eup %4320 }
0x4745   :  { %4125 = vpush %v4321_v7 }
0x4776   :  { %s4126_s12 = spop %4125 }
0x4777   :  { %v3387_v15 = vstv %s4126_s12 }
0x4778   :  { %v3388_v16 = vmul.f32 %v3387_v15, %v3382_v52 }
0x477a   :  { %v3390_v57 = vadd.f32 %v3389_v53, %v3388_v16 }
0x477c   :  { %v3391_v37 = vsel %vm3042_vm7, %v3390_v57, 0.0 }
0x477d   :  { %v3392_v18 = vmul.f32 0.5, %v3391_v37 }
0x477f   :  { %4322 = vtanh.f32 %v3392_v18 }
0x4789   :  { %v4323_v19 = vpop.eup %4322 }
0x478a   :  { %v3394_v20 = vmul.f32 0.5, %v4323_v19 }
0x478c   :  { %v3395_v21 = vadd.f32 0.5, %v3394_v20 }
0x478e   :  { %v3396_v22 = vmul.f32 %v3395_v21, %v3391_v37 }
0x4790   :  { %3408 = vrot.lane.b32.xlu1 %v3396_v22, %s4393_s24  ;;  %3403 = vrot.lane.b32.xlu0 %v3396_v22, %s4390_s21  ;;  %v3402_v30 = vmul.f32 %v3401_v23, %v3396_v22  ;;  %s4395_s21 = smov [#allocation5]  }
0x4791   :  { %s3437_s24 = sshll.u32 %s4395_s21, 4  ;;  %s3438_s24 = int_to_ptr.vmem [resolvable:$true] %s3437_s24 }
0x4792   :  { %s4338_s17 = scalar_lea.vmem %s3438_s24, 128  ;;  %p4343_p6 = scmp.lt.s32.totalorder %s3438_s24, %s3438_s24 }
0x4793   :  { %p4339_p5 = scmp.ne.s32.totalorder %s3438_s24, %s4338_s17  ;;  %p4344_p7 = scmp.lt.s32.totalorder %s4338_s17, %s4338_s17 }
0x4795   :  { %p4345_p8 = por %p4344_p7, %p4343_p6 }
0x4797   :  { %p4346_p9 = pnand %p4345_p8, %p4339_p5 }
0x4802   :  { %v3409_v26 = vpop.permute.xlu1 %3408  ;;  %v3404_v27 = vpop.permute.xlu0 %3403 }
0x4803   :  { %v3406_v4 = vmul.f32 %v3405_v24, %v3404_v27  ;;  %v3411_v31 = vmul.f32 %v3410_v25, %v3409_v26 }
0x4805   :  { %v3407_v32 = vadd.f32 %v3406_v4, %v3402_v30 }
0x4807   :  { %v3412_v35 = vadd.f32 %v3411_v31, %v3407_v32 }
0x4809   :  { %v3414_v36 = vadd.f32 %v3413_v8, %v3412_v35 }
0x480b   :  { %v3415_v10 = vsel %vm3042_vm7, %v3414_v36, 0.0 }
0x480c   :  { %v3416_v14 = vmul.f32 0.1, %v3415_v10 }
0x480e   :  { %v3417_v38 = vadd.f32 %v3416_v14, %v4962_v28 }
0x4810   :  { %v3420_v40 = vmul.f32 %v3419_v56, %v3417_v38 }
0x4812   :  { %v3423_v41 = vadd.f32 %v3422_v39, %v3420_v40 }
0x4814   :  { %v3424_v60 = vsel %vm3042_vm7, %v3423_v41, 0.0 }
0x4815   :  { %3425 = vst [vmem:[#allocation5] sm:$0xff] %v3424_v60  ;;  %v3426_v42 = vmul.f32 0.5, %v3424_v60 }
0x4816   :  { %4349 = shalt.err (!%p4346_p9)
}
0x4817   :  { %s4350_s22 = scalar_lea.hbm %s5014_s3, 128 }
0x4818   :  { %p4351_p10 = scmp.ne.s32.totalorder %s5014_s3, %s4350_s22  ;;  %p4354_p11 = scmp.lt.u32.totalorder %s4350_s22, %s5014_s3 }
0x481a   :  { %p4356_p12 = pnand %p4354_p11, %p4351_p10 }
0x481c   :  { %4359 = shalt.err (!%p4356_p12)
}
0x481d   :  { %3440 = dma.vmem_to_hbm [thread:$0]  %s3438_s24, 128, %s5014_s3, [#allocation3]   ;;  %4324 = vtanh.f32 %v3426_v42 }
0x481e   :  { %s4396_s0 = smov [#allocation6]  }
0x481f   :  { %s3447_s29 = sshll.u32 %s4396_s0, 4  ;;  %s3448_s29 = int_to_ptr.vmem [resolvable:$true] %s3447_s29 }
0x4820   :  { %s4360_s30 = scalar_lea.vmem %s3448_s29, 128  ;;  %p4365_p0 = scmp.lt.s32.totalorder %s3448_s29, %s3448_s29 }
0x4821   :  { %p4361_p13 = scmp.ne.s32.totalorder %s3448_s29, %s4360_s30  ;;  %p4366_p1 = scmp.lt.s32.totalorder %s4360_s30, %s4360_s30 }
0x4823   :  { %p4367_p2 = por %p4366_p1, %p4365_p0 }
0x4825   :  { %p4368_p3 = pnand %p4367_p2, %p4361_p13 }
0x4827   :  { %v4325_v9 = vpop.eup %4324 }
0x4828   :  { %v3428_v28 = vmul.f32 0.5, %v4325_v9 }
0x482a   :  { %v3429_v43 = vadd.f32 0.5, %v3428_v28 }
0x482c   :  { %3430 = vst [vmem:[#allocation6] sm:$0xff] %v3429_v43 }
0x482d   :  { %4371 = shalt.err (!%p4368_p3)
}
0x482e   :  { %s4372_s7 = scalar_lea.hbm %s5015_s4, 128 }
0x482f   :  { %p4373_p4 = scmp.ne.s32.totalorder %s5015_s4, %s4372_s7  ;;  %p4376_p5 = scmp.lt.u32.totalorder %s4372_s7, %s5015_s4 }
0x4831   :  { %p4378_p6 = pnand %p4376_p5, %p4373_p4 }
0x4833   :  { %4381 = shalt.err (!%p4378_p6)
}
0x4834   :  { %3450 = dma.vmem_to_hbm [thread:$0]  %s3448_s29, 128, %s5015_s4, [#allocation7]  }
0x4835   :  { %4384 = dma.done.wait [#allocation3], 128  }
0x4836   :  { %4385 = vsyncadd [#allocation3], 4294967168 }
0x4837   :  { %4386 = dma.done.wait [#allocation7], 128  }
0x4838   :  { %4387 = vsyncadd [#allocation7], 4294967168 }
0x4839   :  { %3457 = vsyncpa [#allocation3], 1 }
0x483a   :  { %3458 = vsyncpa [#allocation7], 1 }
0x483b   :  { %3459 = vsyncpa [#allocation4], 1 }

</bundles_post_ra>
